<compile_context>
chip_gen: v5e
topology: v5e:2x2
jax: 0.10.0
libtpu: 0.0.40
codegen_flags: <defaults>
</compile_context>

<pallas_src>
import functools

import jax
import jax.numpy as jnp
import numpy as np
from jax.experimental import pallas as pl
from jax.experimental.pallas import tpu as pltpu


# ----------------------------------------------------------------------------
# Fused Pallas kernel (one image per grid step, padded flat layout throughout)
# ----------------------------------------------------------------------------
def _bottleneck_kernel(x_ref, w1_ref, w2_ref, b2_ref, w3_ref, b3_ref,
                       o_ref, y1p_ref, *, H, W, Cin):
    Wp = W + 2                      # padded image row stride
    HWp = H * Wp                    # output rows in padded layout (2 junk cols/row)

    # --- conv1 (1x1) + folded BN1 + ReLU, straight into the padded layout --------
    # Last input channel is the interior indicator; its w1 row is the BN1 bias, so
    # halo / slack rows of relu(x_pad @ w1_aug) are exactly 0 == conv2 zero padding.
    xb = x_ref[0].astype(jnp.bfloat16)                               # (Np, Cin+1)
    y1 = jnp.dot(xb, w1_ref[...], preferred_element_type=jnp.float32)
    y1p_ref[...] = jnp.maximum(y1, 0.0)                              # one aligned store

    # --- conv2 (3x3, pad=1) + folded BN2 + ReLU: 9 shifted contiguous matmuls ----
    # Output row q = y*Wp + x; tap (di, dj) reads the padded activation at the
    # static offset di*Wp + dj.  Accumulator seeded by tap 0 (no zero-fill).
    acc = jnp.dot(y1p_ref[0:HWp, :].astype(jnp.bfloat16), w2_ref[0],
                  preferred_element_type=jnp.float32)
    for k in range(1, 9):
        start = (k // 3) * Wp + (k % 3)
        acc = acc + jnp.dot(y1p_ref[start:start + HWp, :].astype(jnp.bfloat16),
                            w2_ref[k], preferred_element_type=jnp.float32)
    y2 = jnp.maximum(acc + b2_ref[...], 0.0).astype(jnp.bfloat16)    # (HWp, width)

    # --- conv3 (1x1) + folded BN3 + identity residual + ReLU ---------------------
    y3 = jnp.dot(y2, w3_ref[...], preferred_element_type=jnp.float32)
    res = x_ref[0, pl.ds(Wp + 1, HWp), pl.ds(0, Cin)]                # f32 identity
    o_ref[0] = jnp.maximum(y3 + b3_ref[...] + res, 0.0).astype(o_ref.dtype)


def _pick_vmem_limit(est_bytes):
    """Per-chip VMEM budget: ~85% of physical (128 MiB v5e/v6e, 64 MiB v7x)."""
    try:
        cap = int(pltpu.get_tpu_info().vmem_capacity_bytes)
    except Exception:
        cap = 64 * 2**20
    return int(min(int(0.85 * cap), max(32 * 2**20, 2 * est_bytes)))


def _fused_bottleneck_call(x_aug, w1, w2, b2, w3, b3, *, H, W,
                           single_buffer_weights=True):
    """x_aug: (B, Np, Cin+1) f32 padded-flat input (+indicator channel);
    weights bf16 (BN scales folded); b2/b3: (1, C) f32.  Returns (B, H*(W+2), outc) bf16."""
    B, Np, Cin1 = x_aug.shape
    Cin = Cin1 - 1
    width = w1.shape[1]
    outc = w3.shape[1]
    Wp = W + 2
    HWp = H * Wp
    assert Np == (H + 2) * Wp + 2

    weight_bytes = int(2 * (w1.size + w2.size + w3.size) + 4 * (b2.size + b3.size))
    flops = int(2 * B * (Np * Cin1 * width + HWp * (9 * width * width + width * outc)))
    bytes_accessed = int(4 * x_aug.size + 2 * B * HWp * outc + weight_bytes)

    # Rough per-step VMEM need: double-buffered x/out blocks, single-buffered
    # weights, padded f32 scratch, and the big live intermediates (y1/acc/y3/res).
    vmem_est = int(2 * Np * Cin1 * 4 + 2 * HWp * outc * 2 + weight_bytes
                   + 2 * Np * width * 4
                   + HWp * (6 * width + 4 * outc + 4 * Cin))

    wkw = dict(pipeline_mode=pl.Buffered(1)) if single_buffer_weights else {}
    in_specs = [
        pl.BlockSpec((1, Np, Cin1), lambda b: (b, 0, 0)),             # x (+ residual)
        pl.BlockSpec((Cin1, width), lambda b: (0, 0), **wkw),         # w1 (scale+bias folded)
        pl.BlockSpec((9, width, width), lambda b: (0, 0, 0), **wkw),  # w2 (scaled)
        pl.BlockSpec((1, width), lambda b: (0, 0), **wkw),            # b2
        pl.BlockSpec((width, outc), lambda b: (0, 0), **wkw),         # w3 (scaled)
        pl.BlockSpec((1, outc), lambda b: (0, 0), **wkw),             # b3
    ]

    kernel = functools.partial(_bottleneck_kernel, H=H, W=W, Cin=Cin)
    return pl.pallas_call(
        kernel,
        out_shape=jax.ShapeDtypeStruct((B, HWp, outc), jnp.bfloat16),
        grid_spec=pltpu.PrefetchScalarGridSpec(
            num_scalar_prefetch=0,
            grid=(B,),
            in_specs=in_specs,
            out_specs=pl.BlockSpec((1, HWp, outc), lambda b: (b, 0, 0)),
            scratch_shapes=[pltpu.VMEM((Np, width), jnp.float32)],
        ),
        compiler_params=pltpu.CompilerParams(
            dimension_semantics=("parallel",),
            vmem_limit_bytes=_pick_vmem_limit(vmem_est)),
        cost_estimate=pl.CostEstimate(flops=flops, transcendentals=0,
                                      bytes_accessed=bytes_accessed),
    )(x_aug, w1, w2, b2, w3, b3)


# ----------------------------------------------------------------------------
# Parameter setup & public forward (plain-JAX glue)
# ----------------------------------------------------------------------------
def init_params(key, inplanes, planes):
    """Deterministic synthetic parameters (torch layouts: conv weights OIHW)."""
    width = planes            # base_width=64, groups=1
    outc = planes * 4         # expansion = 4
    ks = jax.random.split(key, 15)

    def bn_fold(kg, kb, km, kv, c):
        gamma = 1.0 + 0.1 * jax.random.normal(kg, (c,), jnp.float32)
        beta = 0.1 * jax.random.normal(kb, (c,), jnp.float32)
        mean = 0.1 * jax.random.normal(km, (c,), jnp.float32)
        var = 1.0 + 0.1 * jnp.abs(jax.random.normal(kv, (c,), jnp.float32))
        scale = gamma / jnp.sqrt(var + 1e-5)
        bias = beta - mean * scale
        return scale, bias

    w1 = 0.1 * jax.random.normal(ks[0], (width, inplanes, 1, 1), jnp.float32)
    w2 = 0.1 * jax.random.normal(ks[1], (width, width, 3, 3), jnp.float32)
    w3 = 0.1 * jax.random.normal(ks[2], (outc, width, 1, 1), jnp.float32)
    s1, b1 = bn_fold(ks[3], ks[4], ks[5], ks[6], width)
    s2, b2 = bn_fold(ks[7], ks[8], ks[9], ks[10], width)
    s3, b3 = bn_fold(ks[11], ks[12], ks[13], ks[14], outc)
    return dict(w1=w1, w2=w2, w3=w3, s1=s1, b1=b1, s2=s2, b2=b2, s3=s3, b3=b3)


def _bottleneck_forward_impl(x_nchw, params, single_buffer_weights=True):
    """Bottleneck forward (if_dropout=False, downsample=None, stride=1)."""
    B, Cin, H, W = x_nchw.shape
    width = params["w1"].shape[0]
    outc = params["w3"].shape[0]
    assert Cin == outc, "identity residual requires inplanes == planes * expansion"
    Hp, Wp = H + 2, W + 2
    Np = Hp * Wp + 2

    # NCHW -> NHWC -> zero-padded flat layout (+2 slack rows for the last tap shift).
    x_nhwc = jnp.transpose(x_nchw, (0, 2, 3, 1))
    x_pad = jnp.pad(x_nhwc, ((0, 0), (1, 1), (1, 1), (0, 0))).reshape(B, Hp * Wp, Cin)
    x_pad = jnp.pad(x_pad, ((0, 0), (0, 2), (0, 0)))                       # (B, Np, Cin)

    # Interior-indicator channel (static constant): 1 on real pixels, 0 on halo/slack.
    rr = np.arange(Hp * Wp) // Wp
    cc = np.arange(Hp * Wp) % Wp
    ind = np.zeros((Np, 1), np.float32)
    ind[:Hp * Wp, 0] = ((rr >= 1) & (rr <= H) & (cc >= 1) & (cc <= W)).astype(np.float32)
    x_aug = jnp.concatenate(
        [x_pad, jnp.broadcast_to(jnp.asarray(ind), (B, Np, 1))], axis=-1)  # (B, Np, Cin+1)

    # torch OIHW weights -> matmul matrices, BN scales folded into the columns;
    # the conv1(+BN1) bias rides on the indicator-channel row of w1.
    w1m = params["w1"].reshape(width, Cin).T * params["s1"][None, :]
    w1_aug = jnp.concatenate([w1m, params["b1"][None, :]], axis=0).astype(jnp.bfloat16)
    w2m = (jnp.transpose(params["w2"], (2, 3, 1, 0)).reshape(9, width, width)
           * params["s2"][None, None, :]).astype(jnp.bfloat16)
    w3m = (params["w3"].reshape(outc, width).T * params["s3"][None, :]).astype(jnp.bfloat16)
    b2 = params["b2"].reshape(1, width).astype(jnp.float32)
    b3 = params["b3"].reshape(1, outc).astype(jnp.float32)

    out_flat = _fused_bottleneck_call(x_aug, w1_aug, w2m, b2, w3m, b3, H=H, W=W,
                                      single_buffer_weights=single_buffer_weights)
    # (B, H*Wp, outc) bf16 -> strip the 2 junk columns per row -> NCHW f32.
    out = out_flat.reshape(B, H, Wp, outc)[:, :, :W, :]
    return jnp.transpose(out, (0, 3, 1, 2)).astype(jnp.float32)


bottleneck_forward = jax.jit(_bottleneck_forward_impl,
                             static_argnames=("single_buffer_weights",))


# ----------------------------------------------------------------------------
# Plain-JAX reference (lax conv, NCHW/OIHW, f32) for the correctness check
# ----------------------------------------------------------------------------
def reference_forward(x, p):
    def conv(v, w, padding=0):
        return jax.lax.conv_general_dilated(
            v, w, (1, 1), [(padding, padding)] * 2,
            dimension_numbers=("NCHW", "OIHW", "NCHW"))

    def bn(v, scale, bias):
        return v * scale[None, :, None, None] + bias[None, :, None, None]

    out = jax.nn.relu(bn(conv(x, p["w1"]), p["s1"], p["b1"]))
    out = jax.nn.relu(bn(conv(out, p["w2"], padding=1), p["s2"], p["b2"]))
    out = bn(conv(out, p["w3"]), p["s3"], p["b3"]) + x
    return jax.nn.relu(out)


if __name__ == "__main__":
    key = jax.random.PRNGKey(0)
    k_p, k_x = jax.random.split(key)

    B, H, W = 2, 16, 16
    planes = 4
    inplanes = planes * 4  # residual path requires inplanes == planes * expansion

    params = init_params(k_p, inplanes, planes)
    x = jax.random.normal(k_x, (B, inplanes, H, W), jnp.float32)

    try:
        y = bottleneck_forward(x, params, single_buffer_weights=True)
        jax.block_until_ready(y)
    except Exception:
        # Fallback only if this Pallas build rejects single-buffered weight specs
        # (pipeline_mode=pl.Buffered(1)); everything else is identical.
        y = bottleneck_forward(x, params, single_buffer_weights=False)
        jax.block_until_ready(y)

    y_ref = reference_forward(x, params)
    # bf16 matmul operands + bf16 kernel output (f32 accumulation / residual).
    np.testing.assert_allclose(np.asarray(y, dtype=np.float32), np.asarray(y_ref),
                               rtol=3e-2, atol=3e-2)
    print("KERNEL_OK")
</pallas_src>

<mosaic_0001>
module attributes {stable_mosaic.version = 11 : i64} {
  func.func @_bottleneck_kernel(%arg0: i32, %arg1: memref<1x326x17xf32, #tpu.memory_space<vmem>>, %arg2: memref<17x4xbf16, #tpu.memory_space<vmem>>, %arg3: memref<9x4x4xbf16, #tpu.memory_space<vmem>>, %arg4: memref<1x4xf32, #tpu.memory_space<vmem>>, %arg5: memref<4x16xbf16, #tpu.memory_space<vmem>>, %arg6: memref<1x16xf32, #tpu.memory_space<vmem>>, %arg7: memref<1x288x16xbf16, #tpu.memory_space<vmem>>, %arg8: memref<326x4xf32, #tpu.memory_space<vmem>>) attributes {dimension_semantics = [#tpu.dimension_semantics<parallel>], iteration_bounds = array<i64: 2>, scalar_prefetch = 0 : i64, scratch_operands = 1 : i64, tpu.core_type = #tpu.core_type<tc>, window_params = [{transform_indices = @transform_0, window_bounds = array<i64: 1, 326, 17>}, {pipeline_mode = #tpu.pipeline_mode<synchronous>, transform_indices = @transform_1, window_bounds = array<i64: 17, 4>}, {pipeline_mode = #tpu.pipeline_mode<synchronous>, transform_indices = @transform_2, window_bounds = array<i64: 9, 4, 4>}, {pipeline_mode = #tpu.pipeline_mode<synchronous>, transform_indices = @transform_3, window_bounds = array<i64: 1, 4>}, {pipeline_mode = #tpu.pipeline_mode<synchronous>, transform_indices = @transform_4, window_bounds = array<i64: 4, 16>}, {pipeline_mode = #tpu.pipeline_mode<synchronous>, transform_indices = @transform_5, window_bounds = array<i64: 1, 16>}, {transform_indices = @transform_6, window_bounds = array<i64: 1, 288, 16>}]} {
    %c0 = arith.constant 0 : index
    %c0_0 = arith.constant 0 : index
    %c0_1 = arith.constant 0 : index
    %0 = vector.load %arg1[%c0, %c0_0, %c0_1] : memref<1x326x17xf32, #tpu.memory_space<vmem>>, vector<1x326x17xf32>
    %1 = vector.shape_cast %0 : vector<1x326x17xf32> to vector<326x17xf32>
    %2 = arith.truncf %1 : vector<326x17xf32> to vector<326x17xbf16>
    %c0_2 = arith.constant 0 : index
    %c0_3 = arith.constant 0 : index
    %3 = vector.load %arg2[%c0_2, %c0_3] : memref<17x4xbf16, #tpu.memory_space<vmem>>, vector<17x4xbf16>
    %cst = arith.constant dense<0.000000e+00> : vector<326x4xf32>
    %4 = tpu.matmul %2, %3, %cst {dimension_numbers = #tpu.dot_dimension_numbers<[1], [0], [0], [1], [0, 0, 1, 1], [], []>} : vector<326x17xbf16>, vector<17x4xbf16>, vector<326x4xf32> -> vector<326x4xf32>
    %cst_4 = arith.constant 0.000000e+00 : f32
    %5 = vector.broadcast %cst_4 : f32 to vector<326x4xf32>
    %6 = arith.maximumf %4, %5 : vector<326x4xf32>
    %c0_5 = arith.constant 0 : index
    %c0_6 = arith.constant 0 : index
    %7 = vector.load %arg8[%c0_5, %c0_6] : memref<326x4xf32, #tpu.memory_space<vmem>>, vector<326x4xf32>
    tpu.vector_store %arg8[%c0_5, %c0_6], %6 {strides = array<i32>} : memref<326x4xf32, #tpu.memory_space<vmem>>, vector<326x4xf32>,
    %c0_7 = arith.constant 0 : index
    %c0_8 = arith.constant 0 : index
    %8 = vector.load %arg8[%c0_7, %c0_8] : memref<326x4xf32, #tpu.memory_space<vmem>>, vector<288x4xf32>
    %9 = arith.truncf %8 : vector<288x4xf32> to vector<288x4xbf16>
    %c0_9 = arith.constant 0 : index
    %c0_10 = arith.constant 0 : index
    %c0_11 = arith.constant 0 : index
    %10 = vector.load %arg3[%c0_9, %c0_10, %c0_11] : memref<9x4x4xbf16, #tpu.memory_space<vmem>>, vector<1x4x4xbf16>
    %11 = vector.shape_cast %10 : vector<1x4x4xbf16> to vector<4x4xbf16>
    %cst_12 = arith.constant dense<0.000000e+00> : vector<288x4xf32>
    %12 = tpu.matmul %9, %11, %cst_12 {dimension_numbers = #tpu.dot_dimension_numbers<[1], [0], [0], [1], [0, 0, 1, 1], [], []>} : vector<288x4xbf16>, vector<4x4xbf16>, vector<288x4xf32> -> vector<288x4xf32>
    %c1 = arith.constant 1 : index
    %c0_13 = arith.constant 0 : index
    %13 = vector.load %arg8[%c1, %c0_13] : memref<326x4xf32, #tpu.memory_space<vmem>>, vector<288x4xf32>
    %14 = arith.truncf %13 : vector<288x4xf32> to vector<288x4xbf16>
    %c1_14 = arith.constant 1 : index
    %c0_15 = arith.constant 0 : index
    %c0_16 = arith.constant 0 : index
    %15 = vector.load %arg3[%c1_14, %c0_15, %c0_16] : memref<9x4x4xbf16, #tpu.memory_space<vmem>>, vector<1x4x4xbf16>
    %16 = vector.shape_cast %15 : vector<1x4x4xbf16> to vector<4x4xbf16>
    %cst_17 = arith.constant dense<0.000000e+00> : vector<288x4xf32>
    %17 = tpu.matmul %14, %16, %cst_17 {dimension_numbers = #tpu.dot_dimension_numbers<[1], [0], [0], [1], [0, 0, 1, 1], [], []>} : vector<288x4xbf16>, vector<4x4xbf16>, vector<288x4xf32> -> vector<288x4xf32>
    %18 = arith.addf %12, %17 : vector<288x4xf32>
    %c2 = arith.constant 2 : index
    %c0_18 = arith.constant 0 : index
    %19 = vector.load %arg8[%c2, %c0_18] : memref<326x4xf32, #tpu.memory_space<vmem>>, vector<288x4xf32>
    %20 = arith.truncf %19 : vector<288x4xf32> to vector<288x4xbf16>
    %c2_19 = arith.constant 2 : index
    %c0_20 = arith.constant 0 : index
    %c0_21 = arith.constant 0 : index
    %21 = vector.load %arg3[%c2_19, %c0_20, %c0_21] : memref<9x4x4xbf16, #tpu.memory_space<vmem>>, vector<1x4x4xbf16>
    %22 = vector.shape_cast %21 : vector<1x4x4xbf16> to vector<4x4xbf16>
    %cst_22 = arith.constant dense<0.000000e+00> : vector<288x4xf32>
    %23 = tpu.matmul %20, %22, %cst_22 {dimension_numbers = #tpu.dot_dimension_numbers<[1], [0], [0], [1], [0, 0, 1, 1], [], []>} : vector<288x4xbf16>, vector<4x4xbf16>, vector<288x4xf32> -> vector<288x4xf32>
    %24 = arith.addf %18, %23 : vector<288x4xf32>
    %c18 = arith.constant 18 : index
    %c0_23 = arith.constant 0 : index
    %25 = vector.load %arg8[%c18, %c0_23] : memref<326x4xf32, #tpu.memory_space<vmem>>, vector<288x4xf32>
    %26 = arith.truncf %25 : vector<288x4xf32> to vector<288x4xbf16>
    %c3 = arith.constant 3 : index
    %c0_24 = arith.constant 0 : index
    %c0_25 = arith.constant 0 : index
    %27 = vector.load %arg3[%c3, %c0_24, %c0_25] : memref<9x4x4xbf16, #tpu.memory_space<vmem>>, vector<1x4x4xbf16>
    %28 = vector.shape_cast %27 : vector<1x4x4xbf16> to vector<4x4xbf16>
    %cst_26 = arith.constant dense<0.000000e+00> : vector<288x4xf32>
    %29 = tpu.matmul %26, %28, %cst_26 {dimension_numbers = #tpu.dot_dimension_numbers<[1], [0], [0], [1], [0, 0, 1, 1], [], []>} : vector<288x4xbf16>, vector<4x4xbf16>, vector<288x4xf32> -> vector<288x4xf32>
    %30 = arith.addf %24, %29 : vector<288x4xf32>
    %c19 = arith.constant 19 : index
    %c0_27 = arith.constant 0 : index
    %31 = vector.load %arg8[%c19, %c0_27] : memref<326x4xf32, #tpu.memory_space<vmem>>, vector<288x4xf32>
    %32 = arith.truncf %31 : vector<288x4xf32> to vector<288x4xbf16>
    %c4 = arith.constant 4 : index
    %c0_28 = arith.constant 0 : index
    %c0_29 = arith.constant 0 : index
    %33 = vector.load %arg3[%c4, %c0_28, %c0_29] : memref<9x4x4xbf16, #tpu.memory_space<vmem>>, vector<1x4x4xbf16>
    %34 = vector.shape_cast %33 : vector<1x4x4xbf16> to vector<4x4xbf16>
    %cst_30 = arith.constant dense<0.000000e+00> : vector<288x4xf32>
    %35 = tpu.matmul %32, %34, %cst_30 {dimension_numbers = #tpu.dot_dimension_numbers<[1], [0], [0], [1], [0, 0, 1, 1], [], []>} : vector<288x4xbf16>, vector<4x4xbf16>, vector<288x4xf32> -> vector<288x4xf32>
    %36 = arith.addf %30, %35 : vector<288x4xf32>
    %c20 = arith.constant 20 : index
    %c0_31 = arith.constant 0 : index
    %37 = vector.load %arg8[%c20, %c0_31] : memref<326x4xf32, #tpu.memory_space<vmem>>, vector<288x4xf32>
    %38 = arith.truncf %37 : vector<288x4xf32> to vector<288x4xbf16>
    %c5 = arith.constant 5 : index
    %c0_32 = arith.constant 0 : index
    %c0_33 = arith.constant 0 : index
    %39 = vector.load %arg3[%c5, %c0_32, %c0_33] : memref<9x4x4xbf16, #tpu.memory_space<vmem>>, vector<1x4x4xbf16>
    %40 = vector.shape_cast %39 : vector<1x4x4xbf16> to vector<4x4xbf16>
    %cst_34 = arith.constant dense<0.000000e+00> : vector<288x4xf32>
    %41 = tpu.matmul %38, %40, %cst_34 {dimension_numbers = #tpu.dot_dimension_numbers<[1], [0], [0], [1], [0, 0, 1, 1], [], []>} : vector<288x4xbf16>, vector<4x4xbf16>, vector<288x4xf32> -> vector<288x4xf32>
    %42 = arith.addf %36, %41 : vector<288x4xf32>
    %c36 = arith.constant 36 : index
    %c0_35 = arith.constant 0 : index
    %43 = vector.load %arg8[%c36, %c0_35] : memref<326x4xf32, #tpu.memory_space<vmem>>, vector<288x4xf32>
    %44 = arith.truncf %43 : vector<288x4xf32> to vector<288x4xbf16>
    %c6 = arith.constant 6 : index
    %c0_36 = arith.constant 0 : index
    %c0_37 = arith.constant 0 : index
    %45 = vector.load %arg3[%c6, %c0_36, %c0_37] : memref<9x4x4xbf16, #tpu.memory_space<vmem>>, vector<1x4x4xbf16>
    %46 = vector.shape_cast %45 : vector<1x4x4xbf16> to vector<4x4xbf16>
    %cst_38 = arith.constant dense<0.000000e+00> : vector<288x4xf32>
    %47 = tpu.matmul %44, %46, %cst_38 {dimension_numbers = #tpu.dot_dimension_numbers<[1], [0], [0], [1], [0, 0, 1, 1], [], []>} : vector<288x4xbf16>, vector<4x4xbf16>, vector<288x4xf32> -> vector<288x4xf32>
    %48 = arith.addf %42, %47 : vector<288x4xf32>
    %c37 = arith.constant 37 : index
    %c0_39 = arith.constant 0 : index
    %49 = vector.load %arg8[%c37, %c0_39] : memref<326x4xf32, #tpu.memory_space<vmem>>, vector<288x4xf32>
    %50 = arith.truncf %49 : vector<288x4xf32> to vector<288x4xbf16>
    %c7 = arith.constant 7 : index
    %c0_40 = arith.constant 0 : index
    %c0_41 = arith.constant 0 : index
    %51 = vector.load %arg3[%c7, %c0_40, %c0_41] : memref<9x4x4xbf16, #tpu.memory_space<vmem>>, vector<1x4x4xbf16>
    %52 = vector.shape_cast %51 : vector<1x4x4xbf16> to vector<4x4xbf16>
    %cst_42 = arith.constant dense<0.000000e+00> : vector<288x4xf32>
    %53 = tpu.matmul %50, %52, %cst_42 {dimension_numbers = #tpu.dot_dimension_numbers<[1], [0], [0], [1], [0, 0, 1, 1], [], []>} : vector<288x4xbf16>, vector<4x4xbf16>, vector<288x4xf32> -> vector<288x4xf32>
    %54 = arith.addf %48, %53 : vector<288x4xf32>
    %c38 = arith.constant 38 : index
    %c0_43 = arith.constant 0 : index
    %55 = vector.load %arg8[%c38, %c0_43] : memref<326x4xf32, #tpu.memory_space<vmem>>, vector<288x4xf32>
    %56 = arith.truncf %55 : vector<288x4xf32> to vector<288x4xbf16>
    %c8 = arith.constant 8 : index
    %c0_44 = arith.constant 0 : index
    %c0_45 = arith.constant 0 : index
    %57 = vector.load %arg3[%c8, %c0_44, %c0_45] : memref<9x4x4xbf16, #tpu.memory_space<vmem>>, vector<1x4x4xbf16>
    %58 = vector.shape_cast %57 : vector<1x4x4xbf16> to vector<4x4xbf16>
    %cst_46 = arith.constant dense<0.000000e+00> : vector<288x4xf32>
    %59 = tpu.matmul %56, %58, %cst_46 {dimension_numbers = #tpu.dot_dimension_numbers<[1], [0], [0], [1], [0, 0, 1, 1], [], []>} : vector<288x4xbf16>, vector<4x4xbf16>, vector<288x4xf32> -> vector<288x4xf32>
    %60 = arith.addf %54, %59 : vector<288x4xf32>
    %c0_47 = arith.constant 0 : index
    %c0_48 = arith.constant 0 : index
    %61 = vector.load %arg4[%c0_47, %c0_48] : memref<1x4xf32, #tpu.memory_space<vmem>>, vector<1x4xf32>
    %62 = vector.broadcast %61 : vector<1x4xf32> to vector<288x4xf32>
    %63 = arith.addf %60, %62 : vector<288x4xf32>
    %cst_49 = arith.constant 0.000000e+00 : f32
    %64 = vector.broadcast %cst_49 : f32 to vector<288x4xf32>
    %65 = arith.maximumf %63, %64 : vector<288x4xf32>
    %66 = arith.truncf %65 : vector<288x4xf32> to vector<288x4xbf16>
    %c0_50 = arith.constant 0 : index
    %c0_51 = arith.constant 0 : index
    %67 = vector.load %arg5[%c0_50, %c0_51] : memref<4x16xbf16, #tpu.memory_space<vmem>>, vector<4x16xbf16>
    %cst_52 = arith.constant dense<0.000000e+00> : vector<288x16xf32>
    %68 = tpu.matmul %66, %67, %cst_52 {dimension_numbers = #tpu.dot_dimension_numbers<[1], [0], [0], [1], [0, 0, 1, 1], [], []>} : vector<288x4xbf16>, vector<4x16xbf16>, vector<288x16xf32> -> vector<288x16xf32>
    %c0_53 = arith.constant 0 : index
    %c19_54 = arith.constant 19 : index
    %c0_55 = arith.constant 0 : index
    %69 = vector.load %arg1[%c0_53, %c19_54, %c0_55] : memref<1x326x17xf32, #tpu.memory_space<vmem>>, vector<1x288x16xf32>
    %70 = vector.shape_cast %69 : vector<1x288x16xf32> to vector<288x16xf32>
    %c0_56 = arith.constant 0 : index
    %c0_57 = arith.constant 0 : index
    %71 = vector.load %arg6[%c0_56, %c0_57] : memref<1x16xf32, #tpu.memory_space<vmem>>, vector<1x16xf32>
    %72 = vector.broadcast %71 : vector<1x16xf32> to vector<288x16xf32>
    %73 = arith.addf %68, %72 : vector<288x16xf32>
    %74 = arith.addf %73, %70 : vector<288x16xf32>
    %cst_58 = arith.constant 0.000000e+00 : f32
    %75 = vector.broadcast %cst_58 : f32 to vector<288x16xf32>
    %76 = arith.maximumf %74, %75 : vector<288x16xf32>
    %77 = arith.truncf %76 : vector<288x16xf32> to vector<288x16xbf16>
    %c0_59 = arith.constant 0 : index
    %c0_60 = arith.constant 0 : index
    %c0_61 = arith.constant 0 : index
    %78 = vector.load %arg7[%c0_59, %c0_60, %c0_61] : memref<1x288x16xbf16, #tpu.memory_space<vmem>>, vector<1x288x16xbf16>
    %79 = vector.shape_cast %78 : vector<1x288x16xbf16> to vector<288x16xbf16>
    %80 = vector.shape_cast %77 : vector<288x16xbf16> to vector<1x288x16xbf16>
    tpu.vector_store %arg7[%c0_59, %c0_60, %c0_61], %80 {strides = array<i32>} : memref<1x288x16xbf16, #tpu.memory_space<vmem>>, vector<1x288x16xbf16>,
    return
  }
  func.func @transform_0(%arg0: i32) -> (i32, i32, i32) {
    %c0_i32 = arith.constant 0 : i32
    %c0_i32_0 = arith.constant 0 : i32
    %c0_i32_1 = arith.constant 0 : i32
    return %arg0, %c0_i32, %c0_i32_0 : i32, i32, i32
  }
  func.func @transform_1(%arg0: i32) -> (i32, i32) {
    %c0_i32 = arith.constant 0 : i32
    %c0_i32_0 = arith.constant 0 : i32
    %c0_i32_1 = arith.constant 0 : i32
    return %c0_i32, %c0_i32_0 : i32, i32
  }
  func.func @transform_2(%arg0: i32) -> (i32, i32, i32) {
    %c0_i32 = arith.constant 0 : i32
    %c0_i32_0 = arith.constant 0 : i32
    %c0_i32_1 = arith.constant 0 : i32
    %c0_i32_2 = arith.constant 0 : i32
    return %c0_i32, %c0_i32_0, %c0_i32_1 : i32, i32, i32
  }
  func.func @transform_3(%arg0: i32) -> (i32, i32) {
    %c0_i32 = arith.constant 0 : i32
    %c0_i32_0 = arith.constant 0 : i32
    %c0_i32_1 = arith.constant 0 : i32
    return %c0_i32, %c0_i32_0 : i32, i32
  }
  func.func @transform_4(%arg0: i32) -> (i32, i32) {
    %c0_i32 = arith.constant 0 : i32
    %c0_i32_0 = arith.constant 0 : i32
    %c0_i32_1 = arith.constant 0 : i32
    return %c0_i32, %c0_i32_0 : i32, i32
  }
  func.func @transform_5(%arg0: i32) -> (i32, i32) {
    %c0_i32 = arith.constant 0 : i32
    %c0_i32_0 = arith.constant 0 : i32
    %c0_i32_1 = arith.constant 0 : i32
    return %c0_i32, %c0_i32_0 : i32, i32
  }
  func.func @transform_6(%arg0: i32) -> (i32, i32, i32) {
    %c0_i32 = arith.constant 0 : i32
    %c0_i32_0 = arith.constant 0 : i32
    %c0_i32_1 = arith.constant 0 : i32
    return %arg0, %c0_i32, %c0_i32_0 : i32, i32, i32
  }
}

module attributes {stable_mosaic.version = 11 : i64} {
  func.func @_bottleneck_kernel(%arg0: i32, %arg1: memref<1x326x17xf32, #tpu.memory_space<vmem>>, %arg2: memref<17x4xbf16, #tpu.memory_space<vmem>>, %arg3: memref<9x4x4xbf16, #tpu.memory_space<vmem>>, %arg4: memref<1x4xf32, #tpu.memory_space<vmem>>, %arg5: memref<4x16xbf16, #tpu.memory_space<vmem>>, %arg6: memref<1x16xf32, #tpu.memory_space<vmem>>, %arg7: memref<1x288x16xbf16, #tpu.memory_space<vmem>>, %arg8: memref<326x4xf32, #tpu.memory_space<vmem>>) attributes {dimension_semantics = [#tpu.dimension_semantics<parallel>], iteration_bounds = array<i64: 2>, scalar_prefetch = 0 : i64, scratch_operands = 1 : i64, tpu.core_type = #tpu.core_type<tc>, window_params = [{transform_indices = @transform_0, window_bounds = array<i64: 1, 326, 17>}, {pipeline_mode = #tpu.pipeline_mode<synchronous>, transform_indices = @transform_1, window_bounds = array<i64: 17, 4>}, {pipeline_mode = #tpu.pipeline_mode<synchronous>, transform_indices = @transform_2, window_bounds = array<i64: 9, 4, 4>}, {pipeline_mode = #tpu.pipeline_mode<synchronous>, transform_indices = @transform_3, window_bounds = array<i64: 1, 4>}, {pipeline_mode = #tpu.pipeline_mode<synchronous>, transform_indices = @transform_4, window_bounds = array<i64: 4, 16>}, {pipeline_mode = #tpu.pipeline_mode<synchronous>, transform_indices = @transform_5, window_bounds = array<i64: 1, 16>}, {transform_indices = @transform_6, window_bounds = array<i64: 1, 288, 16>}]} {
    %c0 = arith.constant 0 : index
    %c0_0 = arith.constant 0 : index
    %c0_1 = arith.constant 0 : index
    %0 = vector.load %arg1[%c0, %c0_0, %c0_1] : memref<1x326x17xf32, #tpu.memory_space<vmem>>, vector<1x326x17xf32>
    %1 = vector.shape_cast %0 : vector<1x326x17xf32> to vector<326x17xf32>
    %2 = arith.truncf %1 : vector<326x17xf32> to vector<326x17xbf16>
    %c0_2 = arith.constant 0 : index
    %c0_3 = arith.constant 0 : index
    %3 = vector.load %arg2[%c0_2, %c0_3] : memref<17x4xbf16, #tpu.memory_space<vmem>>, vector<17x4xbf16>
    %cst = arith.constant dense<0.000000e+00> : vector<326x4xf32>
    %4 = tpu.matmul %2, %3, %cst {dimension_numbers = #tpu.dot_dimension_numbers<[1], [0], [0], [1], [0, 0, 1, 1], [], []>} : vector<326x17xbf16>, vector<17x4xbf16>, vector<326x4xf32> -> vector<326x4xf32>
    %cst_4 = arith.constant 0.000000e+00 : f32
    %5 = vector.broadcast %cst_4 : f32 to vector<326x4xf32>
    %6 = arith.maximumf %4, %5 : vector<326x4xf32>
    %c0_5 = arith.constant 0 : index
    %c0_6 = arith.constant 0 : index
    %7 = vector.load %arg8[%c0_5, %c0_6] : memref<326x4xf32, #tpu.memory_space<vmem>>, vector<326x4xf32>
    tpu.vector_store %arg8[%c0_5, %c0_6], %6 {strides = array<i32>} : memref<326x4xf32, #tpu.memory_space<vmem>>, vector<326x4xf32>,
    %c0_7 = arith.constant 0 : index
    %c0_8 = arith.constant 0 : index
    %8 = vector.load %arg8[%c0_7, %c0_8] : memref<326x4xf32, #tpu.memory_space<vmem>>, vector<288x4xf32>
    %9 = arith.truncf %8 : vector<288x4xf32> to vector<288x4xbf16>
    %c0_9 = arith.constant 0 : index
    %c0_10 = arith.constant 0 : index
    %c0_11 = arith.constant 0 : index
    %10 = vector.load %arg3[%c0_9, %c0_10, %c0_11] : memref<9x4x4xbf16, #tpu.memory_space<vmem>>, vector<1x4x4xbf16>
    %11 = vector.shape_cast %10 : vector<1x4x4xbf16> to vector<4x4xbf16>
    %cst_12 = arith.constant dense<0.000000e+00> : vector<288x4xf32>
    %12 = tpu.matmul %9, %11, %cst_12 {dimension_numbers = #tpu.dot_dimension_numbers<[1], [0], [0], [1], [0, 0, 1, 1], [], []>} : vector<288x4xbf16>, vector<4x4xbf16>, vector<288x4xf32> -> vector<288x4xf32>
    %c1 = arith.constant 1 : index
    %c0_13 = arith.constant 0 : index
    %13 = vector.load %arg8[%c1, %c0_13] : memref<326x4xf32, #tpu.memory_space<vmem>>, vector<288x4xf32>
    %14 = arith.truncf %13 : vector<288x4xf32> to vector<288x4xbf16>
    %c1_14 = arith.constant 1 : index
    %c0_15 = arith.constant 0 : index
    %c0_16 = arith.constant 0 : index
    %15 = vector.load %arg3[%c1_14, %c0_15, %c0_16] : memref<9x4x4xbf16, #tpu.memory_space<vmem>>, vector<1x4x4xbf16>
    %16 = vector.shape_cast %15 : vector<1x4x4xbf16> to vector<4x4xbf16>
    %cst_17 = arith.constant dense<0.000000e+00> : vector<288x4xf32>
    %17 = tpu.matmul %14, %16, %cst_17 {dimension_numbers = #tpu.dot_dimension_numbers<[1], [0], [0], [1], [0, 0, 1, 1], [], []>} : vector<288x4xbf16>, vector<4x4xbf16>, vector<288x4xf32> -> vector<288x4xf32>
    %18 = arith.addf %12, %17 : vector<288x4xf32>
    %c2 = arith.constant 2 : index
    %c0_18 = arith.constant 0 : index
    %19 = vector.load %arg8[%c2, %c0_18] : memref<326x4xf32, #tpu.memory_space<vmem>>, vector<288x4xf32>
    %20 = arith.truncf %19 : vector<288x4xf32> to vector<288x4xbf16>
    %c2_19 = arith.constant 2 : index
    %c0_20 = arith.constant 0 : index
    %c0_21 = arith.constant 0 : index
    %21 = vector.load %arg3[%c2_19, %c0_20, %c0_21] : memref<9x4x4xbf16, #tpu.memory_space<vmem>>, vector<1x4x4xbf16>
    %22 = vector.shape_cast %21 : vector<1x4x4xbf16> to vector<4x4xbf16>
    %cst_22 = arith.constant dense<0.000000e+00> : vector<288x4xf32>
    %23 = tpu.matmul %20, %22, %cst_22 {dimension_numbers = #tpu.dot_dimension_numbers<[1], [0], [0], [1], [0, 0, 1, 1], [], []>} : vector<288x4xbf16>, vector<4x4xbf16>, vector<288x4xf32> -> vector<288x4xf32>
    %24 = arith.addf %18, %23 : vector<288x4xf32>
    %c18 = arith.constant 18 : index
    %c0_23 = arith.constant 0 : index
    %25 = vector.load %arg8[%c18, %c0_23] : memref<326x4xf32, #tpu.memory_space<vmem>>, vector<288x4xf32>
    %26 = arith.truncf %25 : vector<288x4xf32> to vector<288x4xbf16>
    %c3 = arith.constant 3 : index
    %c0_24 = arith.constant 0 : index
    %c0_25 = arith.constant 0 : index
    %27 = vector.load %arg3[%c3, %c0_24, %c0_25] : memref<9x4x4xbf16, #tpu.memory_space<vmem>>, vector<1x4x4xbf16>
    %28 = vector.shape_cast %27 : vector<1x4x4xbf16> to vector<4x4xbf16>
    %cst_26 = arith.constant dense<0.000000e+00> : vector<288x4xf32>
    %29 = tpu.matmul %26, %28, %cst_26 {dimension_numbers = #tpu.dot_dimension_numbers<[1], [0], [0], [1], [0, 0, 1, 1], [], []>} : vector<288x4xbf16>, vector<4x4xbf16>, vector<288x4xf32> -> vector<288x4xf32>
    %30 = arith.addf %24, %29 : vector<288x4xf32>
    %c19 = arith.constant 19 : index
    %c0_27 = arith.constant 0 : index
    %31 = vector.load %arg8[%c19, %c0_27] : memref<326x4xf32, #tpu.memory_space<vmem>>, vector<288x4xf32>
    %32 = arith.truncf %31 : vector<288x4xf32> to vector<288x4xbf16>
    %c4 = arith.constant 4 : index
    %c0_28 = arith.constant 0 : index
    %c0_29 = arith.constant 0 : index
    %33 = vector.load %arg3[%c4, %c0_28, %c0_29] : memref<9x4x4xbf16, #tpu.memory_space<vmem>>, vector<1x4x4xbf16>
    %34 = vector.shape_cast %33 : vector<1x4x4xbf16> to vector<4x4xbf16>
    %cst_30 = arith.constant dense<0.000000e+00> : vector<288x4xf32>
    %35 = tpu.matmul %32, %34, %cst_30 {dimension_numbers = #tpu.dot_dimension_numbers<[1], [0], [0], [1], [0, 0, 1, 1], [], []>} : vector<288x4xbf16>, vector<4x4xbf16>, vector<288x4xf32> -> vector<288x4xf32>
    %36 = arith.addf %30, %35 : vector<288x4xf32>
    %c20 = arith.constant 20 : index
    %c0_31 = arith.constant 0 : index
    %37 = vector.load %arg8[%c20, %c0_31] : memref<326x4xf32, #tpu.memory_space<vmem>>, vector<288x4xf32>
    %38 = arith.truncf %37 : vector<288x4xf32> to vector<288x4xbf16>
    %c5 = arith.constant 5 : index
    %c0_32 = arith.constant 0 : index
    %c0_33 = arith.constant 0 : index
    %39 = vector.load %arg3[%c5, %c0_32, %c0_33] : memref<9x4x4xbf16, #tpu.memory_space<vmem>>, vector<1x4x4xbf16>
    %40 = vector.shape_cast %39 : vector<1x4x4xbf16> to vector<4x4xbf16>
    %cst_34 = arith.constant dense<0.000000e+00> : vector<288x4xf32>
    %41 = tpu.matmul %38, %40, %cst_34 {dimension_numbers = #tpu.dot_dimension_numbers<[1], [0], [0], [1], [0, 0, 1, 1], [], []>} : vector<288x4xbf16>, vector<4x4xbf16>, vector<288x4xf32> -> vector<288x4xf32>
    %42 = arith.addf %36, %41 : vector<288x4xf32>
    %c36 = arith.constant 36 : index
    %c0_35 = arith.constant 0 : index
    %43 = vector.load %arg8[%c36, %c0_35] : memref<326x4xf32, #tpu.memory_space<vmem>>, vector<288x4xf32>
    %44 = arith.truncf %43 : vector<288x4xf32> to vector<288x4xbf16>
    %c6 = arith.constant 6 : index
    %c0_36 = arith.constant 0 : index
    %c0_37 = arith.constant 0 : index
    %45 = vector.load %arg3[%c6, %c0_36, %c0_37] : memref<9x4x4xbf16, #tpu.memory_space<vmem>>, vector<1x4x4xbf16>
    %46 = vector.shape_cast %45 : vector<1x4x4xbf16> to vector<4x4xbf16>
    %cst_38 = arith.constant dense<0.000000e+00> : vector<288x4xf32>
    %47 = tpu.matmul %44, %46, %cst_38 {dimension_numbers = #tpu.dot_dimension_numbers<[1], [0], [0], [1], [0, 0, 1, 1], [], []>} : vector<288x4xbf16>, vector<4x4xbf16>, vector<288x4xf32> -> vector<288x4xf32>
    %48 = arith.addf %42, %47 : vector<288x4xf32>
    %c37 = arith.constant 37 : index
    %c0_39 = arith.constant 0 : index
    %49 = vector.load %arg8[%c37, %c0_39] : memref<326x4xf32, #tpu.memory_space<vmem>>, vector<288x4xf32>
    %50 = arith.truncf %49 : vector<288x4xf32> to vector<288x4xbf16>
    %c7 = arith.constant 7 : index
    %c0_40 = arith.constant 0 : index
    %c0_41 = arith.constant 0 : index
    %51 = vector.load %arg3[%c7, %c0_40, %c0_41] : memref<9x4x4xbf16, #tpu.memory_space<vmem>>, vector<1x4x4xbf16>
    %52 = vector.shape_cast %51 : vector<1x4x4xbf16> to vector<4x4xbf16>
    %cst_42 = arith.constant dense<0.000000e+00> : vector<288x4xf32>
    %53 = tpu.matmul %50, %52, %cst_42 {dimension_numbers = #tpu.dot_dimension_numbers<[1], [0], [0], [1], [0, 0, 1, 1], [], []>} : vector<288x4xbf16>, vector<4x4xbf16>, vector<288x4xf32> -> vector<288x4xf32>
    %54 = arith.addf %48, %53 : vector<288x4xf32>
    %c38 = arith.constant 38 : index
    %c0_43 = arith.constant 0 : index
    %55 = vector.load %arg8[%c38, %c0_43] : memref<326x4xf32, #tpu.memory_space<vmem>>, vector<288x4xf32>
    %56 = arith.truncf %55 : vector<288x4xf32> to vector<288x4xbf16>
    %c8 = arith.constant 8 : index
    %c0_44 = arith.constant 0 : index
    %c0_45 = arith.constant 0 : index
    %57 = vector.load %arg3[%c8, %c0_44, %c0_45] : memref<9x4x4xbf16, #tpu.memory_space<vmem>>, vector<1x4x4xbf16>
    %58 = vector.shape_cast %57 : vector<1x4x4xbf16> to vector<4x4xbf16>
    %cst_46 = arith.constant dense<0.000000e+00> : vector<288x4xf32>
    %59 = tpu.matmul %56, %58, %cst_46 {dimension_numbers = #tpu.dot_dimension_numbers<[1], [0], [0], [1], [0, 0, 1, 1], [], []>} : vector<288x4xbf16>, vector<4x4xbf16>, vector<288x4xf32> -> vector<288x4xf32>
    %60 = arith.addf %54, %59 : vector<288x4xf32>
    %c0_47 = arith.constant 0 : index
    %c0_48 = arith.constant 0 : index
    %61 = vector.load %arg4[%c0_47, %c0_48] : memref<1x4xf32, #tpu.memory_space<vmem>>, vector<1x4xf32>
    %62 = vector.broadcast %61 : vector<1x4xf32> to vector<288x4xf32>
    %63 = arith.addf %60, %62 : vector<288x4xf32>
    %cst_49 = arith.constant 0.000000e+00 : f32
    %64 = vector.broadcast %cst_49 : f32 to vector<288x4xf32>
    %65 = arith.maximumf %63, %64 : vector<288x4xf32>
    %66 = arith.truncf %65 : vector<288x4xf32> to vector<288x4xbf16>
    %c0_50 = arith.constant 0 : index
    %c0_51 = arith.constant 0 : index
    %67 = vector.load %arg5[%c0_50, %c0_51] : memref<4x16xbf16, #tpu.memory_space<vmem>>, vector<4x16xbf16>
    %cst_52 = arith.constant dense<0.000000e+00> : vector<288x16xf32>
    %68 = tpu.matmul %66, %67, %cst_52 {dimension_numbers = #tpu.dot_dimension_numbers<[1], [0], [0], [1], [0, 0, 1, 1], [], []>} : vector<288x4xbf16>, vector<4x16xbf16>, vector<288x16xf32> -> vector<288x16xf32>
    %c0_53 = arith.constant 0 : index
    %c19_54 = arith.constant 19 : index
    %c0_55 = arith.constant 0 : index
    %69 = vector.load %arg1[%c0_53, %c19_54, %c0_55] : memref<1x326x17xf32, #tpu.memory_space<vmem>>, vector<1x288x16xf32>
    %70 = vector.shape_cast %69 : vector<1x288x16xf32> to vector<288x16xf32>
    %c0_56 = arith.constant 0 : index
    %c0_57 = arith.constant 0 : index
    %71 = vector.load %arg6[%c0_56, %c0_57] : memref<1x16xf32, #tpu.memory_space<vmem>>, vector<1x16xf32>
    %72 = vector.broadcast %71 : vector<1x16xf32> to vector<288x16xf32>
    %73 = arith.addf %68, %72 : vector<288x16xf32>
    %74 = arith.addf %73, %70 : vector<288x16xf32>
    %cst_58 = arith.constant 0.000000e+00 : f32
    %75 = vector.broadcast %cst_58 : f32 to vector<288x16xf32>
    %76 = arith.maximumf %74, %75 : vector<288x16xf32>
    %77 = arith.truncf %76 : vector<288x16xf32> to vector<288x16xbf16>
    %c0_59 = arith.constant 0 : index
    %c0_60 = arith.constant 0 : index
    %c0_61 = arith.constant 0 : index
    %78 = vector.load %arg7[%c0_59, %c0_60, %c0_61] : memref<1x288x16xbf16, #tpu.memory_space<vmem>>, vector<1x288x16xbf16>
    %79 = vector.shape_cast %78 : vector<1x288x16xbf16> to vector<288x16xbf16>
    %80 = vector.shape_cast %77 : vector<288x16xbf16> to vector<1x288x16xbf16>
    tpu.vector_store %arg7[%c0_59, %c0_60, %c0_61], %80 {strides = array<i32>} : memref<1x288x16xbf16, #tpu.memory_space<vmem>>, vector<1x288x16xbf16>,
    return
  }
  func.func @transform_0(%arg0: i32) -> (i32, i32, i32) {
    %c0_i32 = arith.constant 0 : i32
    %c0_i32_0 = arith.constant 0 : i32
    %c0_i32_1 = arith.constant 0 : i32
    return %arg0, %c0_i32, %c0_i32_0 : i32, i32, i32
  }
  func.func @transform_1(%arg0: i32) -> (i32, i32) {
    %c0_i32 = arith.constant 0 : i32
    %c0_i32_0 = arith.constant 0 : i32
    %c0_i32_1 = arith.constant 0 : i32
    return %c0_i32, %c0_i32_0 : i32, i32
  }
  func.func @transform_2(%arg0: i32) -> (i32, i32, i32) {
    %c0_i32 = arith.constant 0 : i32
    %c0_i32_0 = arith.constant 0 : i32
    %c0_i32_1 = arith.constant 0 : i32
    %c0_i32_2 = arith.constant 0 : i32
    return %c0_i32, %c0_i32_0, %c0_i32_1 : i32, i32, i32
  }
  func.func @transform_3(%arg0: i32) -> (i32, i32) {
    %c0_i32 = arith.constant 0 : i32
    %c0_i32_0 = arith.constant 0 : i32
    %c0_i32_1 = arith.constant 0 : i32
    return %c0_i32, %c0_i32_0 : i32, i32
  }
  func.func @transform_4(%arg0: i32) -> (i32, i32) {
    %c0_i32 = arith.constant 0 : i32
    %c0_i32_0 = arith.constant 0 : i32
    %c0_i32_1 = arith.constant 0 : i32
    return %c0_i32, %c0_i32_0 : i32, i32
  }
  func.func @transform_5(%arg0: i32) -> (i32, i32) {
    %c0_i32 = arith.constant 0 : i32
    %c0_i32_0 = arith.constant 0 : i32
    %c0_i32_1 = arith.constant 0 : i32
    return %c0_i32, %c0_i32_0 : i32, i32
  }
  func.func @transform_6(%arg0: i32) -> (i32, i32, i32) {
    %c0_i32 = arith.constant 0 : i32
    %c0_i32_0 = arith.constant 0 : i32
    %c0_i32_1 = arith.constant 0 : i32
    return %arg0, %c0_i32, %c0_i32_0 : i32, i32, i32
  }
}

</mosaic_0001>

<bundles_post_ra>
// kernel: _bottleneck_forward_impl.1
= control target key start
LH: loop header
LB: loop body
LE: loop exit
PB: predicated region body
PF: predicated region fallthrough
CT: control target
= control target key end

     0   :  { %s3528_s21 = smov 0   ;;  %s4402_s0 = inlined_call_operand.vmem [shape: f32[2,326,17], index: 0, kind: input, shape index: {}]   ;;  %s4403_s1 = inlined_call_operand.vmem [shape: bf16[17,4], index: 1, kind: input, shape index: {}]   ;;  %s4404_s2 = inlined_call_operand.vmem [shape: bf16[9,4,4], index: 2, kind: input, shape index: {}]   ;;  %s4405_s3 = inlined_call_operand.vmem [shape: f32[1,4], index: 3, kind: input, shape index: {}]   ;;  %s4406_s4 = inlined_call_operand.vmem [shape: bf16[4,16], index: 4, kind: input, shape index: {}]   ;;  %s4407_s5 = inlined_call_operand.vmem [shape: f32[1,16], index: 5, kind: input, shape index: {}]   ;;  %s4408_s6 = inlined_call_operand.vmem [shape: bf16[2,288,16], index: 6, kind: output, shape index: {}]  }
   0x1 LB: > { %s3245_s22 = sadd.s32 4294967295, %s3490_s21   ;;  %p3249_p0 = scmp.ge.s32.totalorder %s3490_s21, 1  ;;  %s3490_s21 = sphi %s3528_s21, %s16_s21  }
   0x2   : > { %p212_p1 = scmp.lt.s32.totalorder %s3490_s21, 3 }
   0x4   : > { %p213_p2 = pnand %p3249_p0, %p212_p1 }
   0x6   : > { %216 = sbr.rel (%p213_p2) target bundleno = 1320 (0x528), region = 44 }
   0xb   : > { %v317_v0 = vld [vmem:[%s4403_s1 + $0x8] sm:$0x1]  ;;  %vm391_vm0 = vcmask 1040384   ;;  %p242_p3 = scmp.lt.s32.totalorder %s3245_s22, 1  ;;  %v3492_v2 = vmov 0   ;;  %v3467_v6 = vld [vmem:[%s4403_s1] sm:$0xff] }
   0xc   : > { %v323_v1 = vunpack.c.l.b16 %v317_v0  ;;  %v393_v3 = vsel %vm391_vm0, 65535, %v3492_v2  ;;  %vm327_vm1 = vcmask 138240   ;;  %vm551_vm2 = vcmask 31744   ;;  %v648_v49 = vld [vmem:[%s4404_s2] sm:$0x3] }
   0xd   : > { %s4414_s22 = smov (!%p242_p3, %s3245_s22), 1  ;;  %vm759_vm3 = vcmask 1041408   ;;  %v3277_v53 = vld [vmem:[%s4404_s2 + $0x2] sm:$0x3]  ;;  %v3314_v54 = vld [vmem:[%s4404_s2 + $0x4] sm:$0x3] }
   0xe   : > { %v325_v4 = vpack.c.b16 %v323_v1, %v323_v1  ;;  %s3471_s25 = smul.u32 328, %s4414_s22  ;;  %v917_v51 = vsel %vm759_vm3, %v648_v49, 0  ;;  %v761_v56 = vsel %vm759_vm3, %v3277_v53, 0  ;;  %v3600_v57 = vsel %vm759_vm3, %v3314_v54, 0  ;;  %v3352_v58 = vld [vmem:[%s4404_s2 + $0x8] sm:$0x3] }
   0xf   : > { %3469 = vmatpush.bf16.msra.mxu2 %v917_v51  ;;  %3468 = vmatpush.bf16.msra.mxu1 %v761_v56  ;;  %v1625_v61 = vsel %vm759_vm3, %v3352_v58, 0  ;;  %v3333_v62 = vld [vmem:[%s4404_s2 + $0x6] sm:$0x3]  ;;  %vm592_vm4 = vcmask 29696   ;;  %s3472_s10 = smul.u32 144, %s4414_s22  ;;  %vm3153_vm5 = vcmask 125952  }
  0x10   : > { %v395_v5 = vand.u32 %v393_v3, %v325_v4  ;;  %s3545_s28 = scalar_lea.vmem %s4402_s0, %s3471_s25  ;;  %3470 = vmatpush.bf16.msra.mxu3 %v3600_v57  ;;  %v1377_v63 = vsel %vm759_vm3, %v3333_v62, 0 }
  0x11   : > { %v253_v7 = vld [vmem:[%s3545_s28] sm:$0xff]  ;;  %v254_v8 = vld [vmem:[%s3545_s28 + $0x8] sm:$0xff]  ;;  %v255_v10 = vld [vmem:[%s3545_s28 + $0x10] sm:$0xff]  ;;  %s4202_s13 = scalar_lea.vmem %s4408_s6, %s3472_s10 }
  0x12   : > { %403 = vmatpush.bf16.msra.mxu0 %v395_v5  ;;  %v294_v9 = vpack.c.bf16 %v254_v8, %v253_v7  ;;  %v256_v11 = vld [vmem:[%s3545_s28 + $0x18] sm:$0xff]  ;;  %v257_v13 = vld [vmem:[%s3545_s28 + $0x20] sm:$0xff]  ;;  %v258_v14 = vld [vmem:[%s3545_s28 + $0x28] sm:$0xff] }
  0x13   : > { %v295_v12 = vpack.c.bf16 %v256_v11, %v255_v10  ;;  %v296_v15 = vpack.c.bf16 %v258_v14, %v257_v13  ;;  %v259_v16 = vld [vmem:[%s3545_s28 + $0x30] sm:$0xff]  ;;  %v260_v17 = vld [vmem:[%s3545_s28 + $0x38] sm:$0xff]  ;;  %v261_v19 = vld [vmem:[%s3545_s28 + $0x40] sm:$0xff]  ;;  %1634 = vmatpush.bf16.msrb.mxu2 %v1625_v61  ;;  %1386 = vmatpush.bf16.msrb.mxu1 %v1377_v63 }
  0x14   : > { %v297_v18 = vpack.c.bf16 %v260_v17, %v259_v16  ;;  %v262_v20 = vld [vmem:[%s3545_s28 + $0x48] sm:$0xff]  ;;  %v263_v22 = vld [vmem:[%s3545_s28 + $0x50] sm:$0xff]  ;;  %v264_v23 = vld [vmem:[%s3545_s28 + $0x58] sm:$0xff] }
  0x15   : > { %v298_v21 = vpack.c.bf16 %v262_v20, %v261_v19  ;;  %v299_v24 = vpack.c.bf16 %v264_v23, %v263_v22  ;;  %v265_v25 = vld [vmem:[%s3545_s28 + $0x60] sm:$0xff]  ;;  %v266_v26 = vld [vmem:[%s3545_s28 + $0x68] sm:$0xff]  ;;  %v267_v28 = vld [vmem:[%s3545_s28 + $0x70] sm:$0xff] }
  0x16   : > { %404 = vmatpush.bf16.msra.mxu0 %v3467_v6  ;;  %v300_v27 = vpack.c.bf16 %v266_v26, %v265_v25  ;;  %v268_v29 = vld [vmem:[%s3545_s28 + $0x78] sm:$0xff]  ;;  %v269_v31 = vld [vmem:[%s3545_s28 + $0x80] sm:$0xff]  ;;  %v270_v32 = vld [vmem:[%s3545_s28 + $0x88] sm:$0xff] }
  0x17   : > { %v301_v30 = vpack.c.bf16 %v268_v29, %v267_v28  ;;  %v302_v33 = vpack.c.bf16 %v270_v32, %v269_v31  ;;  %v271_v38 = vld [vmem:[%s3545_s28 + $0x90] sm:$0xff]  ;;  %v272_v39 = vld [vmem:[%s3545_s28 + $0x98] sm:$0xff]  ;;  %v273_v45 = vld [vmem:[%s3545_s28 + $0xa0] sm:$0xff] }
  0x18   : > { %v303_v40 = vpack.c.bf16 %v272_v39, %v271_v38  ;;  %v274_v46 = vld [vmem:[%s3545_s28 + $0xa8] sm:$0xff]  ;;  %v275_v59 = vld [vmem:[%s3545_s28 + $0xb0] sm:$0xff]  ;;  %v276_v60 = vld [vmem:[%s3545_s28 + $0xb8] sm:$0xff] }
  0x19   : > { %3256 = vmatmul.msk.bf16.vlgmr.msra.gmra.mxu0 %vm327_vm1, %v294_v9  ;;  %v304_v47 = vpack.c.bf16 %v274_v46, %v273_v45  ;;  %v305_v0 = vpack.c.bf16 %v276_v60, %v275_v59  ;;  %v277_v5 = vld [vmem:[%s3545_s28 + $0xc0] sm:$0xff]  ;;  %v278_v6 = vld [vmem:[%s3545_s28 + $0xc8] sm:$0xff]  ;;  %v280_v22 = vld [vmem:[%s3545_s28 + $0xd8] sm:$0xff] }
  0x1a   : > { %770 = vmatpush.bf16.msrb.mxu0 %v761_v56  ;;  %v306_v7 = vpack.c.bf16 %v278_v6, %v277_v5  ;;  %v282_v38 = vld [vmem:[%s3545_s28 + $0xe8] sm:$0xff]  ;;  %v283_v53 = vld [vmem:[%s3545_s28 + $0xf0] sm:$0xff]  ;;  %v284_v54 = vld [vmem:[%s3545_s28 + $0xf8] sm:$0xff] }
  0x1b   : > { %v285_v6 = vld [vmem:[%s3545_s28 + $0x100] sm:$0xff] }
  0x1e   : > { %926 = vmatpush.bf16.msra.mxu0 %v917_v51 }
  0x29   : > { %3257 = vmatmul.msk.bf16.gmra.mxu0 %vm327_vm1, %v295_v12 }
  0x39   : > { %3258 = vmatmul.msk.bf16.gmra.mxu0 %vm327_vm1, %v296_v15 }
  0x49   : > { %3259 = vmatmul.msk.bf16.gmra.mxu0 %vm327_vm1, %v297_v18 }
  0x59   : > { %3260 = vmatmul.msk.bf16.gmra.mxu0 %vm327_vm1, %v298_v21  ;;  %v279_v21 = vld [vmem:[%s3545_s28 + $0xd0] sm:$0xff] }
  0x5a   : > { %v307_v23 = vpack.c.bf16 %v280_v22, %v279_v21 }
  0x69   : > { %3261 = vmatmul.msk.bf16.gmra.mxu0 %vm327_vm1, %v299_v24 }
  0x79   : > { %3262 = vmatmul.msk.bf16.gmra.mxu0 %vm327_vm1, %v300_v27 }
  0x89   : > { %3263 = vmatmul.msk.bf16.gmra.mxu0 %vm327_vm1, %v301_v30 }
  0x96   : > { %v406_v34 = vpop.f32.mrf.mxu0 }
  0x97   : > { %v510_v35 = vmax.f32 %v406_v34, 0.0 }
  0x99   : > { %552 = vst.msk [vmem:[#allocation2] sm:$0xff] %vm551_vm2, %v510_v35  ;;  %3264 = vmatmul.msk.bf16.gmra.mxu0 %vm327_vm1, %v302_v33 }
  0x9e   : > { %v408_v36 = vpop.f32.mrf.mxu0 }
  0x9f   : > { %v511_v37 = vmax.f32 %v408_v36, 0.0 }
  0xa1   : > { %553 = vst.msk [vmem:[#allocation2 + $0x8] sm:$0xff] %vm551_vm2, %v511_v37  ;;  %v281_v37 = vld [vmem:[%s3545_s28 + $0xe0] sm:$0xff] }
  0xa2   : > { %v308_v39 = vpack.c.bf16 %v282_v38, %v281_v37 }
  0xa6   : > { %v411_v41 = vpop.f32.mrf.mxu0 }
  0xa7   : > { %v512_v42 = vmax.f32 %v411_v41, 0.0 }
  0xa9   : > { %554 = vst.msk [vmem:[#allocation2 + $0x10] sm:$0xff] %vm551_vm2, %v512_v42  ;;  %3265 = vmatmul.msk.bf16.gmra.mxu0 %vm327_vm1, %v303_v40 }
  0xae   : > { %v413_v43 = vpop.f32.mrf.mxu0 }
  0xaf   : > { %v513_v44 = vmax.f32 %v413_v43, 0.0 }
  0xb1   : > { %555 = vst.msk [vmem:[#allocation2 + $0x18] sm:$0xff] %vm551_vm2, %v513_v44 }
  0xb6   : > { %v416_v48 = vpop.f32.mrf.mxu0 }
  0xb7   : > { %v514_v50 = vmax.f32 %v416_v48, 0.0 }
  0xb9   : > { %556 = vst.msk [vmem:[#allocation2 + $0x20] sm:$0xff] %vm551_vm2, %v514_v50  ;;  %3266 = vmatmul.msk.bf16.gmra.mxu0 %vm327_vm1, %v304_v47 }
  0xbe   : > { %v418_v52 = vpop.f32.mrf.mxu0 }
  0xbf   : > { %v515_v55 = vmax.f32 %v418_v52, 0.0 }
  0xc1   : > { %557 = vst.msk [vmem:[#allocation2 + $0x28] sm:$0xff] %vm551_vm2, %v515_v55  ;;  %v309_v55 = vpack.c.bf16 %v284_v54, %v283_v53 }
  0xc6   : > { %v421_v1 = vpop.f32.mrf.mxu0 }
  0xc7   : > { %v516_v2 = vmax.f32 %v421_v1, 0.0 }
  0xc9   : > { %558 = vst.msk [vmem:[#allocation2 + $0x30] sm:$0xff] %vm551_vm2, %v516_v2  ;;  %3267 = vmatmul.msk.bf16.gmra.mxu0 %vm327_vm1, %v305_v0 }
  0xce   : > { %v423_v3 = vpop.f32.mrf.mxu0 }
  0xcf   : > { %v517_v4 = vmax.f32 %v423_v3, 0.0 }
  0xd0   : > { %v600_v10 = vld [vmem:[#allocation2 + $0x30] sm:$0xff] }
  0xd1   : > { %559 = vst.msk [vmem:[#allocation2 + $0x38] sm:$0xff] %vm551_vm2, %v517_v4 }
  0xd6   : > { %v426_v8 = vpop.f32.mrf.mxu0 }
  0xd7   : > { %v518_v9 = vmax.f32 %v426_v8, 0.0 }
  0xd8   : > { %v601_v11 = vld [vmem:[#allocation2 + $0x38] sm:$0xff] }
  0xd9   : > { %560 = vst.msk [vmem:[#allocation2 + $0x40] sm:$0xff] %vm551_vm2, %v518_v9  ;;  %3268 = vmatmul.msk.bf16.gmra.mxu0 %vm327_vm1, %v306_v7  ;;  %v633_v12 = vpack.c.bf16 %v601_v11, %v600_v10  ;;  %v655_v15 = vld [vmem:[#allocation2 + $0x31] sm:$0xff]  ;;  %v286_v7 = vld [vmem:[%s3545_s28 + $0x108] sm:$0xff] }
  0xda   : > { %v1024_v17 = vld [vmem:[#allocation2 + $0x32] sm:$0xff]  ;;  %v310_v8 = vpack.c.bf16 %v286_v7, %v285_v6 }
  0xdb   : > { %3299 = vmatmul.msk.bf16.vlgmr.msra.gmra.mxu2 %vm551_vm2, %v633_v12 }
  0xde   : > { %v428_v13 = vpop.f32.mrf.mxu0 }
  0xdf   : > { %v519_v14 = vmax.f32 %v428_v13, 0.0 }
  0xe0   : > { %v656_v16 = vld [vmem:[#allocation2 + $0x39] sm:$0xff] }
  0xe1   : > { %v1025_v18 = vld [vmem:[#allocation2 + $0x3a] sm:$0xff]  ;;  %561 = vst.msk [vmem:[#allocation2 + $0x48] sm:$0xff] %vm551_vm2, %v519_v14  ;;  %v688_v19 = vpack.c.bf16 %v656_v16, %v655_v15 }
  0xe2   : > { %v3623_v20 = vpack.c.bf16 %v1025_v18, %v1024_v17  ;;  %v602_v26 = vld [vmem:[#allocation2 + $0x40] sm:$0xff] }
  0xe3   : > { %3281 = vmatmul.msk.bf16.vlgmr.msra.gmra.mxu1 %vm551_vm2, %v688_v19 }
  0xe4   : > { %3318 = vmatmul.msk.bf16.vlgmr.msra.gmra.mxu3 %vm551_vm2, %v3623_v20 }
  0xe6   : > { %v431_v24 = vpop.f32.mrf.mxu0 }
  0xe7   : > { %v520_v25 = vmax.f32 %v431_v24, 0.0  ;;  %v288_v24 = vld [vmem:[%s3545_s28 + $0x118] sm:$0xff] }
  0xe8   : > { %v603_v27 = vld [vmem:[#allocation2 + $0x48] sm:$0xff] }
  0xe9   : > { %562 = vst.msk [vmem:[#allocation2 + $0x50] sm:$0xff] %vm551_vm2, %v520_v25  ;;  %3269 = vmatmul.msk.bf16.gmra.mxu0 %vm327_vm1, %v307_v23  ;;  %v634_v28 = vpack.c.bf16 %v603_v27, %v602_v26  ;;  %v657_v31 = vld [vmem:[#allocation2 + $0x41] sm:$0xff]  ;;  %v287_v23 = vld [vmem:[%s3545_s28 + $0x110] sm:$0xff] }
  0xea   : > { %v1026_v33 = vld [vmem:[#allocation2 + $0x42] sm:$0xff]  ;;  %v311_v25 = vpack.c.bf16 %v288_v24, %v287_v23 }
  0xeb   : > { %3300 = vmatmul.msk.bf16.gmra.mxu2 %vm551_vm2, %v634_v28 }
  0xee   : > { %v433_v29 = vpop.f32.mrf.mxu0 }
  0xef   : > { %v521_v30 = vmax.f32 %v433_v29, 0.0 }
  0xf0   : > { %v658_v32 = vld [vmem:[#allocation2 + $0x49] sm:$0xff] }
  0xf1   : > { %v1027_v34 = vld [vmem:[#allocation2 + $0x4a] sm:$0xff]  ;;  %563 = vst.msk [vmem:[#allocation2 + $0x58] sm:$0xff] %vm551_vm2, %v521_v30  ;;  %v689_v35 = vpack.c.bf16 %v658_v32, %v657_v31 }
  0xf2   : > { %v3634_v36 = vpack.c.bf16 %v1027_v34, %v1026_v33  ;;  %v604_v42 = vld [vmem:[#allocation2 + $0x50] sm:$0xff] }
  0xf3   : > { %3282 = vmatmul.msk.bf16.gmra.mxu1 %vm551_vm2, %v689_v35 }
  0xf4   : > { %3319 = vmatmul.msk.bf16.gmra.mxu3 %vm551_vm2, %v3634_v36 }
  0xf6   : > { %v436_v40 = vpop.f32.mrf.mxu0 }
  0xf7   : > { %v522_v41 = vmax.f32 %v436_v40, 0.0  ;;  %v289_v40 = vld [vmem:[%s3545_s28 + $0x120] sm:$0xff] }
  0xf8   : > { %v605_v43 = vld [vmem:[#allocation2 + $0x58] sm:$0xff] }
  0xf9   : > { %564 = vst.msk [vmem:[#allocation2 + $0x60] sm:$0xff] %vm551_vm2, %v522_v41  ;;  %3270 = vmatmul.msk.bf16.gmra.mxu0 %vm327_vm1, %v308_v39  ;;  %v635_v44 = vpack.c.bf16 %v605_v43, %v604_v42  ;;  %v659_v47 = vld [vmem:[#allocation2 + $0x51] sm:$0xff]  ;;  %v290_v41 = vld [vmem:[%s3545_s28 + $0x128] sm:$0xff] }
  0xfa   : > { %v1028_v49 = vld [vmem:[#allocation2 + $0x52] sm:$0xff]  ;;  %v312_v42 = vpack.c.bf16 %v290_v41, %v289_v40 }
  0xfb   : > { %3301 = vmatmul.msk.bf16.gmra.mxu2 %vm551_vm2, %v635_v44 }
  0xfe   : > { %v438_v45 = vpop.f32.mrf.mxu0 }
  0xff   : > { %v523_v46 = vmax.f32 %v438_v45, 0.0 }
 0x100   : > { %v660_v48 = vld [vmem:[#allocation2 + $0x59] sm:$0xff] }
 0x101   : > { %v1029_v50 = vld [vmem:[#allocation2 + $0x5a] sm:$0xff]  ;;  %565 = vst.msk [vmem:[#allocation2 + $0x68] sm:$0xff] %vm551_vm2, %v523_v46  ;;  %v690_v51 = vpack.c.bf16 %v660_v48, %v659_v47 }
 0x102   : > { %v3645_v52 = vpack.c.bf16 %v1029_v50, %v1028_v49  ;;  %v606_v59 = vld [vmem:[#allocation2 + $0x60] sm:$0xff] }
 0x103   : > { %3283 = vmatmul.msk.bf16.gmra.mxu1 %vm551_vm2, %v690_v51 }
 0x104   : > { %3320 = vmatmul.msk.bf16.gmra.mxu3 %vm551_vm2, %v3645_v52 }
 0x106   : > { %v441_v56 = vpop.f32.mrf.mxu0 }
 0x107   : > { %v524_v58 = vmax.f32 %v441_v56, 0.0 }
 0x108   : > { %v607_v60 = vld [vmem:[#allocation2 + $0x68] sm:$0xff] }
 0x109   : > { %566 = vst.msk [vmem:[#allocation2 + $0x70] sm:$0xff] %vm551_vm2, %v524_v58  ;;  %3271 = vmatmul.msk.bf16.gmra.mxu0 %vm327_vm1, %v309_v55  ;;  %v636_v61 = vpack.c.bf16 %v607_v60, %v606_v59  ;;  %v661_v0 = vld [vmem:[#allocation2 + $0x61] sm:$0xff]  ;;  %v291_v58 = vld [vmem:[%s3545_s28 + $0x130] sm:$0xff]  ;;  %v292_v59 = vld [vmem:[%s3545_s28 + $0x138] sm:$0xff] }
 0x10a   : > { %v1030_v2 = vld [vmem:[#allocation2 + $0x62] sm:$0xff]  ;;  %v313_v60 = vpack.c.bf16 %v292_v59, %v291_v58 }
 0x10b   : > { %3302 = vmatmul.msk.bf16.gmra.mxu2 %vm551_vm2, %v636_v61 }
 0x10e   : > { %v443_v62 = vpop.f32.mrf.mxu0 }
 0x10f   : > { %v525_v63 = vmax.f32 %v443_v62, 0.0 }
 0x110   : > { %v662_v1 = vld [vmem:[#allocation2 + $0x69] sm:$0xff] }
 0x111   : > { %v1031_v3 = vld [vmem:[#allocation2 + $0x6a] sm:$0xff]  ;;  %567 = vst.msk [vmem:[#allocation2 + $0x78] sm:$0xff] %vm551_vm2, %v525_v63  ;;  %v691_v4 = vpack.c.bf16 %v662_v1, %v661_v0 }
 0x112   : > { %v3656_v5 = vpack.c.bf16 %v1031_v3, %v1030_v2  ;;  %v608_v11 = vld [vmem:[#allocation2 + $0x70] sm:$0xff] }
 0x113   : > { %3284 = vmatmul.msk.bf16.gmra.mxu1 %vm551_vm2, %v691_v4 }
 0x114   : > { %3321 = vmatmul.msk.bf16.gmra.mxu3 %vm551_vm2, %v3656_v5 }
 0x116   : > { %v446_v9 = vpop.f32.mrf.mxu0 }
 0x117   : > { %v526_v10 = vmax.f32 %v446_v9, 0.0 }
 0x118   : > { %v609_v12 = vld [vmem:[#allocation2 + $0x78] sm:$0xff] }
 0x119   : > { %568 = vst.msk [vmem:[#allocation2 + $0x80] sm:$0xff] %vm551_vm2, %v526_v10  ;;  %3272 = vmatmul.msk.bf16.gmra.mxu0 %vm327_vm1, %v310_v8  ;;  %v637_v13 = vpack.c.bf16 %v609_v12, %v608_v11  ;;  %v663_v16 = vld [vmem:[#allocation2 + $0x71] sm:$0xff]  ;;  %v293_v11 = vld [vmem:[%s3545_s28 + $0x140] sm:$0x3f]  ;;  %v3371_v12 = vld [vmem:[%s4404_s2 + $0xa] sm:$0x3] }
 0x11a   : > { %v1032_v18 = vld [vmem:[#allocation2 + $0x72] sm:$0xff] }
 0x11b   : > { %3303 = vmatmul.msk.bf16.gmra.mxu2 %vm551_vm2, %v637_v13  ;;  %v1873_v13 = vsel %vm759_vm3, %v3371_v12, 0 }
 0x11c   : > { %1882 = vmatpush.bf16.msrb.mxu3 %v1873_v13 }
 0x11e   : > { %v448_v14 = vpop.f32.mrf.mxu0 }
 0x11f   : > { %v527_v15 = vmax.f32 %v448_v14, 0.0  ;;  %v314_v14 = vpack.c.bf16 %v293_v11, %v293_v11 }
 0x120   : > { %v664_v17 = vld [vmem:[#allocation2 + $0x79] sm:$0xff] }
 0x121   : > { %v1033_v19 = vld [vmem:[#allocation2 + $0x7a] sm:$0xff]  ;;  %569 = vst.msk [vmem:[#allocation2 + $0x88] sm:$0xff] %vm551_vm2, %v527_v15  ;;  %v692_v21 = vpack.c.bf16 %v664_v17, %v663_v16 }
 0x122   : > { %v3667_v22 = vpack.c.bf16 %v1033_v19, %v1032_v18  ;;  %v610_v28 = vld [vmem:[#allocation2 + $0x80] sm:$0xff] }
 0x123   : > { %3285 = vmatmul.msk.bf16.gmra.mxu1 %vm551_vm2, %v692_v21 }
 0x124   : > { %3322 = vmatmul.msk.bf16.gmra.mxu3 %vm551_vm2, %v3667_v22 }
 0x126   : > { %v451_v26 = vpop.f32.mrf.mxu0 }
 0x127   : > { %v528_v27 = vmax.f32 %v451_v26, 0.0 }
 0x128   : > { %v611_v29 = vld [vmem:[#allocation2 + $0x88] sm:$0xff] }
 0x129   : > { %570 = vst.msk [vmem:[#allocation2 + $0x90] sm:$0xff] %vm551_vm2, %v528_v27  ;;  %3273 = vmatmul.msk.bf16.gmra.mxu0 %vm327_vm1, %v311_v25  ;;  %v638_v30 = vpack.c.bf16 %v611_v29, %v610_v28  ;;  %v665_v33 = vld [vmem:[#allocation2 + $0x81] sm:$0xff] }
 0x12a   : > { %v1034_v35 = vld [vmem:[#allocation2 + $0x82] sm:$0xff] }
 0x12b   : > { %3304 = vmatmul.msk.bf16.gmra.mxu2 %vm551_vm2, %v638_v30 }
 0x12e   : > { %v453_v31 = vpop.f32.mrf.mxu0 }
 0x12f   : > { %v529_v32 = vmax.f32 %v453_v31, 0.0 }
 0x130   : > { %v666_v34 = vld [vmem:[#allocation2 + $0x89] sm:$0xff] }
 0x131   : > { %v1035_v37 = vld [vmem:[#allocation2 + $0x8a] sm:$0xff]  ;;  %571 = vst.msk [vmem:[#allocation2 + $0x98] sm:$0xff] %vm551_vm2, %v529_v32  ;;  %v693_v38 = vpack.c.bf16 %v666_v34, %v665_v33 }
 0x132   : > { %v3678_v39 = vpack.c.bf16 %v1035_v37, %v1034_v35  ;;  %v612_v45 = vld [vmem:[#allocation2 + $0x90] sm:$0xff]  ;;  %v649_v37 = vld [vmem:[#allocation2 + $0x1] sm:$0xff] }
 0x133   : > { %3286 = vmatmul.msk.bf16.gmra.mxu1 %vm551_vm2, %v693_v38  ;;  %v650_v33 = vld [vmem:[#allocation2 + $0x9] sm:$0xff] }
 0x134   : > { %3323 = vmatmul.msk.bf16.gmra.mxu3 %vm551_vm2, %v3678_v39  ;;  %v685_v41 = vpack.c.bf16 %v650_v33, %v649_v37 }
 0x136   : > { %v456_v43 = vpop.f32.mrf.mxu0 }
 0x137   : > { %v530_v44 = vmax.f32 %v456_v43, 0.0 }
 0x138   : > { %v613_v46 = vld [vmem:[#allocation2 + $0x98] sm:$0xff] }
 0x139   : > { %572 = vst.msk [vmem:[#allocation2 + $0xa0] sm:$0xff] %vm551_vm2, %v530_v44  ;;  %3274 = vmatmul.msk.bf16.gmra.mxu0 %vm327_vm1, %v312_v42  ;;  %v639_v47 = vpack.c.bf16 %v613_v46, %v612_v45  ;;  %v667_v50 = vld [vmem:[#allocation2 + $0x91] sm:$0xff] }
 0x13a   : > { %v1036_v53 = vld [vmem:[#allocation2 + $0x92] sm:$0xff] }
 0x13b   : > { %3305 = vmatmul.msk.bf16.gmra.mxu2 %vm551_vm2, %v639_v47 }
 0x13e   : > { %v458_v48 = vpop.f32.mrf.mxu0 }
 0x13f   : > { %v531_v49 = vmax.f32 %v458_v48, 0.0 }
 0x140   : > { %v668_v51 = vld [vmem:[#allocation2 + $0x99] sm:$0xff] }
 0x141   : > { %v1037_v54 = vld [vmem:[#allocation2 + $0x9a] sm:$0xff]  ;;  %573 = vst.msk [vmem:[#allocation2 + $0xa8] sm:$0xff] %vm551_vm2, %v531_v49  ;;  %v694_v55 = vpack.c.bf16 %v668_v51, %v667_v50 }
 0x142   : > { %v1063_v56 = vpack.c.bf16 %v1037_v54, %v1036_v53  ;;  %v614_v63 = vld [vmem:[#allocation2 + $0xa0] sm:$0xff] }
 0x143   : > { %3287 = vmatmul.msk.bf16.gmra.mxu1 %vm551_vm2, %v694_v55 }
 0x144   : > { %3324 = vmatmul.msk.bf16.gmra.mxu3 %vm551_vm2, %v1063_v56 }
 0x146   : > { %v461_v61 = vpop.f32.mrf.mxu0 }
 0x147   : > { %v532_v62 = vmax.f32 %v461_v61, 0.0 }
 0x148   : > { %v615_v0 = vld [vmem:[#allocation2 + $0xa8] sm:$0xff] }
 0x149   : > { %574 = vst.msk [vmem:[#allocation2 + $0xb0] sm:$0xff] %vm551_vm2, %v532_v62  ;;  %3275 = vmatmul.msk.bf16.gmra.mxu0 %vm327_vm1, %v313_v60  ;;  %v640_v1 = vpack.c.bf16 %v615_v0, %v614_v63  ;;  %v669_v4 = vld [vmem:[#allocation2 + $0xa1] sm:$0xff] }
 0x14a   : > { %v1038_v7 = vld [vmem:[#allocation2 + $0xa2] sm:$0xff] }
 0x14b   : > { %3306 = vmatmul.msk.bf16.gmra.mxu2 %vm551_vm2, %v640_v1  ;;  %v651_v1 = vld [vmem:[#allocation2 + $0x11] sm:$0xff] }
 0x14e   : > { %v463_v2 = vpop.f32.mrf.mxu0 }
 0x14f   : > { %v533_v3 = vmax.f32 %v463_v2, 0.0 }
 0x150   : > { %v670_v6 = vld [vmem:[#allocation2 + $0xa9] sm:$0xff] }
 0x151   : > { %v1039_v8 = vld [vmem:[#allocation2 + $0xaa] sm:$0xff]  ;;  %575 = vst.msk [vmem:[#allocation2 + $0xb8] sm:$0xff] %vm551_vm2, %v533_v3  ;;  %v695_v9 = vpack.c.bf16 %v670_v6, %v669_v4 }
 0x152   : > { %v1064_v10 = vpack.c.bf16 %v1039_v8, %v1038_v7  ;;  %v616_v17 = vld [vmem:[#allocation2 + $0xb0] sm:$0xff] }
 0x153   : > { %3288 = vmatmul.msk.bf16.gmra.mxu1 %vm551_vm2, %v695_v9 }
 0x154   : > { %3325 = vmatmul.msk.bf16.gmra.mxu3 %vm551_vm2, %v1064_v10 }
 0x156   : > { %v466_v15 = vpop.f32.mrf.mxu0 }
 0x157   : > { %v534_v16 = vmax.f32 %v466_v15, 0.0 }
 0x158   : > { %v617_v18 = vld [vmem:[#allocation2 + $0xb8] sm:$0xff] }
 0x159   : > { %576 = vst.msk [vmem:[#allocation2 + $0xc0] sm:$0xff] %vm551_vm2, %v534_v16  ;;  %3276 = vmatmul.msk.bf16.gmra.mxu0 %vm327_vm1, %v314_v14  ;;  %v641_v19 = vpack.c.bf16 %v617_v18, %v616_v17  ;;  %v671_v25 = vld [vmem:[#allocation2 + $0xb1] sm:$0xff] }
 0x15a   : > { %v1040_v28 = vld [vmem:[#allocation2 + $0xb2] sm:$0xff] }
 0x15b   : > { %3307 = vmatmul.msk.bf16.gmra.mxu2 %vm551_vm2, %v641_v19 }
 0x15e   : > { %v468_v21 = vpop.f32.mrf.mxu0  ;;  %v943_v23 = vpop.f32.mrf.mxu2 }
 0x15f   : > { %v535_v24 = vmax.f32 %v468_v21, 0.0 }
 0x160   : > { %v787_v26 = vpop.f32.mrf.mxu1  ;;  %v672_v27 = vld [vmem:[#allocation2 + $0xb9] sm:$0xff] }
 0x161   : > { %v1041_v29 = vld [vmem:[#allocation2 + $0xba] sm:$0xff]  ;;  %577 = vst.msk [vmem:[#allocation2 + $0xc8] sm:$0xff] %vm551_vm2, %v535_v24  ;;  %v944_v30 = vadd.f32 %v943_v23, %v787_v26  ;;  %v696_v31 = vpack.c.bf16 %v672_v27, %v671_v25  ;;  %v654_v27 = vld [vmem:[#allocation2 + $0x29] sm:$0xff] }
 0x162   : > { %v1065_v32 = vpack.c.bf16 %v1041_v29, %v1040_v28  ;;  %v618_v44 = vld [vmem:[#allocation2 + $0xc0] sm:$0xff] }
 0x163   : > { %3289 = vmatmul.msk.bf16.gmra.mxu1 %vm551_vm2, %v696_v31 }
 0x164   : > { %3326 = vmatmul.msk.bf16.gmra.mxu3 %vm551_vm2, %v1065_v32 }
 0x166   : > { %v471_v34 = vpop.f32.mrf.mxu0  ;;  %v945_v35 = vpop.f32.mrf.mxu2 }
 0x167   : > { %v536_v38 = vmax.f32 %v471_v34, 0.0  ;;  %v1155_v40 = vpop.f32.mrf.mxu3 }
 0x168   : > { %v3710_v42 = vadd.f32 %v1155_v40, %v944_v30  ;;  %v789_v43 = vpop.f32.mrf.mxu1  ;;  %v619_v45 = vld [vmem:[#allocation2 + $0xc8] sm:$0xff] }
 0x169   : > { %578 = vst.msk [vmem:[#allocation2 + $0xd0] sm:$0xff] %vm551_vm2, %v536_v38  ;;  %v946_v46 = vadd.f32 %v945_v35, %v789_v43  ;;  %3278 = vmatmul.msk.bf16.vlgmr.msrb.gmra.mxu0 %vm551_vm2, %v685_v41  ;;  %v642_v47 = vpack.c.bf16 %v619_v45, %v618_v44  ;;  %v673_v53 = vld [vmem:[#allocation2 + $0xc1] sm:$0xff] }
 0x16a   : > { %1138 = vmatpush.bf16.msrb.mxu0 %v3600_v57  ;;  %v1042_v58 = vld [vmem:[#allocation2 + $0xc2] sm:$0xff]  ;;  %v652_v57 = vld [vmem:[#allocation2 + $0x19] sm:$0xff] }
 0x16b   : > { %3308 = vmatmul.msk.bf16.gmra.mxu2 %vm551_vm2, %v642_v47  ;;  %v686_v4 = vpack.c.bf16 %v652_v57, %v651_v1  ;;  %v653_v30 = vld [vmem:[#allocation2 + $0x21] sm:$0xff] }
 0x16c   : > { %v687_v33 = vpack.c.bf16 %v654_v27, %v653_v30 }
 0x16e   : > { %v473_v48 = vpop.f32.mrf.mxu0  ;;  %v948_v49 = vpop.f32.mrf.mxu2 }
 0x16f   : > { %v537_v50 = vmax.f32 %v473_v48, 0.0  ;;  %v1157_v51 = vpop.f32.mrf.mxu3 }
 0x170   : > { %v3716_v54 = vadd.f32 %v1157_v51, %v946_v46  ;;  %v792_v55 = vpop.f32.mrf.mxu1  ;;  %v674_v56 = vld [vmem:[#allocation2 + $0xc9] sm:$0xff] }
 0x171   : > { %v1043_v59 = vld [vmem:[#allocation2 + $0xca] sm:$0xff]  ;;  %579 = vst.msk [vmem:[#allocation2 + $0xd8] sm:$0xff] %vm551_vm2, %v537_v50  ;;  %v949_v60 = vadd.f32 %v948_v49, %v792_v55  ;;  %v697_v61 = vpack.c.bf16 %v674_v56, %v673_v53 }
 0x172   : > { %v1066_v62 = vpack.c.bf16 %v1043_v59, %v1042_v58  ;;  %v620_v8 = vld [vmem:[#allocation2 + $0xd0] sm:$0xff]  ;;  %v595_v59 = vld [vmem:[#allocation2 + $0x8] sm:$0xff] }
 0x173   : > { %3290 = vmatmul.msk.bf16.gmra.mxu1 %vm551_vm2, %v697_v61 }
 0x174   : > { %3327 = vmatmul.msk.bf16.gmra.mxu3 %vm551_vm2, %v1066_v62  ;;  %v594_v62 = vld [vmem:[#allocation2] sm:$0xff] }
 0x176   : > { %v476_v63 = vpop.f32.mrf.mxu0  ;;  %v950_v0 = vpop.f32.mrf.mxu2 }
 0x177   : > { %v538_v2 = vmax.f32 %v476_v63, 0.0  ;;  %v1160_v3 = vpop.f32.mrf.mxu3 }
 0x178   : > { %v3721_v6 = vadd.f32 %v1160_v3, %v949_v60  ;;  %v794_v7 = vpop.f32.mrf.mxu1  ;;  %v621_v9 = vld [vmem:[#allocation2 + $0xd8] sm:$0xff] }
 0x179   : > { %580 = vst.msk [vmem:[#allocation2 + $0xe0] sm:$0xff] %vm551_vm2, %v538_v2  ;;  %v951_v10 = vadd.f32 %v950_v0, %v794_v7  ;;  %3279 = vmatmul.msk.bf16.gmra.mxu0 %vm551_vm2, %v686_v4  ;;  %v643_v11 = vpack.c.bf16 %v621_v9, %v620_v8  ;;  %v675_v16 = vld [vmem:[#allocation2 + $0xd1] sm:$0xff]  ;;  %v630_v0 = vpack.c.bf16 %v595_v59, %v594_v62  ;;  %v599_v62 = vld [vmem:[#allocation2 + $0x28] sm:$0xff] }
 0x17a   : > { %v1044_v21 = vld [vmem:[#allocation2 + $0xd2] sm:$0xff]  ;;  %v3428_v59 = vld [vmem:[%s4404_s2 + $0x10] sm:$0x3] }
 0x17b   : > { %3309 = vmatmul.msk.bf16.gmra.mxu2 %vm551_vm2, %v643_v11 }
 0x17e   : > { %v478_v12 = vpop.f32.mrf.mxu0  ;;  %v953_v13 = vpop.f32.mrf.mxu2 }
 0x17f   : > { %v539_v14 = vmax.f32 %v478_v12, 0.0  ;;  %v1162_v15 = vpop.f32.mrf.mxu3 }
 0x180   : > { %v3726_v17 = vadd.f32 %v1162_v15, %v951_v10  ;;  %v797_v18 = vpop.f32.mrf.mxu1  ;;  %v676_v19 = vld [vmem:[#allocation2 + $0xd9] sm:$0xff] }
 0x181   : > { %v1045_v23 = vld [vmem:[#allocation2 + $0xda] sm:$0xff]  ;;  %581 = vst.msk [vmem:[#allocation2 + $0xe8] sm:$0xff] %vm551_vm2, %v539_v14  ;;  %v954_v24 = vadd.f32 %v953_v13, %v797_v18  ;;  %v698_v25 = vpack.c.bf16 %v676_v19, %v675_v16 }
 0x182   : > { %v1067_v26 = vpack.c.bf16 %v1045_v23, %v1044_v21  ;;  %v622_v37 = vld [vmem:[#allocation2 + $0xe0] sm:$0xff] }
 0x183   : > { %3291 = vmatmul.msk.bf16.gmra.mxu1 %vm551_vm2, %v698_v25  ;;  %v597_v25 = vld [vmem:[#allocation2 + $0x18] sm:$0xff] }
 0x184   : > { %3328 = vmatmul.msk.bf16.gmra.mxu3 %vm551_vm2, %v1067_v26 }
 0x186   : > { %v481_v28 = vpop.f32.mrf.mxu0  ;;  %v955_v29 = vpop.f32.mrf.mxu2 }
 0x187   : > { %v540_v31 = vmax.f32 %v481_v28, 0.0  ;;  %v1165_v32 = vpop.f32.mrf.mxu3  ;;  %v596_v28 = vld [vmem:[#allocation2 + $0x10] sm:$0xff] }
 0x188   : > { %v3731_v34 = vadd.f32 %v1165_v32, %v954_v24  ;;  %v799_v35 = vpop.f32.mrf.mxu1  ;;  %v623_v38 = vld [vmem:[#allocation2 + $0xe8] sm:$0xff] }
 0x189   : > { %582 = vst.msk [vmem:[#allocation2 + $0xf0] sm:$0xff] %vm551_vm2, %v540_v31  ;;  %v956_v40 = vadd.f32 %v955_v29, %v799_v35  ;;  %3280 = vmatmul.msk.bf16.gmra.mxu0 %vm551_vm2, %v687_v33  ;;  %v644_v41 = vpack.c.bf16 %v623_v38, %v622_v37  ;;  %v677_v47 = vld [vmem:[#allocation2 + $0xe1] sm:$0xff]  ;;  %v631_v31 = vpack.c.bf16 %v597_v25, %v596_v28 }
 0x18a   : > { %v1046_v51 = vld [vmem:[#allocation2 + $0xe2] sm:$0xff] }
 0x18b   : > { %3310 = vmatmul.msk.bf16.gmra.mxu2 %vm551_vm2, %v644_v41 }
 0x18e   : > { %v483_v43 = vpop.f32.mrf.mxu0  ;;  %v958_v44 = vpop.f32.mrf.mxu2 }
 0x18f   : > { %v541_v45 = vmax.f32 %v483_v43, 0.0  ;;  %v1167_v46 = vpop.f32.mrf.mxu3 }
 0x190   : > { %v3736_v48 = vadd.f32 %v1167_v46, %v956_v40  ;;  %v802_v49 = vpop.f32.mrf.mxu1  ;;  %v678_v50 = vld [vmem:[#allocation2 + $0xe9] sm:$0xff] }
 0x191   : > { %v1047_v53 = vld [vmem:[#allocation2 + $0xea] sm:$0xff]  ;;  %583 = vst.msk [vmem:[#allocation2 + $0xf8] sm:$0xff] %vm551_vm2, %v541_v45  ;;  %v959_v55 = vadd.f32 %v958_v44, %v802_v49  ;;  %v699_v56 = vpack.c.bf16 %v678_v50, %v677_v47 }
 0x192   : > { %v1068_v58 = vpack.c.bf16 %v1047_v53, %v1046_v51  ;;  %v624_v3 = vld [vmem:[#allocation2 + $0xf0] sm:$0xff] }
 0x193   : > { %3292 = vmatmul.msk.bf16.gmra.mxu1 %vm551_vm2, %v699_v56 }
 0x194   : > { %3329 = vmatmul.msk.bf16.gmra.mxu3 %vm551_vm2, %v1068_v58 }
 0x196   : > { %v486_v60 = vpop.f32.mrf.mxu0  ;;  %v960_v61 = vpop.f32.mrf.mxu2 }
 0x197   : > { %v542_v57 = vmax.f32 %v486_v60, 0.0  ;;  %v1170_v63 = vpop.f32.mrf.mxu3  ;;  %v2617_v60 = vsel %vm759_vm3, %v3428_v59, 0 }
 0x198   : > { %v3741_v1 = vadd.f32 %v1170_v63, %v959_v55  ;;  %v804_v2 = vpop.f32.mrf.mxu1  ;;  %v625_v4 = vld [vmem:[#allocation2 + $0xf8] sm:$0xff]  ;;  %2626 = vmatpush.bf16.msra.mxu2 %v2617_v60 }
 0x199   : > { %584 = vst.msk [vmem:[#allocation2 + $0x100] sm:$0xff] %vm551_vm2, %v542_v57  ;;  %v961_v7 = vadd.f32 %v960_v61, %v804_v2  ;;  %3296 = vmatmul.msk.bf16.vlgmr.msra.gmra.mxu0 %vm551_vm2, %v630_v0  ;;  %v645_v8 = vpack.c.bf16 %v625_v4, %v624_v3  ;;  %v679_v13 = vld [vmem:[#allocation2 + $0xf1] sm:$0xff]  ;;  %v3409_v61 = vld [vmem:[%s4404_s2 + $0xe] sm:$0x3]  ;;  %v598_v2 = vld [vmem:[#allocation2 + $0x20] sm:$0xff] }
 0x19a   : > { %v1048_v18 = vld [vmem:[#allocation2 + $0xf2] sm:$0xff]  ;;  %v2369_v57 = vsel %vm759_vm3, %v3409_v61, 0 }
 0x19b   : > { %3311 = vmatmul.msk.bf16.gmra.mxu2 %vm551_vm2, %v645_v8  ;;  %2378 = vmatpush.bf16.msra.mxu1 %v2369_v57  ;;  %v1762_v57 = vld [vmem:[#allocation2 + $0x14] sm:$0xff] }
 0x19e   : > { %v488_v9 = vpop.f32.mrf.mxu0  ;;  %v963_v10 = vpop.f32.mrf.mxu2 }
 0x19f   : > { %v543_v11 = vmax.f32 %v488_v9, 0.0  ;;  %v1172_v12 = vpop.f32.mrf.mxu3 }
 0x1a0   : > { %v3746_v14 = vadd.f32 %v1172_v12, %v961_v7  ;;  %v807_v15 = vpop.f32.mrf.mxu1  ;;  %v680_v16 = vld [vmem:[#allocation2 + $0xf9] sm:$0xff]  ;;  %v632_v7 = vpack.c.bf16 %v599_v62, %v598_v2 }
 0x1a1   : > { %v1049_v19 = vld [vmem:[#allocation2 + $0xfa] sm:$0xff]  ;;  %585 = vst.msk [vmem:[#allocation2 + $0x108] sm:$0xff] %vm551_vm2, %v543_v11  ;;  %v964_v21 = vadd.f32 %v963_v10, %v807_v15  ;;  %v700_v23 = vpack.c.bf16 %v680_v16, %v679_v13  ;;  %v1266_v62 = vld [vmem:[#allocation2 + $0x12] sm:$0xff] }
 0x1a2   : > { %v1069_v24 = vpack.c.bf16 %v1049_v19, %v1048_v18  ;;  %v626_v35 = vld [vmem:[#allocation2 + $0x100] sm:$0xff] }
 0x1a3   : > { %3293 = vmatmul.msk.bf16.gmra.mxu1 %vm551_vm2, %v700_v23 }
 0x1a4   : > { %3330 = vmatmul.msk.bf16.gmra.mxu3 %vm551_vm2, %v1069_v24 }
 0x1a6   : > { %v491_v26 = vpop.f32.mrf.mxu0  ;;  %v965_v27 = vpop.f32.mrf.mxu2 }
 0x1a7   : > { %v544_v29 = vmax.f32 %v491_v26, 0.0  ;;  %v1175_v30 = vpop.f32.mrf.mxu3 }
 0x1a8   : > { %v3751_v32 = vadd.f32 %v1175_v30, %v964_v21  ;;  %v809_v33 = vpop.f32.mrf.mxu1  ;;  %v627_v37 = vld [vmem:[#allocation2 + $0x108] sm:$0xff] }
 0x1a9   : > { %586 = vst.msk [vmem:[#allocation2 + $0x110] sm:$0xff] %vm551_vm2, %v544_v29  ;;  %v966_v38 = vadd.f32 %v965_v27, %v809_v33  ;;  %3297 = vmatmul.msk.bf16.gmra.mxu0 %vm551_vm2, %v631_v31  ;;  %v646_v40 = vpack.c.bf16 %v627_v37, %v626_v35  ;;  %v681_v46 = vld [vmem:[#allocation2 + $0x101] sm:$0xff]  ;;  %v1019_v31 = vld [vmem:[#allocation2 + $0xa] sm:$0xff] }
 0x1aa   : > { %v1050_v51 = vld [vmem:[#allocation2 + $0x102] sm:$0xff] }
 0x1ab   : > { %3312 = vmatmul.msk.bf16.gmra.mxu2 %vm551_vm2, %v646_v40  ;;  %v1018_v37 = vld [vmem:[#allocation2 + $0x2] sm:$0xff] }
 0x1ae   : > { %v493_v41 = vpop.f32.mrf.mxu0  ;;  %v968_v43 = vpop.f32.mrf.mxu2 }
 0x1af   : > { %v545_v44 = vmax.f32 %v493_v41, 0.0  ;;  %v1177_v45 = vpop.f32.mrf.mxu3 }
 0x1b0   : > { %v3756_v47 = vadd.f32 %v1177_v45, %v966_v38  ;;  %v812_v49 = vpop.f32.mrf.mxu1  ;;  %v682_v50 = vld [vmem:[#allocation2 + $0x109] sm:$0xff]  ;;  %v1515_v38 = vld [vmem:[#allocation2 + $0x1b] sm:$0xff] }
 0x1b1   : > { %v1051_v53 = vld [vmem:[#allocation2 + $0x10a] sm:$0xff]  ;;  %587 = vst.msk [vmem:[#allocation2 + $0x118] sm:$0xff] %vm551_vm2, %v545_v44  ;;  %v969_v55 = vadd.f32 %v968_v43, %v812_v49  ;;  %v701_v56 = vpack.c.bf16 %v682_v50, %v681_v46  ;;  %v1054_v43 = vpack.c.bf16 %v1019_v31, %v1018_v37  ;;  %v1514_v46 = vld [vmem:[#allocation2 + $0x13] sm:$0xff] }
 0x1b2   : > { %v1070_v58 = vpack.c.bf16 %v1051_v53, %v1050_v51  ;;  %v628_v10 = vld [vmem:[#allocation2 + $0x110] sm:$0xff]  ;;  %v1550_v50 = vpack.c.bf16 %v1515_v38, %v1514_v46  ;;  %v1764_v31 = vld [vmem:[#allocation2 + $0x24] sm:$0xff] }
 0x1b3   : > { %3294 = vmatmul.msk.bf16.gmra.mxu1 %vm551_vm2, %v701_v56  ;;  %v1763_v56 = vld [vmem:[#allocation2 + $0x1c] sm:$0xff] }
 0x1b4   : > { %3331 = vmatmul.msk.bf16.gmra.mxu3 %vm551_vm2, %v1070_v58  ;;  %v1798_v2 = vpack.c.bf16 %v1763_v56, %v1762_v57  ;;  %v1767_v56 = vld [vmem:[#allocation2 + $0x3c] sm:$0xff] }
 0x1b6   : > { %v496_v63 = vpop.f32.mrf.mxu0  ;;  %v970_v0 = vpop.f32.mrf.mxu2 }
 0x1b7   : > { %v546_v3 = vmax.f32 %v496_v63, 0.0  ;;  %v1180_v4 = vpop.f32.mrf.mxu3 }
 0x1b8   : > { %v3769_v8 = vadd.f32 %v1180_v4, %v969_v55  ;;  %v814_v9 = vpop.f32.mrf.mxu1  ;;  %v629_v11 = vld [vmem:[#allocation2 + $0x118] sm:$0xff] }
 0x1b9   : > { %588 = vst.msk [vmem:[#allocation2 + $0x120] sm:$0xff] %vm551_vm2, %v546_v3  ;;  %v971_v12 = vadd.f32 %v970_v0, %v814_v9  ;;  %3298 = vmatmul.msk.bf16.gmra.mxu0 %vm551_vm2, %v632_v7  ;;  %v647_v13 = vpack.c.bf16 %v629_v11, %v628_v10  ;;  %v683_v21 = vld [vmem:[#allocation2 + $0x111] sm:$0xff]  ;;  %v1267_v55 = vld [vmem:[#allocation2 + $0x1a] sm:$0xff]  ;;  %v3390_v3 = vld [vmem:[%s4404_s2 + $0xc] sm:$0x3] }
 0x1ba   : > { %v1052_v26 = vld [vmem:[#allocation2 + $0x112] sm:$0xff]  ;;  %v1302_v0 = vpack.c.bf16 %v1267_v55, %v1266_v62  ;;  %v2121_v10 = vsel %vm759_vm3, %v3390_v3, 0 }
 0x1bb   : > { %3313 = vmatmul.msk.bf16.gmra.mxu2 %vm551_vm2, %v647_v13  ;;  %v1517_v9 = vld [vmem:[#allocation2 + $0x2b] sm:$0xff]  ;;  %2130 = vmatpush.bf16.msra.mxu0 %v2121_v10  ;;  %v1766_v62 = vld [vmem:[#allocation2 + $0x34] sm:$0xff]  ;;  %v1520_v10 = vld [vmem:[#allocation2 + $0x43] sm:$0xff] }
 0x1bc   : > { %v1521_v3 = vld [vmem:[#allocation2 + $0x4b] sm:$0xff] }
 0x1be   : > { %v498_v15 = vpop.f32.mrf.mxu0  ;;  %v973_v16 = vpop.f32.mrf.mxu2 }
 0x1bf   : > { %v547_v18 = vmax.f32 %v498_v15, 0.0  ;;  %v1182_v19 = vpop.f32.mrf.mxu3 }
 0x1c0   : > { %v3774_v23 = vadd.f32 %v1182_v19, %v971_v12  ;;  %v817_v24 = vpop.f32.mrf.mxu1  ;;  %v684_v25 = vld [vmem:[#allocation2 + $0x119] sm:$0xff] }
 0x1c1   : > { %v1053_v27 = vld [vmem:[#allocation2 + $0x11a] sm:$0xff]  ;;  %589 = vst.msk [vmem:[#allocation2 + $0x128] sm:$0xff] %vm551_vm2, %v547_v18  ;;  %v974_v28 = vadd.f32 %v973_v16, %v817_v24  ;;  %v702_v29 = vpack.c.bf16 %v684_v25, %v683_v21  ;;  %v1516_v16 = vld [vmem:[#allocation2 + $0x23] sm:$0xff] }
 0x1c2   : > { %v1071_v30 = vpack.c.bf16 %v1053_v27, %v1052_v26  ;;  %v1551_v19 = vpack.c.bf16 %v1517_v9, %v1516_v16  ;;  %v1269_v25 = vld [vmem:[#allocation2 + $0x2a] sm:$0xff] }
 0x1c3   : > { %3295 = vmatmul.msk.bf16.gmra.mxu1 %vm551_vm2, %v702_v29  ;;  %v1765_v26 = vld [vmem:[#allocation2 + $0x2c] sm:$0xff] }
 0x1c4   : > { %3332 = vmatmul.msk.bf16.gmra.mxu3 %vm551_vm2, %v1071_v30  ;;  %v1268_v30 = vld [vmem:[#allocation2 + $0x22] sm:$0xff]  ;;  %v1799_v37 = vpack.c.bf16 %v1765_v26, %v1764_v31  ;;  %v1769_v16 = vld [vmem:[#allocation2 + $0x4c] sm:$0xff] }
 0x1c6   : > { %v501_v33 = vpop.f32.mrf.mxu0  ;;  %v975_v35 = vpop.f32.mrf.mxu2 }
 0x1c7   : > { %v548_v40 = vmax.f32 %v501_v33, 0.0  ;;  %v1185_v41 = vpop.f32.mrf.mxu3 }
 0x1c8   : > { %v3779_v44 = vadd.f32 %v1185_v41, %v974_v28  ;;  %v819_v45 = vpop.f32.mrf.mxu1  ;;  %v1519_v41 = vld [vmem:[#allocation2 + $0x3b] sm:$0xff] }
 0x1c9   : > { %590 = vst.msk [vmem:[#allocation2 + $0x130] sm:$0xff] %vm551_vm2, %v548_v40  ;;  %v976_v49 = vadd.f32 %v975_v35, %v819_v45  ;;  %3315 = vmatmul.msk.bf16.vlgmr.msrb.gmra.mxu0 %vm551_vm2, %v1054_v43  ;;  %v1303_v35 = vpack.c.bf16 %v1269_v25, %v1268_v30  ;;  %v1523_v30 = vld [vmem:[#allocation2 + $0x5b] sm:$0xff] }
 0x1cb   : > { %3353 = vmatmul.msk.bf16.vlgmr.msrb.gmra.mxu2 %vm551_vm2, %v1550_v50 }
 0x1ce   : > { %v503_v51 = vpop.f32.mrf.mxu0  ;;  %v978_v53 = vpop.f32.mrf.mxu2 }
 0x1cf   : > { %v549_v58 = vmax.f32 %v503_v51, 0.0  ;;  %v1187_v59 = vpop.f32.mrf.mxu3 }
 0x1d0   : > { %v3784_v60 = vadd.f32 %v1187_v59, %v976_v49  ;;  %v822_v61 = vpop.f32.mrf.mxu1  ;;  %v1518_v49 = vld [vmem:[#allocation2 + $0x33] sm:$0xff] }
 0x1d1   : > { %591 = vst.msk [vmem:[#allocation2 + $0x138] sm:$0xff] %vm551_vm2, %v549_v58  ;;  %v979_v63 = vadd.f32 %v978_v53, %v822_v61  ;;  %v1552_v51 = vpack.c.bf16 %v1519_v41, %v1518_v49 }
 0x1d3   : > { %3334 = vmatmul.msk.bf16.vlgmr.msrb.gmra.mxu1 %vm551_vm2, %v1302_v0 }
 0x1d4   : > { %3372 = vmatmul.msk.bf16.vlgmr.msrb.gmra.mxu3 %vm551_vm2, %v1798_v2 }
 0x1d6   : > { %v506_v4 = vpop.f32.mrf.mxu0  ;;  %v980_v7 = vpop.f32.mrf.mxu2 }
 0x1d7   : > { %v550_v11 = vmax.f32 %v506_v4, 0.0  ;;  %v1190_v12 = vpop.f32.mrf.mxu3 }
 0x1d8   : > { %v3793_v13 = vadd.f32 %v1190_v12, %v979_v63  ;;  %v824_v15 = vpop.f32.mrf.mxu1  ;;  %v1800_v63 = vpack.c.bf16 %v1767_v56, %v1766_v62  ;;  %v1553_v12 = vpack.c.bf16 %v1521_v3, %v1520_v10 }
 0x1d9   : > { %593 = vst.msk [vmem:[#allocation2 + $0x140] sm:$0x3f] %vm592_vm4, %v550_v11  ;;  %v981_v18 = vadd.f32 %v980_v7, %v824_v15  ;;  %3316 = vmatmul.msk.bf16.gmra.mxu0 %vm551_vm2, %v1302_v0 }
 0x1db   : > { %3354 = vmatmul.msk.bf16.gmra.mxu2 %vm551_vm2, %v1551_v19 }
 0x1de   : > { %v508_v21 = vpop.f32.mrf.mxu0  ;;  %v983_v24 = vpop.f32.mrf.mxu2 }
 0x1df   : > { %v1192_v27 = vpop.f32.mrf.mxu3 }
 0x1e0   : > { %v3797_v28 = vadd.f32 %v1192_v27, %v981_v18  ;;  %v827_v29 = vpop.f32.mrf.mxu1 }
 0x1e1   : > { %v984_v33 = vadd.f32 %v983_v24, %v827_v29  ;;  %v1768_v24 = vld [vmem:[#allocation2 + $0x44] sm:$0xff] }
 0x1e2   : > { %v1801_v26 = vpack.c.bf16 %v1769_v16, %v1768_v24  ;;  %v1772_v24 = vld [vmem:[#allocation2 + $0x64] sm:$0xff] }
 0x1e3   : > { %3335 = vmatmul.msk.bf16.gmra.mxu1 %vm551_vm2, %v1303_v35 }
 0x1e4   : > { %3373 = vmatmul.msk.bf16.gmra.mxu3 %vm551_vm2, %v1799_v37 }
 0x1e6   : > { %v3801_v38 = vpop.f32.mrf.mxu0  ;;  %v985_v40 = vpop.f32.mrf.mxu2 }
 0x1e7   : > { %v1195_v43 = vpop.f32.mrf.mxu3 }
 0x1e8   : > { %v3803_v45 = vadd.f32 %v1195_v43, %v984_v33  ;;  %v829_v46 = vpop.f32.mrf.mxu1 }
 0x1e9   : > { %v986_v50 = vadd.f32 %v985_v40, %v829_v46  ;;  %3317 = vmatmul.msk.bf16.gmra.mxu0 %vm551_vm2, %v1303_v35  ;;  %v1771_v46 = vld [vmem:[#allocation2 + $0x5c] sm:$0xff] }
 0x1eb   : > { %3355 = vmatmul.msk.bf16.gmra.mxu2 %vm551_vm2, %v1552_v51 }
 0x1ee   : > { %v3807_v53 = vpop.f32.mrf.mxu0  ;;  %v988_v55 = vpop.f32.mrf.mxu2 }
 0x1ef   : > { %v1197_v58 = vpop.f32.mrf.mxu3 }
 0x1f0   : > { %v3809_v59 = vadd.f32 %v1197_v58, %v986_v50  ;;  %v832_v61 = vpop.f32.mrf.mxu1 }
 0x1f1   : > { %v989_v57 = vadd.f32 %v988_v55, %v832_v61  ;;  %v1770_v55 = vld [vmem:[#allocation2 + $0x54] sm:$0xff] }
 0x1f2   : > { %v1802_v58 = vpack.c.bf16 %v1771_v46, %v1770_v55 }
 0x1f3   : > { %3336 = vmatmul.msk.bf16.gmra.mxu1 %vm551_vm2, %v3623_v20 }
 0x1f4   : > { %3374 = vmatmul.msk.bf16.gmra.mxu3 %vm551_vm2, %v1800_v63 }
 0x1f6   : > { %v3814_v0 = vpop.f32.mrf.mxu0  ;;  %v990_v2 = vpop.f32.mrf.mxu2 }
 0x1f7   : > { %v1200_v4 = vpop.f32.mrf.mxu3 }
 0x1f8   : > { %v3816_v7 = vadd.f32 %v1200_v4, %v989_v57  ;;  %v834_v9 = vpop.f32.mrf.mxu1  ;;  %v1525_v57 = vld [vmem:[#allocation2 + $0x6b] sm:$0xff] }
 0x1f9   : > { %v991_v11 = vadd.f32 %v990_v2, %v834_v9  ;;  %3391 = vmatmul.msk.bf16.vlgmr.msra.gmra.mxu0 %vm551_vm2, %v1799_v37  ;;  %v1522_v37 = vld [vmem:[#allocation2 + $0x53] sm:$0xff]  ;;  %v1524_v9 = vld [vmem:[#allocation2 + $0x63] sm:$0xff] }
 0x1fa   : > { %v1554_v41 = vpack.c.bf16 %v1523_v30, %v1522_v37 }
 0x1fb   : > { %3356 = vmatmul.msk.bf16.gmra.mxu2 %vm551_vm2, %v1553_v12 }
 0x1fe   : > { %v3820_v15 = vpop.f32.mrf.mxu0  ;;  %v993_v20 = vpop.f32.mrf.mxu2 }
 0x1ff   : > { %v1202_v18 = vpop.f32.mrf.mxu3 }
 0x200   : > { %v3822_v19 = vadd.f32 %v1202_v18, %v991_v11  ;;  %v837_v21 = vpop.f32.mrf.mxu1  ;;  %v1555_v11 = vpack.c.bf16 %v1525_v57, %v1524_v9  ;;  %v1529_v9 = vld [vmem:[#allocation2 + $0x8b] sm:$0xff] }
 0x201   : > { %v994_v25 = vadd.f32 %v993_v20, %v837_v21  ;;  %v1773_v20 = vld [vmem:[#allocation2 + $0x6c] sm:$0xff] }
 0x203   : > { %3337 = vmatmul.msk.bf16.gmra.mxu1 %vm551_vm2, %v3634_v36 }
 0x204   : > { %3375 = vmatmul.msk.bf16.gmra.mxu3 %vm551_vm2, %v1801_v26 }
 0x206   : > { %v3827_v27 = vpop.f32.mrf.mxu0  ;;  %v995_v29 = vpop.f32.mrf.mxu2 }
 0x207   : > { %v1205_v31 = vpop.f32.mrf.mxu3 }
 0x208   : > { %v3829_v33 = vadd.f32 %v1205_v31, %v994_v25  ;;  %v839_v35 = vpop.f32.mrf.mxu1  ;;  %v1527_v31 = vld [vmem:[#allocation2 + $0x7b] sm:$0xff] }
 0x209   : > { %v996_v40 = vadd.f32 %v995_v29, %v839_v35  ;;  %3392 = vmatmul.msk.bf16.gmra.mxu0 %vm551_vm2, %v1800_v63  ;;  %v1803_v29 = vpack.c.bf16 %v1773_v20, %v1772_v24  ;;  %v1777_v24 = vld [vmem:[#allocation2 + $0x8c] sm:$0xff] }
 0x20b   : > { %3357 = vmatmul.msk.bf16.gmra.mxu2 %vm551_vm2, %v1554_v41  ;;  %v1526_v41 = vld [vmem:[#allocation2 + $0x73] sm:$0xff] }
 0x20c   : > { %v1556_v46 = vpack.c.bf16 %v1527_v31, %v1526_v41  ;;  %v1776_v31 = vld [vmem:[#allocation2 + $0x84] sm:$0xff] }
 0x20e   : > { %v3833_v43 = vpop.f32.mrf.mxu0  ;;  %v998_v36 = vpop.f32.mrf.mxu2 }
 0x20f   : > { %v1207_v49 = vpop.f32.mrf.mxu3 }
 0x210   : > { %v3835_v50 = vadd.f32 %v1207_v49, %v996_v40  ;;  %v842_v51 = vpop.f32.mrf.mxu1 }
 0x211   : > { %v999_v56 = vadd.f32 %v998_v36, %v842_v51  ;;  %v1775_v51 = vld [vmem:[#allocation2 + $0x7c] sm:$0xff] }
 0x213   : > { %3338 = vmatmul.msk.bf16.gmra.mxu1 %vm551_vm2, %v3645_v52 }
 0x214   : > { %3376 = vmatmul.msk.bf16.gmra.mxu3 %vm551_vm2, %v1802_v58 }
 0x216   : > { %v928_v61 = vpop.f32.mrf.mxu0  ;;  %v1000_v62 = vpop.f32.mrf.mxu2 }
 0x217   : > { %v3841_v63 = vadd.f32 %v928_v61, %v3801_v38  ;;  %v1210_v2 = vpop.f32.mrf.mxu3 }
 0x218   : > { %v3843_v3 = vadd.f32 %v1210_v2, %v999_v56  ;;  %v844_v4 = vpop.f32.mrf.mxu1 }
 0x219   : > { %v1001_v10 = vadd.f32 %v1000_v62, %v844_v4  ;;  %3393 = vmatmul.msk.bf16.gmra.mxu0 %vm551_vm2, %v1801_v26  ;;  %v1774_v62 = vld [vmem:[#allocation2 + $0x74] sm:$0xff] }
 0x21a   : > { %v1804_v2 = vpack.c.bf16 %v1775_v51, %v1774_v62 }
 0x21b   : > { %3358 = vmatmul.msk.bf16.gmra.mxu2 %vm551_vm2, %v1555_v11 }
 0x21e   : > { %v930_v52 = vpop.f32.mrf.mxu0  ;;  %v1003_v12 = vpop.f32.mrf.mxu2 }
 0x21f   : > { %v3848_v16 = vadd.f32 %v930_v52, %v3807_v53  ;;  %v1212_v18 = vpop.f32.mrf.mxu3 }
 0x220   : > { %v3850_v38 = vadd.f32 %v1212_v18, %v1001_v10  ;;  %v847_v21 = vpop.f32.mrf.mxu1 }
 0x221   : > { %v1004_v25 = vadd.f32 %v1003_v12, %v847_v21  ;;  %v1528_v12 = vld [vmem:[#allocation2 + $0x83] sm:$0xff] }
 0x222   : > { %v1557_v18 = vpack.c.bf16 %v1529_v9, %v1528_v12  ;;  %v1779_v9 = vld [vmem:[#allocation2 + $0x9c] sm:$0xff] }
 0x223   : > { %3339 = vmatmul.msk.bf16.gmra.mxu1 %vm551_vm2, %v3656_v5 }
 0x224   : > { %3377 = vmatmul.msk.bf16.gmra.mxu3 %vm551_vm2, %v1803_v29 }
 0x226   : > { %v933_v26 = vpop.f32.mrf.mxu0  ;;  %v1005_v30 = vpop.f32.mrf.mxu2 }
 0x227   : > { %v3856_v35 = vadd.f32 %v933_v26, %v3814_v0  ;;  %v1215_v53 = vpop.f32.mrf.mxu3 }
 0x228   : > { %v3858_v37 = vadd.f32 %v1215_v53, %v1004_v25  ;;  %v849_v40 = vpop.f32.mrf.mxu1 }
 0x229   : > { %v1006_v36 = vadd.f32 %v1005_v30, %v849_v40  ;;  %3394 = vmatmul.msk.bf16.gmra.mxu0 %vm551_vm2, %v1802_v58  ;;  %v1805_v40 = vpack.c.bf16 %v1777_v24, %v1776_v31  ;;  %v1533_v31 = vld [vmem:[#allocation2 + $0xab] sm:$0xff] }
 0x22b   : > { %3359 = vmatmul.msk.bf16.gmra.mxu2 %vm551_vm2, %v1556_v46  ;;  %v1531_v46 = vld [vmem:[#allocation2 + $0x9b] sm:$0xff] }
 0x22e   : > { %v935_v5 = vpop.f32.mrf.mxu0  ;;  %v1008_v49 = vpop.f32.mrf.mxu2 }
 0x22f   : > { %v3863_v55 = vadd.f32 %v935_v5, %v3820_v15  ;;  %v1217_v56 = vpop.f32.mrf.mxu3 }
 0x230   : > { %v3865_v0 = vadd.f32 %v1217_v56, %v1006_v36  ;;  %v852_v61 = vpop.f32.mrf.mxu1 }
 0x231   : > { %v1009_v57 = vadd.f32 %v1008_v49, %v852_v61  ;;  %v1530_v61 = vld [vmem:[#allocation2 + $0x93] sm:$0xff] }
 0x232   : > { %v1558_v62 = vpack.c.bf16 %v1531_v46, %v1530_v61  ;;  %v1285_v61 = vld [vmem:[#allocation2 + $0xaa] sm:$0xff] }
 0x233   : > { %3340 = vmatmul.msk.bf16.gmra.mxu1 %vm551_vm2, %v3667_v22 }
 0x234   : > { %3378 = vmatmul.msk.bf16.gmra.mxu3 %vm551_vm2, %v1804_v2 }
 0x236   : > { %v938_v58 = vpop.f32.mrf.mxu0  ;;  %v1010_v4 = vpop.f32.mrf.mxu2 }
 0x237   : > { %v3871_v10 = vadd.f32 %v938_v58, %v3827_v27  ;;  %v1220_v15 = vpop.f32.mrf.mxu3 }
 0x238   : > { %v3873_v11 = vadd.f32 %v1220_v15, %v1009_v57  ;;  %v854_v52 = vpop.f32.mrf.mxu1 }
 0x239   : > { %v1011_v20 = vadd.f32 %v1010_v4, %v854_v52  ;;  %3395 = vmatmul.msk.bf16.gmra.mxu0 %vm551_vm2, %v1803_v29  ;;  %v2848_v29 = vld [vmem:[%s4406_s4] sm:$0x3] }
 0x23a   : > { %v2944_v41 = vsel %vm759_vm3, %v2848_v29, 0  ;;  %v1283_v4 = vld [vmem:[#allocation2 + $0x9a] sm:$0xff] }
 0x23b   : > { %3360 = vmatmul.msk.bf16.gmra.mxu2 %vm551_vm2, %v1557_v18  ;;  %2953 = vmatpush.bf16.msra.mxu3 %v2944_v41  ;;  %v1778_v18 = vld [vmem:[#allocation2 + $0x94] sm:$0xff] }
 0x23c   : > { %v1806_v24 = vpack.c.bf16 %v1779_v9, %v1778_v18  ;;  %v1780_v9 = vld [vmem:[#allocation2 + $0xa4] sm:$0xff] }
 0x23e   : > { %v940_v22 = vpop.f32.mrf.mxu0  ;;  %v1013_v21 = vpop.f32.mrf.mxu2 }
 0x23f   : > { %v3878_v25 = vadd.f32 %v940_v22, %v3833_v43  ;;  %v1222_v26 = vpop.f32.mrf.mxu3 }
 0x240   : > { %v3880_v27 = vadd.f32 %v1222_v26, %v1011_v20  ;;  %v857_v30 = vpop.f32.mrf.mxu1  ;;  %v1282_v20 = vld [vmem:[#allocation2 + $0x92] sm:$0xff] }
 0x241   : > { %v1014_v53 = vadd.f32 %v1013_v21, %v857_v30  ;;  %v1310_v21 = vpack.c.bf16 %v1283_v4, %v1282_v20  ;;  %v1284_v4 = vld [vmem:[#allocation2 + $0xa2] sm:$0xff] }
 0x243   : > { %3341 = vmatmul.msk.bf16.gmra.mxu1 %vm551_vm2, %v3678_v39 }
 0x244   : > { %3379 = vmatmul.msk.bf16.gmra.mxu3 %vm551_vm2, %v1805_v40 }
 0x246   : > { %v1015_v43 = vpop.f32.mrf.mxu2  ;;  %v1140_v36 = vpop.f32.mrf.mxu0 }
 0x247   : > { %v1230_v5 = vadd.f32 %v1140_v36, %v3841_v63  ;;  %v1225_v49 = vpop.f32.mrf.mxu3 }
 0x248   : > { %v3890_v51 = vadd.f32 %v1225_v49, %v1014_v53  ;;  %v859_v56 = vpop.f32.mrf.mxu1 }
 0x249   : > { %v1016_v39 = vadd.f32 %v1015_v43, %v859_v56  ;;  %3396 = vmatmul.msk.bf16.gmra.mxu0 %vm551_vm2, %v1804_v2  ;;  %v1532_v43 = vld [vmem:[#allocation2 + $0xa3] sm:$0xff] }
 0x24a   : > { %v1559_v46 = vpack.c.bf16 %v1533_v31, %v1532_v43 }
 0x24b   : > { %3361 = vmatmul.msk.bf16.gmra.mxu2 %vm551_vm2, %v1558_v62 }
 0x24e   : > { %v1142_v57 = vpop.f32.mrf.mxu0  ;;  %v1636_v58 = vpop.f32.mrf.mxu2 }
 0x24f   : > { %v1231_v15 = vadd.f32 %v1142_v57, %v3848_v16  ;;  %v1227_v52 = vpop.f32.mrf.mxu3 }
 0x250   : > { %v3895_v12 = vadd.f32 %v1227_v52, %v1016_v39  ;;  %v1388_v63 = vpop.f32.mrf.mxu1  ;;  %v1781_v39 = vld [vmem:[#allocation2 + $0xac] sm:$0xff] }
 0x251   : > { %v1478_v22 = vadd.f32 %v1388_v63, %v1230_v5  ;;  %v1311_v63 = vpack.c.bf16 %v1285_v61, %v1284_v4  ;;  %v1286_v61 = vld [vmem:[#allocation2 + $0xb2] sm:$0xff] }
 0x253   : > { %3342 = vmatmul.msk.bf16.gmra.mxu1 %vm551_vm2, %v1310_v21  ;;  %v1726_v2 = vadd.f32 %v1636_v58, %v1478_v22  ;;  %v1535_v22 = vld [vmem:[#allocation2 + $0xbb] sm:$0xff] }
 0x254   : > { %3380 = vmatmul.msk.bf16.gmra.mxu3 %vm551_vm2, %v1806_v24 }
 0x256   : > { %v1145_v26 = vpop.f32.mrf.mxu0  ;;  %v1638_v30 = vpop.f32.mrf.mxu2 }
 0x257   : > { %v1232_v53 = vadd.f32 %v1145_v26, %v3856_v35  ;;  %v1884_v16 = vpop.f32.mrf.mxu3 }
 0x258   : > { %v1974_v29 = vadd.f32 %v1884_v16, %v1726_v2  ;;  %v1390_v41 = vpop.f32.mrf.mxu1 }
 0x259   : > { %v1479_v36 = vadd.f32 %v1390_v41, %v1231_v15  ;;  %3397 = vmatmul.msk.bf16.gmra.mxu0 %vm551_vm2, %v1805_v40  ;;  %v1807_v15 = vpack.c.bf16 %v1781_v39, %v1780_v9  ;;  %v1782_v39 = vld [vmem:[#allocation2 + $0xb4] sm:$0xff] }
 0x25b   : > { %3362 = vmatmul.msk.bf16.gmra.mxu2 %vm551_vm2, %v1559_v46  ;;  %v1727_v5 = vadd.f32 %v1638_v30, %v1479_v36  ;;  %v1534_v30 = vld [vmem:[#allocation2 + $0xb3] sm:$0xff]  ;;  %v1783_v46 = vld [vmem:[#allocation2 + $0xbc] sm:$0xff] }
 0x25c   : > { %v1287_v36 = vld [vmem:[#allocation2 + $0xba] sm:$0xff] }
 0x25e   : > { %v1147_v49 = vpop.f32.mrf.mxu0  ;;  %v1641_v56 = vpop.f32.mrf.mxu2 }
 0x25f   : > { %v1233_v62 = vadd.f32 %v1147_v49, %v3863_v55  ;;  %v1886_v57 = vpop.f32.mrf.mxu3 }
 0x260   : > { %v1975_v58 = vadd.f32 %v1886_v57, %v1727_v5  ;;  %v1393_v35 = vpop.f32.mrf.mxu1 }
 0x261   : > { %v1480_v52 = vadd.f32 %v1393_v35, %v1232_v53  ;;  %v1560_v53 = vpack.c.bf16 %v1535_v22, %v1534_v30  ;;  %v1312_v35 = vpack.c.bf16 %v1287_v36, %v1286_v61  ;;  %v1288_v36 = vld [vmem:[#allocation2 + $0xc2] sm:$0xff] }
 0x263   : > { %3343 = vmatmul.msk.bf16.gmra.mxu1 %vm551_vm2, %v1311_v63  ;;  %v1728_v40 = vadd.f32 %v1641_v56, %v1480_v52  ;;  %v1537_v52 = vld [vmem:[#allocation2 + $0xcb] sm:$0xff] }
 0x264   : > { %3381 = vmatmul.msk.bf16.gmra.mxu3 %vm551_vm2, %v1807_v15 }
 0x266   : > { %v1150_v20 = vpop.f32.mrf.mxu0  ;;  %v1643_v18 = vpop.f32.mrf.mxu2 }
 0x267   : > { %v1234_v21 = vadd.f32 %v1150_v20, %v3871_v10  ;;  %v1889_v2 = vpop.f32.mrf.mxu3 }
 0x268   : > { %v1976_v55 = vadd.f32 %v1889_v2, %v1728_v40  ;;  %v1395_v26 = vpop.f32.mrf.mxu1 }
 0x269   : > { %v1481_v31 = vadd.f32 %v1395_v26, %v1233_v62  ;;  %3398 = vmatmul.msk.bf16.gmra.mxu0 %vm551_vm2, %v1806_v24  ;;  %v1808_v62 = vpack.c.bf16 %v1783_v46, %v1782_v39  ;;  %v1784_v46 = vld [vmem:[#allocation2 + $0xc4] sm:$0xff] }
 0x26b   : > { %3363 = vmatmul.msk.bf16.gmra.mxu2 %vm551_vm2, %v1560_v53  ;;  %v1729_v16 = vadd.f32 %v1643_v18, %v1481_v31  ;;  %v1536_v18 = vld [vmem:[#allocation2 + $0xc3] sm:$0xff]  ;;  %v1785_v53 = vld [vmem:[#allocation2 + $0xcc] sm:$0xff] }
 0x26c   : > { %v1289_v31 = vld [vmem:[#allocation2 + $0xca] sm:$0xff] }
 0x26e   : > { %v1152_v41 = vpop.f32.mrf.mxu0  ;;  %v1646_v43 = vpop.f32.mrf.mxu2 }
 0x26f   : > { %v1235_v5 = vadd.f32 %v1152_v41, %v3878_v25  ;;  %v1891_v49 = vpop.f32.mrf.mxu3 }
 0x270   : > { %v1977_v56 = vadd.f32 %v1891_v49, %v1729_v16  ;;  %v1398_v10 = vpop.f32.mrf.mxu1 }
 0x271   : > { %v1482_v57 = vadd.f32 %v1398_v10, %v1234_v21  ;;  %v1561_v21 = vpack.c.bf16 %v1537_v52, %v1536_v18  ;;  %v1809_v10 = vpack.c.bf16 %v1785_v53, %v1784_v46  ;;  %v1786_v53 = vld [vmem:[#allocation2 + $0xd4] sm:$0xff] }
 0x273   : > { %3344 = vmatmul.msk.bf16.gmra.mxu1 %vm551_vm2, %v1312_v35  ;;  %v1730_v24 = vadd.f32 %v1646_v43, %v1482_v57  ;;  %v1539_v57 = vld [vmem:[#allocation2 + $0xdb] sm:$0xff] }
 0x274   : > { %3382 = vmatmul.msk.bf16.gmra.mxu3 %vm551_vm2, %v1808_v62 }
 0x276   : > { %v1648_v4 = vpop.f32.mrf.mxu2  ;;  %v2132_v9 = vpop.f32.mrf.mxu0 }
 0x277   : > { %v1894_v63 = vpop.f32.mrf.mxu3  ;;  %v3911_v40 = vadd.f32 %v2132_v9, %v1974_v29  ;;  %v1538_v9 = vld [vmem:[#allocation2 + $0xd3] sm:$0xff] }
 0x278   : > { %v1978_v25 = vadd.f32 %v1894_v63, %v1730_v24  ;;  %v1400_v20 = vpop.f32.mrf.mxu1 }
 0x279   : > { %v1483_v22 = vadd.f32 %v1400_v20, %v1235_v5  ;;  %3399 = vmatmul.msk.bf16.gmra.mxu0 %vm551_vm2, %v1807_v15  ;;  %v1313_v5 = vpack.c.bf16 %v1289_v31, %v1288_v36  ;;  %v1290_v31 = vld [vmem:[#allocation2 + $0xd2] sm:$0xff] }
 0x27b   : > { %3364 = vmatmul.msk.bf16.gmra.mxu2 %vm551_vm2, %v1561_v21  ;;  %v1731_v2 = vadd.f32 %v1648_v4, %v1483_v22  ;;  %v1291_v22 = vld [vmem:[#allocation2 + $0xda] sm:$0xff] }
 0x27c   : > { %v1787_v21 = vld [vmem:[#allocation2 + $0xdc] sm:$0xff] }
 0x27e   : > { %v1651_v26 = vpop.f32.mrf.mxu2  ;;  %v2134_v30 = vpop.f32.mrf.mxu0 }
 0x27f   : > { %v1896_v16 = vpop.f32.mrf.mxu3  ;;  %v3915_v41 = vadd.f32 %v2134_v30, %v1975_v58 }
 0x280   : > { %v1979_v43 = vadd.f32 %v1896_v16, %v1731_v2  ;;  %v1403_v29 = vpop.f32.mrf.mxu1 }
 0x281   : > { %v1484_v49 = vadd.f32 %v1403_v29, %v3710_v42  ;;  %v1562_v42 = vpack.c.bf16 %v1539_v57, %v1538_v9  ;;  %v1810_v29 = vpack.c.bf16 %v1787_v21, %v1786_v53  ;;  %v1788_v21 = vld [vmem:[#allocation2 + $0xe4] sm:$0xff] }
 0x283   : > { %3345 = vmatmul.msk.bf16.gmra.mxu1 %vm551_vm2, %v1313_v5  ;;  %v1732_v15 = vadd.f32 %v1651_v26, %v1484_v49  ;;  %v1541_v49 = vld [vmem:[#allocation2 + $0xeb] sm:$0xff] }
 0x284   : > { %3383 = vmatmul.msk.bf16.gmra.mxu3 %vm551_vm2, %v1809_v10 }
 0x286   : > { %v1653_v61 = vpop.f32.mrf.mxu2  ;;  %v2137_v39 = vpop.f32.mrf.mxu0 }
 0x287   : > { %v1899_v35 = vpop.f32.mrf.mxu3  ;;  %v3920_v24 = vadd.f32 %v2137_v39, %v1976_v55  ;;  %v1540_v39 = vld [vmem:[#allocation2 + $0xe3] sm:$0xff] }
 0x288   : > { %v1980_v58 = vadd.f32 %v1899_v35, %v1732_v15  ;;  %v1405_v4 = vpop.f32.mrf.mxu1 }
 0x289   : > { %v1485_v52 = vadd.f32 %v1405_v4, %v3716_v54  ;;  %3400 = vmatmul.msk.bf16.gmra.mxu0 %vm551_vm2, %v1808_v62  ;;  %v1314_v54 = vpack.c.bf16 %v1291_v22, %v1290_v31  ;;  %v1292_v22 = vld [vmem:[#allocation2 + $0xe2] sm:$0xff] }
 0x28b   : > { %3365 = vmatmul.msk.bf16.gmra.mxu2 %vm551_vm2, %v1562_v42  ;;  %v1733_v63 = vadd.f32 %v1653_v61, %v1485_v52  ;;  %v1293_v52 = vld [vmem:[#allocation2 + $0xea] sm:$0xff] }
 0x28c   : > { %v1789_v42 = vld [vmem:[#allocation2 + $0xec] sm:$0xff] }
 0x28e   : > { %v1656_v20 = vpop.f32.mrf.mxu2  ;;  %v2139_v18 = vpop.f32.mrf.mxu0 }
 0x28f   : > { %v1901_v2 = vpop.f32.mrf.mxu3  ;;  %v3925_v26 = vadd.f32 %v2139_v18, %v1977_v56 }
 0x290   : > { %v1981_v55 = vadd.f32 %v1901_v2, %v1733_v63  ;;  %v1408_v30 = vpop.f32.mrf.mxu1 }
 0x291   : > { %v1486_v16 = vadd.f32 %v1408_v30, %v3721_v6  ;;  %v1563_v6 = vpack.c.bf16 %v1541_v49, %v1540_v39  ;;  %v1811_v30 = vpack.c.bf16 %v1789_v42, %v1788_v21  ;;  %v1790_v42 = vld [vmem:[#allocation2 + $0xf4] sm:$0xff] }
 0x293   : > { %3346 = vmatmul.msk.bf16.gmra.mxu1 %vm551_vm2, %v1314_v54  ;;  %v1734_v62 = vadd.f32 %v1656_v20, %v1486_v16  ;;  %v1543_v16 = vld [vmem:[#allocation2 + $0xfb] sm:$0xff] }
 0x294   : > { %3384 = vmatmul.msk.bf16.gmra.mxu3 %vm551_vm2, %v1810_v29 }
 0x296   : > { %v1658_v36 = vpop.f32.mrf.mxu2  ;;  %v2142_v46 = vpop.f32.mrf.mxu0 }
 0x297   : > { %v1904_v5 = vpop.f32.mrf.mxu3  ;;  %v3930_v15 = vadd.f32 %v2142_v46, %v1978_v25  ;;  %v1542_v46 = vld [vmem:[#allocation2 + $0xf3] sm:$0xff] }
 0x298   : > { %v1982_v56 = vadd.f32 %v1904_v5, %v1734_v62  ;;  %v1410_v61 = vpop.f32.mrf.mxu1 }
 0x299   : > { %v1487_v57 = vadd.f32 %v1410_v61, %v3726_v17  ;;  %3401 = vmatmul.msk.bf16.gmra.mxu0 %vm551_vm2, %v1809_v10  ;;  %v1315_v17 = vpack.c.bf16 %v1293_v52, %v1292_v22  ;;  %v1294_v52 = vld [vmem:[#allocation2 + $0xf2] sm:$0xff] }
 0x29b   : > { %3366 = vmatmul.msk.bf16.gmra.mxu2 %vm551_vm2, %v1563_v6  ;;  %v1735_v35 = vadd.f32 %v1658_v36, %v1487_v57  ;;  %v1295_v57 = vld [vmem:[#allocation2 + $0xfa] sm:$0xff] }
 0x29c   : > { %v1791_v6 = vld [vmem:[#allocation2 + $0xfc] sm:$0xff] }
 0x29e   : > { %v1661_v4 = vpop.f32.mrf.mxu2  ;;  %v2144_v9 = vpop.f32.mrf.mxu0 }
 0x29f   : > { %v1906_v63 = vpop.f32.mrf.mxu3  ;;  %v3935_v20 = vadd.f32 %v2144_v9, %v1979_v43 }
 0x2a0   : > { %v1983_v25 = vadd.f32 %v1906_v63, %v1735_v35  ;;  %v1413_v18 = vpop.f32.mrf.mxu1 }
 0x2a1   : > { %v1488_v2 = vadd.f32 %v1413_v18, %v3731_v34  ;;  %v1564_v34 = vpack.c.bf16 %v1543_v16, %v1542_v46  ;;  %v1812_v18 = vpack.c.bf16 %v1791_v6, %v1790_v42  ;;  %v1547_v42 = vld [vmem:[#allocation2 + $0x11b] sm:$0xff] }
 0x2a3   : > { %3347 = vmatmul.msk.bf16.gmra.mxu1 %vm551_vm2, %v1315_v17  ;;  %v1736_v10 = vadd.f32 %v1661_v4, %v1488_v2  ;;  %v1545_v2 = vld [vmem:[#allocation2 + $0x10b] sm:$0xff] }
 0x2a4   : > { %3385 = vmatmul.msk.bf16.gmra.mxu3 %vm551_vm2, %v1811_v30 }
 0x2a6   : > { %v1663_v31 = vpop.f32.mrf.mxu2  ;;  %v2147_v53 = vpop.f32.mrf.mxu0 }
 0x2a7   : > { %v1909_v54 = vpop.f32.mrf.mxu3  ;;  %v3940_v62 = vadd.f32 %v2147_v53, %v1980_v58  ;;  %v1544_v53 = vld [vmem:[#allocation2 + $0x103] sm:$0xff] }
 0x2a8   : > { %v1984_v43 = vadd.f32 %v1909_v54, %v1736_v10  ;;  %v1415_v36 = vpop.f32.mrf.mxu1 }
 0x2a9   : > { %v1489_v49 = vadd.f32 %v1415_v36, %v3736_v48  ;;  %3402 = vmatmul.msk.bf16.gmra.mxu0 %vm551_vm2, %v1810_v29  ;;  %v1316_v48 = vpack.c.bf16 %v1295_v57, %v1294_v52  ;;  %v1792_v57 = vld [vmem:[#allocation2 + $0x104] sm:$0xff] }
 0x2ab   : > { %3367 = vmatmul.msk.bf16.gmra.mxu2 %vm551_vm2, %v1564_v34  ;;  %v1737_v5 = vadd.f32 %v1663_v31, %v1489_v49  ;;  %v1297_v49 = vld [vmem:[#allocation2 + $0x10a] sm:$0xff] }
 0x2ac   : > { %v1793_v34 = vld [vmem:[#allocation2 + $0x10c] sm:$0xff] }
 0x2ae   : > { %v1666_v61 = vpop.f32.mrf.mxu2  ;;  %v2149_v39 = vpop.f32.mrf.mxu0 }
 0x2af   : > { %v1911_v35 = vpop.f32.mrf.mxu3  ;;  %v3945_v4 = vadd.f32 %v2149_v39, %v1981_v55  ;;  %v1296_v39 = vld [vmem:[#allocation2 + $0x102] sm:$0xff] }
 0x2b0   : > { %v1985_v58 = vadd.f32 %v1911_v35, %v1737_v5  ;;  %v1418_v9 = vpop.f32.mrf.mxu1  ;;  %v1317_v6 = vpack.c.bf16 %v1297_v49, %v1296_v39  ;;  %v1794_v49 = vld [vmem:[#allocation2 + $0x114] sm:$0xff] }
 0x2b1   : > { %v1490_v63 = vadd.f32 %v1418_v9, %v3741_v1  ;;  %v1565_v1 = vpack.c.bf16 %v1545_v2, %v1544_v53  ;;  %v1299_v53 = vld [vmem:[#allocation2 + $0x11a] sm:$0xff] }
 0x2b3   : > { %3348 = vmatmul.msk.bf16.gmra.mxu1 %vm551_vm2, %v1316_v48  ;;  %v1738_v29 = vadd.f32 %v1666_v61, %v1490_v63 }
 0x2b4   : > { %3386 = vmatmul.msk.bf16.gmra.mxu3 %vm551_vm2, %v1812_v18 }
 0x2b6   : > { %v1668_v22 = vpop.f32.mrf.mxu2  ;;  %v2152_v21 = vpop.f32.mrf.mxu0 }
 0x2b7   : > { %v1914_v17 = vpop.f32.mrf.mxu3  ;;  %v3950_v10 = vadd.f32 %v2152_v21, %v1982_v56 }
 0x2b8   : > { %v3952_v55 = vadd.f32 %v1914_v17, %v1738_v29  ;;  %v1420_v31 = vpop.f32.mrf.mxu1 }
 0x2b9   : > { %v1491_v16 = vadd.f32 %v1420_v31, %v3746_v14  ;;  %3403 = vmatmul.msk.bf16.gmra.mxu0 %vm551_vm2, %v1811_v30  ;;  %v1813_v30 = vpack.c.bf16 %v1793_v34, %v1792_v57  ;;  %v1549_v57 = vld [vmem:[#allocation2 + $0x12b] sm:$0xff] }
 0x2bb   : > { %3368 = vmatmul.msk.bf16.gmra.mxu2 %vm551_vm2, %v1565_v1  ;;  %v3957_v54 = vadd.f32 %v1668_v22, %v1491_v16  ;;  %v1546_v22 = vld [vmem:[#allocation2 + $0x113] sm:$0xff]  ;;  %v1795_v16 = vld [vmem:[#allocation2 + $0x11c] sm:$0xff] }
 0x2be   : > { %v1671_v36 = vpop.f32.mrf.mxu2  ;;  %v2154_v46 = vpop.f32.mrf.mxu0 }
 0x2bf   : > { %v3959_v5 = vpop.f32.mrf.mxu3  ;;  %v3961_v56 = vadd.f32 %v2154_v46, %v1983_v25  ;;  %v1298_v46 = vld [vmem:[#allocation2 + $0x112] sm:$0xff] }
 0x2c0   : > { %v1423_v61 = vpop.f32.mrf.mxu1  ;;  %v1318_v34 = vpack.c.bf16 %v1299_v53, %v1298_v46 }
 0x2c1   : > { %v1492_v14 = vadd.f32 %v1423_v61, %v3751_v32  ;;  %v1566_v32 = vpack.c.bf16 %v1547_v42, %v1546_v22 }
 0x2c3   : > { %3349 = vmatmul.msk.bf16.gmra.mxu1 %vm551_vm2, %v1317_v6  ;;  %v1740_v35 = vadd.f32 %v1671_v36, %v1492_v14 }
 0x2c4   : > { %3387 = vmatmul.msk.bf16.gmra.mxu3 %vm551_vm2, %v1813_v30 }
 0x2c6   : > { %v1673_v9 = vpop.f32.mrf.mxu2  ;;  %v2157_v52 = vpop.f32.mrf.mxu0 }
 0x2c7   : > { %v1919_v63 = vpop.f32.mrf.mxu3  ;;  %v3966_v48 = vadd.f32 %v2157_v52, %v1984_v43 }
 0x2c8   : > { %v3968_v25 = vadd.f32 %v1919_v63, %v1740_v35  ;;  %v1425_v29 = vpop.f32.mrf.mxu1  ;;  %v1301_v63 = vld [vmem:[#allocation2 + $0x12a] sm:$0xff] }
 0x2c9   : > { %v1493_v21 = vadd.f32 %v1425_v29, %v3756_v47  ;;  %3404 = vmatmul.msk.bf16.gmra.mxu0 %vm551_vm2, %v1812_v18  ;;  %v1814_v18 = vpack.c.bf16 %v1795_v16, %v1794_v49  ;;  %v1797_v29 = vld [vmem:[#allocation2 + $0x12c] sm:$0xff] }
 0x2cb   : > { %3369 = vmatmul.msk.bf16.gmra.mxu2 %vm551_vm2, %v1566_v32  ;;  %v3973_v2 = vadd.f32 %v1673_v9, %v1493_v21  ;;  %v1300_v32 = vld [vmem:[#allocation2 + $0x122] sm:$0xff] }
 0x2cc   : > { %v1319_v53 = vpack.c.bf16 %v1301_v63, %v1300_v32 }
 0x2ce   : > { %v1676_v17 = vpop.f32.mrf.mxu2  ;;  %v2159_v31 = vpop.f32.mrf.mxu0 }
 0x2cf   : > { %v3975_v1 = vpop.f32.mrf.mxu3  ;;  %v3977_v43 = vadd.f32 %v2159_v31, %v1985_v58  ;;  %v1548_v58 = vld [vmem:[#allocation2 + $0x123] sm:$0xff] }
 0x2d0   : > { %v1428_v36 = vpop.f32.mrf.mxu1  ;;  %v1567_v52 = vpack.c.bf16 %v1549_v57, %v1548_v58 }
 0x2d1   : > { %v1494_v47 = vadd.f32 %v1428_v36, %v3769_v8  ;;  %v2507_v36 = vld [vmem:[#allocation2 + $0x2e] sm:$0xff] }
 0x2d3   : > { %3350 = vmatmul.msk.bf16.gmra.mxu1 %vm551_vm2, %v1318_v34  ;;  %v1742_v61 = vadd.f32 %v1676_v17, %v1494_v47  ;;  %v1796_v17 = vld [vmem:[#allocation2 + $0x124] sm:$0xff] }
 0x2d4   : > { %3388 = vmatmul.msk.bf16.gmra.mxu3 %vm551_vm2, %v1814_v18  ;;  %v1815_v16 = vpack.c.bf16 %v1797_v29, %v1796_v17  ;;  %v2506_v34 = vld [vmem:[#allocation2 + $0x26] sm:$0xff]  ;;  %v2509_v29 = vld [vmem:[#allocation2 + $0x3e] sm:$0xff]  ;;  %v2508_v17 = vld [vmem:[#allocation2 + $0x36] sm:$0xff] }
 0x2d6   : > { %v1678_v39 = vpop.f32.mrf.mxu2 }
 0x2d7   : > { %v1924_v14 = vpop.f32.mrf.mxu3 }
 0x2d8   : > { %v3982_v6 = vadd.f32 %v1924_v14, %v1742_v61  ;;  %v1430_v35 = vpop.f32.mrf.mxu1  ;;  %v2259_v14 = vld [vmem:[#allocation2 + $0x2d] sm:$0xff] }
 0x2d9   : > { %v1495_v9 = vadd.f32 %v1430_v35, %v3774_v23  ;;  %3405 = vmatmul.msk.bf16.gmra.mxu0 %vm551_vm2, %v1813_v30 }
 0x2db   : > { %3370 = vmatmul.msk.bf16.gmra.mxu2 %vm551_vm2, %v1567_v52  ;;  %v3987_v8 = vadd.f32 %v1678_v39, %v1495_v9  ;;  %v2542_v39 = vpack.c.bf16 %v2507_v36, %v2506_v34  ;;  %v2258_v9 = vld [vmem:[#allocation2 + $0x25] sm:$0xff] }
 0x2de   : > { %v1681_v42 = vpop.f32.mrf.mxu2 }
 0x2df   : > { %v3989_v22 = vpop.f32.mrf.mxu3 }
 0x2e0   : > { %v1433_v21 = vpop.f32.mrf.mxu1 }
 0x2e1   : > { %v1496_v31 = vadd.f32 %v1433_v21, %v3779_v44 }
 0x2e3   : > { %3351 = vmatmul.msk.bf16.gmra.mxu1 %vm551_vm2, %v1319_v53  ;;  %v1744_v23 = vadd.f32 %v1681_v42, %v1496_v31  ;;  %v2294_v42 = vpack.c.bf16 %v2259_v14, %v2258_v9  ;;  %v2543_v53 = vpack.c.bf16 %v2509_v29, %v2508_v17  ;;  %v2511_v14 = vld [vmem:[#allocation2 + $0x4e] sm:$0xff] }
 0x2e4   : > { %3389 = vmatmul.msk.bf16.gmra.mxu3 %vm551_vm2, %v1815_v16 }
 0x2e6   : > { %v1683_v30 = vpop.f32.mrf.mxu2 }
 0x2e7   : > { %v1929_v46 = vpop.f32.mrf.mxu3 }
 0x2e8   : > { %v3994_v49 = vadd.f32 %v1929_v46, %v1744_v23  ;;  %v1435_v47 = vpop.f32.mrf.mxu1 }
 0x2e9   : > { %v1497_v61 = vadd.f32 %v1435_v47, %v3784_v60  ;;  %3406 = vmatmul.msk.bf16.gmra.mxu0 %vm551_vm2, %v1814_v18  ;;  %v2260_v47 = vld [vmem:[#allocation2 + $0x35] sm:$0xff] }
 0x2eb   : > { %3429 = vmatmul.msk.bf16.vlgmr.msra.gmra.mxu2 %vm551_vm2, %v2542_v39  ;;  %v3999_v44 = vadd.f32 %v1683_v30, %v1497_v61  ;;  %v2261_v30 = vld [vmem:[#allocation2 + $0x3d] sm:$0xff] }
 0x2ec   : > { %v2295_v61 = vpack.c.bf16 %v2261_v30, %v2260_v47  ;;  %v2513_v47 = vld [vmem:[#allocation2 + $0x5e] sm:$0xff] }
 0x2ee   : > { %v1686_v57 = vpop.f32.mrf.mxu2 }
 0x2ef   : > { %v4001_v35 = vpop.f32.mrf.mxu3 }
 0x2f0   : > { %v1438_v58 = vpop.f32.mrf.mxu1 }
 0x2f1   : > { %v1498_v52 = vadd.f32 %v1438_v58, %v3793_v13 }
 0x2f3   : > { %3410 = vmatmul.msk.bf16.vlgmr.msra.gmra.mxu1 %vm551_vm2, %v2294_v42  ;;  %v1746_v63 = vadd.f32 %v1686_v57, %v1498_v52  ;;  %v2045_v57 = vld [vmem:[#allocation2 + $0x13c] sm:$0xff] }
 0x2f6   : > { %v1688_v60 = vpop.f32.mrf.mxu2 }
 0x2f7   : > { %v1934_v18 = vpop.f32.mrf.mxu3 }
 0x2f8   : > { %v4005_v21 = vadd.f32 %v1934_v18, %v1746_v63  ;;  %v1440_v32 = vpop.f32.mrf.mxu1  ;;  %v2510_v63 = vld [vmem:[#allocation2 + $0x46] sm:$0xff] }
 0x2f9   : > { %v1499_v31 = vadd.f32 %v1440_v32, %v3797_v28  ;;  %3407 = vmatmul.msk.bf16.gmra.mxu0 %vm551_vm2, %v1815_v16  ;;  %v2044_v28 = vld [vmem:[#allocation2 + $0x134] sm:$0xff]  ;;  %v2544_v29 = vpack.c.bf16 %v2511_v14, %v2510_v63 }
 0x2fa   : > { %v2063_v9 = vpack.c.bf16 %v2045_v57, %v2044_v28  ;;  %v2263_v32 = vld [vmem:[#allocation2 + $0x4d] sm:$0xff]  ;;  %v2512_v28 = vld [vmem:[#allocation2 + $0x56] sm:$0xff] }
 0x2fb   : > { %3430 = vmatmul.msk.bf16.gmra.mxu2 %vm551_vm2, %v2543_v53  ;;  %v4010_v23 = vadd.f32 %v1688_v60, %v1499_v31  ;;  %v2262_v53 = vld [vmem:[#allocation2 + $0x45] sm:$0xff]  ;;  %v2264_v63 = vld [vmem:[#allocation2 + $0x55] sm:$0xff] }
 0x2fc   : > { %v2296_v30 = vpack.c.bf16 %v2263_v32, %v2262_v53 }
 0x2fe   : > { %v1691_v13 = vpop.f32.mrf.mxu2 }
 0x2ff   : > { %v4012_v36 = vpop.f32.mrf.mxu3 }
 0x300   : > { %v1443_v46 = vpop.f32.mrf.mxu1 }
 0x301   : > { %v1500_v34 = vadd.f32 %v1443_v46, %v3803_v45 }
 0x303   : > { %3411 = vmatmul.msk.bf16.gmra.mxu1 %vm551_vm2, %v2295_v61  ;;  %v1748_v39 = vadd.f32 %v1691_v13, %v1500_v34 }
 0x306   : > { %v1693_v16 = vpop.f32.mrf.mxu2 }
 0x307   : > { %v1939_v58 = vpop.f32.mrf.mxu3 }
 0x308   : > { %v4016_v52 = vadd.f32 %v1939_v58, %v1748_v39  ;;  %v1445_v42 = vpop.f32.mrf.mxu1 }
 0x309   : > { %v1501_v60 = vadd.f32 %v1445_v42, %v3809_v59  ;;  %3408 = vmatmul.msk.bf16.gmra.mxu0 %vm551_vm2, %v2063_v9 }
 0x30b   : > { %3431 = vmatmul.msk.bf16.gmra.mxu2 %vm551_vm2, %v2544_v29  ;;  %v4021_v45 = vadd.f32 %v1693_v16, %v1501_v60  ;;  %v2545_v16 = vpack.c.bf16 %v2513_v47, %v2512_v28 }
 0x30e   : > { %v1696_v18 = vpop.f32.mrf.mxu2 }
 0x30f   : > { %v4023_v17 = vpop.f32.mrf.mxu3 }
 0x310   : > { %v1448_v31 = vpop.f32.mrf.mxu1 }
 0x311   : > { %v1502_v13 = vadd.f32 %v1448_v31, %v3816_v7  ;;  %v2265_v7 = vld [vmem:[#allocation2 + $0x5d] sm:$0xff]  ;;  %v2515_v31 = vld [vmem:[#allocation2 + $0x6e] sm:$0xff] }
 0x312   : > { %v2297_v29 = vpack.c.bf16 %v2265_v7, %v2264_v63  ;;  %v2517_v63 = vld [vmem:[#allocation2 + $0x7e] sm:$0xff] }
 0x313   : > { %3412 = vmatmul.msk.bf16.gmra.mxu1 %vm551_vm2, %v2296_v30  ;;  %v1750_v46 = vadd.f32 %v1696_v18, %v1502_v13  ;;  %v2514_v30 = vld [vmem:[#allocation2 + $0x66] sm:$0xff] }
 0x316   : > { %v1698_v59 = vpop.f32.mrf.mxu2 }
 0x317   : > { %v1944_v34 = vpop.f32.mrf.mxu3 }
 0x318   : > { %v4027_v61 = vadd.f32 %v1944_v34, %v1750_v46  ;;  %v1450_v39 = vpop.f32.mrf.mxu1 }
 0x319   : > { %v1503_v57 = vadd.f32 %v1450_v39, %v3822_v19 }
 0x31b   : > { %3432 = vmatmul.msk.bf16.gmra.mxu2 %vm551_vm2, %v2545_v16  ;;  %v4031_v14 = vadd.f32 %v1698_v59, %v1503_v57  ;;  %v2546_v59 = vpack.c.bf16 %v2515_v31, %v2514_v30  ;;  %v2266_v57 = vld [vmem:[#allocation2 + $0x65] sm:$0xff] }
 0x31e   : > { %v1701_v58 = vpop.f32.mrf.mxu2 }
 0x31f   : > { %v4033_v9 = vpop.f32.mrf.mxu3 }
 0x320   : > { %v1453_v42 = vpop.f32.mrf.mxu1 }
 0x321   : > { %v1504_v60 = vadd.f32 %v1453_v42, %v3829_v33  ;;  %v2267_v33 = vld [vmem:[#allocation2 + $0x6d] sm:$0xff] }
 0x323   : > { %3413 = vmatmul.msk.bf16.gmra.mxu1 %vm551_vm2, %v2297_v29  ;;  %v1752_v18 = vadd.f32 %v1701_v58, %v1504_v60  ;;  %v2298_v58 = vpack.c.bf16 %v2267_v33, %v2266_v57 }
 0x326   : > { %v1703_v32 = vpop.f32.mrf.mxu2 }
 0x327   : > { %v1949_v19 = vpop.f32.mrf.mxu3 }
 0x328   : > { %v4037_v53 = vadd.f32 %v1949_v19, %v1752_v18  ;;  %v1455_v13 = vpop.f32.mrf.mxu1  ;;  %v2516_v18 = vld [vmem:[#allocation2 + $0x76] sm:$0xff] }
 0x329   : > { %v1505_v46 = vadd.f32 %v1455_v13, %v3835_v50  ;;  %v2547_v31 = vpack.c.bf16 %v2517_v63, %v2516_v18 }
 0x32b   : > { %3433 = vmatmul.msk.bf16.gmra.mxu2 %vm551_vm2, %v2546_v59  ;;  %v4041_v47 = vadd.f32 %v1703_v32, %v1505_v46  ;;  %v2268_v59 = vld [vmem:[#allocation2 + $0x75] sm:$0xff] }
 0x32e   : > { %v1706_v34 = vpop.f32.mrf.mxu2 }
 0x32f   : > { %v4043_v39 = vpop.f32.mrf.mxu3 }
 0x330   : > { %v1458_v28 = vpop.f32.mrf.mxu1 }
 0x331   : > { %v1506_v16 = vadd.f32 %v1458_v28, %v3843_v3  ;;  %v2269_v3 = vld [vmem:[#allocation2 + $0x7d] sm:$0xff] }
 0x332   : > { %v2299_v33 = vpack.c.bf16 %v2269_v3, %v2268_v59 }
 0x333   : > { %3414 = vmatmul.msk.bf16.gmra.mxu1 %vm551_vm2, %v2298_v58  ;;  %v1754_v7 = vadd.f32 %v1706_v34, %v1506_v16  ;;  %v2519_v16 = vld [vmem:[#allocation2 + $0x8e] sm:$0xff] }
 0x336   : > { %v1708_v42 = vpop.f32.mrf.mxu2 }
 0x337   : > { %v1954_v50 = vpop.f32.mrf.mxu3 }
 0x338   : > { %v4047_v60 = vadd.f32 %v1954_v50, %v1754_v7  ;;  %v1460_v29 = vpop.f32.mrf.mxu1 }
 0x339   : > { %v1507_v32 = vadd.f32 %v1460_v29, %v3850_v38 }
 0x33b   : > { %3434 = vmatmul.msk.bf16.gmra.mxu2 %vm551_vm2, %v2547_v31  ;;  %v4051_v19 = vadd.f32 %v1708_v42, %v1507_v32  ;;  %v2518_v42 = vld [vmem:[#allocation2 + $0x86] sm:$0xff] }
 0x33c   : > { %v2548_v50 = vpack.c.bf16 %v2519_v16, %v2518_v42 }
 0x33e   : > { %v1711_v13 = vpop.f32.mrf.mxu2 }
 0x33f   : > { %v4053_v30 = vpop.f32.mrf.mxu3 }
 0x340   : > { %v1463_v46 = vpop.f32.mrf.mxu1 }
 0x341   : > { %v1508_v34 = vadd.f32 %v1463_v46, %v3858_v37  ;;  %v2271_v37 = vld [vmem:[#allocation2 + $0x8d] sm:$0xff] }
 0x343   : > { %3415 = vmatmul.msk.bf16.gmra.mxu1 %vm551_vm2, %v2299_v33  ;;  %v1756_v28 = vadd.f32 %v1711_v13, %v1508_v34  ;;  %v2270_v13 = vld [vmem:[#allocation2 + $0x85] sm:$0xff] }
 0x344   : > { %v2300_v46 = vpack.c.bf16 %v2271_v37, %v2270_v13  ;;  %v2521_v33 = vld [vmem:[#allocation2 + $0x9e] sm:$0xff] }
 0x346   : > { %v1713_v57 = vpop.f32.mrf.mxu2 }
 0x347   : > { %v1959_v38 = vpop.f32.mrf.mxu3 }
 0x348   : > { %v4057_v58 = vadd.f32 %v1959_v38, %v1756_v28  ;;  %v1465_v7 = vpop.f32.mrf.mxu1 }
 0x349   : > { %v1509_v63 = vadd.f32 %v1465_v7, %v3865_v0 }
 0x34b   : > { %3435 = vmatmul.msk.bf16.gmra.mxu2 %vm551_vm2, %v2548_v50  ;;  %v4061_v29 = vadd.f32 %v1713_v57, %v1509_v63  ;;  %v2520_v57 = vld [vmem:[#allocation2 + $0x96] sm:$0xff] }
 0x34c   : > { %v2549_v7 = vpack.c.bf16 %v2521_v33, %v2520_v57 }
 0x34e   : > { %v1716_v18 = vpop.f32.mrf.mxu2 }
 0x34f   : > { %v4063_v32 = vpop.f32.mrf.mxu3 }
 0x350   : > { %v1468_v31 = vpop.f32.mrf.mxu1 }
 0x351   : > { %v1510_v3 = vadd.f32 %v1468_v31, %v3873_v11  ;;  %v2273_v11 = vld [vmem:[#allocation2 + $0x9d] sm:$0xff] }
 0x353   : > { %3416 = vmatmul.msk.bf16.gmra.mxu1 %vm551_vm2, %v2300_v46  ;;  %v1758_v59 = vadd.f32 %v1716_v18, %v1510_v3  ;;  %v2272_v18 = vld [vmem:[#allocation2 + $0x95] sm:$0xff] }
 0x354   : > { %v2301_v13 = vpack.c.bf16 %v2273_v11, %v2272_v18 }
 0x356   : > { %v1718_v34 = vpop.f32.mrf.mxu2 }
 0x357   : > { %v1964_v0 = vpop.f32.mrf.mxu3 }
 0x358   : > { %v4067_v28 = vadd.f32 %v1964_v0, %v1758_v59  ;;  %v1470_v16 = vpop.f32.mrf.mxu1  ;;  %v2523_v59 = vld [vmem:[#allocation2 + $0xae] sm:$0xff] }
 0x359   : > { %v1511_v38 = vadd.f32 %v1470_v16, %v3880_v27 }
 0x35b   : > { %3436 = vmatmul.msk.bf16.gmra.mxu2 %vm551_vm2, %v2549_v7  ;;  %v4071_v42 = vadd.f32 %v1718_v34, %v1511_v38  ;;  %v2522_v34 = vld [vmem:[#allocation2 + $0xa6] sm:$0xff] }
 0x35c   : > { %v2550_v57 = vpack.c.bf16 %v2523_v59, %v2522_v34 }
 0x35e   : > { %v1721_v63 = vpop.f32.mrf.mxu2 }
 0x35f   : > { %v4073_v50 = vpop.f32.mrf.mxu3 }
 0x360   : > { %v1473_v37 = vpop.f32.mrf.mxu1 }
 0x361   : > { %v1512_v31 = vadd.f32 %v1473_v37, %v3890_v51  ;;  %v2275_v51 = vld [vmem:[#allocation2 + $0xad] sm:$0xff]  ;;  %v2274_v37 = vld [vmem:[#allocation2 + $0xa5] sm:$0xff] }
 0x362   : > { %v2302_v18 = vpack.c.bf16 %v2275_v51, %v2274_v37  ;;  %v2277_v51 = vld [vmem:[#allocation2 + $0xbd] sm:$0xff] }
 0x363   : > { %3417 = vmatmul.msk.bf16.gmra.mxu1 %vm551_vm2, %v2301_v13  ;;  %v1760_v3 = vadd.f32 %v1721_v63, %v1512_v31  ;;  %v2525_v13 = vld [vmem:[#allocation2 + $0xbe] sm:$0xff] }
 0x366   : > { %v1723_v46 = vpop.f32.mrf.mxu2 }
 0x367   : > { %v1969_v27 = vpop.f32.mrf.mxu3 }
 0x368   : > { %v4077_v33 = vadd.f32 %v1969_v27, %v1760_v3  ;;  %v1475_v0 = vpop.f32.mrf.mxu1 }
 0x369   : > { %v1513_v16 = vadd.f32 %v1475_v0, %v3895_v12  ;;  %v4088_v12 = vld [vmem:[%s4405_s3] ss:$0 sm:$0xff] }
 0x36a   : > { %4409 = vst [vmem:[#allocation3_spill] sm:$0xff] %v4077_v33 }
 0x36b   : > { %3437 = vmatmul.msk.bf16.gmra.mxu2 %vm551_vm2, %v2550_v57  ;;  %v4081_v38 = vadd.f32 %v1723_v46, %v1513_v16  ;;  %v2524_v46 = vld [vmem:[#allocation2 + $0xb6] sm:$0xff] }
 0x36c   : > { %v2551_v0 = vpack.c.bf16 %v2525_v13, %v2524_v46 }
 0x36d   : > { %4410 = vst [vmem:[#allocation4_spill] sm:$0xff] %v4081_v38 }
 0x36e   : > { %v2628_v7 = vpop.f32.mrf.mxu2 }
 0x370   : > { %v2380_v11 = vpop.f32.mrf.mxu1 }
 0x371   : > { %v2470_v63 = vadd.f32 %v2380_v11, %v3911_v40 }
 0x373   : > { %3418 = vmatmul.msk.bf16.gmra.mxu1 %vm551_vm2, %v2302_v18  ;;  %v2718_v3 = vadd.f32 %v2628_v7, %v2470_v63  ;;  %v2276_v18 = vld [vmem:[#allocation2 + $0xb5] sm:$0xff] }
 0x374   : > { %v2303_v38 = vpack.c.bf16 %v2277_v51, %v2276_v18  ;;  %v2529_v18 = vld [vmem:[#allocation2 + $0xde] sm:$0xff] }
 0x375   : > { %v2758_v34 = vadd.f32 %v4088_v12, %v2718_v3 }
 0x376   : > { %v2630_v31 = vpop.f32.mrf.mxu2 }
 0x377   : > { %v2794_v7 = vmax.f32 %v2758_v34, 0.0 }
 0x378   : > { %v2382_v59 = vpop.f32.mrf.mxu1 }
 0x379   : > { %v2471_v27 = vadd.f32 %v2382_v59, %v3915_v41  ;;  %v2526_v59 = vld [vmem:[#allocation2 + $0xc6] sm:$0xff] }
 0x37b   : > { %v2719_v16 = vadd.f32 %v2630_v31, %v2471_v27  ;;  %3438 = vmatmul.msk.bf16.gmra.mxu2 %vm551_vm2, %v2551_v0  ;;  %v2527_v31 = vld [vmem:[#allocation2 + $0xce] sm:$0xff] }
 0x37c   : > { %v2552_v27 = vpack.c.bf16 %v2527_v31, %v2526_v59  ;;  %v2528_v31 = vld [vmem:[#allocation2 + $0xd6] sm:$0xff] }
 0x37d   : > { %v2759_v40 = vadd.f32 %v4088_v12, %v2719_v16 }
 0x37e   : > { %v2633_v57 = vpop.f32.mrf.mxu2 }
 0x37f   : > { %v2795_v11 = vmax.f32 %v2759_v40, 0.0  ;;  %v2279_v40 = vld [vmem:[#allocation2 + $0xcd] sm:$0xff] }
 0x380   : > { %v2385_v37 = vpop.f32.mrf.mxu1 }
 0x381   : > { %v2830_v63 = vpack.c.bf16 %v2795_v11, %v2794_v7  ;;  %v2472_v33 = vadd.f32 %v2385_v37, %v3920_v24  ;;  %v2278_v11 = vld [vmem:[#allocation2 + $0xc5] sm:$0xff] }
 0x382   : > { %v2304_v37 = vpack.c.bf16 %v2279_v40, %v2278_v11 }
 0x383   : > { %3419 = vmatmul.msk.bf16.gmra.mxu1 %vm551_vm2, %v2303_v38  ;;  %3447 = vmatmul.msk.bf16.vlgmr.msra.gmra.mxu3 %vm551_vm2, %v2830_v63  ;;  %v2720_v13 = vadd.f32 %v2633_v57, %v2472_v33 }
 0x385   : > { %v2760_v0 = vadd.f32 %v4088_v12, %v2720_v13 }
 0x386   : > { %v2635_v41 = vpop.f32.mrf.mxu2 }
 0x387   : > { %v2796_v38 = vmax.f32 %v2760_v0, 0.0 }
 0x388   : > { %v2387_v3 = vpop.f32.mrf.mxu1 }
 0x389   : > { %v2473_v46 = vadd.f32 %v2387_v3, %v3925_v26  ;;  %v2553_v3 = vpack.c.bf16 %v2529_v18, %v2528_v31  ;;  %v2530_v18 = vld [vmem:[#allocation2 + $0xe6] sm:$0xff] }
 0x38b   : > { %v2721_v34 = vadd.f32 %v2635_v41, %v2473_v46  ;;  %3439 = vmatmul.msk.bf16.gmra.mxu2 %vm551_vm2, %v2552_v27  ;;  %v4107_v27 = vpop.f32.mrf.mxu0 }
 0x38d   : > { %v2761_v16 = vadd.f32 %v4088_v12, %v2721_v34  ;;  %v2281_v34 = vld [vmem:[#allocation2 + $0xdd] sm:$0xff] }
 0x38e   : > { %v2638_v24 = vpop.f32.mrf.mxu2 }
 0x38f   : > { %v2797_v51 = vmax.f32 %v2761_v16, 0.0 }
 0x390   : > { %v2390_v7 = vpop.f32.mrf.mxu1 }
 0x391   : > { %v2831_v33 = vpack.c.bf16 %v2797_v51, %v2796_v38  ;;  %v2474_v57 = vadd.f32 %v2390_v7, %v3930_v15 }
 0x393   : > { %3420 = vmatmul.msk.bf16.gmra.mxu1 %vm551_vm2, %v2304_v37  ;;  %3448 = vmatmul.msk.bf16.gmra.mxu3 %vm551_vm2, %v2831_v33  ;;  %v2722_v63 = vadd.f32 %v2638_v24, %v2474_v57  ;;  %v2280_v24 = vld [vmem:[#allocation2 + $0xd5] sm:$0xff]  ;;  %v4113_v33 = vpop.f32.mrf.mxu0 }
 0x394   : > { %v2305_v51 = vpack.c.bf16 %v2281_v34, %v2280_v24  ;;  %v2531_v37 = vld [vmem:[#allocation2 + $0xee] sm:$0xff] }
 0x395   : > { %v2762_v59 = vadd.f32 %v4088_v12, %v2722_v63 }
 0x396   : > { %v2640_v26 = vpop.f32.mrf.mxu2 }
 0x397   : > { %v2798_v16 = vmax.f32 %v2762_v59, 0.0  ;;  %v2283_v59 = vld [vmem:[#allocation2 + $0xed] sm:$0xff] }
 0x398   : > { %v2392_v41 = vpop.f32.mrf.mxu1 }
 0x399   : > { %v2475_v13 = vadd.f32 %v2392_v41, %v3935_v20  ;;  %v2554_v41 = vpack.c.bf16 %v2531_v37, %v2530_v18 }
 0x39b   : > { %v2723_v46 = vadd.f32 %v2640_v26, %v2475_v13  ;;  %3440 = vmatmul.msk.bf16.gmra.mxu2 %vm551_vm2, %v2553_v3 }
 0x39d   : > { %v2763_v15 = vadd.f32 %v4088_v12, %v2723_v46 }
 0x39e   : > { %v2643_v0 = vpop.f32.mrf.mxu2 }
 0x39f   : > { %v2799_v40 = vmax.f32 %v2763_v15, 0.0 }
 0x3a0   : > { %v2395_v38 = vpop.f32.mrf.mxu1 }
 0x3a1   : > { %v2832_v7 = vpack.c.bf16 %v2799_v40, %v2798_v16  ;;  %v2476_v20 = vadd.f32 %v2395_v38, %v3940_v62  ;;  %v2282_v16 = vld [vmem:[#allocation2 + $0xe5] sm:$0xff]  ;;  %v4119_v40 = vpop.f32.mrf.mxu0 }
 0x3a3   : > { %3421 = vmatmul.msk.bf16.gmra.mxu1 %vm551_vm2, %v2305_v51  ;;  %3449 = vmatmul.msk.bf16.gmra.mxu3 %vm551_vm2, %v2832_v7  ;;  %v2724_v57 = vadd.f32 %v2643_v0, %v2476_v20  ;;  %v2306_v0 = vpack.c.bf16 %v2283_v59, %v2282_v16  ;;  %v2533_v51 = vld [vmem:[#allocation2 + $0xfe] sm:$0xff] }
 0x3a5   : > { %v2764_v31 = vadd.f32 %v4088_v12, %v2724_v57 }
 0x3a6   : > { %v2645_v11 = vpop.f32.mrf.mxu2 }
 0x3a7   : > { %v2800_v46 = vmax.f32 %v2764_v31, 0.0  ;;  %v2285_v31 = vld [vmem:[#allocation2 + $0xfd] sm:$0xff] }
 0x3a8   : > { %v2397_v26 = vpop.f32.mrf.mxu1 }
 0x3a9   : > { %v2477_v63 = vadd.f32 %v2397_v26, %v3945_v4  ;;  %v4125_v26 = vpop.f32.mrf.mxu0 }
 0x3ab   : > { %v2725_v13 = vadd.f32 %v2645_v11, %v2477_v63  ;;  %3441 = vmatmul.msk.bf16.gmra.mxu2 %vm551_vm2, %v2554_v41  ;;  %v2532_v11 = vld [vmem:[#allocation2 + $0xf6] sm:$0xff] }
 0x3ac   : > { %v2555_v57 = vpack.c.bf16 %v2533_v51, %v2532_v11 }
 0x3ad   : > { %v2765_v62 = vadd.f32 %v4088_v12, %v2725_v13 }
 0x3ae   : > { %v2648_v3 = vpop.f32.mrf.mxu2 }
 0x3af   : > { %v2801_v15 = vmax.f32 %v2765_v62, 0.0 }
 0x3b0   : > { %v2400_v34 = vpop.f32.mrf.mxu1 }
 0x3b1   : > { %v2833_v38 = vpack.c.bf16 %v2801_v15, %v2800_v46  ;;  %v2478_v4 = vadd.f32 %v2400_v34, %v3950_v10  ;;  %v4133_v34 = vpop.f32.mrf.mxu0 }
 0x3b3   : > { %3422 = vmatmul.msk.bf16.gmra.mxu1 %vm551_vm2, %v2306_v0  ;;  %3450 = vmatmul.msk.bf16.gmra.mxu3 %vm551_vm2, %v2833_v38  ;;  %v2726_v7 = vadd.f32 %v2648_v3, %v2478_v4  ;;  %v2284_v3 = vld [vmem:[#allocation2 + $0xf5] sm:$0xff] }
 0x3b4   : > { %v2307_v46 = vpack.c.bf16 %v2285_v31, %v2284_v3  ;;  %v2535_v0 = vld [vmem:[#allocation2 + $0x10e] sm:$0xff]  ;;  %v1987_v3 = vadd.f32 %v3959_v5, %v3957_v54  ;;  %v2289_v54 = vld [vmem:[#allocation2 + $0x11d] sm:$0xff] }
 0x3b5   : > { %v2766_v18 = vadd.f32 %v4088_v12, %v2726_v7 }
 0x3b6   : > { %v2650_v24 = vpop.f32.mrf.mxu2 }
 0x3b7   : > { %v2802_v13 = vmax.f32 %v2766_v18, 0.0 }
 0x3b8   : > { %v2402_v20 = vpop.f32.mrf.mxu1 }
 0x3b9   : > { %v2479_v37 = vadd.f32 %v2402_v20, %v3961_v56  ;;  %v4139_v18 = vpop.f32.mrf.mxu0 }
 0x3bb   : > { %v2727_v63 = vadd.f32 %v2650_v24, %v2479_v37  ;;  %3442 = vmatmul.msk.bf16.gmra.mxu2 %vm551_vm2, %v2555_v57  ;;  %v2534_v24 = vld [vmem:[#allocation2 + $0x106] sm:$0xff] }
 0x3bc   : > { %v2556_v7 = vpack.c.bf16 %v2535_v0, %v2534_v24  ;;  %v2287_v57 = vld [vmem:[#allocation2 + $0x10d] sm:$0xff] }
 0x3bd   : > { %v2767_v10 = vadd.f32 %v4088_v12, %v2727_v63 }
 0x3be   : > { %v2653_v41 = vpop.f32.mrf.mxu2 }
 0x3bf   : > { %v2803_v62 = vmax.f32 %v2767_v10, 0.0 }
 0x3c0   : > { %v2405_v59 = vpop.f32.mrf.mxu1 }
 0x3c1   : > { %v2834_v15 = vpack.c.bf16 %v2803_v62, %v2802_v13  ;;  %v2480_v56 = vadd.f32 %v2405_v59, %v3966_v48  ;;  %v2234_v13 = vadd.f32 %v4107_v27, %v3952_v55 }
 0x3c3   : > { %3423 = vmatmul.msk.bf16.gmra.mxu1 %vm551_vm2, %v2307_v46  ;;  %3451 = vmatmul.msk.bf16.gmra.mxu3 %vm551_vm2, %v2834_v15  ;;  %v2728_v38 = vadd.f32 %v2653_v41, %v2480_v56  ;;  %v2286_v41 = vld [vmem:[#allocation2 + $0x105] sm:$0xff]  ;;  %v2235_v56 = vadd.f32 %v4113_v33, %v1987_v3  ;;  %v2288_v33 = vld [vmem:[#allocation2 + $0x115] sm:$0xff] }
 0x3c4   : > { %v2537_v15 = vld [vmem:[#allocation2 + $0x11e] sm:$0xff] }
 0x3c5   : > { %v2768_v20 = vadd.f32 %v4088_v12, %v2728_v38  ;;  %v2536_v38 = vld [vmem:[#allocation2 + $0x116] sm:$0xff] }
 0x3c6   : > { %v2655_v16 = vpop.f32.mrf.mxu2  ;;  %v2557_v27 = vpack.c.bf16 %v2537_v15, %v2536_v38 }
 0x3c7   : > { %v2804_v63 = vmax.f32 %v2768_v20, 0.0 }
 0x3c8   : > { %v2407_v4 = vpop.f32.mrf.mxu1 }
 0x3c9   : > { %v2481_v51 = vadd.f32 %v2407_v4, %v3977_v43  ;;  %v2308_v43 = vpack.c.bf16 %v2287_v57, %v2286_v41  ;;  %v4148_v4 = vpop.f32.mrf.mxu0  ;;  %v1989_v41 = vadd.f32 %v3975_v1, %v3973_v2  ;;  %v2291_v2 = vld [vmem:[#allocation2 + $0x12d] sm:$0xff] }
 0x3cb   : > { %v2729_v11 = vadd.f32 %v2655_v16, %v2481_v51  ;;  %3443 = vmatmul.msk.bf16.gmra.mxu2 %vm551_vm2, %v2556_v7 }
 0x3cd   : > { %v2769_v48 = vadd.f32 %v4088_v12, %v2729_v11 }
 0x3ce   : > { %v2658_v37 = vpop.f32.mrf.mxu2 }
 0x3cf   : > { %v2805_v10 = vmax.f32 %v2769_v48, 0.0 }
 0x3d0   : > { %v2410_v31 = vpop.f32.mrf.mxu1 }
 0x3d1   : > { %v2835_v62 = vpack.c.bf16 %v2805_v10, %v2804_v63  ;;  %v2482_v59 = vadd.f32 %v2410_v31, %v2234_v13  ;;  %v2309_v63 = vpack.c.bf16 %v2289_v54, %v2288_v33  ;;  %v4155_v10 = vpop.f32.mrf.mxu0  ;;  %v1991_v54 = vadd.f32 %v3989_v22, %v3987_v8  ;;  %v2292_v22 = vld [vmem:[#allocation2 + $0x135] sm:$0xff] }
 0x3d3   : > { %3424 = vmatmul.msk.bf16.gmra.mxu1 %vm551_vm2, %v2308_v43  ;;  %3452 = vmatmul.msk.bf16.gmra.mxu3 %vm551_vm2, %v2835_v62  ;;  %v2730_v16 = vadd.f32 %v2658_v37, %v2482_v59  ;;  %v2236_v37 = vadd.f32 %v4119_v40, %v3968_v25  ;;  %v2539_v43 = vld [vmem:[#allocation2 + $0x12e] sm:$0xff]  ;;  %v2237_v62 = vadd.f32 %v4125_v26, %v1989_v41  ;;  %v2290_v26 = vld [vmem:[#allocation2 + $0x125] sm:$0xff] }
 0x3d4   : > { %v2239_v33 = vadd.f32 %v4139_v18, %v1991_v54 }
 0x3d5   : > { %v2770_v24 = vadd.f32 %v4088_v12, %v2730_v16 }
 0x3d6   : > { %v2660_v46 = vpop.f32.mrf.mxu2 }
 0x3d7   : > { %v2806_v5 = vmax.f32 %v2770_v24, 0.0  ;;  %v2238_v24 = vadd.f32 %v4133_v34, %v3982_v6 }
 0x3d8   : > { %v2412_v0 = vpop.f32.mrf.mxu1 }
 0x3d9   : > { %v2483_v55 = vadd.f32 %v2412_v0, %v2235_v56  ;;  %v4164_v16 = vpop.f32.mrf.mxu0 }
 0x3db   : > { %v2731_v51 = vadd.f32 %v2660_v46, %v2483_v55  ;;  %3444 = vmatmul.msk.bf16.gmra.mxu2 %vm551_vm2, %v2557_v27  ;;  %v2538_v46 = vld [vmem:[#allocation2 + $0x126] sm:$0xff] }
 0x3dc   : > { %v2558_v40 = vpack.c.bf16 %v2539_v43, %v2538_v46  ;;  %v4179_v43 = vpop.f32.mrf.mxu3  ;;  %v2240_v46 = vadd.f32 %v4148_v4, %v3994_v49 }
 0x3dd   : > { %v2771_v7 = vadd.f32 %v4088_v12, %v2731_v51 }
 0x3de   : > { %v2663_v20 = vpop.f32.mrf.mxu2 }
 0x3df   : > { %v2807_v11 = vmax.f32 %v2771_v7, 0.0  ;;  %v2310_v7 = vpack.c.bf16 %v2291_v2, %v2290_v26 }
 0x3e0   : > { %v2415_v48 = vpop.f32.mrf.mxu1 }
 0x3e1   : > { %v2836_v57 = vpack.c.bf16 %v2807_v11, %v2806_v5  ;;  %v2484_v31 = vadd.f32 %v2415_v48, %v2236_v37  ;;  %v2540_v11 = vld [vmem:[#allocation2 + $0x136] sm:$0xff]  ;;  %v2541_v48 = vld [vmem:[#allocation2 + $0x13e] sm:$0xff]  ;;  %v4174_v37 = vpop.f32.mrf.mxu0 }
 0x3e2   : > { %v2559_v34 = vpack.c.bf16 %v2541_v48, %v2540_v11  ;;  %v2850_v11 = vld [vmem:[%s3545_s28 + $0x1b] sm:$0xff] }
 0x3e3   : > { %3425 = vmatmul.msk.bf16.gmra.mxu1 %vm551_vm2, %v2309_v63  ;;  %3453 = vmatmul.msk.bf16.gmra.mxu3 %vm551_vm2, %v2836_v57  ;;  %v2732_v59 = vadd.f32 %v2663_v20, %v2484_v31 }
 0x3e5   : > { %v2772_v15 = vadd.f32 %v4088_v12, %v2732_v59 }
 0x3e6   : > { %v2665_v13 = vpop.f32.mrf.mxu2 }
 0x3e7   : > { %v2808_v1 = vmax.f32 %v2772_v15, 0.0 }
 0x3e8   : > { %v2417_v3 = vpop.f32.mrf.mxu1 }
 0x3e9   : > { %v2485_v25 = vadd.f32 %v2417_v3, %v2237_v62  ;;  %v2293_v62 = vld [vmem:[#allocation2 + $0x13d] sm:$0xff] }
 0x3ea   : > { %v2311_v15 = vpack.c.bf16 %v2293_v62, %v2292_v22  ;;  %v1995_v22 = vadd.f32 %v4012_v36, %v4010_v23 }
 0x3eb   : > { %v2733_v56 = vadd.f32 %v2665_v13, %v2485_v25  ;;  %3445 = vmatmul.msk.bf16.gmra.mxu2 %vm551_vm2, %v2558_v40  ;;  %v4183_v25 = vpop.f32.mrf.mxu0 }
 0x3ed   : > { %v2773_v0 = vadd.f32 %v4088_v12, %v2733_v56 }
 0x3ee   : > { %v2668_v38 = vpop.f32.mrf.mxu2 }
 0x3ef   : > { %v2809_v55 = vmax.f32 %v2773_v0, 0.0  ;;  %v4190_v0 = vld [vmem:[%s4407_s5] ss:$0 sm:$0xff] }
 0x3f0   : > { %v2420_v27 = vpop.f32.mrf.mxu1 }
 0x3f1   : > { %v2837_v51 = vpack.c.bf16 %v2809_v55, %v2808_v1  ;;  %v2486_v20 = vadd.f32 %v2420_v27, %v2238_v24  ;;  %v2849_v1 = vld [vmem:[%s3545_s28 + $0x13] sm:$0xff] }
 0x3f3   : > { %3426 = vmatmul.msk.bf16.gmra.mxu1 %vm551_vm2, %v2310_v7  ;;  %3454 = vmatmul.msk.bf16.gmra.mxu3 %vm551_vm2, %v2837_v51  ;;  %v2734_v57 = vadd.f32 %v2668_v38, %v2486_v20  ;;  %v1993_v38 = vadd.f32 %v4001_v35, %v3999_v44  ;;  %v2189_v7 = vpop.f32.mrf.mxu0 }
 0x3f5   : > { %v2774_v31 = vadd.f32 %v4088_v12, %v2734_v57  ;;  %v2241_v4 = vadd.f32 %v4155_v10, %v1993_v38 }
 0x3f6   : > { %v2670_v5 = vpop.f32.mrf.mxu2 }
 0x3f7   : > { %v2810_v18 = vmax.f32 %v2774_v31, 0.0 }
 0x3f8   : > { %v2422_v63 = vpop.f32.mrf.mxu1 }
 0x3f9   : > { %v2487_v6 = vadd.f32 %v2422_v63, %v2239_v33 }
 0x3fb   : > { %v2735_v41 = vadd.f32 %v2670_v5, %v2487_v6  ;;  %3446 = vmatmul.msk.bf16.gmra.mxu2 %vm551_vm2, %v2559_v34  ;;  %v2242_v34 = vadd.f32 %v4164_v16, %v4005_v21  ;;  %v2192_v62 = vpop.f32.mrf.mxu0 }
 0x3fd   : > { %v2775_v13 = vadd.f32 %v4088_v12, %v2735_v41 }
 0x3fe   : > { %v2673_v8 = vpop.f32.mrf.mxu2 }
 0x3ff   : > { %v2811_v59 = vmax.f32 %v2775_v13, 0.0 }
 0x400   : > { %v2425_v3 = vpop.f32.mrf.mxu1 }
 0x401   : > { %v2838_v40 = vpack.c.bf16 %v2811_v59, %v2810_v18  ;;  %v2488_v56 = vadd.f32 %v2425_v3, %v2240_v46  ;;  %v2851_v3 = vld [vmem:[%s3545_s28 + $0x23] sm:$0xff] }
 0x403   : > { %3427 = vmatmul.msk.bf16.gmra.mxu1 %vm551_vm2, %v2311_v15  ;;  %3455 = vmatmul.msk.bf16.gmra.mxu3 %vm551_vm2, %v2838_v40  ;;  %v2736_v55 = vadd.f32 %v2673_v8, %v2488_v56  ;;  %v2243_v40 = vadd.f32 %v4174_v37, %v1995_v22  ;;  %v2194_v37 = vpop.f32.mrf.mxu0 }
 0x405   : > { %v2776_v20 = vadd.f32 %v4088_v12, %v2736_v55  ;;  %v2852_v55 = vld [vmem:[%s3545_s28 + $0x2b] sm:$0xff] }
 0x406   : > { %v2675_v2 = vpop.f32.mrf.mxu2  ;;  %v2955_v49 = vpop.f32.mrf.mxu3 }
 0x407   : > { %v2956_v27 = vadd.f32 %v4190_v0, %v2955_v49  ;;  %v2812_v33 = vmax.f32 %v2776_v20, 0.0 }
 0x408   : > { %v2427_v26 = vpop.f32.mrf.mxu1 }
 0x409   : > { %v3045_v24 = vadd.f32 %v2956_v27, %v2849_v1  ;;  %v2489_v51 = vadd.f32 %v2427_v26, %v2241_v4 }
 0x40b   : > { %v3081_v54 = vmax.f32 %v3045_v24, 0.0  ;;  %v2737_v5 = vadd.f32 %v2675_v2, %v2489_v51 }
 0x40d   : > { %v3117_v44 = vpack.c.bf16 %v3081_v54, %v3081_v54  ;;  %v2777_v35 = vadd.f32 %v4088_v12, %v2737_v5  ;;  %v2244_v54 = vadd.f32 %v4183_v25, %v4016_v52 }
 0x40e   : > { %v2678_v10 = vpop.f32.mrf.mxu2  ;;  %v2957_v48 = vpop.f32.mrf.mxu3 }
 0x40f   : > { %3154 = vst.msk [vmem:[%s4202_s13] sm:$0xf] %vm3153_vm5, %v3117_v44  ;;  %v2813_v57 = vmax.f32 %v2777_v35, 0.0  ;;  %v2958_v63 = vadd.f32 %v4190_v0, %v2957_v48 }
 0x410   : > { %v2430_v6 = vpop.f32.mrf.mxu1 }
 0x411   : > { %v2839_v31 = vpack.c.bf16 %v2813_v57, %v2812_v33  ;;  %v3046_v41 = vadd.f32 %v2958_v63, %v2850_v11  ;;  %v2490_v8 = vadd.f32 %v2430_v6, %v2242_v34  ;;  %v1997_v11 = vadd.f32 %v4023_v17, %v4021_v45  ;;  %v2853_v57 = vld [vmem:[%s3545_s28 + $0x33] sm:$0xff] }
 0x413   : > { %v3082_v13 = vmax.f32 %v3046_v41, 0.0  ;;  %3456 = vmatmul.msk.bf16.gmra.mxu3 %vm551_vm2, %v2839_v31  ;;  %v2738_v21 = vadd.f32 %v2678_v10, %v2490_v8  ;;  %v2245_v6 = vadd.f32 %v2189_v7, %v1997_v11  ;;  %v2197_v31 = vpop.f32.mrf.mxu0  ;;  %v2856_v11 = vld [vmem:[%s3545_s28 + $0x4b] sm:$0xff] }
 0x415   : > { %v3118_v18 = vpack.c.bf16 %v3082_v13, %v3082_v13  ;;  %v2778_v2 = vadd.f32 %v4088_v12, %v2738_v21 }
 0x416   : > { %v2680_v59 = vpop.f32.mrf.mxu2  ;;  %v2960_v46 = vpop.f32.mrf.mxu3 }
 0x417   : > { %3155 = vst.msk [vmem:[%s4202_s13 + $0x4] sm:$0xf] %vm3153_vm5, %v3118_v18  ;;  %v2961_v16 = vadd.f32 %v4190_v0, %v2960_v46  ;;  %v2814_v26 = vmax.f32 %v2778_v2, 0.0 }
 0x418   : > { %v2432_v15 = vpop.f32.mrf.mxu1 }
 0x419   : > { %v3047_v56 = vadd.f32 %v2961_v16, %v2851_v3  ;;  %v2491_v38 = vadd.f32 %v2432_v15, %v2243_v40  ;;  %v2854_v3 = vld [vmem:[%s3545_s28 + $0x3b] sm:$0xff]  ;;  %v2246_v15 = vadd.f32 %v2192_v62, %v4027_v61 }
 0x41b   : > { %v3083_v23 = vmax.f32 %v3047_v56, 0.0  ;;  %v2739_v36 = vadd.f32 %v2680_v59, %v2491_v38  ;;  %v2199_v2 = vpop.f32.mrf.mxu0 }
 0x41d   : > { %v3119_v1 = vpack.c.bf16 %v3083_v23, %v3083_v23  ;;  %v2779_v49 = vadd.f32 %v4088_v12, %v2739_v36 }
 0x41e   : > { %v2683_v4 = vpop.f32.mrf.mxu2  ;;  %v2962_v27 = vpop.f32.mrf.mxu3 }
 0x41f   : > { %3156 = vst.msk [vmem:[%s4202_s13 + $0x8] sm:$0xf] %vm3153_vm5, %v3119_v1  ;;  %v2815_v24 = vmax.f32 %v2779_v49, 0.0  ;;  %v2963_v51 = vadd.f32 %v4190_v0, %v2962_v27  ;;  %v1999_v1 = vadd.f32 %v4033_v9, %v4031_v14 }
 0x420   : > { %v2435_v20 = vpop.f32.mrf.mxu1 }
 0x421   : > { %v2840_v5 = vpack.c.bf16 %v2815_v24, %v2814_v26  ;;  %v3048_v44 = vadd.f32 %v2963_v51, %v2852_v55  ;;  %v2492_v10 = vadd.f32 %v2435_v20, %v2244_v54  ;;  %v2855_v55 = vld [vmem:[%s3545_s28 + $0x43] sm:$0xff]  ;;  %v2247_v26 = vadd.f32 %v2194_v37, %v1999_v1 }
 0x423   : > { %v3084_v35 = vmax.f32 %v3048_v44, 0.0  ;;  %3457 = vmatmul.msk.bf16.gmra.mxu3 %vm551_vm2, %v2840_v5  ;;  %v2740_v34 = vadd.f32 %v2683_v4, %v2492_v10  ;;  %v2202_v14 = vpop.f32.mrf.mxu0 }
 0x425   : > { %v3120_v48 = vpack.c.bf16 %v3084_v35, %v3084_v35  ;;  %v2780_v8 = vadd.f32 %v4088_v12, %v2740_v34 }
 0x426   : > { %v2685_v33 = vpop.f32.mrf.mxu2  ;;  %v2965_v63 = vpop.f32.mrf.mxu3 }
 0x427   : > { %3157 = vst.msk [vmem:[%s4202_s13 + $0xc] sm:$0xf] %vm3153_vm5, %v3120_v48  ;;  %v2966_v52 = vadd.f32 %v4190_v0, %v2965_v63  ;;  %v2816_v46 = vmax.f32 %v2780_v8, 0.0 }
 0x428   : > { %v2437_v25 = vpop.f32.mrf.mxu1 }
 0x429   : > { %v3049_v41 = vadd.f32 %v2966_v52, %v2853_v57  ;;  %v2493_v13 = vadd.f32 %v2437_v25, %v2245_v6  ;;  %v2248_v6 = vadd.f32 %v2197_v31, %v4037_v53 }
 0x42b   : > { %v3085_v22 = vmax.f32 %v3049_v41, 0.0  ;;  %v2741_v45 = vadd.f32 %v2685_v33, %v2493_v13  ;;  %v2001_v13 = vadd.f32 %v4043_v39, %v4041_v47 }
 0x42d   : > { %v3121_v17 = vpack.c.bf16 %v3085_v22, %v3085_v22  ;;  %v2781_v18 = vadd.f32 %v4088_v12, %v2741_v45  ;;  %v2857_v45 = vld [vmem:[%s3545_s28 + $0x53] sm:$0xff] }
 0x42e   : > { %v2688_v59 = vpop.f32.mrf.mxu2  ;;  %v2967_v7 = vpop.f32.mrf.mxu3 }
 0x42f   : > { %3158 = vst.msk [vmem:[%s4202_s13 + $0x10] sm:$0xf] %vm3153_vm5, %v3121_v17  ;;  %v2817_v40 = vmax.f32 %v2781_v18, 0.0  ;;  %v2968_v21 = vadd.f32 %v4190_v0, %v2967_v7  ;;  %v2249_v18 = vadd.f32 %v2199_v2, %v2001_v13 }
 0x430   : > { %v2440_v16 = vpop.f32.mrf.mxu1 }
 0x431   : > { %v2841_v56 = vpack.c.bf16 %v2817_v40, %v2816_v46  ;;  %v3050_v38 = vadd.f32 %v2968_v21, %v2854_v3  ;;  %v2494_v36 = vadd.f32 %v2440_v16, %v2246_v15 }
 0x433   : > { %v3086_v23 = vmax.f32 %v3050_v38, 0.0  ;;  %3458 = vmatmul.msk.bf16.gmra.mxu3 %vm551_vm2, %v2841_v56  ;;  %v2742_v61 = vadd.f32 %v2688_v59, %v2494_v36  ;;  %v2204_v59 = vpop.f32.mrf.mxu0  ;;  %v2858_v56 = vld [vmem:[%s3545_s28 + $0x5b] sm:$0xff] }
 0x435   : > { %v3122_v49 = vpack.c.bf16 %v3086_v23, %v3086_v23  ;;  %v2782_v54 = vadd.f32 %v4088_v12, %v2742_v61 }
 0x436   : > { %v2690_v4 = vpop.f32.mrf.mxu2  ;;  %v2970_v27 = vpop.f32.mrf.mxu3 }
 0x437   : > { %3159 = vst.msk [vmem:[%s4202_s13 + $0x14] sm:$0xf] %vm3153_vm5, %v3122_v49  ;;  %v2971_v62 = vadd.f32 %v4190_v0, %v2970_v27  ;;  %v2818_v48 = vmax.f32 %v2782_v54, 0.0  ;;  %v2250_v49 = vadd.f32 %v2202_v14, %v4047_v60 }
 0x438   : > { %v2442_v24 = vpop.f32.mrf.mxu1 }
 0x439   : > { %v3051_v51 = vadd.f32 %v2971_v62, %v2855_v55  ;;  %v2495_v20 = vadd.f32 %v2442_v24, %v2247_v26  ;;  %v2003_v62 = vadd.f32 %v4053_v30, %v4051_v19 }
 0x43b   : > { %v3087_v5 = vmax.f32 %v3051_v51, 0.0  ;;  %v2743_v44 = vadd.f32 %v2690_v4, %v2495_v20  ;;  %v2207_v4 = vpop.f32.mrf.mxu0  ;;  %v2859_v20 = vld [vmem:[%s3545_s28 + $0x63] sm:$0xff] }
 0x43d   : > { %v3123_v9 = vpack.c.bf16 %v3087_v5, %v3087_v5  ;;  %v2783_v35 = vadd.f32 %v4088_v12, %v2743_v44  ;;  %v2251_v5 = vadd.f32 %v2204_v59, %v2003_v62 }
 0x43e   : > { %v2693_v10 = vpop.f32.mrf.mxu2  ;;  %v2972_v37 = vpop.f32.mrf.mxu3 }
 0x43f   : > { %3160 = vst.msk [vmem:[%s4202_s13 + $0x18] sm:$0xf] %vm3153_vm5, %v3123_v9  ;;  %v2819_v33 = vmax.f32 %v2783_v35, 0.0  ;;  %v2973_v57 = vadd.f32 %v4190_v0, %v2972_v37 }
 0x440   : > { %v2445_v63 = vpop.f32.mrf.mxu1 }
 0x441   : > { %v2842_v34 = vpack.c.bf16 %v2819_v33, %v2818_v48  ;;  %v3052_v52 = vadd.f32 %v2973_v57, %v2856_v11  ;;  %v2496_v41 = vadd.f32 %v2445_v63, %v2248_v6  ;;  %v2860_v57 = vld [vmem:[%s3545_s28 + $0x6b] sm:$0xff] }
 0x443   : > { %v3088_v25 = vmax.f32 %v3052_v52, 0.0  ;;  %3459 = vmatmul.msk.bf16.gmra.mxu3 %vm551_vm2, %v2842_v34  ;;  %v2744_v53 = vadd.f32 %v2693_v10, %v2496_v41  ;;  %v2209_v10 = vpop.f32.mrf.mxu0  ;;  %v2252_v41 = vadd.f32 %v2207_v4, %v4057_v58 }
 0x445   : > { %v3124_v8 = vpack.c.bf16 %v3088_v25, %v3088_v25  ;;  %v2784_v40 = vadd.f32 %v4088_v12, %v2744_v53 }
 0x446   : > { %v2695_v22 = vpop.f32.mrf.mxu2  ;;  %v2975_v17 = vpop.f32.mrf.mxu3 }
 0x447   : > { %3161 = vst.msk [vmem:[%s4202_s13 + $0x1c] sm:$0xf] %vm3153_vm5, %v3124_v8  ;;  %v2976_v31 = vadd.f32 %v4190_v0, %v2975_v17  ;;  %v2820_v2 = vmax.f32 %v2784_v40, 0.0  ;;  %v2005_v17 = vadd.f32 %v4063_v32, %v4061_v29 }
 0x448   : > { %v2447_v3 = vpop.f32.mrf.mxu1 }
 0x449   : > { %v3053_v7 = vadd.f32 %v2976_v31, %v2857_v45  ;;  %v2497_v46 = vadd.f32 %v2447_v3, %v2249_v18  ;;  %v2861_v31 = vld [vmem:[%s3545_s28 + $0x73] sm:$0xff] }
 0x44b   : > { %v3089_v21 = vmax.f32 %v3053_v7, 0.0  ;;  %v2745_v47 = vadd.f32 %v2695_v22, %v2497_v46  ;;  %v2212_v18 = vpop.f32.mrf.mxu0  ;;  %v2253_v7 = vadd.f32 %v2209_v10, %v2005_v17  ;;  %v4412_v17 = vld [vmem:[#allocation4_spill] sm:$0xff] }
 0x44d   : > { %v3125_v39 = vpack.c.bf16 %v3089_v21, %v3089_v21  ;;  %v2785_v16 = vadd.f32 %v4088_v12, %v2745_v47 }
 0x44e   : > { %v2698_v15 = vpop.f32.mrf.mxu2  ;;  %v2977_v38 = vpop.f32.mrf.mxu3 }
 0x44f   : > { %3162 = vst.msk [vmem:[%s4202_s13 + $0x20] sm:$0xf] %vm3153_vm5, %v3125_v39  ;;  %v2821_v23 = vmax.f32 %v2785_v16, 0.0  ;;  %v2978_v36 = vadd.f32 %v4190_v0, %v2977_v38  ;;  %v2862_v38 = vld [vmem:[%s3545_s28 + $0x7b] sm:$0xff] }
 0x450   : > { %v2450_v1 = vpop.f32.mrf.mxu1 }
 0x451   : > { %v2843_v55 = vpack.c.bf16 %v2821_v23, %v2820_v2  ;;  %v3054_v27 = vadd.f32 %v2978_v36, %v2858_v56  ;;  %v2498_v61 = vadd.f32 %v2450_v1, %v2250_v49 }
 0x453   : > { %v3090_v26 = vmax.f32 %v3054_v27, 0.0  ;;  %3460 = vmatmul.msk.bf16.gmra.mxu3 %vm551_vm2, %v2843_v55  ;;  %v2746_v60 = vadd.f32 %v2698_v15, %v2498_v61  ;;  %v2214_v49 = vpop.f32.mrf.mxu0  ;;  %v2254_v55 = vadd.f32 %v2212_v18, %v4067_v28  ;;  %v2009_v18 = vadd.f32 %v4179_v43, %v4412_v17 }
 0x455   : > { %v3126_v24 = vpack.c.bf16 %v3090_v26, %v3090_v26  ;;  %v2786_v11 = vadd.f32 %v4088_v12, %v2746_v60 }
 0x456   : > { %v2700_v51 = vpop.f32.mrf.mxu2  ;;  %v2980_v54 = vpop.f32.mrf.mxu3 }
 0x457   : > { %3163 = vst.msk [vmem:[%s4202_s13 + $0x24] sm:$0xf] %vm3153_vm5, %v3126_v24  ;;  %v2981_v44 = vadd.f32 %v4190_v0, %v2980_v54  ;;  %v2822_v6 = vmax.f32 %v2786_v11, 0.0  ;;  %v2007_v24 = vadd.f32 %v4073_v50, %v4071_v42  ;;  %v2863_v54 = vld [vmem:[%s3545_s28 + $0x83] sm:$0xff] }
 0x458   : > { %v2452_v14 = vpop.f32.mrf.mxu1 }
 0x459   : > { %v3055_v9 = vadd.f32 %v2981_v44, %v2859_v20  ;;  %v2499_v35 = vadd.f32 %v2452_v14, %v2251_v5  ;;  %v2255_v60 = vadd.f32 %v2214_v49, %v2007_v24  ;;  %v2868_v24 = vld [vmem:[%s3545_s28 + $0xab] sm:$0xff] }
 0x45b   : > { %v3091_v37 = vmax.f32 %v3055_v9, 0.0  ;;  %v2747_v19 = vadd.f32 %v2700_v51, %v2499_v35  ;;  %v2217_v10 = vpop.f32.mrf.mxu0 }
 0x45d   : > { %v3127_v30 = vpack.c.bf16 %v3091_v37, %v3091_v37  ;;  %v2787_v48 = vadd.f32 %v4088_v12, %v2747_v19 }
 0x45e   : > { %v2703_v33 = vpop.f32.mrf.mxu2  ;;  %v2982_v63 = vpop.f32.mrf.mxu3 }
 0x45f   : > { %3164 = vst.msk [vmem:[%s4202_s13 + $0x28] sm:$0xf] %vm3153_vm5, %v3127_v30  ;;  %v2823_v34 = vmax.f32 %v2787_v48, 0.0  ;;  %v2983_v52 = vadd.f32 %v4190_v0, %v2982_v63  ;;  %v2864_v30 = vld [vmem:[%s3545_s28 + $0x8b] sm:$0xff] }
 0x460   : > { %v2455_v25 = vpop.f32.mrf.mxu1 }
 0x461   : > { %v2844_v13 = vpack.c.bf16 %v2823_v34, %v2822_v6  ;;  %v3056_v8 = vadd.f32 %v2983_v52, %v2860_v57  ;;  %v2500_v45 = vadd.f32 %v2455_v25, %v2252_v41  ;;  %v4411_v52 = vld [vmem:[#allocation3_spill] sm:$0xff] }
 0x462   : > { %v2256_v25 = vadd.f32 %v2217_v10, %v4411_v52  ;;  %v2872_v52 = vld [vmem:[%s3545_s28 + $0xcb] sm:$0xff] }
 0x463   : > { %v3092_v22 = vmax.f32 %v3056_v8, 0.0  ;;  %3461 = vmatmul.msk.bf16.gmra.mxu3 %vm551_vm2, %v2844_v13  ;;  %v2748_v58 = vadd.f32 %v2703_v33, %v2500_v45  ;;  %v2219_v45 = vpop.f32.mrf.mxu0 }
 0x465   : > { %v3128_v59 = vpack.c.bf16 %v3092_v22, %v3092_v22  ;;  %v2788_v39 = vadd.f32 %v4088_v12, %v2748_v58 }
 0x466   : > { %v2705_v53 = vpop.f32.mrf.mxu2  ;;  %v2985_v3 = vpop.f32.mrf.mxu3 }
 0x467   : > { %3165 = vst.msk [vmem:[%s4202_s13 + $0x2c] sm:$0xf] %vm3153_vm5, %v3128_v59  ;;  %v2986_v46 = vadd.f32 %v4190_v0, %v2985_v3  ;;  %v2824_v23 = vmax.f32 %v2788_v39, 0.0  ;;  %v2257_v3 = vadd.f32 %v2219_v45, %v2009_v18  ;;  %v2873_v45 = vld [vmem:[%s3545_s28 + $0xd3] sm:$0xff] }
 0x468   : > { %v2457_v40 = vpop.f32.mrf.mxu1 }
 0x469   : > { %v3057_v21 = vadd.f32 %v2986_v46, %v2861_v31  ;;  %v2501_v47 = vadd.f32 %v2457_v40, %v2253_v7 }
 0x46b   : > { %v3093_v16 = vmax.f32 %v3057_v21, 0.0  ;;  %v2749_v29 = vadd.f32 %v2705_v53, %v2501_v47  ;;  %v2865_v53 = vld [vmem:[%s3545_s28 + $0x93] sm:$0xff] }
 0x46d   : > { %v3129_v32 = vpack.c.bf16 %v3093_v16, %v3093_v16  ;;  %v2789_v15 = vadd.f32 %v4088_v12, %v2749_v29 }
 0x46e   : > { %v2708_v56 = vpop.f32.mrf.mxu2  ;;  %v2987_v2 = vpop.f32.mrf.mxu3 }
 0x46f   : > { %3166 = vst.msk [vmem:[%s4202_s13 + $0x30] sm:$0xf] %vm3153_vm5, %v3129_v32  ;;  %v2825_v36 = vmax.f32 %v2789_v15, 0.0  ;;  %v2988_v1 = vadd.f32 %v4190_v0, %v2987_v2  ;;  %v2866_v15 = vld [vmem:[%s3545_s28 + $0x9b] sm:$0xff] }
 0x470   : > { %v2460_v4 = vpop.f32.mrf.mxu1 }
 0x471   : > { %v2845_v27 = vpack.c.bf16 %v2825_v36, %v2824_v23  ;;  %v3058_v26 = vadd.f32 %v2988_v1, %v2862_v38  ;;  %v2502_v62 = vadd.f32 %v2460_v4, %v2254_v55  ;;  %v2867_v55 = vld [vmem:[%s3545_s28 + $0xa3] sm:$0xff] }
 0x473   : > { %v3094_v61 = vmax.f32 %v3058_v26, 0.0  ;;  %3462 = vmatmul.msk.bf16.gmra.mxu3 %vm551_vm2, %v2845_v27  ;;  %v2750_v44 = vadd.f32 %v2708_v56, %v2502_v62 }
 0x475   : > { %v3130_v51 = vpack.c.bf16 %v3094_v61, %v3094_v61  ;;  %v2790_v11 = vadd.f32 %v4088_v12, %v2750_v44  ;;  %v2869_v44 = vld [vmem:[%s3545_s28 + $0xb3] sm:$0xff] }
 0x476   : > { %v2710_v20 = vpop.f32.mrf.mxu2  ;;  %v2990_v5 = vpop.f32.mrf.mxu3 }
 0x477   : > { %3167 = vst.msk [vmem:[%s4202_s13 + $0x34] sm:$0xf] %vm3153_vm5, %v3130_v51  ;;  %v2991_v28 = vadd.f32 %v4190_v0, %v2990_v5  ;;  %v2826_v33 = vmax.f32 %v2790_v11, 0.0  ;;  %v2870_v11 = vld [vmem:[%s3545_s28 + $0xbb] sm:$0xff] }
 0x478   : > { %v2462_v14 = vpop.f32.mrf.mxu1 }
 0x479   : > { %v3059_v9 = vadd.f32 %v2991_v28, %v2863_v54  ;;  %v2503_v35 = vadd.f32 %v2462_v14, %v2255_v60 }
 0x47b   : > { %v3095_v37 = vmax.f32 %v3059_v9, 0.0  ;;  %v2751_v42 = vadd.f32 %v2710_v20, %v2503_v35 }
 0x47d   : > { %v3131_v50 = vpack.c.bf16 %v3095_v37, %v3095_v37  ;;  %v2791_v19 = vadd.f32 %v4088_v12, %v2751_v42 }
 0x47e   : > { %v2992_v48 = vpop.f32.mrf.mxu3  ;;  %v2713_v6 = vpop.f32.mrf.mxu2 }
 0x47f   : > { %3168 = vst.msk [vmem:[%s4202_s13 + $0x38] sm:$0xf] %vm3153_vm5, %v3131_v50  ;;  %v2827_v57 = vmax.f32 %v2791_v19, 0.0  ;;  %v2993_v63 = vadd.f32 %v4190_v0, %v2992_v48  ;;  %v2871_v48 = vld [vmem:[%s3545_s28 + $0xc3] sm:$0xff] }
 0x480   : > { %v2465_v34 = vpop.f32.mrf.mxu1 }
 0x481   : > { %v2846_v41 = vpack.c.bf16 %v2827_v57, %v2826_v33  ;;  %v3060_v13 = vadd.f32 %v2993_v63, %v2864_v30  ;;  %v2504_v22 = vadd.f32 %v2465_v34, %v2256_v25 }
 0x483   : > { %v3096_v8 = vmax.f32 %v3060_v13, 0.0  ;;  %3463 = vmatmul.msk.bf16.gmra.mxu3 %vm551_vm2, %v2846_v41  ;;  %v2752_v7 = vadd.f32 %v2713_v6, %v2504_v22 }
 0x485   : > { %v3132_v59 = vpack.c.bf16 %v3096_v8, %v3096_v8  ;;  %v2792_v39 = vadd.f32 %v4088_v12, %v2752_v7 }
 0x486   : > { %v2995_v31 = vpop.f32.mrf.mxu3  ;;  %v2715_v47 = vpop.f32.mrf.mxu2 }
 0x487   : > { %3169 = vst.msk [vmem:[%s4202_s13 + $0x3c] sm:$0xf] %vm3153_vm5, %v3132_v59  ;;  %v2996_v58 = vadd.f32 %v4190_v0, %v2995_v31  ;;  %v2828_v38 = vmax.f32 %v2792_v39, 0.0 }
 0x488   : > { %v2467_v46 = vpop.f32.mrf.mxu1 }
 0x489   : > { %v3061_v40 = vadd.f32 %v2996_v58, %v2865_v53  ;;  %v2505_v21 = vadd.f32 %v2467_v46, %v2257_v3  ;;  %v2874_v3 = vld [vmem:[%s3545_s28 + $0xdb] sm:$0xff] }
 0x48b   : > { %v3097_v16 = vmax.f32 %v3061_v40, 0.0  ;;  %v2753_v43 = vadd.f32 %v2715_v47, %v2505_v21  ;;  %v2875_v47 = vld [vmem:[%s3545_s28 + $0xe3] sm:$0xff] }
 0x48d   : > { %v3133_v29 = vpack.c.bf16 %v3097_v16, %v3097_v16  ;;  %v2793_v32 = vadd.f32 %v4088_v12, %v2753_v43 }
 0x48e   : > { %v2997_v56 = vpop.f32.mrf.mxu3 }
 0x48f   : > { %3170 = vst.msk [vmem:[%s4202_s13 + $0x40] sm:$0xf] %vm3153_vm5, %v3133_v29  ;;  %v2829_v2 = vmax.f32 %v2793_v32, 0.0  ;;  %v2998_v23 = vadd.f32 %v4190_v0, %v2997_v56 }
 0x491   : > { %v2847_v36 = vpack.c.bf16 %v2829_v2, %v2828_v38  ;;  %v3062_v1 = vadd.f32 %v2998_v23, %v2866_v15  ;;  %v2876_v15 = vld [vmem:[%s3545_s28 + $0xeb] sm:$0xff] }
 0x493   : > { %v3098_v49 = vmax.f32 %v3062_v1, 0.0  ;;  %3464 = vmatmul.msk.bf16.gmra.mxu3 %vm551_vm2, %v2847_v36  ;;  %v2877_v1 = vld [vmem:[%s3545_s28 + $0xf3] sm:$0xff] }
 0x495   : > { %v3134_v4 = vpack.c.bf16 %v3098_v49, %v3098_v49 }
 0x496   : > { %v3000_v12 = vpop.f32.mrf.mxu3 }
 0x497   : > { %3171 = vst.msk [vmem:[%s4202_s13 + $0x44] sm:$0xf] %vm3153_vm5, %v3134_v4  ;;  %v3001_v27 = vadd.f32 %v4190_v0, %v3000_v12 }
 0x499   : > { %v3063_v26 = vadd.f32 %v3001_v27, %v2867_v55 }
 0x49b   : > { %v3099_v61 = vmax.f32 %v3063_v26, 0.0  ;;  %v2878_v26 = vld [vmem:[%s3545_s28 + $0xfb] sm:$0xff] }
 0x49d   : > { %v3135_v62 = vpack.c.bf16 %v3099_v61, %v3099_v61 }
 0x49e   : > { %v3002_v51 = vpop.f32.mrf.mxu3 }
 0x49f   : > { %3172 = vst.msk [vmem:[%s4202_s13 + $0x48] sm:$0xf] %vm3153_vm5, %v3135_v62  ;;  %v3003_v20 = vadd.f32 %v4190_v0, %v3002_v51 }
 0x4a1   : > { %v3064_v54 = vadd.f32 %v3003_v20, %v2868_v24 }
 0x4a3   : > { %v3100_v5 = vmax.f32 %v3064_v54, 0.0  ;;  %v2879_v54 = vld [vmem:[%s3545_s28 + $0x103] sm:$0xff] }
 0x4a5   : > { %v3136_v60 = vpack.c.bf16 %v3100_v5, %v3100_v5 }
 0x4a6   : > { %v3005_v28 = vpop.f32.mrf.mxu3 }
 0x4a7   : > { %3173 = vst.msk [vmem:[%s4202_s13 + $0x4c] sm:$0xf] %vm3153_vm5, %v3136_v60  ;;  %v3006_v14 = vadd.f32 %v4190_v0, %v3005_v28 }
 0x4a9   : > { %v3065_v9 = vadd.f32 %v3006_v14, %v2869_v44 }
 0x4ab   : > { %v3101_v35 = vmax.f32 %v3065_v9, 0.0  ;;  %v2880_v9 = vld [vmem:[%s3545_s28 + $0x10b] sm:$0xff] }
 0x4ad   : > { %v3137_v10 = vpack.c.bf16 %v3101_v35, %v3101_v35 }
 0x4ae   : > { %v3007_v37 = vpop.f32.mrf.mxu3 }
 0x4af   : > { %3174 = vst.msk [vmem:[%s4202_s13 + $0x50] sm:$0xf] %vm3153_vm5, %v3137_v10  ;;  %v3008_v42 = vadd.f32 %v4190_v0, %v3007_v37 }
 0x4b1   : > { %v3066_v50 = vadd.f32 %v3008_v42, %v2870_v11 }
 0x4b3   : > { %v3102_v19 = vmax.f32 %v3066_v50, 0.0  ;;  %v2881_v50 = vld [vmem:[%s3545_s28 + $0x113] sm:$0xff] }
 0x4b5   : > { %v3138_v30 = vpack.c.bf16 %v3102_v19, %v3102_v19 }
 0x4b6   : > { %v3010_v33 = vpop.f32.mrf.mxu3 }
 0x4b7   : > { %3175 = vst.msk [vmem:[%s4202_s13 + $0x54] sm:$0xf] %vm3153_vm5, %v3138_v30  ;;  %v3011_v57 = vadd.f32 %v4190_v0, %v3010_v33 }
 0x4b9   : > { %v3067_v63 = vadd.f32 %v3011_v57, %v2871_v48 }
 0x4bb   : > { %v3103_v6 = vmax.f32 %v3067_v63, 0.0  ;;  %v2882_v63 = vld [vmem:[%s3545_s28 + $0x11b] sm:$0xff] }
 0x4bd   : > { %v3139_v34 = vpack.c.bf16 %v3103_v6, %v3103_v6 }
 0x4be   : > { %v3012_v25 = vpop.f32.mrf.mxu3 }
 0x4bf   : > { %3176 = vst.msk [vmem:[%s4202_s13 + $0x58] sm:$0xf] %vm3153_vm5, %v3139_v34  ;;  %v3013_v41 = vadd.f32 %v4190_v0, %v3012_v25 }
 0x4c1   : > { %v3068_v13 = vadd.f32 %v3013_v41, %v2872_v52 }
 0x4c3   : > { %v3104_v8 = vmax.f32 %v3068_v13, 0.0  ;;  %v2883_v13 = vld [vmem:[%s3545_s28 + $0x123] sm:$0xff] }
 0x4c5   : > { %v3140_v22 = vpack.c.bf16 %v3104_v8, %v3104_v8 }
 0x4c6   : > { %v3015_v17 = vpop.f32.mrf.mxu3 }
 0x4c7   : > { %3177 = vst.msk [vmem:[%s4202_s13 + $0x5c] sm:$0xf] %vm3153_vm5, %v3140_v22  ;;  %v3016_v18 = vadd.f32 %v4190_v0, %v3015_v17 }
 0x4c9   : > { %v3069_v59 = vadd.f32 %v3016_v18, %v2873_v45 }
 0x4cb   : > { %v3105_v53 = vmax.f32 %v3069_v59, 0.0  ;;  %v2884_v59 = vld [vmem:[%s3545_s28 + $0x12b] sm:$0xff] }
 0x4cd   : > { %v3141_v31 = vpack.c.bf16 %v3105_v53, %v3105_v53 }
 0x4ce   : > { %v3017_v7 = vpop.f32.mrf.mxu3 }
 0x4cf   : > { %3178 = vst.msk [vmem:[%s4202_s13 + $0x60] sm:$0xf] %vm3153_vm5, %v3141_v31  ;;  %v3018_v58 = vadd.f32 %v4190_v0, %v3017_v7 }
 0x4d1   : > { %v3070_v46 = vadd.f32 %v3018_v58, %v2874_v3 }
 0x4d3   : > { %v3106_v40 = vmax.f32 %v3070_v46, 0.0 }
 0x4d5   : > { %v3142_v21 = vpack.c.bf16 %v3106_v40, %v3106_v40 }
 0x4d6   : > { %v3020_v39 = vpop.f32.mrf.mxu3 }
 0x4d7   : > { %3179 = vst.msk [vmem:[%s4202_s13 + $0x64] sm:$0xf] %vm3153_vm5, %v3142_v21  ;;  %v3021_v16 = vadd.f32 %v4190_v0, %v3020_v39 }
 0x4d9   : > { %v3071_v43 = vadd.f32 %v3021_v16, %v2875_v47 }
 0x4db   : > { %v3107_v29 = vmax.f32 %v3071_v43, 0.0 }
 0x4dd   : > { %v3143_v32 = vpack.c.bf16 %v3107_v29, %v3107_v29 }
 0x4de   : > { %v3022_v56 = vpop.f32.mrf.mxu3 }
 0x4df   : > { %3180 = vst.msk [vmem:[%s4202_s13 + $0x68] sm:$0xf] %vm3153_vm5, %v3143_v32  ;;  %v3023_v38 = vadd.f32 %v4190_v0, %v3022_v56 }
 0x4e1   : > { %v3072_v2 = vadd.f32 %v3023_v38, %v2876_v15 }
 0x4e3   : > { %v3108_v23 = vmax.f32 %v3072_v2, 0.0 }
 0x4e5   : > { %v3144_v36 = vpack.c.bf16 %v3108_v23, %v3108_v23 }
 0x4e6   : > { %v3025_v49 = vpop.f32.mrf.mxu3 }
 0x4e7   : > { %3181 = vst.msk [vmem:[%s4202_s13 + $0x6c] sm:$0xf] %vm3153_vm5, %v3144_v36  ;;  %v3026_v4 = vadd.f32 %v4190_v0, %v3025_v49 }
 0x4e9   : > { %v3073_v55 = vadd.f32 %v3026_v4, %v2877_v1 }
 0x4eb   : > { %v3109_v12 = vmax.f32 %v3073_v55, 0.0 }
 0x4ed   : > { %v3145_v27 = vpack.c.bf16 %v3109_v12, %v3109_v12 }
 0x4ee   : > { %v3027_v61 = vpop.f32.mrf.mxu3 }
 0x4ef   : > { %3182 = vst.msk [vmem:[%s4202_s13 + $0x70] sm:$0xf] %vm3153_vm5, %v3145_v27  ;;  %v3028_v62 = vadd.f32 %v4190_v0, %v3027_v61 }
 0x4f1   : > { %v3074_v24 = vadd.f32 %v3028_v62, %v2878_v26 }
 0x4f3   : > { %v3110_v51 = vmax.f32 %v3074_v24, 0.0 }
 0x4f5   : > { %v3146_v20 = vpack.c.bf16 %v3110_v51, %v3110_v51 }
 0x4f6   : > { %v3030_v5 = vpop.f32.mrf.mxu3 }
 0x4f7   : > { %3183 = vst.msk [vmem:[%s4202_s13 + $0x74] sm:$0xf] %vm3153_vm5, %v3146_v20  ;;  %v3031_v60 = vadd.f32 %v4190_v0, %v3030_v5 }
 0x4f9   : > { %v3075_v44 = vadd.f32 %v3031_v60, %v2879_v54 }
 0x4fb   : > { %v3111_v28 = vmax.f32 %v3075_v44, 0.0 }
 0x4fd   : > { %v3147_v14 = vpack.c.bf16 %v3111_v28, %v3111_v28 }
 0x4fe   : > { %v3032_v35 = vpop.f32.mrf.mxu3 }
 0x4ff   : > { %3184 = vst.msk [vmem:[%s4202_s13 + $0x78] sm:$0xf] %vm3153_vm5, %v3147_v14  ;;  %v3033_v10 = vadd.f32 %v4190_v0, %v3032_v35 }
 0x501   : > { %v3076_v11 = vadd.f32 %v3033_v10, %v2880_v9 }
 0x503   : > { %v3112_v37 = vmax.f32 %v3076_v11, 0.0 }
 0x505   : > { %v3148_v42 = vpack.c.bf16 %v3112_v37, %v3112_v37 }
 0x506   : > { %v3035_v19 = vpop.f32.mrf.mxu3 }
 0x507   : > { %3185 = vst.msk [vmem:[%s4202_s13 + $0x7c] sm:$0xf] %vm3153_vm5, %v3148_v42  ;;  %v3036_v30 = vadd.f32 %v4190_v0, %v3035_v19 }
 0x509   : > { %v3077_v48 = vadd.f32 %v3036_v30, %v2881_v50 }
 0x50b   : > { %v3113_v33 = vmax.f32 %v3077_v48, 0.0 }
 0x50d   : > { %v3149_v57 = vpack.c.bf16 %v3113_v33, %v3113_v33 }
 0x50e   : > { %v3037_v6 = vpop.f32.mrf.mxu3 }
 0x50f   : > { %3186 = vst.msk [vmem:[%s4202_s13 + $0x80] sm:$0xf] %vm3153_vm5, %v3149_v57  ;;  %v3038_v34 = vadd.f32 %v4190_v0, %v3037_v6 }
 0x511   : > { %v3078_v52 = vadd.f32 %v3038_v34, %v2882_v63 }
 0x513   : > { %v3114_v25 = vmax.f32 %v3078_v52, 0.0 }
 0x515   : > { %v3150_v41 = vpack.c.bf16 %v3114_v25, %v3114_v25 }
 0x516   : > { %v3040_v8 = vpop.f32.mrf.mxu3 }
 0x517   : > { %3187 = vst.msk [vmem:[%s4202_s13 + $0x84] sm:$0xf] %vm3153_vm5, %v3150_v41  ;;  %v3041_v22 = vadd.f32 %v4190_v0, %v3040_v8 }
 0x519   : > { %v3079_v45 = vadd.f32 %v3041_v22, %v2883_v13 }
 0x51b   : > { %v3115_v17 = vmax.f32 %v3079_v45, 0.0 }
 0x51d   : > { %v3151_v18 = vpack.c.bf16 %v3115_v17, %v3115_v17 }
 0x51e   : > { %v3042_v53 = vpop.f32.mrf.mxu3 }
 0x51f   : > { %3188 = vst.msk [vmem:[%s4202_s13 + $0x88] sm:$0xf] %vm3153_vm5, %v3151_v18  ;;  %v3043_v31 = vadd.f32 %v4190_v0, %v3042_v53 }
 0x521   : > { %v3080_v3 = vadd.f32 %v3043_v31, %v2884_v59 }
 0x523   : > { %v3116_v7 = vmax.f32 %v3080_v3, 0.0 }
 0x525   : > { %v3152_v58 = vpack.c.bf16 %v3116_v7, %v3116_v7 }
 0x527   : > { %3189 = vst.msk [vmem:[%s4202_s13 + $0x8c] sm:$0xf] %vm3153_vm5, %v3152_v58 }
 0x528 PF: > { %s16_s21 = sadd.s32 1, %s3490_s21  }
 0x529   : > { %p13_p4 = scmp.ge.s32.totalorder %s16_s21, 4  }
 0x52b   :  { %15 = sbr.rel (!%p13_p4) target bundleno = 1 (0x1), region = 82 }

// kernel: _bottleneck_forward_impl.1
= control target key start
LH: loop header
LB: loop body
LE: loop exit
PB: predicated region body
PF: predicated region fallthrough
CT: control target
= control target key end

     0   :  { %s3528_s21 = smov 0   ;;  %s4402_s0 = inlined_call_operand.vmem [shape: f32[2,326,17], index: 0, kind: input, shape index: {}]   ;;  %s4403_s1 = inlined_call_operand.vmem [shape: bf16[17,4], index: 1, kind: input, shape index: {}]   ;;  %s4404_s2 = inlined_call_operand.vmem [shape: bf16[9,4,4], index: 2, kind: input, shape index: {}]   ;;  %s4405_s3 = inlined_call_operand.vmem [shape: f32[1,4], index: 3, kind: input, shape index: {}]   ;;  %s4406_s4 = inlined_call_operand.vmem [shape: bf16[4,16], index: 4, kind: input, shape index: {}]   ;;  %s4407_s5 = inlined_call_operand.vmem [shape: f32[1,16], index: 5, kind: input, shape index: {}]   ;;  %s4408_s6 = inlined_call_operand.vmem [shape: bf16[2,288,16], index: 6, kind: output, shape index: {}]  }
   0x1 LB: > { %s3245_s22 = sadd.s32 4294967295, %s3490_s21   ;;  %p3249_p0 = scmp.ge.s32.totalorder %s3490_s21, 1  ;;  %s3490_s21 = sphi %s3528_s21, %s16_s21  }
   0x2   : > { %p212_p1 = scmp.lt.s32.totalorder %s3490_s21, 3 }
   0x4   : > { %p213_p2 = pnand %p3249_p0, %p212_p1 }
   0x6   : > { %216 = sbr.rel (%p213_p2) target bundleno = 1320 (0x528), region = 44 }
   0xb   : > { %v317_v0 = vld [vmem:[%s4403_s1 + $0x8] sm:$0x1]  ;;  %vm391_vm0 = vcmask 1040384   ;;  %p242_p3 = scmp.lt.s32.totalorder %s3245_s22, 1  ;;  %v3492_v2 = vmov 0   ;;  %v3467_v6 = vld [vmem:[%s4403_s1] sm:$0xff] }
   0xc   : > { %v323_v1 = vunpack.c.l.b16 %v317_v0  ;;  %v393_v3 = vsel %vm391_vm0, 65535, %v3492_v2  ;;  %vm327_vm1 = vcmask 138240   ;;  %vm551_vm2 = vcmask 31744   ;;  %v648_v49 = vld [vmem:[%s4404_s2] sm:$0x3] }
   0xd   : > { %s4414_s22 = smov (!%p242_p3, %s3245_s22), 1  ;;  %vm759_vm3 = vcmask 1041408   ;;  %v3277_v53 = vld [vmem:[%s4404_s2 + $0x2] sm:$0x3]  ;;  %v3314_v54 = vld [vmem:[%s4404_s2 + $0x4] sm:$0x3] }
   0xe   : > { %v325_v4 = vpack.c.b16 %v323_v1, %v323_v1  ;;  %s3471_s25 = smul.u32 328, %s4414_s22  ;;  %v917_v51 = vsel %vm759_vm3, %v648_v49, 0  ;;  %v761_v56 = vsel %vm759_vm3, %v3277_v53, 0  ;;  %v3600_v57 = vsel %vm759_vm3, %v3314_v54, 0  ;;  %v3352_v58 = vld [vmem:[%s4404_s2 + $0x8] sm:$0x3] }
   0xf   : > { %3469 = vmatpush.bf16.msra.mxu2 %v917_v51  ;;  %3468 = vmatpush.bf16.msra.mxu1 %v761_v56  ;;  %v1625_v61 = vsel %vm759_vm3, %v3352_v58, 0  ;;  %v3333_v62 = vld [vmem:[%s4404_s2 + $0x6] sm:$0x3]  ;;  %vm592_vm4 = vcmask 29696   ;;  %s3472_s10 = smul.u32 144, %s4414_s22  ;;  %vm3153_vm5 = vcmask 125952  }
  0x10   : > { %v395_v5 = vand.u32 %v393_v3, %v325_v4  ;;  %s3545_s28 = scalar_lea.vmem %s4402_s0, %s3471_s25  ;;  %3470 = vmatpush.bf16.msra.mxu3 %v3600_v57  ;;  %v1377_v63 = vsel %vm759_vm3, %v3333_v62, 0 }
  0x11   : > { %v253_v7 = vld [vmem:[%s3545_s28] sm:$0xff]  ;;  %v254_v8 = vld [vmem:[%s3545_s28 + $0x8] sm:$0xff]  ;;  %v255_v10 = vld [vmem:[%s3545_s28 + $0x10] sm:$0xff]  ;;  %s4202_s13 = scalar_lea.vmem %s4408_s6, %s3472_s10 }
  0x12   : > { %403 = vmatpush.bf16.msra.mxu0 %v395_v5  ;;  %v294_v9 = vpack.c.bf16 %v254_v8, %v253_v7  ;;  %v256_v11 = vld [vmem:[%s3545_s28 + $0x18] sm:$0xff]  ;;  %v257_v13 = vld [vmem:[%s3545_s28 + $0x20] sm:$0xff]  ;;  %v258_v14 = vld [vmem:[%s3545_s28 + $0x28] sm:$0xff] }
  0x13   : > { %v295_v12 = vpack.c.bf16 %v256_v11, %v255_v10  ;;  %v296_v15 = vpack.c.bf16 %v258_v14, %v257_v13  ;;  %v259_v16 = vld [vmem:[%s3545_s28 + $0x30] sm:$0xff]  ;;  %v260_v17 = vld [vmem:[%s3545_s28 + $0x38] sm:$0xff]  ;;  %v261_v19 = vld [vmem:[%s3545_s28 + $0x40] sm:$0xff]  ;;  %1634 = vmatpush.bf16.msrb.mxu2 %v1625_v61  ;;  %1386 = vmatpush.bf16.msrb.mxu1 %v1377_v63 }
  0x14   : > { %v297_v18 = vpack.c.bf16 %v260_v17, %v259_v16  ;;  %v262_v20 = vld [vmem:[%s3545_s28 + $0x48] sm:$0xff]  ;;  %v263_v22 = vld [vmem:[%s3545_s28 + $0x50] sm:$0xff]  ;;  %v264_v23 = vld [vmem:[%s3545_s28 + $0x58] sm:$0xff] }
  0x15   : > { %v298_v21 = vpack.c.bf16 %v262_v20, %v261_v19  ;;  %v299_v24 = vpack.c.bf16 %v264_v23, %v263_v22  ;;  %v265_v25 = vld [vmem:[%s3545_s28 + $0x60] sm:$0xff]  ;;  %v266_v26 = vld [vmem:[%s3545_s28 + $0x68] sm:$0xff]  ;;  %v267_v28 = vld [vmem:[%s3545_s28 + $0x70] sm:$0xff] }
  0x16   : > { %404 = vmatpush.bf16.msra.mxu0 %v3467_v6  ;;  %v300_v27 = vpack.c.bf16 %v266_v26, %v265_v25  ;;  %v268_v29 = vld [vmem:[%s3545_s28 + $0x78] sm:$0xff]  ;;  %v269_v31 = vld [vmem:[%s3545_s28 + $0x80] sm:$0xff]  ;;  %v270_v32 = vld [vmem:[%s3545_s28 + $0x88] sm:$0xff] }
  0x17   : > { %v301_v30 = vpack.c.bf16 %v268_v29, %v267_v28  ;;  %v302_v33 = vpack.c.bf16 %v270_v32, %v269_v31  ;;  %v271_v38 = vld [vmem:[%s3545_s28 + $0x90] sm:$0xff]  ;;  %v272_v39 = vld [vmem:[%s3545_s28 + $0x98] sm:$0xff]  ;;  %v273_v45 = vld [vmem:[%s3545_s28 + $0xa0] sm:$0xff] }
  0x18   : > { %v303_v40 = vpack.c.bf16 %v272_v39, %v271_v38  ;;  %v274_v46 = vld [vmem:[%s3545_s28 + $0xa8] sm:$0xff]  ;;  %v275_v59 = vld [vmem:[%s3545_s28 + $0xb0] sm:$0xff]  ;;  %v276_v60 = vld [vmem:[%s3545_s28 + $0xb8] sm:$0xff] }
  0x19   : > { %3256 = vmatmul.msk.bf16.vlgmr.msra.gmra.mxu0 %vm327_vm1, %v294_v9  ;;  %v304_v47 = vpack.c.bf16 %v274_v46, %v273_v45  ;;  %v305_v0 = vpack.c.bf16 %v276_v60, %v275_v59  ;;  %v277_v5 = vld [vmem:[%s3545_s28 + $0xc0] sm:$0xff]  ;;  %v278_v6 = vld [vmem:[%s3545_s28 + $0xc8] sm:$0xff]  ;;  %v280_v22 = vld [vmem:[%s3545_s28 + $0xd8] sm:$0xff] }
  0x1a   : > { %770 = vmatpush.bf16.msrb.mxu0 %v761_v56  ;;  %v306_v7 = vpack.c.bf16 %v278_v6, %v277_v5  ;;  %v282_v38 = vld [vmem:[%s3545_s28 + $0xe8] sm:$0xff]  ;;  %v283_v53 = vld [vmem:[%s3545_s28 + $0xf0] sm:$0xff]  ;;  %v284_v54 = vld [vmem:[%s3545_s28 + $0xf8] sm:$0xff] }
  0x1b   : > { %v285_v6 = vld [vmem:[%s3545_s28 + $0x100] sm:$0xff] }
  0x1e   : > { %926 = vmatpush.bf16.msra.mxu0 %v917_v51 }
  0x29   : > { %3257 = vmatmul.msk.bf16.gmra.mxu0 %vm327_vm1, %v295_v12 }
  0x39   : > { %3258 = vmatmul.msk.bf16.gmra.mxu0 %vm327_vm1, %v296_v15 }
  0x49   : > { %3259 = vmatmul.msk.bf16.gmra.mxu0 %vm327_vm1, %v297_v18 }
  0x59   : > { %3260 = vmatmul.msk.bf16.gmra.mxu0 %vm327_vm1, %v298_v21  ;;  %v279_v21 = vld [vmem:[%s3545_s28 + $0xd0] sm:$0xff] }
  0x5a   : > { %v307_v23 = vpack.c.bf16 %v280_v22, %v279_v21 }
  0x69   : > { %3261 = vmatmul.msk.bf16.gmra.mxu0 %vm327_vm1, %v299_v24 }
  0x79   : > { %3262 = vmatmul.msk.bf16.gmra.mxu0 %vm327_vm1, %v300_v27 }
  0x89   : > { %3263 = vmatmul.msk.bf16.gmra.mxu0 %vm327_vm1, %v301_v30 }
  0x96   : > { %v406_v34 = vpop.f32.mrf.mxu0 }
  0x97   : > { %v510_v35 = vmax.f32 %v406_v34, 0.0 }
  0x99   : > { %552 = vst.msk [vmem:[#allocation2] sm:$0xff] %vm551_vm2, %v510_v35  ;;  %3264 = vmatmul.msk.bf16.gmra.mxu0 %vm327_vm1, %v302_v33 }
  0x9e   : > { %v408_v36 = vpop.f32.mrf.mxu0 }
  0x9f   : > { %v511_v37 = vmax.f32 %v408_v36, 0.0 }
  0xa1   : > { %553 = vst.msk [vmem:[#allocation2 + $0x8] sm:$0xff] %vm551_vm2, %v511_v37  ;;  %v281_v37 = vld [vmem:[%s3545_s28 + $0xe0] sm:$0xff] }
  0xa2   : > { %v308_v39 = vpack.c.bf16 %v282_v38, %v281_v37 }
  0xa6   : > { %v411_v41 = vpop.f32.mrf.mxu0 }
  0xa7   : > { %v512_v42 = vmax.f32 %v411_v41, 0.0 }
  0xa9   : > { %554 = vst.msk [vmem:[#allocation2 + $0x10] sm:$0xff] %vm551_vm2, %v512_v42  ;;  %3265 = vmatmul.msk.bf16.gmra.mxu0 %vm327_vm1, %v303_v40 }
  0xae   : > { %v413_v43 = vpop.f32.mrf.mxu0 }
  0xaf   : > { %v513_v44 = vmax.f32 %v413_v43, 0.0 }
  0xb1   : > { %555 = vst.msk [vmem:[#allocation2 + $0x18] sm:$0xff] %vm551_vm2, %v513_v44 }
  0xb6   : > { %v416_v48 = vpop.f32.mrf.mxu0 }
  0xb7   : > { %v514_v50 = vmax.f32 %v416_v48, 0.0 }
  0xb9   : > { %556 = vst.msk [vmem:[#allocation2 + $0x20] sm:$0xff] %vm551_vm2, %v514_v50  ;;  %3266 = vmatmul.msk.bf16.gmra.mxu0 %vm327_vm1, %v304_v47 }
  0xbe   : > { %v418_v52 = vpop.f32.mrf.mxu0 }
  0xbf   : > { %v515_v55 = vmax.f32 %v418_v52, 0.0 }
  0xc1   : > { %557 = vst.msk [vmem:[#allocation2 + $0x28] sm:$0xff] %vm551_vm2, %v515_v55  ;;  %v309_v55 = vpack.c.bf16 %v284_v54, %v283_v53 }
  0xc6   : > { %v421_v1 = vpop.f32.mrf.mxu0 }
  0xc7   : > { %v516_v2 = vmax.f32 %v421_v1, 0.0 }
  0xc9   : > { %558 = vst.msk [vmem:[#allocation2 + $0x30] sm:$0xff] %vm551_vm2, %v516_v2  ;;  %3267 = vmatmul.msk.bf16.gmra.mxu0 %vm327_vm1, %v305_v0 }
  0xce   : > { %v423_v3 = vpop.f32.mrf.mxu0 }
  0xcf   : > { %v517_v4 = vmax.f32 %v423_v3, 0.0 }
  0xd0   : > { %v600_v10 = vld [vmem:[#allocation2 + $0x30] sm:$0xff] }
  0xd1   : > { %559 = vst.msk [vmem:[#allocation2 + $0x38] sm:$0xff] %vm551_vm2, %v517_v4 }
  0xd6   : > { %v426_v8 = vpop.f32.mrf.mxu0 }
  0xd7   : > { %v518_v9 = vmax.f32 %v426_v8, 0.0 }
  0xd8   : > { %v601_v11 = vld [vmem:[#allocation2 + $0x38] sm:$0xff] }
  0xd9   : > { %560 = vst.msk [vmem:[#allocation2 + $0x40] sm:$0xff] %vm551_vm2, %v518_v9  ;;  %3268 = vmatmul.msk.bf16.gmra.mxu0 %vm327_vm1, %v306_v7  ;;  %v633_v12 = vpack.c.bf16 %v601_v11, %v600_v10  ;;  %v655_v15 = vld [vmem:[#allocation2 + $0x31] sm:$0xff]  ;;  %v286_v7 = vld [vmem:[%s3545_s28 + $0x108] sm:$0xff] }
  0xda   : > { %v1024_v17 = vld [vmem:[#allocation2 + $0x32] sm:$0xff]  ;;  %v310_v8 = vpack.c.bf16 %v286_v7, %v285_v6 }
  0xdb   : > { %3299 = vmatmul.msk.bf16.vlgmr.msra.gmra.mxu2 %vm551_vm2, %v633_v12 }
  0xde   : > { %v428_v13 = vpop.f32.mrf.mxu0 }
  0xdf   : > { %v519_v14 = vmax.f32 %v428_v13, 0.0 }
  0xe0   : > { %v656_v16 = vld [vmem:[#allocation2 + $0x39] sm:$0xff] }
  0xe1   : > { %v1025_v18 = vld [vmem:[#allocation2 + $0x3a] sm:$0xff]  ;;  %561 = vst.msk [vmem:[#allocation2 + $0x48] sm:$0xff] %vm551_vm2, %v519_v14  ;;  %v688_v19 = vpack.c.bf16 %v656_v16, %v655_v15 }
  0xe2   : > { %v3623_v20 = vpack.c.bf16 %v1025_v18, %v1024_v17  ;;  %v602_v26 = vld [vmem:[#allocation2 + $0x40] sm:$0xff] }
  0xe3   : > { %3281 = vmatmul.msk.bf16.vlgmr.msra.gmra.mxu1 %vm551_vm2, %v688_v19 }
  0xe4   : > { %3318 = vmatmul.msk.bf16.vlgmr.msra.gmra.mxu3 %vm551_vm2, %v3623_v20 }
  0xe6   : > { %v431_v24 = vpop.f32.mrf.mxu0 }
  0xe7   : > { %v520_v25 = vmax.f32 %v431_v24, 0.0  ;;  %v288_v24 = vld [vmem:[%s3545_s28 + $0x118] sm:$0xff] }
  0xe8   : > { %v603_v27 = vld [vmem:[#allocation2 + $0x48] sm:$0xff] }
  0xe9   : > { %562 = vst.msk [vmem:[#allocation2 + $0x50] sm:$0xff] %vm551_vm2, %v520_v25  ;;  %3269 = vmatmul.msk.bf16.gmra.mxu0 %vm327_vm1, %v307_v23  ;;  %v634_v28 = vpack.c.bf16 %v603_v27, %v602_v26  ;;  %v657_v31 = vld [vmem:[#allocation2 + $0x41] sm:$0xff]  ;;  %v287_v23 = vld [vmem:[%s3545_s28 + $0x110] sm:$0xff] }
  0xea   : > { %v1026_v33 = vld [vmem:[#allocation2 + $0x42] sm:$0xff]  ;;  %v311_v25 = vpack.c.bf16 %v288_v24, %v287_v23 }
  0xeb   : > { %3300 = vmatmul.msk.bf16.gmra.mxu2 %vm551_vm2, %v634_v28 }
  0xee   : > { %v433_v29 = vpop.f32.mrf.mxu0 }
  0xef   : > { %v521_v30 = vmax.f32 %v433_v29, 0.0 }
  0xf0   : > { %v658_v32 = vld [vmem:[#allocation2 + $0x49] sm:$0xff] }
  0xf1   : > { %v1027_v34 = vld [vmem:[#allocation2 + $0x4a] sm:$0xff]  ;;  %563 = vst.msk [vmem:[#allocation2 + $0x58] sm:$0xff] %vm551_vm2, %v521_v30  ;;  %v689_v35 = vpack.c.bf16 %v658_v32, %v657_v31 }
  0xf2   : > { %v3634_v36 = vpack.c.bf16 %v1027_v34, %v1026_v33  ;;  %v604_v42 = vld [vmem:[#allocation2 + $0x50] sm:$0xff] }
  0xf3   : > { %3282 = vmatmul.msk.bf16.gmra.mxu1 %vm551_vm2, %v689_v35 }
  0xf4   : > { %3319 = vmatmul.msk.bf16.gmra.mxu3 %vm551_vm2, %v3634_v36 }
  0xf6   : > { %v436_v40 = vpop.f32.mrf.mxu0 }
  0xf7   : > { %v522_v41 = vmax.f32 %v436_v40, 0.0  ;;  %v289_v40 = vld [vmem:[%s3545_s28 + $0x120] sm:$0xff] }
  0xf8   : > { %v605_v43 = vld [vmem:[#allocation2 + $0x58] sm:$0xff] }
  0xf9   : > { %564 = vst.msk [vmem:[#allocation2 + $0x60] sm:$0xff] %vm551_vm2, %v522_v41  ;;  %3270 = vmatmul.msk.bf16.gmra.mxu0 %vm327_vm1, %v308_v39  ;;  %v635_v44 = vpack.c.bf16 %v605_v43, %v604_v42  ;;  %v659_v47 = vld [vmem:[#allocation2 + $0x51] sm:$0xff]  ;;  %v290_v41 = vld [vmem:[%s3545_s28 + $0x128] sm:$0xff] }
  0xfa   : > { %v1028_v49 = vld [vmem:[#allocation2 + $0x52] sm:$0xff]  ;;  %v312_v42 = vpack.c.bf16 %v290_v41, %v289_v40 }
  0xfb   : > { %3301 = vmatmul.msk.bf16.gmra.mxu2 %vm551_vm2, %v635_v44 }
  0xfe   : > { %v438_v45 = vpop.f32.mrf.mxu0 }
  0xff   : > { %v523_v46 = vmax.f32 %v438_v45, 0.0 }
 0x100   : > { %v660_v48 = vld [vmem:[#allocation2 + $0x59] sm:$0xff] }
 0x101   : > { %v1029_v50 = vld [vmem:[#allocation2 + $0x5a] sm:$0xff]  ;;  %565 = vst.msk [vmem:[#allocation2 + $0x68] sm:$0xff] %vm551_vm2, %v523_v46  ;;  %v690_v51 = vpack.c.bf16 %v660_v48, %v659_v47 }
 0x102   : > { %v3645_v52 = vpack.c.bf16 %v1029_v50, %v1028_v49  ;;  %v606_v59 = vld [vmem:[#allocation2 + $0x60] sm:$0xff] }
 0x103   : > { %3283 = vmatmul.msk.bf16.gmra.mxu1 %vm551_vm2, %v690_v51 }
 0x104   : > { %3320 = vmatmul.msk.bf16.gmra.mxu3 %vm551_vm2, %v3645_v52 }
 0x106   : > { %v441_v56 = vpop.f32.mrf.mxu0 }
 0x107   : > { %v524_v58 = vmax.f32 %v441_v56, 0.0 }
 0x108   : > { %v607_v60 = vld [vmem:[#allocation2 + $0x68] sm:$0xff] }
 0x109   : > { %566 = vst.msk [vmem:[#allocation2 + $0x70] sm:$0xff] %vm551_vm2, %v524_v58  ;;  %3271 = vmatmul.msk.bf16.gmra.mxu0 %vm327_vm1, %v309_v55  ;;  %v636_v61 = vpack.c.bf16 %v607_v60, %v606_v59  ;;  %v661_v0 = vld [vmem:[#allocation2 + $0x61] sm:$0xff]  ;;  %v291_v58 = vld [vmem:[%s3545_s28 + $0x130] sm:$0xff]  ;;  %v292_v59 = vld [vmem:[%s3545_s28 + $0x138] sm:$0xff] }
 0x10a   : > { %v1030_v2 = vld [vmem:[#allocation2 + $0x62] sm:$0xff]  ;;  %v313_v60 = vpack.c.bf16 %v292_v59, %v291_v58 }
 0x10b   : > { %3302 = vmatmul.msk.bf16.gmra.mxu2 %vm551_vm2, %v636_v61 }
 0x10e   : > { %v443_v62 = vpop.f32.mrf.mxu0 }
 0x10f   : > { %v525_v63 = vmax.f32 %v443_v62, 0.0 }
 0x110   : > { %v662_v1 = vld [vmem:[#allocation2 + $0x69] sm:$0xff] }
 0x111   : > { %v1031_v3 = vld [vmem:[#allocation2 + $0x6a] sm:$0xff]  ;;  %567 = vst.msk [vmem:[#allocation2 + $0x78] sm:$0xff] %vm551_vm2, %v525_v63  ;;  %v691_v4 = vpack.c.bf16 %v662_v1, %v661_v0 }
 0x112   : > { %v3656_v5 = vpack.c.bf16 %v1031_v3, %v1030_v2  ;;  %v608_v11 = vld [vmem:[#allocation2 + $0x70] sm:$0xff] }
 0x113   : > { %3284 = vmatmul.msk.bf16.gmra.mxu1 %vm551_vm2, %v691_v4 }
 0x114   : > { %3321 = vmatmul.msk.bf16.gmra.mxu3 %vm551_vm2, %v3656_v5 }
 0x116   : > { %v446_v9 = vpop.f32.mrf.mxu0 }
 0x117   : > { %v526_v10 = vmax.f32 %v446_v9, 0.0 }
 0x118   : > { %v609_v12 = vld [vmem:[#allocation2 + $0x78] sm:$0xff] }
 0x119   : > { %568 = vst.msk [vmem:[#allocation2 + $0x80] sm:$0xff] %vm551_vm2, %v526_v10  ;;  %3272 = vmatmul.msk.bf16.gmra.mxu0 %vm327_vm1, %v310_v8  ;;  %v637_v13 = vpack.c.bf16 %v609_v12, %v608_v11  ;;  %v663_v16 = vld [vmem:[#allocation2 + $0x71] sm:$0xff]  ;;  %v293_v11 = vld [vmem:[%s3545_s28 + $0x140] sm:$0x3f]  ;;  %v3371_v12 = vld [vmem:[%s4404_s2 + $0xa] sm:$0x3] }
 0x11a   : > { %v1032_v18 = vld [vmem:[#allocation2 + $0x72] sm:$0xff] }
 0x11b   : > { %3303 = vmatmul.msk.bf16.gmra.mxu2 %vm551_vm2, %v637_v13  ;;  %v1873_v13 = vsel %vm759_vm3, %v3371_v12, 0 }
 0x11c   : > { %1882 = vmatpush.bf16.msrb.mxu3 %v1873_v13 }
 0x11e   : > { %v448_v14 = vpop.f32.mrf.mxu0 }
 0x11f   : > { %v527_v15 = vmax.f32 %v448_v14, 0.0  ;;  %v314_v14 = vpack.c.bf16 %v293_v11, %v293_v11 }
 0x120   : > { %v664_v17 = vld [vmem:[#allocation2 + $0x79] sm:$0xff] }
 0x121   : > { %v1033_v19 = vld [vmem:[#allocation2 + $0x7a] sm:$0xff]  ;;  %569 = vst.msk [vmem:[#allocation2 + $0x88] sm:$0xff] %vm551_vm2, %v527_v15  ;;  %v692_v21 = vpack.c.bf16 %v664_v17, %v663_v16 }
 0x122   : > { %v3667_v22 = vpack.c.bf16 %v1033_v19, %v1032_v18  ;;  %v610_v28 = vld [vmem:[#allocation2 + $0x80] sm:$0xff] }
 0x123   : > { %3285 = vmatmul.msk.bf16.gmra.mxu1 %vm551_vm2, %v692_v21 }
 0x124   : > { %3322 = vmatmul.msk.bf16.gmra.mxu3 %vm551_vm2, %v3667_v22 }
 0x126   : > { %v451_v26 = vpop.f32.mrf.mxu0 }
 0x127   : > { %v528_v27 = vmax.f32 %v451_v26, 0.0 }
 0x128   : > { %v611_v29 = vld [vmem:[#allocation2 + $0x88] sm:$0xff] }
 0x129   : > { %570 = vst.msk [vmem:[#allocation2 + $0x90] sm:$0xff] %vm551_vm2, %v528_v27  ;;  %3273 = vmatmul.msk.bf16.gmra.mxu0 %vm327_vm1, %v311_v25  ;;  %v638_v30 = vpack.c.bf16 %v611_v29, %v610_v28  ;;  %v665_v33 = vld [vmem:[#allocation2 + $0x81] sm:$0xff] }
 0x12a   : > { %v1034_v35 = vld [vmem:[#allocation2 + $0x82] sm:$0xff] }
 0x12b   : > { %3304 = vmatmul.msk.bf16.gmra.mxu2 %vm551_vm2, %v638_v30 }
 0x12e   : > { %v453_v31 = vpop.f32.mrf.mxu0 }
 0x12f   : > { %v529_v32 = vmax.f32 %v453_v31, 0.0 }
 0x130   : > { %v666_v34 = vld [vmem:[#allocation2 + $0x89] sm:$0xff] }
 0x131   : > { %v1035_v37 = vld [vmem:[#allocation2 + $0x8a] sm:$0xff]  ;;  %571 = vst.msk [vmem:[#allocation2 + $0x98] sm:$0xff] %vm551_vm2, %v529_v32  ;;  %v693_v38 = vpack.c.bf16 %v666_v34, %v665_v33 }
 0x132   : > { %v3678_v39 = vpack.c.bf16 %v1035_v37, %v1034_v35  ;;  %v612_v45 = vld [vmem:[#allocation2 + $0x90] sm:$0xff]  ;;  %v649_v37 = vld [vmem:[#allocation2 + $0x1] sm:$0xff] }
 0x133   : > { %3286 = vmatmul.msk.bf16.gmra.mxu1 %vm551_vm2, %v693_v38  ;;  %v650_v33 = vld [vmem:[#allocation2 + $0x9] sm:$0xff] }
 0x134   : > { %3323 = vmatmul.msk.bf16.gmra.mxu3 %vm551_vm2, %v3678_v39  ;;  %v685_v41 = vpack.c.bf16 %v650_v33, %v649_v37 }
 0x136   : > { %v456_v43 = vpop.f32.mrf.mxu0 }
 0x137   : > { %v530_v44 = vmax.f32 %v456_v43, 0.0 }
 0x138   : > { %v613_v46 = vld [vmem:[#allocation2 + $0x98] sm:$0xff] }
 0x139   : > { %572 = vst.msk [vmem:[#allocation2 + $0xa0] sm:$0xff] %vm551_vm2, %v530_v44  ;;  %3274 = vmatmul.msk.bf16.gmra.mxu0 %vm327_vm1, %v312_v42  ;;  %v639_v47 = vpack.c.bf16 %v613_v46, %v612_v45  ;;  %v667_v50 = vld [vmem:[#allocation2 + $0x91] sm:$0xff] }
 0x13a   : > { %v1036_v53 = vld [vmem:[#allocation2 + $0x92] sm:$0xff] }
 0x13b   : > { %3305 = vmatmul.msk.bf16.gmra.mxu2 %vm551_vm2, %v639_v47 }
 0x13e   : > { %v458_v48 = vpop.f32.mrf.mxu0 }
 0x13f   : > { %v531_v49 = vmax.f32 %v458_v48, 0.0 }
 0x140   : > { %v668_v51 = vld [vmem:[#allocation2 + $0x99] sm:$0xff] }
 0x141   : > { %v1037_v54 = vld [vmem:[#allocation2 + $0x9a] sm:$0xff]  ;;  %573 = vst.msk [vmem:[#allocation2 + $0xa8] sm:$0xff] %vm551_vm2, %v531_v49  ;;  %v694_v55 = vpack.c.bf16 %v668_v51, %v667_v50 }
 0x142   : > { %v1063_v56 = vpack.c.bf16 %v1037_v54, %v1036_v53  ;;  %v614_v63 = vld [vmem:[#allocation2 + $0xa0] sm:$0xff] }
 0x143   : > { %3287 = vmatmul.msk.bf16.gmra.mxu1 %vm551_vm2, %v694_v55 }
 0x144   : > { %3324 = vmatmul.msk.bf16.gmra.mxu3 %vm551_vm2, %v1063_v56 }
 0x146   : > { %v461_v61 = vpop.f32.mrf.mxu0 }
 0x147   : > { %v532_v62 = vmax.f32 %v461_v61, 0.0 }
 0x148   : > { %v615_v0 = vld [vmem:[#allocation2 + $0xa8] sm:$0xff] }
 0x149   : > { %574 = vst.msk [vmem:[#allocation2 + $0xb0] sm:$0xff] %vm551_vm2, %v532_v62  ;;  %3275 = vmatmul.msk.bf16.gmra.mxu0 %vm327_vm1, %v313_v60  ;;  %v640_v1 = vpack.c.bf16 %v615_v0, %v614_v63  ;;  %v669_v4 = vld [vmem:[#allocation2 + $0xa1] sm:$0xff] }
 0x14a   : > { %v1038_v7 = vld [vmem:[#allocation2 + $0xa2] sm:$0xff] }
 0x14b   : > { %3306 = vmatmul.msk.bf16.gmra.mxu2 %vm551_vm2, %v640_v1  ;;  %v651_v1 = vld [vmem:[#allocation2 + $0x11] sm:$0xff] }
 0x14e   : > { %v463_v2 = vpop.f32.mrf.mxu0 }
 0x14f   : > { %v533_v3 = vmax.f32 %v463_v2, 0.0 }
 0x150   : > { %v670_v6 = vld [vmem:[#allocation2 + $0xa9] sm:$0xff] }
 0x151   : > { %v1039_v8 = vld [vmem:[#allocation2 + $0xaa] sm:$0xff]  ;;  %575 = vst.msk [vmem:[#allocation2 + $0xb8] sm:$0xff] %vm551_vm2, %v533_v3  ;;  %v695_v9 = vpack.c.bf16 %v670_v6, %v669_v4 }
 0x152   : > { %v1064_v10 = vpack.c.bf16 %v1039_v8, %v1038_v7  ;;  %v616_v17 = vld [vmem:[#allocation2 + $0xb0] sm:$0xff] }
 0x153   : > { %3288 = vmatmul.msk.bf16.gmra.mxu1 %vm551_vm2, %v695_v9 }
 0x154   : > { %3325 = vmatmul.msk.bf16.gmra.mxu3 %vm551_vm2, %v1064_v10 }
 0x156   : > { %v466_v15 = vpop.f32.mrf.mxu0 }
 0x157   : > { %v534_v16 = vmax.f32 %v466_v15, 0.0 }
 0x158   : > { %v617_v18 = vld [vmem:[#allocation2 + $0xb8] sm:$0xff] }
 0x159   : > { %576 = vst.msk [vmem:[#allocation2 + $0xc0] sm:$0xff] %vm551_vm2, %v534_v16  ;;  %3276 = vmatmul.msk.bf16.gmra.mxu0 %vm327_vm1, %v314_v14  ;;  %v641_v19 = vpack.c.bf16 %v617_v18, %v616_v17  ;;  %v671_v25 = vld [vmem:[#allocation2 + $0xb1] sm:$0xff] }
 0x15a   : > { %v1040_v28 = vld [vmem:[#allocation2 + $0xb2] sm:$0xff] }
 0x15b   : > { %3307 = vmatmul.msk.bf16.gmra.mxu2 %vm551_vm2, %v641_v19 }
 0x15e   : > { %v468_v21 = vpop.f32.mrf.mxu0  ;;  %v943_v23 = vpop.f32.mrf.mxu2 }
 0x15f   : > { %v535_v24 = vmax.f32 %v468_v21, 0.0 }
 0x160   : > { %v787_v26 = vpop.f32.mrf.mxu1  ;;  %v672_v27 = vld [vmem:[#allocation2 + $0xb9] sm:$0xff] }
 0x161   : > { %v1041_v29 = vld [vmem:[#allocation2 + $0xba] sm:$0xff]  ;;  %577 = vst.msk [vmem:[#allocation2 + $0xc8] sm:$0xff] %vm551_vm2, %v535_v24  ;;  %v944_v30 = vadd.f32 %v943_v23, %v787_v26  ;;  %v696_v31 = vpack.c.bf16 %v672_v27, %v671_v25  ;;  %v654_v27 = vld [vmem:[#allocation2 + $0x29] sm:$0xff] }
 0x162   : > { %v1065_v32 = vpack.c.bf16 %v1041_v29, %v1040_v28  ;;  %v618_v44 = vld [vmem:[#allocation2 + $0xc0] sm:$0xff] }
 0x163   : > { %3289 = vmatmul.msk.bf16.gmra.mxu1 %vm551_vm2, %v696_v31 }
 0x164   : > { %3326 = vmatmul.msk.bf16.gmra.mxu3 %vm551_vm2, %v1065_v32 }
 0x166   : > { %v471_v34 = vpop.f32.mrf.mxu0  ;;  %v945_v35 = vpop.f32.mrf.mxu2 }
 0x167   : > { %v536_v38 = vmax.f32 %v471_v34, 0.0  ;;  %v1155_v40 = vpop.f32.mrf.mxu3 }
 0x168   : > { %v3710_v42 = vadd.f32 %v1155_v40, %v944_v30  ;;  %v789_v43 = vpop.f32.mrf.mxu1  ;;  %v619_v45 = vld [vmem:[#allocation2 + $0xc8] sm:$0xff] }
 0x169   : > { %578 = vst.msk [vmem:[#allocation2 + $0xd0] sm:$0xff] %vm551_vm2, %v536_v38  ;;  %v946_v46 = vadd.f32 %v945_v35, %v789_v43  ;;  %3278 = vmatmul.msk.bf16.vlgmr.msrb.gmra.mxu0 %vm551_vm2, %v685_v41  ;;  %v642_v47 = vpack.c.bf16 %v619_v45, %v618_v44  ;;  %v673_v53 = vld [vmem:[#allocation2 + $0xc1] sm:$0xff] }
 0x16a   : > { %1138 = vmatpush.bf16.msrb.mxu0 %v3600_v57  ;;  %v1042_v58 = vld [vmem:[#allocation2 + $0xc2] sm:$0xff]  ;;  %v652_v57 = vld [vmem:[#allocation2 + $0x19] sm:$0xff] }
 0x16b   : > { %3308 = vmatmul.msk.bf16.gmra.mxu2 %vm551_vm2, %v642_v47  ;;  %v686_v4 = vpack.c.bf16 %v652_v57, %v651_v1  ;;  %v653_v30 = vld [vmem:[#allocation2 + $0x21] sm:$0xff] }
 0x16c   : > { %v687_v33 = vpack.c.bf16 %v654_v27, %v653_v30 }
 0x16e   : > { %v473_v48 = vpop.f32.mrf.mxu0  ;;  %v948_v49 = vpop.f32.mrf.mxu2 }
 0x16f   : > { %v537_v50 = vmax.f32 %v473_v48, 0.0  ;;  %v1157_v51 = vpop.f32.mrf.mxu3 }
 0x170   : > { %v3716_v54 = vadd.f32 %v1157_v51, %v946_v46  ;;  %v792_v55 = vpop.f32.mrf.mxu1  ;;  %v674_v56 = vld [vmem:[#allocation2 + $0xc9] sm:$0xff] }
 0x171   : > { %v1043_v59 = vld [vmem:[#allocation2 + $0xca] sm:$0xff]  ;;  %579 = vst.msk [vmem:[#allocation2 + $0xd8] sm:$0xff] %vm551_vm2, %v537_v50  ;;  %v949_v60 = vadd.f32 %v948_v49, %v792_v55  ;;  %v697_v61 = vpack.c.bf16 %v674_v56, %v673_v53 }
 0x172   : > { %v1066_v62 = vpack.c.bf16 %v1043_v59, %v1042_v58  ;;  %v620_v8 = vld [vmem:[#allocation2 + $0xd0] sm:$0xff]  ;;  %v595_v59 = vld [vmem:[#allocation2 + $0x8] sm:$0xff] }
 0x173   : > { %3290 = vmatmul.msk.bf16.gmra.mxu1 %vm551_vm2, %v697_v61 }
 0x174   : > { %3327 = vmatmul.msk.bf16.gmra.mxu3 %vm551_vm2, %v1066_v62  ;;  %v594_v62 = vld [vmem:[#allocation2] sm:$0xff] }
 0x176   : > { %v476_v63 = vpop.f32.mrf.mxu0  ;;  %v950_v0 = vpop.f32.mrf.mxu2 }
 0x177   : > { %v538_v2 = vmax.f32 %v476_v63, 0.0  ;;  %v1160_v3 = vpop.f32.mrf.mxu3 }
 0x178   : > { %v3721_v6 = vadd.f32 %v1160_v3, %v949_v60  ;;  %v794_v7 = vpop.f32.mrf.mxu1  ;;  %v621_v9 = vld [vmem:[#allocation2 + $0xd8] sm:$0xff] }
 0x179   : > { %580 = vst.msk [vmem:[#allocation2 + $0xe0] sm:$0xff] %vm551_vm2, %v538_v2  ;;  %v951_v10 = vadd.f32 %v950_v0, %v794_v7  ;;  %3279 = vmatmul.msk.bf16.gmra.mxu0 %vm551_vm2, %v686_v4  ;;  %v643_v11 = vpack.c.bf16 %v621_v9, %v620_v8  ;;  %v675_v16 = vld [vmem:[#allocation2 + $0xd1] sm:$0xff]  ;;  %v630_v0 = vpack.c.bf16 %v595_v59, %v594_v62  ;;  %v599_v62 = vld [vmem:[#allocation2 + $0x28] sm:$0xff] }
 0x17a   : > { %v1044_v21 = vld [vmem:[#allocation2 + $0xd2] sm:$0xff]  ;;  %v3428_v59 = vld [vmem:[%s4404_s2 + $0x10] sm:$0x3] }
 0x17b   : > { %3309 = vmatmul.msk.bf16.gmra.mxu2 %vm551_vm2, %v643_v11 }
 0x17e   : > { %v478_v12 = vpop.f32.mrf.mxu0  ;;  %v953_v13 = vpop.f32.mrf.mxu2 }
 0x17f   : > { %v539_v14 = vmax.f32 %v478_v12, 0.0  ;;  %v1162_v15 = vpop.f32.mrf.mxu3 }
 0x180   : > { %v3726_v17 = vadd.f32 %v1162_v15, %v951_v10  ;;  %v797_v18 = vpop.f32.mrf.mxu1  ;;  %v676_v19 = vld [vmem:[#allocation2 + $0xd9] sm:$0xff] }
 0x181   : > { %v1045_v23 = vld [vmem:[#allocation2 + $0xda] sm:$0xff]  ;;  %581 = vst.msk [vmem:[#allocation2 + $0xe8] sm:$0xff] %vm551_vm2, %v539_v14  ;;  %v954_v24 = vadd.f32 %v953_v13, %v797_v18  ;;  %v698_v25 = vpack.c.bf16 %v676_v19, %v675_v16 }
 0x182   : > { %v1067_v26 = vpack.c.bf16 %v1045_v23, %v1044_v21  ;;  %v622_v37 = vld [vmem:[#allocation2 + $0xe0] sm:$0xff] }
 0x183   : > { %3291 = vmatmul.msk.bf16.gmra.mxu1 %vm551_vm2, %v698_v25  ;;  %v597_v25 = vld [vmem:[#allocation2 + $0x18] sm:$0xff] }
 0x184   : > { %3328 = vmatmul.msk.bf16.gmra.mxu3 %vm551_vm2, %v1067_v26 }
 0x186   : > { %v481_v28 = vpop.f32.mrf.mxu0  ;;  %v955_v29 = vpop.f32.mrf.mxu2 }
 0x187   : > { %v540_v31 = vmax.f32 %v481_v28, 0.0  ;;  %v1165_v32 = vpop.f32.mrf.mxu3  ;;  %v596_v28 = vld [vmem:[#allocation2 + $0x10] sm:$0xff] }
 0x188   : > { %v3731_v34 = vadd.f32 %v1165_v32, %v954_v24  ;;  %v799_v35 = vpop.f32.mrf.mxu1  ;;  %v623_v38 = vld [vmem:[#allocation2 + $0xe8] sm:$0xff] }
 0x189   : > { %582 = vst.msk [vmem:[#allocation2 + $0xf0] sm:$0xff] %vm551_vm2, %v540_v31  ;;  %v956_v40 = vadd.f32 %v955_v29, %v799_v35  ;;  %3280 = vmatmul.msk.bf16.gmra.mxu0 %vm551_vm2, %v687_v33  ;;  %v644_v41 = vpack.c.bf16 %v623_v38, %v622_v37  ;;  %v677_v47 = vld [vmem:[#allocation2 + $0xe1] sm:$0xff]  ;;  %v631_v31 = vpack.c.bf16 %v597_v25, %v596_v28 }
 0x18a   : > { %v1046_v51 = vld [vmem:[#allocation2 + $0xe2] sm:$0xff] }
 0x18b   : > { %3310 = vmatmul.msk.bf16.gmra.mxu2 %vm551_vm2, %v644_v41 }
 0x18e   : > { %v483_v43 = vpop.f32.mrf.mxu0  ;;  %v958_v44 = vpop.f32.mrf.mxu2 }
 0x18f   : > { %v541_v45 = vmax.f32 %v483_v43, 0.0  ;;  %v1167_v46 = vpop.f32.mrf.mxu3 }
 0x190   : > { %v3736_v48 = vadd.f32 %v1167_v46, %v956_v40  ;;  %v802_v49 = vpop.f32.mrf.mxu1  ;;  %v678_v50 = vld [vmem:[#allocation2 + $0xe9] sm:$0xff] }
 0x191   : > { %v1047_v53 = vld [vmem:[#allocation2 + $0xea] sm:$0xff]  ;;  %583 = vst.msk [vmem:[#allocation2 + $0xf8] sm:$0xff] %vm551_vm2, %v541_v45  ;;  %v959_v55 = vadd.f32 %v958_v44, %v802_v49  ;;  %v699_v56 = vpack.c.bf16 %v678_v50, %v677_v47 }
 0x192   : > { %v1068_v58 = vpack.c.bf16 %v1047_v53, %v1046_v51  ;;  %v624_v3 = vld [vmem:[#allocation2 + $0xf0] sm:$0xff] }
 0x193   : > { %3292 = vmatmul.msk.bf16.gmra.mxu1 %vm551_vm2, %v699_v56 }
 0x194   : > { %3329 = vmatmul.msk.bf16.gmra.mxu3 %vm551_vm2, %v1068_v58 }
 0x196   : > { %v486_v60 = vpop.f32.mrf.mxu0  ;;  %v960_v61 = vpop.f32.mrf.mxu2 }
 0x197   : > { %v542_v57 = vmax.f32 %v486_v60, 0.0  ;;  %v1170_v63 = vpop.f32.mrf.mxu3  ;;  %v2617_v60 = vsel %vm759_vm3, %v3428_v59, 0 }
 0x198   : > { %v3741_v1 = vadd.f32 %v1170_v63, %v959_v55  ;;  %v804_v2 = vpop.f32.mrf.mxu1  ;;  %v625_v4 = vld [vmem:[#allocation2 + $0xf8] sm:$0xff]  ;;  %2626 = vmatpush.bf16.msra.mxu2 %v2617_v60 }
 0x199   : > { %584 = vst.msk [vmem:[#allocation2 + $0x100] sm:$0xff] %vm551_vm2, %v542_v57  ;;  %v961_v7 = vadd.f32 %v960_v61, %v804_v2  ;;  %3296 = vmatmul.msk.bf16.vlgmr.msra.gmra.mxu0 %vm551_vm2, %v630_v0  ;;  %v645_v8 = vpack.c.bf16 %v625_v4, %v624_v3  ;;  %v679_v13 = vld [vmem:[#allocation2 + $0xf1] sm:$0xff]  ;;  %v3409_v61 = vld [vmem:[%s4404_s2 + $0xe] sm:$0x3]  ;;  %v598_v2 = vld [vmem:[#allocation2 + $0x20] sm:$0xff] }
 0x19a   : > { %v1048_v18 = vld [vmem:[#allocation2 + $0xf2] sm:$0xff]  ;;  %v2369_v57 = vsel %vm759_vm3, %v3409_v61, 0 }
 0x19b   : > { %3311 = vmatmul.msk.bf16.gmra.mxu2 %vm551_vm2, %v645_v8  ;;  %2378 = vmatpush.bf16.msra.mxu1 %v2369_v57  ;;  %v1762_v57 = vld [vmem:[#allocation2 + $0x14] sm:$0xff] }
 0x19e   : > { %v488_v9 = vpop.f32.mrf.mxu0  ;;  %v963_v10 = vpop.f32.mrf.mxu2 }
 0x19f   : > { %v543_v11 = vmax.f32 %v488_v9, 0.0  ;;  %v1172_v12 = vpop.f32.mrf.mxu3 }
 0x1a0   : > { %v3746_v14 = vadd.f32 %v1172_v12, %v961_v7  ;;  %v807_v15 = vpop.f32.mrf.mxu1  ;;  %v680_v16 = vld [vmem:[#allocation2 + $0xf9] sm:$0xff]  ;;  %v632_v7 = vpack.c.bf16 %v599_v62, %v598_v2 }
 0x1a1   : > { %v1049_v19 = vld [vmem:[#allocation2 + $0xfa] sm:$0xff]  ;;  %585 = vst.msk [vmem:[#allocation2 + $0x108] sm:$0xff] %vm551_vm2, %v543_v11  ;;  %v964_v21 = vadd.f32 %v963_v10, %v807_v15  ;;  %v700_v23 = vpack.c.bf16 %v680_v16, %v679_v13  ;;  %v1266_v62 = vld [vmem:[#allocation2 + $0x12] sm:$0xff] }
 0x1a2   : > { %v1069_v24 = vpack.c.bf16 %v1049_v19, %v1048_v18  ;;  %v626_v35 = vld [vmem:[#allocation2 + $0x100] sm:$0xff] }
 0x1a3   : > { %3293 = vmatmul.msk.bf16.gmra.mxu1 %vm551_vm2, %v700_v23 }
 0x1a4   : > { %3330 = vmatmul.msk.bf16.gmra.mxu3 %vm551_vm2, %v1069_v24 }
 0x1a6   : > { %v491_v26 = vpop.f32.mrf.mxu0  ;;  %v965_v27 = vpop.f32.mrf.mxu2 }
 0x1a7   : > { %v544_v29 = vmax.f32 %v491_v26, 0.0  ;;  %v1175_v30 = vpop.f32.mrf.mxu3 }
 0x1a8   : > { %v3751_v32 = vadd.f32 %v1175_v30, %v964_v21  ;;  %v809_v33 = vpop.f32.mrf.mxu1  ;;  %v627_v37 = vld [vmem:[#allocation2 + $0x108] sm:$0xff] }
 0x1a9   : > { %586 = vst.msk [vmem:[#allocation2 + $0x110] sm:$0xff] %vm551_vm2, %v544_v29  ;;  %v966_v38 = vadd.f32 %v965_v27, %v809_v33  ;;  %3297 = vmatmul.msk.bf16.gmra.mxu0 %vm551_vm2, %v631_v31  ;;  %v646_v40 = vpack.c.bf16 %v627_v37, %v626_v35  ;;  %v681_v46 = vld [vmem:[#allocation2 + $0x101] sm:$0xff]  ;;  %v1019_v31 = vld [vmem:[#allocation2 + $0xa] sm:$0xff] }
 0x1aa   : > { %v1050_v51 = vld [vmem:[#allocation2 + $0x102] sm:$0xff] }
 0x1ab   : > { %3312 = vmatmul.msk.bf16.gmra.mxu2 %vm551_vm2, %v646_v40  ;;  %v1018_v37 = vld [vmem:[#allocation2 + $0x2] sm:$0xff] }
 0x1ae   : > { %v493_v41 = vpop.f32.mrf.mxu0  ;;  %v968_v43 = vpop.f32.mrf.mxu2 }
 0x1af   : > { %v545_v44 = vmax.f32 %v493_v41, 0.0  ;;  %v1177_v45 = vpop.f32.mrf.mxu3 }
 0x1b0   : > { %v3756_v47 = vadd.f32 %v1177_v45, %v966_v38  ;;  %v812_v49 = vpop.f32.mrf.mxu1  ;;  %v682_v50 = vld [vmem:[#allocation2 + $0x109] sm:$0xff]  ;;  %v1515_v38 = vld [vmem:[#allocation2 + $0x1b] sm:$0xff] }
 0x1b1   : > { %v1051_v53 = vld [vmem:[#allocation2 + $0x10a] sm:$0xff]  ;;  %587 = vst.msk [vmem:[#allocation2 + $0x118] sm:$0xff] %vm551_vm2, %v545_v44  ;;  %v969_v55 = vadd.f32 %v968_v43, %v812_v49  ;;  %v701_v56 = vpack.c.bf16 %v682_v50, %v681_v46  ;;  %v1054_v43 = vpack.c.bf16 %v1019_v31, %v1018_v37  ;;  %v1514_v46 = vld [vmem:[#allocation2 + $0x13] sm:$0xff] }
 0x1b2   : > { %v1070_v58 = vpack.c.bf16 %v1051_v53, %v1050_v51  ;;  %v628_v10 = vld [vmem:[#allocation2 + $0x110] sm:$0xff]  ;;  %v1550_v50 = vpack.c.bf16 %v1515_v38, %v1514_v46  ;;  %v1764_v31 = vld [vmem:[#allocation2 + $0x24] sm:$0xff] }
 0x1b3   : > { %3294 = vmatmul.msk.bf16.gmra.mxu1 %vm551_vm2, %v701_v56  ;;  %v1763_v56 = vld [vmem:[#allocation2 + $0x1c] sm:$0xff] }
 0x1b4   : > { %3331 = vmatmul.msk.bf16.gmra.mxu3 %vm551_vm2, %v1070_v58  ;;  %v1798_v2 = vpack.c.bf16 %v1763_v56, %v1762_v57  ;;  %v1767_v56 = vld [vmem:[#allocation2 + $0x3c] sm:$0xff] }
 0x1b6   : > { %v496_v63 = vpop.f32.mrf.mxu0  ;;  %v970_v0 = vpop.f32.mrf.mxu2 }
 0x1b7   : > { %v546_v3 = vmax.f32 %v496_v63, 0.0  ;;  %v1180_v4 = vpop.f32.mrf.mxu3 }
 0x1b8   : > { %v3769_v8 = vadd.f32 %v1180_v4, %v969_v55  ;;  %v814_v9 = vpop.f32.mrf.mxu1  ;;  %v629_v11 = vld [vmem:[#allocation2 + $0x118] sm:$0xff] }
 0x1b9   : > { %588 = vst.msk [vmem:[#allocation2 + $0x120] sm:$0xff] %vm551_vm2, %v546_v3  ;;  %v971_v12 = vadd.f32 %v970_v0, %v814_v9  ;;  %3298 = vmatmul.msk.bf16.gmra.mxu0 %vm551_vm2, %v632_v7  ;;  %v647_v13 = vpack.c.bf16 %v629_v11, %v628_v10  ;;  %v683_v21 = vld [vmem:[#allocation2 + $0x111] sm:$0xff]  ;;  %v1267_v55 = vld [vmem:[#allocation2 + $0x1a] sm:$0xff]  ;;  %v3390_v3 = vld [vmem:[%s4404_s2 + $0xc] sm:$0x3] }
 0x1ba   : > { %v1052_v26 = vld [vmem:[#allocation2 + $0x112] sm:$0xff]  ;;  %v1302_v0 = vpack.c.bf16 %v1267_v55, %v1266_v62  ;;  %v2121_v10 = vsel %vm759_vm3, %v3390_v3, 0 }
 0x1bb   : > { %3313 = vmatmul.msk.bf16.gmra.mxu2 %vm551_vm2, %v647_v13  ;;  %v1517_v9 = vld [vmem:[#allocation2 + $0x2b] sm:$0xff]  ;;  %2130 = vmatpush.bf16.msra.mxu0 %v2121_v10  ;;  %v1766_v62 = vld [vmem:[#allocation2 + $0x34] sm:$0xff]  ;;  %v1520_v10 = vld [vmem:[#allocation2 + $0x43] sm:$0xff] }
 0x1bc   : > { %v1521_v3 = vld [vmem:[#allocation2 + $0x4b] sm:$0xff] }
 0x1be   : > { %v498_v15 = vpop.f32.mrf.mxu0  ;;  %v973_v16 = vpop.f32.mrf.mxu2 }
 0x1bf   : > { %v547_v18 = vmax.f32 %v498_v15, 0.0  ;;  %v1182_v19 = vpop.f32.mrf.mxu3 }
 0x1c0   : > { %v3774_v23 = vadd.f32 %v1182_v19, %v971_v12  ;;  %v817_v24 = vpop.f32.mrf.mxu1  ;;  %v684_v25 = vld [vmem:[#allocation2 + $0x119] sm:$0xff] }
 0x1c1   : > { %v1053_v27 = vld [vmem:[#allocation2 + $0x11a] sm:$0xff]  ;;  %589 = vst.msk [vmem:[#allocation2 + $0x128] sm:$0xff] %vm551_vm2, %v547_v18  ;;  %v974_v28 = vadd.f32 %v973_v16, %v817_v24  ;;  %v702_v29 = vpack.c.bf16 %v684_v25, %v683_v21  ;;  %v1516_v16 = vld [vmem:[#allocation2 + $0x23] sm:$0xff] }
 0x1c2   : > { %v1071_v30 = vpack.c.bf16 %v1053_v27, %v1052_v26  ;;  %v1551_v19 = vpack.c.bf16 %v1517_v9, %v1516_v16  ;;  %v1269_v25 = vld [vmem:[#allocation2 + $0x2a] sm:$0xff] }
 0x1c3   : > { %3295 = vmatmul.msk.bf16.gmra.mxu1 %vm551_vm2, %v702_v29  ;;  %v1765_v26 = vld [vmem:[#allocation2 + $0x2c] sm:$0xff] }
 0x1c4   : > { %3332 = vmatmul.msk.bf16.gmra.mxu3 %vm551_vm2, %v1071_v30  ;;  %v1268_v30 = vld [vmem:[#allocation2 + $0x22] sm:$0xff]  ;;  %v1799_v37 = vpack.c.bf16 %v1765_v26, %v1764_v31  ;;  %v1769_v16 = vld [vmem:[#allocation2 + $0x4c] sm:$0xff] }
 0x1c6   : > { %v501_v33 = vpop.f32.mrf.mxu0  ;;  %v975_v35 = vpop.f32.mrf.mxu2 }
 0x1c7   : > { %v548_v40 = vmax.f32 %v501_v33, 0.0  ;;  %v1185_v41 = vpop.f32.mrf.mxu3 }
 0x1c8   : > { %v3779_v44 = vadd.f32 %v1185_v41, %v974_v28  ;;  %v819_v45 = vpop.f32.mrf.mxu1  ;;  %v1519_v41 = vld [vmem:[#allocation2 + $0x3b] sm:$0xff] }
 0x1c9   : > { %590 = vst.msk [vmem:[#allocation2 + $0x130] sm:$0xff] %vm551_vm2, %v548_v40  ;;  %v976_v49 = vadd.f32 %v975_v35, %v819_v45  ;;  %3315 = vmatmul.msk.bf16.vlgmr.msrb.gmra.mxu0 %vm551_vm2, %v1054_v43  ;;  %v1303_v35 = vpack.c.bf16 %v1269_v25, %v1268_v30  ;;  %v1523_v30 = vld [vmem:[#allocation2 + $0x5b] sm:$0xff] }
 0x1cb   : > { %3353 = vmatmul.msk.bf16.vlgmr.msrb.gmra.mxu2 %vm551_vm2, %v1550_v50 }
 0x1ce   : > { %v503_v51 = vpop.f32.mrf.mxu0  ;;  %v978_v53 = vpop.f32.mrf.mxu2 }
 0x1cf   : > { %v549_v58 = vmax.f32 %v503_v51, 0.0  ;;  %v1187_v59 = vpop.f32.mrf.mxu3 }
 0x1d0   : > { %v3784_v60 = vadd.f32 %v1187_v59, %v976_v49  ;;  %v822_v61 = vpop.f32.mrf.mxu1  ;;  %v1518_v49 = vld [vmem:[#allocation2 + $0x33] sm:$0xff] }
 0x1d1   : > { %591 = vst.msk [vmem:[#allocation2 + $0x138] sm:$0xff] %vm551_vm2, %v549_v58  ;;  %v979_v63 = vadd.f32 %v978_v53, %v822_v61  ;;  %v1552_v51 = vpack.c.bf16 %v1519_v41, %v1518_v49 }
 0x1d3   : > { %3334 = vmatmul.msk.bf16.vlgmr.msrb.gmra.mxu1 %vm551_vm2, %v1302_v0 }
 0x1d4   : > { %3372 = vmatmul.msk.bf16.vlgmr.msrb.gmra.mxu3 %vm551_vm2, %v1798_v2 }
 0x1d6   : > { %v506_v4 = vpop.f32.mrf.mxu0  ;;  %v980_v7 = vpop.f32.mrf.mxu2 }
 0x1d7   : > { %v550_v11 = vmax.f32 %v506_v4, 0.0  ;;  %v1190_v12 = vpop.f32.mrf.mxu3 }
 0x1d8   : > { %v3793_v13 = vadd.f32 %v1190_v12, %v979_v63  ;;  %v824_v15 = vpop.f32.mrf.mxu1  ;;  %v1800_v63 = vpack.c.bf16 %v1767_v56, %v1766_v62  ;;  %v1553_v12 = vpack.c.bf16 %v1521_v3, %v1520_v10 }
 0x1d9   : > { %593 = vst.msk [vmem:[#allocation2 + $0x140] sm:$0x3f] %vm592_vm4, %v550_v11  ;;  %v981_v18 = vadd.f32 %v980_v7, %v824_v15  ;;  %3316 = vmatmul.msk.bf16.gmra.mxu0 %vm551_vm2, %v1302_v0 }
 0x1db   : > { %3354 = vmatmul.msk.bf16.gmra.mxu2 %vm551_vm2, %v1551_v19 }
 0x1de   : > { %v508_v21 = vpop.f32.mrf.mxu0  ;;  %v983_v24 = vpop.f32.mrf.mxu2 }
 0x1df   : > { %v1192_v27 = vpop.f32.mrf.mxu3 }
 0x1e0   : > { %v3797_v28 = vadd.f32 %v1192_v27, %v981_v18  ;;  %v827_v29 = vpop.f32.mrf.mxu1 }
 0x1e1   : > { %v984_v33 = vadd.f32 %v983_v24, %v827_v29  ;;  %v1768_v24 = vld [vmem:[#allocation2 + $0x44] sm:$0xff] }
 0x1e2   : > { %v1801_v26 = vpack.c.bf16 %v1769_v16, %v1768_v24  ;;  %v1772_v24 = vld [vmem:[#allocation2 + $0x64] sm:$0xff] }
 0x1e3   : > { %3335 = vmatmul.msk.bf16.gmra.mxu1 %vm551_vm2, %v1303_v35 }
 0x1e4   : > { %3373 = vmatmul.msk.bf16.gmra.mxu3 %vm551_vm2, %v1799_v37 }
 0x1e6   : > { %v3801_v38 = vpop.f32.mrf.mxu0  ;;  %v985_v40 = vpop.f32.mrf.mxu2 }
 0x1e7   : > { %v1195_v43 = vpop.f32.mrf.mxu3 }
 0x1e8   : > { %v3803_v45 = vadd.f32 %v1195_v43, %v984_v33  ;;  %v829_v46 = vpop.f32.mrf.mxu1 }
 0x1e9   : > { %v986_v50 = vadd.f32 %v985_v40, %v829_v46  ;;  %3317 = vmatmul.msk.bf16.gmra.mxu0 %vm551_vm2, %v1303_v35  ;;  %v1771_v46 = vld [vmem:[#allocation2 + $0x5c] sm:$0xff] }
 0x1eb   : > { %3355 = vmatmul.msk.bf16.gmra.mxu2 %vm551_vm2, %v1552_v51 }
 0x1ee   : > { %v3807_v53 = vpop.f32.mrf.mxu0  ;;  %v988_v55 = vpop.f32.mrf.mxu2 }
 0x1ef   : > { %v1197_v58 = vpop.f32.mrf.mxu3 }
 0x1f0   : > { %v3809_v59 = vadd.f32 %v1197_v58, %v986_v50  ;;  %v832_v61 = vpop.f32.mrf.mxu1 }
 0x1f1   : > { %v989_v57 = vadd.f32 %v988_v55, %v832_v61  ;;  %v1770_v55 = vld [vmem:[#allocation2 + $0x54] sm:$0xff] }
 0x1f2   : > { %v1802_v58 = vpack.c.bf16 %v1771_v46, %v1770_v55 }
 0x1f3   : > { %3336 = vmatmul.msk.bf16.gmra.mxu1 %vm551_vm2, %v3623_v20 }
 0x1f4   : > { %3374 = vmatmul.msk.bf16.gmra.mxu3 %vm551_vm2, %v1800_v63 }
 0x1f6   : > { %v3814_v0 = vpop.f32.mrf.mxu0  ;;  %v990_v2 = vpop.f32.mrf.mxu2 }
 0x1f7   : > { %v1200_v4 = vpop.f32.mrf.mxu3 }
 0x1f8   : > { %v3816_v7 = vadd.f32 %v1200_v4, %v989_v57  ;;  %v834_v9 = vpop.f32.mrf.mxu1  ;;  %v1525_v57 = vld [vmem:[#allocation2 + $0x6b] sm:$0xff] }
 0x1f9   : > { %v991_v11 = vadd.f32 %v990_v2, %v834_v9  ;;  %3391 = vmatmul.msk.bf16.vlgmr.msra.gmra.mxu0 %vm551_vm2, %v1799_v37  ;;  %v1522_v37 = vld [vmem:[#allocation2 + $0x53] sm:$0xff]  ;;  %v1524_v9 = vld [vmem:[#allocation2 + $0x63] sm:$0xff] }
 0x1fa   : > { %v1554_v41 = vpack.c.bf16 %v1523_v30, %v1522_v37 }
 0x1fb   : > { %3356 = vmatmul.msk.bf16.gmra.mxu2 %vm551_vm2, %v1553_v12 }
 0x1fe   : > { %v3820_v15 = vpop.f32.mrf.mxu0  ;;  %v993_v20 = vpop.f32.mrf.mxu2 }
 0x1ff   : > { %v1202_v18 = vpop.f32.mrf.mxu3 }
 0x200   : > { %v3822_v19 = vadd.f32 %v1202_v18, %v991_v11  ;;  %v837_v21 = vpop.f32.mrf.mxu1  ;;  %v1555_v11 = vpack.c.bf16 %v1525_v57, %v1524_v9  ;;  %v1529_v9 = vld [vmem:[#allocation2 + $0x8b] sm:$0xff] }
 0x201   : > { %v994_v25 = vadd.f32 %v993_v20, %v837_v21  ;;  %v1773_v20 = vld [vmem:[#allocation2 + $0x6c] sm:$0xff] }
 0x203   : > { %3337 = vmatmul.msk.bf16.gmra.mxu1 %vm551_vm2, %v3634_v36 }
 0x204   : > { %3375 = vmatmul.msk.bf16.gmra.mxu3 %vm551_vm2, %v1801_v26 }
 0x206   : > { %v3827_v27 = vpop.f32.mrf.mxu0  ;;  %v995_v29 = vpop.f32.mrf.mxu2 }
 0x207   : > { %v1205_v31 = vpop.f32.mrf.mxu3 }
 0x208   : > { %v3829_v33 = vadd.f32 %v1205_v31, %v994_v25  ;;  %v839_v35 = vpop.f32.mrf.mxu1  ;;  %v1527_v31 = vld [vmem:[#allocation2 + $0x7b] sm:$0xff] }
 0x209   : > { %v996_v40 = vadd.f32 %v995_v29, %v839_v35  ;;  %3392 = vmatmul.msk.bf16.gmra.mxu0 %vm551_vm2, %v1800_v63  ;;  %v1803_v29 = vpack.c.bf16 %v1773_v20, %v1772_v24  ;;  %v1777_v24 = vld [vmem:[#allocation2 + $0x8c] sm:$0xff] }
 0x20b   : > { %3357 = vmatmul.msk.bf16.gmra.mxu2 %vm551_vm2, %v1554_v41  ;;  %v1526_v41 = vld [vmem:[#allocation2 + $0x73] sm:$0xff] }
 0x20c   : > { %v1556_v46 = vpack.c.bf16 %v1527_v31, %v1526_v41  ;;  %v1776_v31 = vld [vmem:[#allocation2 + $0x84] sm:$0xff] }
 0x20e   : > { %v3833_v43 = vpop.f32.mrf.mxu0  ;;  %v998_v36 = vpop.f32.mrf.mxu2 }
 0x20f   : > { %v1207_v49 = vpop.f32.mrf.mxu3 }
 0x210   : > { %v3835_v50 = vadd.f32 %v1207_v49, %v996_v40  ;;  %v842_v51 = vpop.f32.mrf.mxu1 }
 0x211   : > { %v999_v56 = vadd.f32 %v998_v36, %v842_v51  ;;  %v1775_v51 = vld [vmem:[#allocation2 + $0x7c] sm:$0xff] }
 0x213   : > { %3338 = vmatmul.msk.bf16.gmra.mxu1 %vm551_vm2, %v3645_v52 }
 0x214   : > { %3376 = vmatmul.msk.bf16.gmra.mxu3 %vm551_vm2, %v1802_v58 }
 0x216   : > { %v928_v61 = vpop.f32.mrf.mxu0  ;;  %v1000_v62 = vpop.f32.mrf.mxu2 }
 0x217   : > { %v3841_v63 = vadd.f32 %v928_v61, %v3801_v38  ;;  %v1210_v2 = vpop.f32.mrf.mxu3 }
 0x218   : > { %v3843_v3 = vadd.f32 %v1210_v2, %v999_v56  ;;  %v844_v4 = vpop.f32.mrf.mxu1 }
 0x219   : > { %v1001_v10 = vadd.f32 %v1000_v62, %v844_v4  ;;  %3393 = vmatmul.msk.bf16.gmra.mxu0 %vm551_vm2, %v1801_v26  ;;  %v1774_v62 = vld [vmem:[#allocation2 + $0x74] sm:$0xff] }
 0x21a   : > { %v1804_v2 = vpack.c.bf16 %v1775_v51, %v1774_v62 }
 0x21b   : > { %3358 = vmatmul.msk.bf16.gmra.mxu2 %vm551_vm2, %v1555_v11 }
 0x21e   : > { %v930_v52 = vpop.f32.mrf.mxu0  ;;  %v1003_v12 = vpop.f32.mrf.mxu2 }
 0x21f   : > { %v3848_v16 = vadd.f32 %v930_v52, %v3807_v53  ;;  %v1212_v18 = vpop.f32.mrf.mxu3 }
 0x220   : > { %v3850_v38 = vadd.f32 %v1212_v18, %v1001_v10  ;;  %v847_v21 = vpop.f32.mrf.mxu1 }
 0x221   : > { %v1004_v25 = vadd.f32 %v1003_v12, %v847_v21  ;;  %v1528_v12 = vld [vmem:[#allocation2 + $0x83] sm:$0xff] }
 0x222   : > { %v1557_v18 = vpack.c.bf16 %v1529_v9, %v1528_v12  ;;  %v1779_v9 = vld [vmem:[#allocation2 + $0x9c] sm:$0xff] }
 0x223   : > { %3339 = vmatmul.msk.bf16.gmra.mxu1 %vm551_vm2, %v3656_v5 }
 0x224   : > { %3377 = vmatmul.msk.bf16.gmra.mxu3 %vm551_vm2, %v1803_v29 }
 0x226   : > { %v933_v26 = vpop.f32.mrf.mxu0  ;;  %v1005_v30 = vpop.f32.mrf.mxu2 }
 0x227   : > { %v3856_v35 = vadd.f32 %v933_v26, %v3814_v0  ;;  %v1215_v53 = vpop.f32.mrf.mxu3 }
 0x228   : > { %v3858_v37 = vadd.f32 %v1215_v53, %v1004_v25  ;;  %v849_v40 = vpop.f32.mrf.mxu1 }
 0x229   : > { %v1006_v36 = vadd.f32 %v1005_v30, %v849_v40  ;;  %3394 = vmatmul.msk.bf16.gmra.mxu0 %vm551_vm2, %v1802_v58  ;;  %v1805_v40 = vpack.c.bf16 %v1777_v24, %v1776_v31  ;;  %v1533_v31 = vld [vmem:[#allocation2 + $0xab] sm:$0xff] }
 0x22b   : > { %3359 = vmatmul.msk.bf16.gmra.mxu2 %vm551_vm2, %v1556_v46  ;;  %v1531_v46 = vld [vmem:[#allocation2 + $0x9b] sm:$0xff] }
 0x22e   : > { %v935_v5 = vpop.f32.mrf.mxu0  ;;  %v1008_v49 = vpop.f32.mrf.mxu2 }
 0x22f   : > { %v3863_v55 = vadd.f32 %v935_v5, %v3820_v15  ;;  %v1217_v56 = vpop.f32.mrf.mxu3 }
 0x230   : > { %v3865_v0 = vadd.f32 %v1217_v56, %v1006_v36  ;;  %v852_v61 = vpop.f32.mrf.mxu1 }
 0x231   : > { %v1009_v57 = vadd.f32 %v1008_v49, %v852_v61  ;;  %v1530_v61 = vld [vmem:[#allocation2 + $0x93] sm:$0xff] }
 0x232   : > { %v1558_v62 = vpack.c.bf16 %v1531_v46, %v1530_v61  ;;  %v1285_v61 = vld [vmem:[#allocation2 + $0xaa] sm:$0xff] }
 0x233   : > { %3340 = vmatmul.msk.bf16.gmra.mxu1 %vm551_vm2, %v3667_v22 }
 0x234   : > { %3378 = vmatmul.msk.bf16.gmra.mxu3 %vm551_vm2, %v1804_v2 }
 0x236   : > { %v938_v58 = vpop.f32.mrf.mxu0  ;;  %v1010_v4 = vpop.f32.mrf.mxu2 }
 0x237   : > { %v3871_v10 = vadd.f32 %v938_v58, %v3827_v27  ;;  %v1220_v15 = vpop.f32.mrf.mxu3 }
 0x238   : > { %v3873_v11 = vadd.f32 %v1220_v15, %v1009_v57  ;;  %v854_v52 = vpop.f32.mrf.mxu1 }
 0x239   : > { %v1011_v20 = vadd.f32 %v1010_v4, %v854_v52  ;;  %3395 = vmatmul.msk.bf16.gmra.mxu0 %vm551_vm2, %v1803_v29  ;;  %v2848_v29 = vld [vmem:[%s4406_s4] sm:$0x3] }
 0x23a   : > { %v2944_v41 = vsel %vm759_vm3, %v2848_v29, 0  ;;  %v1283_v4 = vld [vmem:[#allocation2 + $0x9a] sm:$0xff] }
 0x23b   : > { %3360 = vmatmul.msk.bf16.gmra.mxu2 %vm551_vm2, %v1557_v18  ;;  %2953 = vmatpush.bf16.msra.mxu3 %v2944_v41  ;;  %v1778_v18 = vld [vmem:[#allocation2 + $0x94] sm:$0xff] }
 0x23c   : > { %v1806_v24 = vpack.c.bf16 %v1779_v9, %v1778_v18  ;;  %v1780_v9 = vld [vmem:[#allocation2 + $0xa4] sm:$0xff] }
 0x23e   : > { %v940_v22 = vpop.f32.mrf.mxu0  ;;  %v1013_v21 = vpop.f32.mrf.mxu2 }
 0x23f   : > { %v3878_v25 = vadd.f32 %v940_v22, %v3833_v43  ;;  %v1222_v26 = vpop.f32.mrf.mxu3 }
 0x240   : > { %v3880_v27 = vadd.f32 %v1222_v26, %v1011_v20  ;;  %v857_v30 = vpop.f32.mrf.mxu1  ;;  %v1282_v20 = vld [vmem:[#allocation2 + $0x92] sm:$0xff] }
 0x241   : > { %v1014_v53 = vadd.f32 %v1013_v21, %v857_v30  ;;  %v1310_v21 = vpack.c.bf16 %v1283_v4, %v1282_v20  ;;  %v1284_v4 = vld [vmem:[#allocation2 + $0xa2] sm:$0xff] }
 0x243   : > { %3341 = vmatmul.msk.bf16.gmra.mxu1 %vm551_vm2, %v3678_v39 }
 0x244   : > { %3379 = vmatmul.msk.bf16.gmra.mxu3 %vm551_vm2, %v1805_v40 }
 0x246   : > { %v1015_v43 = vpop.f32.mrf.mxu2  ;;  %v1140_v36 = vpop.f32.mrf.mxu0 }
 0x247   : > { %v1230_v5 = vadd.f32 %v1140_v36, %v3841_v63  ;;  %v1225_v49 = vpop.f32.mrf.mxu3 }
 0x248   : > { %v3890_v51 = vadd.f32 %v1225_v49, %v1014_v53  ;;  %v859_v56 = vpop.f32.mrf.mxu1 }
 0x249   : > { %v1016_v39 = vadd.f32 %v1015_v43, %v859_v56  ;;  %3396 = vmatmul.msk.bf16.gmra.mxu0 %vm551_vm2, %v1804_v2  ;;  %v1532_v43 = vld [vmem:[#allocation2 + $0xa3] sm:$0xff] }
 0x24a   : > { %v1559_v46 = vpack.c.bf16 %v1533_v31, %v1532_v43 }
 0x24b   : > { %3361 = vmatmul.msk.bf16.gmra.mxu2 %vm551_vm2, %v1558_v62 }
 0x24e   : > { %v1142_v57 = vpop.f32.mrf.mxu0  ;;  %v1636_v58 = vpop.f32.mrf.mxu2 }
 0x24f   : > { %v1231_v15 = vadd.f32 %v1142_v57, %v3848_v16  ;;  %v1227_v52 = vpop.f32.mrf.mxu3 }
 0x250   : > { %v3895_v12 = vadd.f32 %v1227_v52, %v1016_v39  ;;  %v1388_v63 = vpop.f32.mrf.mxu1  ;;  %v1781_v39 = vld [vmem:[#allocation2 + $0xac] sm:$0xff] }
 0x251   : > { %v1478_v22 = vadd.f32 %v1388_v63, %v1230_v5  ;;  %v1311_v63 = vpack.c.bf16 %v1285_v61, %v1284_v4  ;;  %v1286_v61 = vld [vmem:[#allocation2 + $0xb2] sm:$0xff] }
 0x253   : > { %3342 = vmatmul.msk.bf16.gmra.mxu1 %vm551_vm2, %v1310_v21  ;;  %v1726_v2 = vadd.f32 %v1636_v58, %v1478_v22  ;;  %v1535_v22 = vld [vmem:[#allocation2 + $0xbb] sm:$0xff] }
 0x254   : > { %3380 = vmatmul.msk.bf16.gmra.mxu3 %vm551_vm2, %v1806_v24 }
 0x256   : > { %v1145_v26 = vpop.f32.mrf.mxu0  ;;  %v1638_v30 = vpop.f32.mrf.mxu2 }
 0x257   : > { %v1232_v53 = vadd.f32 %v1145_v26, %v3856_v35  ;;  %v1884_v16 = vpop.f32.mrf.mxu3 }
 0x258   : > { %v1974_v29 = vadd.f32 %v1884_v16, %v1726_v2  ;;  %v1390_v41 = vpop.f32.mrf.mxu1 }
 0x259   : > { %v1479_v36 = vadd.f32 %v1390_v41, %v1231_v15  ;;  %3397 = vmatmul.msk.bf16.gmra.mxu0 %vm551_vm2, %v1805_v40  ;;  %v1807_v15 = vpack.c.bf16 %v1781_v39, %v1780_v9  ;;  %v1782_v39 = vld [vmem:[#allocation2 + $0xb4] sm:$0xff] }
 0x25b   : > { %3362 = vmatmul.msk.bf16.gmra.mxu2 %vm551_vm2, %v1559_v46  ;;  %v1727_v5 = vadd.f32 %v1638_v30, %v1479_v36  ;;  %v1534_v30 = vld [vmem:[#allocation2 + $0xb3] sm:$0xff]  ;;  %v1783_v46 = vld [vmem:[#allocation2 + $0xbc] sm:$0xff] }
 0x25c   : > { %v1287_v36 = vld [vmem:[#allocation2 + $0xba] sm:$0xff] }
 0x25e   : > { %v1147_v49 = vpop.f32.mrf.mxu0  ;;  %v1641_v56 = vpop.f32.mrf.mxu2 }
 0x25f   : > { %v1233_v62 = vadd.f32 %v1147_v49, %v3863_v55  ;;  %v1886_v57 = vpop.f32.mrf.mxu3 }
 0x260   : > { %v1975_v58 = vadd.f32 %v1886_v57, %v1727_v5  ;;  %v1393_v35 = vpop.f32.mrf.mxu1 }
 0x261   : > { %v1480_v52 = vadd.f32 %v1393_v35, %v1232_v53  ;;  %v1560_v53 = vpack.c.bf16 %v1535_v22, %v1534_v30  ;;  %v1312_v35 = vpack.c.bf16 %v1287_v36, %v1286_v61  ;;  %v1288_v36 = vld [vmem:[#allocation2 + $0xc2] sm:$0xff] }
 0x263   : > { %3343 = vmatmul.msk.bf16.gmra.mxu1 %vm551_vm2, %v1311_v63  ;;  %v1728_v40 = vadd.f32 %v1641_v56, %v1480_v52  ;;  %v1537_v52 = vld [vmem:[#allocation2 + $0xcb] sm:$0xff] }
 0x264   : > { %3381 = vmatmul.msk.bf16.gmra.mxu3 %vm551_vm2, %v1807_v15 }
 0x266   : > { %v1150_v20 = vpop.f32.mrf.mxu0  ;;  %v1643_v18 = vpop.f32.mrf.mxu2 }
 0x267   : > { %v1234_v21 = vadd.f32 %v1150_v20, %v3871_v10  ;;  %v1889_v2 = vpop.f32.mrf.mxu3 }
 0x268   : > { %v1976_v55 = vadd.f32 %v1889_v2, %v1728_v40  ;;  %v1395_v26 = vpop.f32.mrf.mxu1 }
 0x269   : > { %v1481_v31 = vadd.f32 %v1395_v26, %v1233_v62  ;;  %3398 = vmatmul.msk.bf16.gmra.mxu0 %vm551_vm2, %v1806_v24  ;;  %v1808_v62 = vpack.c.bf16 %v1783_v46, %v1782_v39  ;;  %v1784_v46 = vld [vmem:[#allocation2 + $0xc4] sm:$0xff] }
 0x26b   : > { %3363 = vmatmul.msk.bf16.gmra.mxu2 %vm551_vm2, %v1560_v53  ;;  %v1729_v16 = vadd.f32 %v1643_v18, %v1481_v31  ;;  %v1536_v18 = vld [vmem:[#allocation2 + $0xc3] sm:$0xff]  ;;  %v1785_v53 = vld [vmem:[#allocation2 + $0xcc] sm:$0xff] }
 0x26c   : > { %v1289_v31 = vld [vmem:[#allocation2 + $0xca] sm:$0xff] }
 0x26e   : > { %v1152_v41 = vpop.f32.mrf.mxu0  ;;  %v1646_v43 = vpop.f32.mrf.mxu2 }
 0x26f   : > { %v1235_v5 = vadd.f32 %v1152_v41, %v3878_v25  ;;  %v1891_v49 = vpop.f32.mrf.mxu3 }
 0x270   : > { %v1977_v56 = vadd.f32 %v1891_v49, %v1729_v16  ;;  %v1398_v10 = vpop.f32.mrf.mxu1 }
 0x271   : > { %v1482_v57 = vadd.f32 %v1398_v10, %v1234_v21  ;;  %v1561_v21 = vpack.c.bf16 %v1537_v52, %v1536_v18  ;;  %v1809_v10 = vpack.c.bf16 %v1785_v53, %v1784_v46  ;;  %v1786_v53 = vld [vmem:[#allocation2 + $0xd4] sm:$0xff] }
 0x273   : > { %3344 = vmatmul.msk.bf16.gmra.mxu1 %vm551_vm2, %v1312_v35  ;;  %v1730_v24 = vadd.f32 %v1646_v43, %v1482_v57  ;;  %v1539_v57 = vld [vmem:[#allocation2 + $0xdb] sm:$0xff] }
 0x274   : > { %3382 = vmatmul.msk.bf16.gmra.mxu3 %vm551_vm2, %v1808_v62 }
 0x276   : > { %v1648_v4 = vpop.f32.mrf.mxu2  ;;  %v2132_v9 = vpop.f32.mrf.mxu0 }
 0x277   : > { %v1894_v63 = vpop.f32.mrf.mxu3  ;;  %v3911_v40 = vadd.f32 %v2132_v9, %v1974_v29  ;;  %v1538_v9 = vld [vmem:[#allocation2 + $0xd3] sm:$0xff] }
 0x278   : > { %v1978_v25 = vadd.f32 %v1894_v63, %v1730_v24  ;;  %v1400_v20 = vpop.f32.mrf.mxu1 }
 0x279   : > { %v1483_v22 = vadd.f32 %v1400_v20, %v1235_v5  ;;  %3399 = vmatmul.msk.bf16.gmra.mxu0 %vm551_vm2, %v1807_v15  ;;  %v1313_v5 = vpack.c.bf16 %v1289_v31, %v1288_v36  ;;  %v1290_v31 = vld [vmem:[#allocation2 + $0xd2] sm:$0xff] }
 0x27b   : > { %3364 = vmatmul.msk.bf16.gmra.mxu2 %vm551_vm2, %v1561_v21  ;;  %v1731_v2 = vadd.f32 %v1648_v4, %v1483_v22  ;;  %v1291_v22 = vld [vmem:[#allocation2 + $0xda] sm:$0xff] }
 0x27c   : > { %v1787_v21 = vld [vmem:[#allocation2 + $0xdc] sm:$0xff] }
 0x27e   : > { %v1651_v26 = vpop.f32.mrf.mxu2  ;;  %v2134_v30 = vpop.f32.mrf.mxu0 }
 0x27f   : > { %v1896_v16 = vpop.f32.mrf.mxu3  ;;  %v3915_v41 = vadd.f32 %v2134_v30, %v1975_v58 }
 0x280   : > { %v1979_v43 = vadd.f32 %v1896_v16, %v1731_v2  ;;  %v1403_v29 = vpop.f32.mrf.mxu1 }
 0x281   : > { %v1484_v49 = vadd.f32 %v1403_v29, %v3710_v42  ;;  %v1562_v42 = vpack.c.bf16 %v1539_v57, %v1538_v9  ;;  %v1810_v29 = vpack.c.bf16 %v1787_v21, %v1786_v53  ;;  %v1788_v21 = vld [vmem:[#allocation2 + $0xe4] sm:$0xff] }
 0x283   : > { %3345 = vmatmul.msk.bf16.gmra.mxu1 %vm551_vm2, %v1313_v5  ;;  %v1732_v15 = vadd.f32 %v1651_v26, %v1484_v49  ;;  %v1541_v49 = vld [vmem:[#allocation2 + $0xeb] sm:$0xff] }
 0x284   : > { %3383 = vmatmul.msk.bf16.gmra.mxu3 %vm551_vm2, %v1809_v10 }
 0x286   : > { %v1653_v61 = vpop.f32.mrf.mxu2  ;;  %v2137_v39 = vpop.f32.mrf.mxu0 }
 0x287   : > { %v1899_v35 = vpop.f32.mrf.mxu3  ;;  %v3920_v24 = vadd.f32 %v2137_v39, %v1976_v55  ;;  %v1540_v39 = vld [vmem:[#allocation2 + $0xe3] sm:$0xff] }
 0x288   : > { %v1980_v58 = vadd.f32 %v1899_v35, %v1732_v15  ;;  %v1405_v4 = vpop.f32.mrf.mxu1 }
 0x289   : > { %v1485_v52 = vadd.f32 %v1405_v4, %v3716_v54  ;;  %3400 = vmatmul.msk.bf16.gmra.mxu0 %vm551_vm2, %v1808_v62  ;;  %v1314_v54 = vpack.c.bf16 %v1291_v22, %v1290_v31  ;;  %v1292_v22 = vld [vmem:[#allocation2 + $0xe2] sm:$0xff] }
 0x28b   : > { %3365 = vmatmul.msk.bf16.gmra.mxu2 %vm551_vm2, %v1562_v42  ;;  %v1733_v63 = vadd.f32 %v1653_v61, %v1485_v52  ;;  %v1293_v52 = vld [vmem:[#allocation2 + $0xea] sm:$0xff] }
 0x28c   : > { %v1789_v42 = vld [vmem:[#allocation2 + $0xec] sm:$0xff] }
 0x28e   : > { %v1656_v20 = vpop.f32.mrf.mxu2  ;;  %v2139_v18 = vpop.f32.mrf.mxu0 }
 0x28f   : > { %v1901_v2 = vpop.f32.mrf.mxu3  ;;  %v3925_v26 = vadd.f32 %v2139_v18, %v1977_v56 }
 0x290   : > { %v1981_v55 = vadd.f32 %v1901_v2, %v1733_v63  ;;  %v1408_v30 = vpop.f32.mrf.mxu1 }
 0x291   : > { %v1486_v16 = vadd.f32 %v1408_v30, %v3721_v6  ;;  %v1563_v6 = vpack.c.bf16 %v1541_v49, %v1540_v39  ;;  %v1811_v30 = vpack.c.bf16 %v1789_v42, %v1788_v21  ;;  %v1790_v42 = vld [vmem:[#allocation2 + $0xf4] sm:$0xff] }
 0x293   : > { %3346 = vmatmul.msk.bf16.gmra.mxu1 %vm551_vm2, %v1314_v54  ;;  %v1734_v62 = vadd.f32 %v1656_v20, %v1486_v16  ;;  %v1543_v16 = vld [vmem:[#allocation2 + $0xfb] sm:$0xff] }
 0x294   : > { %3384 = vmatmul.msk.bf16.gmra.mxu3 %vm551_vm2, %v1810_v29 }
 0x296   : > { %v1658_v36 = vpop.f32.mrf.mxu2  ;;  %v2142_v46 = vpop.f32.mrf.mxu0 }
 0x297   : > { %v1904_v5 = vpop.f32.mrf.mxu3  ;;  %v3930_v15 = vadd.f32 %v2142_v46, %v1978_v25  ;;  %v1542_v46 = vld [vmem:[#allocation2 + $0xf3] sm:$0xff] }
 0x298   : > { %v1982_v56 = vadd.f32 %v1904_v5, %v1734_v62  ;;  %v1410_v61 = vpop.f32.mrf.mxu1 }
 0x299   : > { %v1487_v57 = vadd.f32 %v1410_v61, %v3726_v17  ;;  %3401 = vmatmul.msk.bf16.gmra.mxu0 %vm551_vm2, %v1809_v10  ;;  %v1315_v17 = vpack.c.bf16 %v1293_v52, %v1292_v22  ;;  %v1294_v52 = vld [vmem:[#allocation2 + $0xf2] sm:$0xff] }
 0x29b   : > { %3366 = vmatmul.msk.bf16.gmra.mxu2 %vm551_vm2, %v1563_v6  ;;  %v1735_v35 = vadd.f32 %v1658_v36, %v1487_v57  ;;  %v1295_v57 = vld [vmem:[#allocation2 + $0xfa] sm:$0xff] }
 0x29c   : > { %v1791_v6 = vld [vmem:[#allocation2 + $0xfc] sm:$0xff] }
 0x29e   : > { %v1661_v4 = vpop.f32.mrf.mxu2  ;;  %v2144_v9 = vpop.f32.mrf.mxu0 }
 0x29f   : > { %v1906_v63 = vpop.f32.mrf.mxu3  ;;  %v3935_v20 = vadd.f32 %v2144_v9, %v1979_v43 }
 0x2a0   : > { %v1983_v25 = vadd.f32 %v1906_v63, %v1735_v35  ;;  %v1413_v18 = vpop.f32.mrf.mxu1 }
 0x2a1   : > { %v1488_v2 = vadd.f32 %v1413_v18, %v3731_v34  ;;  %v1564_v34 = vpack.c.bf16 %v1543_v16, %v1542_v46  ;;  %v1812_v18 = vpack.c.bf16 %v1791_v6, %v1790_v42  ;;  %v1547_v42 = vld [vmem:[#allocation2 + $0x11b] sm:$0xff] }
 0x2a3   : > { %3347 = vmatmul.msk.bf16.gmra.mxu1 %vm551_vm2, %v1315_v17  ;;  %v1736_v10 = vadd.f32 %v1661_v4, %v1488_v2  ;;  %v1545_v2 = vld [vmem:[#allocation2 + $0x10b] sm:$0xff] }
 0x2a4   : > { %3385 = vmatmul.msk.bf16.gmra.mxu3 %vm551_vm2, %v1811_v30 }
 0x2a6   : > { %v1663_v31 = vpop.f32.mrf.mxu2  ;;  %v2147_v53 = vpop.f32.mrf.mxu0 }
 0x2a7   : > { %v1909_v54 = vpop.f32.mrf.mxu3  ;;  %v3940_v62 = vadd.f32 %v2147_v53, %v1980_v58  ;;  %v1544_v53 = vld [vmem:[#allocation2 + $0x103] sm:$0xff] }
 0x2a8   : > { %v1984_v43 = vadd.f32 %v1909_v54, %v1736_v10  ;;  %v1415_v36 = vpop.f32.mrf.mxu1 }
 0x2a9   : > { %v1489_v49 = vadd.f32 %v1415_v36, %v3736_v48  ;;  %3402 = vmatmul.msk.bf16.gmra.mxu0 %vm551_vm2, %v1810_v29  ;;  %v1316_v48 = vpack.c.bf16 %v1295_v57, %v1294_v52  ;;  %v1792_v57 = vld [vmem:[#allocation2 + $0x104] sm:$0xff] }
 0x2ab   : > { %3367 = vmatmul.msk.bf16.gmra.mxu2 %vm551_vm2, %v1564_v34  ;;  %v1737_v5 = vadd.f32 %v1663_v31, %v1489_v49  ;;  %v1297_v49 = vld [vmem:[#allocation2 + $0x10a] sm:$0xff] }
 0x2ac   : > { %v1793_v34 = vld [vmem:[#allocation2 + $0x10c] sm:$0xff] }
 0x2ae   : > { %v1666_v61 = vpop.f32.mrf.mxu2  ;;  %v2149_v39 = vpop.f32.mrf.mxu0 }
 0x2af   : > { %v1911_v35 = vpop.f32.mrf.mxu3  ;;  %v3945_v4 = vadd.f32 %v2149_v39, %v1981_v55  ;;  %v1296_v39 = vld [vmem:[#allocation2 + $0x102] sm:$0xff] }
 0x2b0   : > { %v1985_v58 = vadd.f32 %v1911_v35, %v1737_v5  ;;  %v1418_v9 = vpop.f32.mrf.mxu1  ;;  %v1317_v6 = vpack.c.bf16 %v1297_v49, %v1296_v39  ;;  %v1794_v49 = vld [vmem:[#allocation2 + $0x114] sm:$0xff] }
 0x2b1   : > { %v1490_v63 = vadd.f32 %v1418_v9, %v3741_v1  ;;  %v1565_v1 = vpack.c.bf16 %v1545_v2, %v1544_v53  ;;  %v1299_v53 = vld [vmem:[#allocation2 + $0x11a] sm:$0xff] }
 0x2b3   : > { %3348 = vmatmul.msk.bf16.gmra.mxu1 %vm551_vm2, %v1316_v48  ;;  %v1738_v29 = vadd.f32 %v1666_v61, %v1490_v63 }
 0x2b4   : > { %3386 = vmatmul.msk.bf16.gmra.mxu3 %vm551_vm2, %v1812_v18 }
 0x2b6   : > { %v1668_v22 = vpop.f32.mrf.mxu2  ;;  %v2152_v21 = vpop.f32.mrf.mxu0 }
 0x2b7   : > { %v1914_v17 = vpop.f32.mrf.mxu3  ;;  %v3950_v10 = vadd.f32 %v2152_v21, %v1982_v56 }
 0x2b8   : > { %v3952_v55 = vadd.f32 %v1914_v17, %v1738_v29  ;;  %v1420_v31 = vpop.f32.mrf.mxu1 }
 0x2b9   : > { %v1491_v16 = vadd.f32 %v1420_v31, %v3746_v14  ;;  %3403 = vmatmul.msk.bf16.gmra.mxu0 %vm551_vm2, %v1811_v30  ;;  %v1813_v30 = vpack.c.bf16 %v1793_v34, %v1792_v57  ;;  %v1549_v57 = vld [vmem:[#allocation2 + $0x12b] sm:$0xff] }
 0x2bb   : > { %3368 = vmatmul.msk.bf16.gmra.mxu2 %vm551_vm2, %v1565_v1  ;;  %v3957_v54 = vadd.f32 %v1668_v22, %v1491_v16  ;;  %v1546_v22 = vld [vmem:[#allocation2 + $0x113] sm:$0xff]  ;;  %v1795_v16 = vld [vmem:[#allocation2 + $0x11c] sm:$0xff] }
 0x2be   : > { %v1671_v36 = vpop.f32.mrf.mxu2  ;;  %v2154_v46 = vpop.f32.mrf.mxu0 }
 0x2bf   : > { %v3959_v5 = vpop.f32.mrf.mxu3  ;;  %v3961_v56 = vadd.f32 %v2154_v46, %v1983_v25  ;;  %v1298_v46 = vld [vmem:[#allocation2 + $0x112] sm:$0xff] }
 0x2c0   : > { %v1423_v61 = vpop.f32.mrf.mxu1  ;;  %v1318_v34 = vpack.c.bf16 %v1299_v53, %v1298_v46 }
 0x2c1   : > { %v1492_v14 = vadd.f32 %v1423_v61, %v3751_v32  ;;  %v1566_v32 = vpack.c.bf16 %v1547_v42, %v1546_v22 }
 0x2c3   : > { %3349 = vmatmul.msk.bf16.gmra.mxu1 %vm551_vm2, %v1317_v6  ;;  %v1740_v35 = vadd.f32 %v1671_v36, %v1492_v14 }
 0x2c4   : > { %3387 = vmatmul.msk.bf16.gmra.mxu3 %vm551_vm2, %v1813_v30 }
 0x2c6   : > { %v1673_v9 = vpop.f32.mrf.mxu2  ;;  %v2157_v52 = vpop.f32.mrf.mxu0 }
 0x2c7   : > { %v1919_v63 = vpop.f32.mrf.mxu3  ;;  %v3966_v48 = vadd.f32 %v2157_v52, %v1984_v43 }
 0x2c8   : > { %v3968_v25 = vadd.f32 %v1919_v63, %v1740_v35  ;;  %v1425_v29 = vpop.f32.mrf.mxu1  ;;  %v1301_v63 = vld [vmem:[#allocation2 + $0x12a] sm:$0xff] }
 0x2c9   : > { %v1493_v21 = vadd.f32 %v1425_v29, %v3756_v47  ;;  %3404 = vmatmul.msk.bf16.gmra.mxu0 %vm551_vm2, %v1812_v18  ;;  %v1814_v18 = vpack.c.bf16 %v1795_v16, %v1794_v49  ;;  %v1797_v29 = vld [vmem:[#allocation2 + $0x12c] sm:$0xff] }
 0x2cb   : > { %3369 = vmatmul.msk.bf16.gmra.mxu2 %vm551_vm2, %v1566_v32  ;;  %v3973_v2 = vadd.f32 %v1673_v9, %v1493_v21  ;;  %v1300_v32 = vld [vmem:[#allocation2 + $0x122] sm:$0xff] }
 0x2cc   : > { %v1319_v53 = vpack.c.bf16 %v1301_v63, %v1300_v32 }
 0x2ce   : > { %v1676_v17 = vpop.f32.mrf.mxu2  ;;  %v2159_v31 = vpop.f32.mrf.mxu0 }
 0x2cf   : > { %v3975_v1 = vpop.f32.mrf.mxu3  ;;  %v3977_v43 = vadd.f32 %v2159_v31, %v1985_v58  ;;  %v1548_v58 = vld [vmem:[#allocation2 + $0x123] sm:$0xff] }
 0x2d0   : > { %v1428_v36 = vpop.f32.mrf.mxu1  ;;  %v1567_v52 = vpack.c.bf16 %v1549_v57, %v1548_v58 }
 0x2d1   : > { %v1494_v47 = vadd.f32 %v1428_v36, %v3769_v8  ;;  %v2507_v36 = vld [vmem:[#allocation2 + $0x2e] sm:$0xff] }
 0x2d3   : > { %3350 = vmatmul.msk.bf16.gmra.mxu1 %vm551_vm2, %v1318_v34  ;;  %v1742_v61 = vadd.f32 %v1676_v17, %v1494_v47  ;;  %v1796_v17 = vld [vmem:[#allocation2 + $0x124] sm:$0xff] }
 0x2d4   : > { %3388 = vmatmul.msk.bf16.gmra.mxu3 %vm551_vm2, %v1814_v18  ;;  %v1815_v16 = vpack.c.bf16 %v1797_v29, %v1796_v17  ;;  %v2506_v34 = vld [vmem:[#allocation2 + $0x26] sm:$0xff]  ;;  %v2509_v29 = vld [vmem:[#allocation2 + $0x3e] sm:$0xff]  ;;  %v2508_v17 = vld [vmem:[#allocation2 + $0x36] sm:$0xff] }
 0x2d6   : > { %v1678_v39 = vpop.f32.mrf.mxu2 }
 0x2d7   : > { %v1924_v14 = vpop.f32.mrf.mxu3 }
 0x2d8   : > { %v3982_v6 = vadd.f32 %v1924_v14, %v1742_v61  ;;  %v1430_v35 = vpop.f32.mrf.mxu1  ;;  %v2259_v14 = vld [vmem:[#allocation2 + $0x2d] sm:$0xff] }
 0x2d9   : > { %v1495_v9 = vadd.f32 %v1430_v35, %v3774_v23  ;;  %3405 = vmatmul.msk.bf16.gmra.mxu0 %vm551_vm2, %v1813_v30 }
 0x2db   : > { %3370 = vmatmul.msk.bf16.gmra.mxu2 %vm551_vm2, %v1567_v52  ;;  %v3987_v8 = vadd.f32 %v1678_v39, %v1495_v9  ;;  %v2542_v39 = vpack.c.bf16 %v2507_v36, %v2506_v34  ;;  %v2258_v9 = vld [vmem:[#allocation2 + $0x25] sm:$0xff] }
 0x2de   : > { %v1681_v42 = vpop.f32.mrf.mxu2 }
 0x2df   : > { %v3989_v22 = vpop.f32.mrf.mxu3 }
 0x2e0   : > { %v1433_v21 = vpop.f32.mrf.mxu1 }
 0x2e1   : > { %v1496_v31 = vadd.f32 %v1433_v21, %v3779_v44 }
 0x2e3   : > { %3351 = vmatmul.msk.bf16.gmra.mxu1 %vm551_vm2, %v1319_v53  ;;  %v1744_v23 = vadd.f32 %v1681_v42, %v1496_v31  ;;  %v2294_v42 = vpack.c.bf16 %v2259_v14, %v2258_v9  ;;  %v2543_v53 = vpack.c.bf16 %v2509_v29, %v2508_v17  ;;  %v2511_v14 = vld [vmem:[#allocation2 + $0x4e] sm:$0xff] }
 0x2e4   : > { %3389 = vmatmul.msk.bf16.gmra.mxu3 %vm551_vm2, %v1815_v16 }
 0x2e6   : > { %v1683_v30 = vpop.f32.mrf.mxu2 }
 0x2e7   : > { %v1929_v46 = vpop.f32.mrf.mxu3 }
 0x2e8   : > { %v3994_v49 = vadd.f32 %v1929_v46, %v1744_v23  ;;  %v1435_v47 = vpop.f32.mrf.mxu1 }
 0x2e9   : > { %v1497_v61 = vadd.f32 %v1435_v47, %v3784_v60  ;;  %3406 = vmatmul.msk.bf16.gmra.mxu0 %vm551_vm2, %v1814_v18  ;;  %v2260_v47 = vld [vmem:[#allocation2 + $0x35] sm:$0xff] }
 0x2eb   : > { %3429 = vmatmul.msk.bf16.vlgmr.msra.gmra.mxu2 %vm551_vm2, %v2542_v39  ;;  %v3999_v44 = vadd.f32 %v1683_v30, %v1497_v61  ;;  %v2261_v30 = vld [vmem:[#allocation2 + $0x3d] sm:$0xff] }
 0x2ec   : > { %v2295_v61 = vpack.c.bf16 %v2261_v30, %v2260_v47  ;;  %v2513_v47 = vld [vmem:[#allocation2 + $0x5e] sm:$0xff] }
 0x2ee   : > { %v1686_v57 = vpop.f32.mrf.mxu2 }
 0x2ef   : > { %v4001_v35 = vpop.f32.mrf.mxu3 }
 0x2f0   : > { %v1438_v58 = vpop.f32.mrf.mxu1 }
 0x2f1   : > { %v1498_v52 = vadd.f32 %v1438_v58, %v3793_v13 }
 0x2f3   : > { %3410 = vmatmul.msk.bf16.vlgmr.msra.gmra.mxu1 %vm551_vm2, %v2294_v42  ;;  %v1746_v63 = vadd.f32 %v1686_v57, %v1498_v52  ;;  %v2045_v57 = vld [vmem:[#allocation2 + $0x13c] sm:$0xff] }
 0x2f6   : > { %v1688_v60 = vpop.f32.mrf.mxu2 }
 0x2f7   : > { %v1934_v18 = vpop.f32.mrf.mxu3 }
 0x2f8   : > { %v4005_v21 = vadd.f32 %v1934_v18, %v1746_v63  ;;  %v1440_v32 = vpop.f32.mrf.mxu1  ;;  %v2510_v63 = vld [vmem:[#allocation2 + $0x46] sm:$0xff] }
 0x2f9   : > { %v1499_v31 = vadd.f32 %v1440_v32, %v3797_v28  ;;  %3407 = vmatmul.msk.bf16.gmra.mxu0 %vm551_vm2, %v1815_v16  ;;  %v2044_v28 = vld [vmem:[#allocation2 + $0x134] sm:$0xff]  ;;  %v2544_v29 = vpack.c.bf16 %v2511_v14, %v2510_v63 }
 0x2fa   : > { %v2063_v9 = vpack.c.bf16 %v2045_v57, %v2044_v28  ;;  %v2263_v32 = vld [vmem:[#allocation2 + $0x4d] sm:$0xff]  ;;  %v2512_v28 = vld [vmem:[#allocation2 + $0x56] sm:$0xff] }
 0x2fb   : > { %3430 = vmatmul.msk.bf16.gmra.mxu2 %vm551_vm2, %v2543_v53  ;;  %v4010_v23 = vadd.f32 %v1688_v60, %v1499_v31  ;;  %v2262_v53 = vld [vmem:[#allocation2 + $0x45] sm:$0xff]  ;;  %v2264_v63 = vld [vmem:[#allocation2 + $0x55] sm:$0xff] }
 0x2fc   : > { %v2296_v30 = vpack.c.bf16 %v2263_v32, %v2262_v53 }
 0x2fe   : > { %v1691_v13 = vpop.f32.mrf.mxu2 }
 0x2ff   : > { %v4012_v36 = vpop.f32.mrf.mxu3 }
 0x300   : > { %v1443_v46 = vpop.f32.mrf.mxu1 }
 0x301   : > { %v1500_v34 = vadd.f32 %v1443_v46, %v3803_v45 }
 0x303   : > { %3411 = vmatmul.msk.bf16.gmra.mxu1 %vm551_vm2, %v2295_v61  ;;  %v1748_v39 = vadd.f32 %v1691_v13, %v1500_v34 }
 0x306   : > { %v1693_v16 = vpop.f32.mrf.mxu2 }
 0x307   : > { %v1939_v58 = vpop.f32.mrf.mxu3 }
 0x308   : > { %v4016_v52 = vadd.f32 %v1939_v58, %v1748_v39  ;;  %v1445_v42 = vpop.f32.mrf.mxu1 }
 0x309   : > { %v1501_v60 = vadd.f32 %v1445_v42, %v3809_v59  ;;  %3408 = vmatmul.msk.bf16.gmra.mxu0 %vm551_vm2, %v2063_v9 }
 0x30b   : > { %3431 = vmatmul.msk.bf16.gmra.mxu2 %vm551_vm2, %v2544_v29  ;;  %v4021_v45 = vadd.f32 %v1693_v16, %v1501_v60  ;;  %v2545_v16 = vpack.c.bf16 %v2513_v47, %v2512_v28 }
 0x30e   : > { %v1696_v18 = vpop.f32.mrf.mxu2 }
 0x30f   : > { %v4023_v17 = vpop.f32.mrf.mxu3 }
 0x310   : > { %v1448_v31 = vpop.f32.mrf.mxu1 }
 0x311   : > { %v1502_v13 = vadd.f32 %v1448_v31, %v3816_v7  ;;  %v2265_v7 = vld [vmem:[#allocation2 + $0x5d] sm:$0xff]  ;;  %v2515_v31 = vld [vmem:[#allocation2 + $0x6e] sm:$0xff] }
 0x312   : > { %v2297_v29 = vpack.c.bf16 %v2265_v7, %v2264_v63  ;;  %v2517_v63 = vld [vmem:[#allocation2 + $0x7e] sm:$0xff] }
 0x313   : > { %3412 = vmatmul.msk.bf16.gmra.mxu1 %vm551_vm2, %v2296_v30  ;;  %v1750_v46 = vadd.f32 %v1696_v18, %v1502_v13  ;;  %v2514_v30 = vld [vmem:[#allocation2 + $0x66] sm:$0xff] }
 0x316   : > { %v1698_v59 = vpop.f32.mrf.mxu2 }
 0x317   : > { %v1944_v34 = vpop.f32.mrf.mxu3 }
 0x318   : > { %v4027_v61 = vadd.f32 %v1944_v34, %v1750_v46  ;;  %v1450_v39 = vpop.f32.mrf.mxu1 }
 0x319   : > { %v1503_v57 = vadd.f32 %v1450_v39, %v3822_v19 }
 0x31b   : > { %3432 = vmatmul.msk.bf16.gmra.mxu2 %vm551_vm2, %v2545_v16  ;;  %v4031_v14 = vadd.f32 %v1698_v59, %v1503_v57  ;;  %v2546_v59 = vpack.c.bf16 %v2515_v31, %v2514_v30  ;;  %v2266_v57 = vld [vmem:[#allocation2 + $0x65] sm:$0xff] }
 0x31e   : > { %v1701_v58 = vpop.f32.mrf.mxu2 }
 0x31f   : > { %v4033_v9 = vpop.f32.mrf.mxu3 }
 0x320   : > { %v1453_v42 = vpop.f32.mrf.mxu1 }
 0x321   : > { %v1504_v60 = vadd.f32 %v1453_v42, %v3829_v33  ;;  %v2267_v33 = vld [vmem:[#allocation2 + $0x6d] sm:$0xff] }
 0x323   : > { %3413 = vmatmul.msk.bf16.gmra.mxu1 %vm551_vm2, %v2297_v29  ;;  %v1752_v18 = vadd.f32 %v1701_v58, %v1504_v60  ;;  %v2298_v58 = vpack.c.bf16 %v2267_v33, %v2266_v57 }
 0x326   : > { %v1703_v32 = vpop.f32.mrf.mxu2 }
 0x327   : > { %v1949_v19 = vpop.f32.mrf.mxu3 }
 0x328   : > { %v4037_v53 = vadd.f32 %v1949_v19, %v1752_v18  ;;  %v1455_v13 = vpop.f32.mrf.mxu1  ;;  %v2516_v18 = vld [vmem:[#allocation2 + $0x76] sm:$0xff] }
 0x329   : > { %v1505_v46 = vadd.f32 %v1455_v13, %v3835_v50  ;;  %v2547_v31 = vpack.c.bf16 %v2517_v63, %v2516_v18 }
 0x32b   : > { %3433 = vmatmul.msk.bf16.gmra.mxu2 %vm551_vm2, %v2546_v59  ;;  %v4041_v47 = vadd.f32 %v1703_v32, %v1505_v46  ;;  %v2268_v59 = vld [vmem:[#allocation2 + $0x75] sm:$0xff] }
 0x32e   : > { %v1706_v34 = vpop.f32.mrf.mxu2 }
 0x32f   : > { %v4043_v39 = vpop.f32.mrf.mxu3 }
 0x330   : > { %v1458_v28 = vpop.f32.mrf.mxu1 }
 0x331   : > { %v1506_v16 = vadd.f32 %v1458_v28, %v3843_v3  ;;  %v2269_v3 = vld [vmem:[#allocation2 + $0x7d] sm:$0xff] }
 0x332   : > { %v2299_v33 = vpack.c.bf16 %v2269_v3, %v2268_v59 }
 0x333   : > { %3414 = vmatmul.msk.bf16.gmra.mxu1 %vm551_vm2, %v2298_v58  ;;  %v1754_v7 = vadd.f32 %v1706_v34, %v1506_v16  ;;  %v2519_v16 = vld [vmem:[#allocation2 + $0x8e] sm:$0xff] }
 0x336   : > { %v1708_v42 = vpop.f32.mrf.mxu2 }
 0x337   : > { %v1954_v50 = vpop.f32.mrf.mxu3 }
 0x338   : > { %v4047_v60 = vadd.f32 %v1954_v50, %v1754_v7  ;;  %v1460_v29 = vpop.f32.mrf.mxu1 }
 0x339   : > { %v1507_v32 = vadd.f32 %v1460_v29, %v3850_v38 }
 0x33b   : > { %3434 = vmatmul.msk.bf16.gmra.mxu2 %vm551_vm2, %v2547_v31  ;;  %v4051_v19 = vadd.f32 %v1708_v42, %v1507_v32  ;;  %v2518_v42 = vld [vmem:[#allocation2 + $0x86] sm:$0xff] }
 0x33c   : > { %v2548_v50 = vpack.c.bf16 %v2519_v16, %v2518_v42 }
 0x33e   : > { %v1711_v13 = vpop.f32.mrf.mxu2 }
 0x33f   : > { %v4053_v30 = vpop.f32.mrf.mxu3 }
 0x340   : > { %v1463_v46 = vpop.f32.mrf.mxu1 }
 0x341   : > { %v1508_v34 = vadd.f32 %v1463_v46, %v3858_v37  ;;  %v2271_v37 = vld [vmem:[#allocation2 + $0x8d] sm:$0xff] }
 0x343   : > { %3415 = vmatmul.msk.bf16.gmra.mxu1 %vm551_vm2, %v2299_v33  ;;  %v1756_v28 = vadd.f32 %v1711_v13, %v1508_v34  ;;  %v2270_v13 = vld [vmem:[#allocation2 + $0x85] sm:$0xff] }
 0x344   : > { %v2300_v46 = vpack.c.bf16 %v2271_v37, %v2270_v13  ;;  %v2521_v33 = vld [vmem:[#allocation2 + $0x9e] sm:$0xff] }
 0x346   : > { %v1713_v57 = vpop.f32.mrf.mxu2 }
 0x347   : > { %v1959_v38 = vpop.f32.mrf.mxu3 }
 0x348   : > { %v4057_v58 = vadd.f32 %v1959_v38, %v1756_v28  ;;  %v1465_v7 = vpop.f32.mrf.mxu1 }
 0x349   : > { %v1509_v63 = vadd.f32 %v1465_v7, %v3865_v0 }
 0x34b   : > { %3435 = vmatmul.msk.bf16.gmra.mxu2 %vm551_vm2, %v2548_v50  ;;  %v4061_v29 = vadd.f32 %v1713_v57, %v1509_v63  ;;  %v2520_v57 = vld [vmem:[#allocation2 + $0x96] sm:$0xff] }
 0x34c   : > { %v2549_v7 = vpack.c.bf16 %v2521_v33, %v2520_v57 }
 0x34e   : > { %v1716_v18 = vpop.f32.mrf.mxu2 }
 0x34f   : > { %v4063_v32 = vpop.f32.mrf.mxu3 }
 0x350   : > { %v1468_v31 = vpop.f32.mrf.mxu1 }
 0x351   : > { %v1510_v3 = vadd.f32 %v1468_v31, %v3873_v11  ;;  %v2273_v11 = vld [vmem:[#allocation2 + $0x9d] sm:$0xff] }
 0x353   : > { %3416 = vmatmul.msk.bf16.gmra.mxu1 %vm551_vm2, %v2300_v46  ;;  %v1758_v59 = vadd.f32 %v1716_v18, %v1510_v3  ;;  %v2272_v18 = vld [vmem:[#allocation2 + $0x95] sm:$0xff] }
 0x354   : > { %v2301_v13 = vpack.c.bf16 %v2273_v11, %v2272_v18 }
 0x356   : > { %v1718_v34 = vpop.f32.mrf.mxu2 }
 0x357   : > { %v1964_v0 = vpop.f32.mrf.mxu3 }
 0x358   : > { %v4067_v28 = vadd.f32 %v1964_v0, %v1758_v59  ;;  %v1470_v16 = vpop.f32.mrf.mxu1  ;;  %v2523_v59 = vld [vmem:[#allocation2 + $0xae] sm:$0xff] }
 0x359   : > { %v1511_v38 = vadd.f32 %v1470_v16, %v3880_v27 }
 0x35b   : > { %3436 = vmatmul.msk.bf16.gmra.mxu2 %vm551_vm2, %v2549_v7  ;;  %v4071_v42 = vadd.f32 %v1718_v34, %v1511_v38  ;;  %v2522_v34 = vld [vmem:[#allocation2 + $0xa6] sm:$0xff] }
 0x35c   : > { %v2550_v57 = vpack.c.bf16 %v2523_v59, %v2522_v34 }
 0x35e   : > { %v1721_v63 = vpop.f32.mrf.mxu2 }
 0x35f   : > { %v4073_v50 = vpop.f32.mrf.mxu3 }
 0x360   : > { %v1473_v37 = vpop.f32.mrf.mxu1 }
 0x361   : > { %v1512_v31 = vadd.f32 %v1473_v37, %v3890_v51  ;;  %v2275_v51 = vld [vmem:[#allocation2 + $0xad] sm:$0xff]  ;;  %v2274_v37 = vld [vmem:[#allocation2 + $0xa5] sm:$0xff] }
 0x362   : > { %v2302_v18 = vpack.c.bf16 %v2275_v51, %v2274_v37  ;;  %v2277_v51 = vld [vmem:[#allocation2 + $0xbd] sm:$0xff] }
 0x363   : > { %3417 = vmatmul.msk.bf16.gmra.mxu1 %vm551_vm2, %v2301_v13  ;;  %v1760_v3 = vadd.f32 %v1721_v63, %v1512_v31  ;;  %v2525_v13 = vld [vmem:[#allocation2 + $0xbe] sm:$0xff] }
 0x366   : > { %v1723_v46 = vpop.f32.mrf.mxu2 }
 0x367   : > { %v1969_v27 = vpop.f32.mrf.mxu3 }
 0x368   : > { %v4077_v33 = vadd.f32 %v1969_v27, %v1760_v3  ;;  %v1475_v0 = vpop.f32.mrf.mxu1 }
 0x369   : > { %v1513_v16 = vadd.f32 %v1475_v0, %v3895_v12  ;;  %v4088_v12 = vld [vmem:[%s4405_s3] ss:$0 sm:$0xff] }
 0x36a   : > { %4409 = vst [vmem:[#allocation3_spill] sm:$0xff] %v4077_v33 }
 0x36b   : > { %3437 = vmatmul.msk.bf16.gmra.mxu2 %vm551_vm2, %v2550_v57  ;;  %v4081_v38 = vadd.f32 %v1723_v46, %v1513_v16  ;;  %v2524_v46 = vld [vmem:[#allocation2 + $0xb6] sm:$0xff] }
 0x36c   : > { %v2551_v0 = vpack.c.bf16 %v2525_v13, %v2524_v46 }
 0x36d   : > { %4410 = vst [vmem:[#allocation4_spill] sm:$0xff] %v4081_v38 }
 0x36e   : > { %v2628_v7 = vpop.f32.mrf.mxu2 }
 0x370   : > { %v2380_v11 = vpop.f32.mrf.mxu1 }
 0x371   : > { %v2470_v63 = vadd.f32 %v2380_v11, %v3911_v40 }
 0x373   : > { %3418 = vmatmul.msk.bf16.gmra.mxu1 %vm551_vm2, %v2302_v18  ;;  %v2718_v3 = vadd.f32 %v2628_v7, %v2470_v63  ;;  %v2276_v18 = vld [vmem:[#allocation2 + $0xb5] sm:$0xff] }
 0x374   : > { %v2303_v38 = vpack.c.bf16 %v2277_v51, %v2276_v18  ;;  %v2529_v18 = vld [vmem:[#allocation2 + $0xde] sm:$0xff] }
 0x375   : > { %v2758_v34 = vadd.f32 %v4088_v12, %v2718_v3 }
 0x376   : > { %v2630_v31 = vpop.f32.mrf.mxu2 }
 0x377   : > { %v2794_v7 = vmax.f32 %v2758_v34, 0.0 }
 0x378   : > { %v2382_v59 = vpop.f32.mrf.mxu1 }
 0x379   : > { %v2471_v27 = vadd.f32 %v2382_v59, %v3915_v41  ;;  %v2526_v59 = vld [vmem:[#allocation2 + $0xc6] sm:$0xff] }
 0x37b   : > { %v2719_v16 = vadd.f32 %v2630_v31, %v2471_v27  ;;  %3438 = vmatmul.msk.bf16.gmra.mxu2 %vm551_vm2, %v2551_v0  ;;  %v2527_v31 = vld [vmem:[#allocation2 + $0xce] sm:$0xff] }
 0x37c   : > { %v2552_v27 = vpack.c.bf16 %v2527_v31, %v2526_v59  ;;  %v2528_v31 = vld [vmem:[#allocation2 + $0xd6] sm:$0xff] }
 0x37d   : > { %v2759_v40 = vadd.f32 %v4088_v12, %v2719_v16 }
 0x37e   : > { %v2633_v57 = vpop.f32.mrf.mxu2 }
 0x37f   : > { %v2795_v11 = vmax.f32 %v2759_v40, 0.0  ;;  %v2279_v40 = vld [vmem:[#allocation2 + $0xcd] sm:$0xff] }
 0x380   : > { %v2385_v37 = vpop.f32.mrf.mxu1 }
 0x381   : > { %v2830_v63 = vpack.c.bf16 %v2795_v11, %v2794_v7  ;;  %v2472_v33 = vadd.f32 %v2385_v37, %v3920_v24  ;;  %v2278_v11 = vld [vmem:[#allocation2 + $0xc5] sm:$0xff] }
 0x382   : > { %v2304_v37 = vpack.c.bf16 %v2279_v40, %v2278_v11 }
 0x383   : > { %3419 = vmatmul.msk.bf16.gmra.mxu1 %vm551_vm2, %v2303_v38  ;;  %3447 = vmatmul.msk.bf16.vlgmr.msra.gmra.mxu3 %vm551_vm2, %v2830_v63  ;;  %v2720_v13 = vadd.f32 %v2633_v57, %v2472_v33 }
 0x385   : > { %v2760_v0 = vadd.f32 %v4088_v12, %v2720_v13 }
 0x386   : > { %v2635_v41 = vpop.f32.mrf.mxu2 }
 0x387   : > { %v2796_v38 = vmax.f32 %v2760_v0, 0.0 }
 0x388   : > { %v2387_v3 = vpop.f32.mrf.mxu1 }
 0x389   : > { %v2473_v46 = vadd.f32 %v2387_v3, %v3925_v26  ;;  %v2553_v3 = vpack.c.bf16 %v2529_v18, %v2528_v31  ;;  %v2530_v18 = vld [vmem:[#allocation2 + $0xe6] sm:$0xff] }
 0x38b   : > { %v2721_v34 = vadd.f32 %v2635_v41, %v2473_v46  ;;  %3439 = vmatmul.msk.bf16.gmra.mxu2 %vm551_vm2, %v2552_v27  ;;  %v4107_v27 = vpop.f32.mrf.mxu0 }
 0x38d   : > { %v2761_v16 = vadd.f32 %v4088_v12, %v2721_v34  ;;  %v2281_v34 = vld [vmem:[#allocation2 + $0xdd] sm:$0xff] }
 0x38e   : > { %v2638_v24 = vpop.f32.mrf.mxu2 }
 0x38f   : > { %v2797_v51 = vmax.f32 %v2761_v16, 0.0 }
 0x390   : > { %v2390_v7 = vpop.f32.mrf.mxu1 }
 0x391   : > { %v2831_v33 = vpack.c.bf16 %v2797_v51, %v2796_v38  ;;  %v2474_v57 = vadd.f32 %v2390_v7, %v3930_v15 }
 0x393   : > { %3420 = vmatmul.msk.bf16.gmra.mxu1 %vm551_vm2, %v2304_v37  ;;  %3448 = vmatmul.msk.bf16.gmra.mxu3 %vm551_vm2, %v2831_v33  ;;  %v2722_v63 = vadd.f32 %v2638_v24, %v2474_v57  ;;  %v2280_v24 = vld [vmem:[#allocation2 + $0xd5] sm:$0xff]  ;;  %v4113_v33 = vpop.f32.mrf.mxu0 }
 0x394   : > { %v2305_v51 = vpack.c.bf16 %v2281_v34, %v2280_v24  ;;  %v2531_v37 = vld [vmem:[#allocation2 + $0xee] sm:$0xff] }
 0x395   : > { %v2762_v59 = vadd.f32 %v4088_v12, %v2722_v63 }
 0x396   : > { %v2640_v26 = vpop.f32.mrf.mxu2 }
 0x397   : > { %v2798_v16 = vmax.f32 %v2762_v59, 0.0  ;;  %v2283_v59 = vld [vmem:[#allocation2 + $0xed] sm:$0xff] }
 0x398   : > { %v2392_v41 = vpop.f32.mrf.mxu1 }
 0x399   : > { %v2475_v13 = vadd.f32 %v2392_v41, %v3935_v20  ;;  %v2554_v41 = vpack.c.bf16 %v2531_v37, %v2530_v18 }
 0x39b   : > { %v2723_v46 = vadd.f32 %v2640_v26, %v2475_v13  ;;  %3440 = vmatmul.msk.bf16.gmra.mxu2 %vm551_vm2, %v2553_v3 }
 0x39d   : > { %v2763_v15 = vadd.f32 %v4088_v12, %v2723_v46 }
 0x39e   : > { %v2643_v0 = vpop.f32.mrf.mxu2 }
 0x39f   : > { %v2799_v40 = vmax.f32 %v2763_v15, 0.0 }
 0x3a0   : > { %v2395_v38 = vpop.f32.mrf.mxu1 }
 0x3a1   : > { %v2832_v7 = vpack.c.bf16 %v2799_v40, %v2798_v16  ;;  %v2476_v20 = vadd.f32 %v2395_v38, %v3940_v62  ;;  %v2282_v16 = vld [vmem:[#allocation2 + $0xe5] sm:$0xff]  ;;  %v4119_v40 = vpop.f32.mrf.mxu0 }
 0x3a3   : > { %3421 = vmatmul.msk.bf16.gmra.mxu1 %vm551_vm2, %v2305_v51  ;;  %3449 = vmatmul.msk.bf16.gmra.mxu3 %vm551_vm2, %v2832_v7  ;;  %v2724_v57 = vadd.f32 %v2643_v0, %v2476_v20  ;;  %v2306_v0 = vpack.c.bf16 %v2283_v59, %v2282_v16  ;;  %v2533_v51 = vld [vmem:[#allocation2 + $0xfe] sm:$0xff] }
 0x3a5   : > { %v2764_v31 = vadd.f32 %v4088_v12, %v2724_v57 }
 0x3a6   : > { %v2645_v11 = vpop.f32.mrf.mxu2 }
 0x3a7   : > { %v2800_v46 = vmax.f32 %v2764_v31, 0.0  ;;  %v2285_v31 = vld [vmem:[#allocation2 + $0xfd] sm:$0xff] }
 0x3a8   : > { %v2397_v26 = vpop.f32.mrf.mxu1 }
 0x3a9   : > { %v2477_v63 = vadd.f32 %v2397_v26, %v3945_v4  ;;  %v4125_v26 = vpop.f32.mrf.mxu0 }
 0x3ab   : > { %v2725_v13 = vadd.f32 %v2645_v11, %v2477_v63  ;;  %3441 = vmatmul.msk.bf16.gmra.mxu2 %vm551_vm2, %v2554_v41  ;;  %v2532_v11 = vld [vmem:[#allocation2 + $0xf6] sm:$0xff] }
 0x3ac   : > { %v2555_v57 = vpack.c.bf16 %v2533_v51, %v2532_v11 }
 0x3ad   : > { %v2765_v62 = vadd.f32 %v4088_v12, %v2725_v13 }
 0x3ae   : > { %v2648_v3 = vpop.f32.mrf.mxu2 }
 0x3af   : > { %v2801_v15 = vmax.f32 %v2765_v62, 0.0 }
 0x3b0   : > { %v2400_v34 = vpop.f32.mrf.mxu1 }
 0x3b1   : > { %v2833_v38 = vpack.c.bf16 %v2801_v15, %v2800_v46  ;;  %v2478_v4 = vadd.f32 %v2400_v34, %v3950_v10  ;;  %v4133_v34 = vpop.f32.mrf.mxu0 }
 0x3b3   : > { %3422 = vmatmul.msk.bf16.gmra.mxu1 %vm551_vm2, %v2306_v0  ;;  %3450 = vmatmul.msk.bf16.gmra.mxu3 %vm551_vm2, %v2833_v38  ;;  %v2726_v7 = vadd.f32 %v2648_v3, %v2478_v4  ;;  %v2284_v3 = vld [vmem:[#allocation2 + $0xf5] sm:$0xff] }
 0x3b4   : > { %v2307_v46 = vpack.c.bf16 %v2285_v31, %v2284_v3  ;;  %v2535_v0 = vld [vmem:[#allocation2 + $0x10e] sm:$0xff]  ;;  %v1987_v3 = vadd.f32 %v3959_v5, %v3957_v54  ;;  %v2289_v54 = vld [vmem:[#allocation2 + $0x11d] sm:$0xff] }
 0x3b5   : > { %v2766_v18 = vadd.f32 %v4088_v12, %v2726_v7 }
 0x3b6   : > { %v2650_v24 = vpop.f32.mrf.mxu2 }
 0x3b7   : > { %v2802_v13 = vmax.f32 %v2766_v18, 0.0 }
 0x3b8   : > { %v2402_v20 = vpop.f32.mrf.mxu1 }
 0x3b9   : > { %v2479_v37 = vadd.f32 %v2402_v20, %v3961_v56  ;;  %v4139_v18 = vpop.f32.mrf.mxu0 }
 0x3bb   : > { %v2727_v63 = vadd.f32 %v2650_v24, %v2479_v37  ;;  %3442 = vmatmul.msk.bf16.gmra.mxu2 %vm551_vm2, %v2555_v57  ;;  %v2534_v24 = vld [vmem:[#allocation2 + $0x106] sm:$0xff] }
 0x3bc   : > { %v2556_v7 = vpack.c.bf16 %v2535_v0, %v2534_v24  ;;  %v2287_v57 = vld [vmem:[#allocation2 + $0x10d] sm:$0xff] }
 0x3bd   : > { %v2767_v10 = vadd.f32 %v4088_v12, %v2727_v63 }
 0x3be   : > { %v2653_v41 = vpop.f32.mrf.mxu2 }
 0x3bf   : > { %v2803_v62 = vmax.f32 %v2767_v10, 0.0 }
 0x3c0   : > { %v2405_v59 = vpop.f32.mrf.mxu1 }
 0x3c1   : > { %v2834_v15 = vpack.c.bf16 %v2803_v62, %v2802_v13  ;;  %v2480_v56 = vadd.f32 %v2405_v59, %v3966_v48  ;;  %v2234_v13 = vadd.f32 %v4107_v27, %v3952_v55 }
 0x3c3   : > { %3423 = vmatmul.msk.bf16.gmra.mxu1 %vm551_vm2, %v2307_v46  ;;  %3451 = vmatmul.msk.bf16.gmra.mxu3 %vm551_vm2, %v2834_v15  ;;  %v2728_v38 = vadd.f32 %v2653_v41, %v2480_v56  ;;  %v2286_v41 = vld [vmem:[#allocation2 + $0x105] sm:$0xff]  ;;  %v2235_v56 = vadd.f32 %v4113_v33, %v1987_v3  ;;  %v2288_v33 = vld [vmem:[#allocation2 + $0x115] sm:$0xff] }
 0x3c4   : > { %v2537_v15 = vld [vmem:[#allocation2 + $0x11e] sm:$0xff] }
 0x3c5   : > { %v2768_v20 = vadd.f32 %v4088_v12, %v2728_v38  ;;  %v2536_v38 = vld [vmem:[#allocation2 + $0x116] sm:$0xff] }
 0x3c6   : > { %v2655_v16 = vpop.f32.mrf.mxu2  ;;  %v2557_v27 = vpack.c.bf16 %v2537_v15, %v2536_v38 }
 0x3c7   : > { %v2804_v63 = vmax.f32 %v2768_v20, 0.0 }
 0x3c8   : > { %v2407_v4 = vpop.f32.mrf.mxu1 }
 0x3c9   : > { %v2481_v51 = vadd.f32 %v2407_v4, %v3977_v43  ;;  %v2308_v43 = vpack.c.bf16 %v2287_v57, %v2286_v41  ;;  %v4148_v4 = vpop.f32.mrf.mxu0  ;;  %v1989_v41 = vadd.f32 %v3975_v1, %v3973_v2  ;;  %v2291_v2 = vld [vmem:[#allocation2 + $0x12d] sm:$0xff] }
 0x3cb   : > { %v2729_v11 = vadd.f32 %v2655_v16, %v2481_v51  ;;  %3443 = vmatmul.msk.bf16.gmra.mxu2 %vm551_vm2, %v2556_v7 }
 0x3cd   : > { %v2769_v48 = vadd.f32 %v4088_v12, %v2729_v11 }
 0x3ce   : > { %v2658_v37 = vpop.f32.mrf.mxu2 }
 0x3cf   : > { %v2805_v10 = vmax.f32 %v2769_v48, 0.0 }
 0x3d0   : > { %v2410_v31 = vpop.f32.mrf.mxu1 }
 0x3d1   : > { %v2835_v62 = vpack.c.bf16 %v2805_v10, %v2804_v63  ;;  %v2482_v59 = vadd.f32 %v2410_v31, %v2234_v13  ;;  %v2309_v63 = vpack.c.bf16 %v2289_v54, %v2288_v33  ;;  %v4155_v10 = vpop.f32.mrf.mxu0  ;;  %v1991_v54 = vadd.f32 %v3989_v22, %v3987_v8  ;;  %v2292_v22 = vld [vmem:[#allocation2 + $0x135] sm:$0xff] }
 0x3d3   : > { %3424 = vmatmul.msk.bf16.gmra.mxu1 %vm551_vm2, %v2308_v43  ;;  %3452 = vmatmul.msk.bf16.gmra.mxu3 %vm551_vm2, %v2835_v62  ;;  %v2730_v16 = vadd.f32 %v2658_v37, %v2482_v59  ;;  %v2236_v37 = vadd.f32 %v4119_v40, %v3968_v25  ;;  %v2539_v43 = vld [vmem:[#allocation2 + $0x12e] sm:$0xff]  ;;  %v2237_v62 = vadd.f32 %v4125_v26, %v1989_v41  ;;  %v2290_v26 = vld [vmem:[#allocation2 + $0x125] sm:$0xff] }
 0x3d4   : > { %v2239_v33 = vadd.f32 %v4139_v18, %v1991_v54 }
 0x3d5   : > { %v2770_v24 = vadd.f32 %v4088_v12, %v2730_v16 }
 0x3d6   : > { %v2660_v46 = vpop.f32.mrf.mxu2 }
 0x3d7   : > { %v2806_v5 = vmax.f32 %v2770_v24, 0.0  ;;  %v2238_v24 = vadd.f32 %v4133_v34, %v3982_v6 }
 0x3d8   : > { %v2412_v0 = vpop.f32.mrf.mxu1 }
 0x3d9   : > { %v2483_v55 = vadd.f32 %v2412_v0, %v2235_v56  ;;  %v4164_v16 = vpop.f32.mrf.mxu0 }
 0x3db   : > { %v2731_v51 = vadd.f32 %v2660_v46, %v2483_v55  ;;  %3444 = vmatmul.msk.bf16.gmra.mxu2 %vm551_vm2, %v2557_v27  ;;  %v2538_v46 = vld [vmem:[#allocation2 + $0x126] sm:$0xff] }
 0x3dc   : > { %v2558_v40 = vpack.c.bf16 %v2539_v43, %v2538_v46  ;;  %v4179_v43 = vpop.f32.mrf.mxu3  ;;  %v2240_v46 = vadd.f32 %v4148_v4, %v3994_v49 }
 0x3dd   : > { %v2771_v7 = vadd.f32 %v4088_v12, %v2731_v51 }
 0x3de   : > { %v2663_v20 = vpop.f32.mrf.mxu2 }
 0x3df   : > { %v2807_v11 = vmax.f32 %v2771_v7, 0.0  ;;  %v2310_v7 = vpack.c.bf16 %v2291_v2, %v2290_v26 }
 0x3e0   : > { %v2415_v48 = vpop.f32.mrf.mxu1 }
 0x3e1   : > { %v2836_v57 = vpack.c.bf16 %v2807_v11, %v2806_v5  ;;  %v2484_v31 = vadd.f32 %v2415_v48, %v2236_v37  ;;  %v2540_v11 = vld [vmem:[#allocation2 + $0x136] sm:$0xff]  ;;  %v2541_v48 = vld [vmem:[#allocation2 + $0x13e] sm:$0xff]  ;;  %v4174_v37 = vpop.f32.mrf.mxu0 }
 0x3e2   : > { %v2559_v34 = vpack.c.bf16 %v2541_v48, %v2540_v11  ;;  %v2850_v11 = vld [vmem:[%s3545_s28 + $0x1b] sm:$0xff] }
 0x3e3   : > { %3425 = vmatmul.msk.bf16.gmra.mxu1 %vm551_vm2, %v2309_v63  ;;  %3453 = vmatmul.msk.bf16.gmra.mxu3 %vm551_vm2, %v2836_v57  ;;  %v2732_v59 = vadd.f32 %v2663_v20, %v2484_v31 }
 0x3e5   : > { %v2772_v15 = vadd.f32 %v4088_v12, %v2732_v59 }
 0x3e6   : > { %v2665_v13 = vpop.f32.mrf.mxu2 }
 0x3e7   : > { %v2808_v1 = vmax.f32 %v2772_v15, 0.0 }
 0x3e8   : > { %v2417_v3 = vpop.f32.mrf.mxu1 }
 0x3e9   : > { %v2485_v25 = vadd.f32 %v2417_v3, %v2237_v62  ;;  %v2293_v62 = vld [vmem:[#allocation2 + $0x13d] sm:$0xff] }
 0x3ea   : > { %v2311_v15 = vpack.c.bf16 %v2293_v62, %v2292_v22  ;;  %v1995_v22 = vadd.f32 %v4012_v36, %v4010_v23 }
 0x3eb   : > { %v2733_v56 = vadd.f32 %v2665_v13, %v2485_v25  ;;  %3445 = vmatmul.msk.bf16.gmra.mxu2 %vm551_vm2, %v2558_v40  ;;  %v4183_v25 = vpop.f32.mrf.mxu0 }
 0x3ed   : > { %v2773_v0 = vadd.f32 %v4088_v12, %v2733_v56 }
 0x3ee   : > { %v2668_v38 = vpop.f32.mrf.mxu2 }
 0x3ef   : > { %v2809_v55 = vmax.f32 %v2773_v0, 0.0  ;;  %v4190_v0 = vld [vmem:[%s4407_s5] ss:$0 sm:$0xff] }
 0x3f0   : > { %v2420_v27 = vpop.f32.mrf.mxu1 }
 0x3f1   : > { %v2837_v51 = vpack.c.bf16 %v2809_v55, %v2808_v1  ;;  %v2486_v20 = vadd.f32 %v2420_v27, %v2238_v24  ;;  %v2849_v1 = vld [vmem:[%s3545_s28 + $0x13] sm:$0xff] }
 0x3f3   : > { %3426 = vmatmul.msk.bf16.gmra.mxu1 %vm551_vm2, %v2310_v7  ;;  %3454 = vmatmul.msk.bf16.gmra.mxu3 %vm551_vm2, %v2837_v51  ;;  %v2734_v57 = vadd.f32 %v2668_v38, %v2486_v20  ;;  %v1993_v38 = vadd.f32 %v4001_v35, %v3999_v44  ;;  %v2189_v7 = vpop.f32.mrf.mxu0 }
 0x3f5   : > { %v2774_v31 = vadd.f32 %v4088_v12, %v2734_v57  ;;  %v2241_v4 = vadd.f32 %v4155_v10, %v1993_v38 }
 0x3f6   : > { %v2670_v5 = vpop.f32.mrf.mxu2 }
 0x3f7   : > { %v2810_v18 = vmax.f32 %v2774_v31, 0.0 }
 0x3f8   : > { %v2422_v63 = vpop.f32.mrf.mxu1 }
 0x3f9   : > { %v2487_v6 = vadd.f32 %v2422_v63, %v2239_v33 }
 0x3fb   : > { %v2735_v41 = vadd.f32 %v2670_v5, %v2487_v6  ;;  %3446 = vmatmul.msk.bf16.gmra.mxu2 %vm551_vm2, %v2559_v34  ;;  %v2242_v34 = vadd.f32 %v4164_v16, %v4005_v21  ;;  %v2192_v62 = vpop.f32.mrf.mxu0 }
 0x3fd   : > { %v2775_v13 = vadd.f32 %v4088_v12, %v2735_v41 }
 0x3fe   : > { %v2673_v8 = vpop.f32.mrf.mxu2 }
 0x3ff   : > { %v2811_v59 = vmax.f32 %v2775_v13, 0.0 }
 0x400   : > { %v2425_v3 = vpop.f32.mrf.mxu1 }
 0x401   : > { %v2838_v40 = vpack.c.bf16 %v2811_v59, %v2810_v18  ;;  %v2488_v56 = vadd.f32 %v2425_v3, %v2240_v46  ;;  %v2851_v3 = vld [vmem:[%s3545_s28 + $0x23] sm:$0xff] }
 0x403   : > { %3427 = vmatmul.msk.bf16.gmra.mxu1 %vm551_vm2, %v2311_v15  ;;  %3455 = vmatmul.msk.bf16.gmra.mxu3 %vm551_vm2, %v2838_v40  ;;  %v2736_v55 = vadd.f32 %v2673_v8, %v2488_v56  ;;  %v2243_v40 = vadd.f32 %v4174_v37, %v1995_v22  ;;  %v2194_v37 = vpop.f32.mrf.mxu0 }
 0x405   : > { %v2776_v20 = vadd.f32 %v4088_v12, %v2736_v55  ;;  %v2852_v55 = vld [vmem:[%s3545_s28 + $0x2b] sm:$0xff] }
 0x406   : > { %v2675_v2 = vpop.f32.mrf.mxu2  ;;  %v2955_v49 = vpop.f32.mrf.mxu3 }
 0x407   : > { %v2956_v27 = vadd.f32 %v4190_v0, %v2955_v49  ;;  %v2812_v33 = vmax.f32 %v2776_v20, 0.0 }
 0x408   : > { %v2427_v26 = vpop.f32.mrf.mxu1 }
 0x409   : > { %v3045_v24 = vadd.f32 %v2956_v27, %v2849_v1  ;;  %v2489_v51 = vadd.f32 %v2427_v26, %v2241_v4 }
 0x40b   : > { %v3081_v54 = vmax.f32 %v3045_v24, 0.0  ;;  %v2737_v5 = vadd.f32 %v2675_v2, %v2489_v51 }
 0x40d   : > { %v3117_v44 = vpack.c.bf16 %v3081_v54, %v3081_v54  ;;  %v2777_v35 = vadd.f32 %v4088_v12, %v2737_v5  ;;  %v2244_v54 = vadd.f32 %v4183_v25, %v4016_v52 }
 0x40e   : > { %v2678_v10 = vpop.f32.mrf.mxu2  ;;  %v2957_v48 = vpop.f32.mrf.mxu3 }
 0x40f   : > { %3154 = vst.msk [vmem:[%s4202_s13] sm:$0xf] %vm3153_vm5, %v3117_v44  ;;  %v2813_v57 = vmax.f32 %v2777_v35, 0.0  ;;  %v2958_v63 = vadd.f32 %v4190_v0, %v2957_v48 }
 0x410   : > { %v2430_v6 = vpop.f32.mrf.mxu1 }
 0x411   : > { %v2839_v31 = vpack.c.bf16 %v2813_v57, %v2812_v33  ;;  %v3046_v41 = vadd.f32 %v2958_v63, %v2850_v11  ;;  %v2490_v8 = vadd.f32 %v2430_v6, %v2242_v34  ;;  %v1997_v11 = vadd.f32 %v4023_v17, %v4021_v45  ;;  %v2853_v57 = vld [vmem:[%s3545_s28 + $0x33] sm:$0xff] }
 0x413   : > { %v3082_v13 = vmax.f32 %v3046_v41, 0.0  ;;  %3456 = vmatmul.msk.bf16.gmra.mxu3 %vm551_vm2, %v2839_v31  ;;  %v2738_v21 = vadd.f32 %v2678_v10, %v2490_v8  ;;  %v2245_v6 = vadd.f32 %v2189_v7, %v1997_v11  ;;  %v2197_v31 = vpop.f32.mrf.mxu0  ;;  %v2856_v11 = vld [vmem:[%s3545_s28 + $0x4b] sm:$0xff] }
 0x415   : > { %v3118_v18 = vpack.c.bf16 %v3082_v13, %v3082_v13  ;;  %v2778_v2 = vadd.f32 %v4088_v12, %v2738_v21 }
 0x416   : > { %v2680_v59 = vpop.f32.mrf.mxu2  ;;  %v2960_v46 = vpop.f32.mrf.mxu3 }
 0x417   : > { %3155 = vst.msk [vmem:[%s4202_s13 + $0x4] sm:$0xf] %vm3153_vm5, %v3118_v18  ;;  %v2961_v16 = vadd.f32 %v4190_v0, %v2960_v46  ;;  %v2814_v26 = vmax.f32 %v2778_v2, 0.0 }
 0x418   : > { %v2432_v15 = vpop.f32.mrf.mxu1 }
 0x419   : > { %v3047_v56 = vadd.f32 %v2961_v16, %v2851_v3  ;;  %v2491_v38 = vadd.f32 %v2432_v15, %v2243_v40  ;;  %v2854_v3 = vld [vmem:[%s3545_s28 + $0x3b] sm:$0xff]  ;;  %v2246_v15 = vadd.f32 %v2192_v62, %v4027_v61 }
 0x41b   : > { %v3083_v23 = vmax.f32 %v3047_v56, 0.0  ;;  %v2739_v36 = vadd.f32 %v2680_v59, %v2491_v38  ;;  %v2199_v2 = vpop.f32.mrf.mxu0 }
 0x41d   : > { %v3119_v1 = vpack.c.bf16 %v3083_v23, %v3083_v23  ;;  %v2779_v49 = vadd.f32 %v4088_v12, %v2739_v36 }
 0x41e   : > { %v2683_v4 = vpop.f32.mrf.mxu2  ;;  %v2962_v27 = vpop.f32.mrf.mxu3 }
 0x41f   : > { %3156 = vst.msk [vmem:[%s4202_s13 + $0x8] sm:$0xf] %vm3153_vm5, %v3119_v1  ;;  %v2815_v24 = vmax.f32 %v2779_v49, 0.0  ;;  %v2963_v51 = vadd.f32 %v4190_v0, %v2962_v27  ;;  %v1999_v1 = vadd.f32 %v4033_v9, %v4031_v14 }
 0x420   : > { %v2435_v20 = vpop.f32.mrf.mxu1 }
 0x421   : > { %v2840_v5 = vpack.c.bf16 %v2815_v24, %v2814_v26  ;;  %v3048_v44 = vadd.f32 %v2963_v51, %v2852_v55  ;;  %v2492_v10 = vadd.f32 %v2435_v20, %v2244_v54  ;;  %v2855_v55 = vld [vmem:[%s3545_s28 + $0x43] sm:$0xff]  ;;  %v2247_v26 = vadd.f32 %v2194_v37, %v1999_v1 }
 0x423   : > { %v3084_v35 = vmax.f32 %v3048_v44, 0.0  ;;  %3457 = vmatmul.msk.bf16.gmra.mxu3 %vm551_vm2, %v2840_v5  ;;  %v2740_v34 = vadd.f32 %v2683_v4, %v2492_v10  ;;  %v2202_v14 = vpop.f32.mrf.mxu0 }
 0x425   : > { %v3120_v48 = vpack.c.bf16 %v3084_v35, %v3084_v35  ;;  %v2780_v8 = vadd.f32 %v4088_v12, %v2740_v34 }
 0x426   : > { %v2685_v33 = vpop.f32.mrf.mxu2  ;;  %v2965_v63 = vpop.f32.mrf.mxu3 }
 0x427   : > { %3157 = vst.msk [vmem:[%s4202_s13 + $0xc] sm:$0xf] %vm3153_vm5, %v3120_v48  ;;  %v2966_v52 = vadd.f32 %v4190_v0, %v2965_v63  ;;  %v2816_v46 = vmax.f32 %v2780_v8, 0.0 }
 0x428   : > { %v2437_v25 = vpop.f32.mrf.mxu1 }
 0x429   : > { %v3049_v41 = vadd.f32 %v2966_v52, %v2853_v57  ;;  %v2493_v13 = vadd.f32 %v2437_v25, %v2245_v6  ;;  %v2248_v6 = vadd.f32 %v2197_v31, %v4037_v53 }
 0x42b   : > { %v3085_v22 = vmax.f32 %v3049_v41, 0.0  ;;  %v2741_v45 = vadd.f32 %v2685_v33, %v2493_v13  ;;  %v2001_v13 = vadd.f32 %v4043_v39, %v4041_v47 }
 0x42d   : > { %v3121_v17 = vpack.c.bf16 %v3085_v22, %v3085_v22  ;;  %v2781_v18 = vadd.f32 %v4088_v12, %v2741_v45  ;;  %v2857_v45 = vld [vmem:[%s3545_s28 + $0x53] sm:$0xff] }
 0x42e   : > { %v2688_v59 = vpop.f32.mrf.mxu2  ;;  %v2967_v7 = vpop.f32.mrf.mxu3 }
 0x42f   : > { %3158 = vst.msk [vmem:[%s4202_s13 + $0x10] sm:$0xf] %vm3153_vm5, %v3121_v17  ;;  %v2817_v40 = vmax.f32 %v2781_v18, 0.0  ;;  %v2968_v21 = vadd.f32 %v4190_v0, %v2967_v7  ;;  %v2249_v18 = vadd.f32 %v2199_v2, %v2001_v13 }
 0x430   : > { %v2440_v16 = vpop.f32.mrf.mxu1 }
 0x431   : > { %v2841_v56 = vpack.c.bf16 %v2817_v40, %v2816_v46  ;;  %v3050_v38 = vadd.f32 %v2968_v21, %v2854_v3  ;;  %v2494_v36 = vadd.f32 %v2440_v16, %v2246_v15 }
 0x433   : > { %v3086_v23 = vmax.f32 %v3050_v38, 0.0  ;;  %3458 = vmatmul.msk.bf16.gmra.mxu3 %vm551_vm2, %v2841_v56  ;;  %v2742_v61 = vadd.f32 %v2688_v59, %v2494_v36  ;;  %v2204_v59 = vpop.f32.mrf.mxu0  ;;  %v2858_v56 = vld [vmem:[%s3545_s28 + $0x5b] sm:$0xff] }
 0x435   : > { %v3122_v49 = vpack.c.bf16 %v3086_v23, %v3086_v23  ;;  %v2782_v54 = vadd.f32 %v4088_v12, %v2742_v61 }
 0x436   : > { %v2690_v4 = vpop.f32.mrf.mxu2  ;;  %v2970_v27 = vpop.f32.mrf.mxu3 }
 0x437   : > { %3159 = vst.msk [vmem:[%s4202_s13 + $0x14] sm:$0xf] %vm3153_vm5, %v3122_v49  ;;  %v2971_v62 = vadd.f32 %v4190_v0, %v2970_v27  ;;  %v2818_v48 = vmax.f32 %v2782_v54, 0.0  ;;  %v2250_v49 = vadd.f32 %v2202_v14, %v4047_v60 }
 0x438   : > { %v2442_v24 = vpop.f32.mrf.mxu1 }
 0x439   : > { %v3051_v51 = vadd.f32 %v2971_v62, %v2855_v55  ;;  %v2495_v20 = vadd.f32 %v2442_v24, %v2247_v26  ;;  %v2003_v62 = vadd.f32 %v4053_v30, %v4051_v19 }
 0x43b   : > { %v3087_v5 = vmax.f32 %v3051_v51, 0.0  ;;  %v2743_v44 = vadd.f32 %v2690_v4, %v2495_v20  ;;  %v2207_v4 = vpop.f32.mrf.mxu0  ;;  %v2859_v20 = vld [vmem:[%s3545_s28 + $0x63] sm:$0xff] }
 0x43d   : > { %v3123_v9 = vpack.c.bf16 %v3087_v5, %v3087_v5  ;;  %v2783_v35 = vadd.f32 %v4088_v12, %v2743_v44  ;;  %v2251_v5 = vadd.f32 %v2204_v59, %v2003_v62 }
 0x43e   : > { %v2693_v10 = vpop.f32.mrf.mxu2  ;;  %v2972_v37 = vpop.f32.mrf.mxu3 }
 0x43f   : > { %3160 = vst.msk [vmem:[%s4202_s13 + $0x18] sm:$0xf] %vm3153_vm5, %v3123_v9  ;;  %v2819_v33 = vmax.f32 %v2783_v35, 0.0  ;;  %v2973_v57 = vadd.f32 %v4190_v0, %v2972_v37 }
 0x440   : > { %v2445_v63 = vpop.f32.mrf.mxu1 }
 0x441   : > { %v2842_v34 = vpack.c.bf16 %v2819_v33, %v2818_v48  ;;  %v3052_v52 = vadd.f32 %v2973_v57, %v2856_v11  ;;  %v2496_v41 = vadd.f32 %v2445_v63, %v2248_v6  ;;  %v2860_v57 = vld [vmem:[%s3545_s28 + $0x6b] sm:$0xff] }
 0x443   : > { %v3088_v25 = vmax.f32 %v3052_v52, 0.0  ;;  %3459 = vmatmul.msk.bf16.gmra.mxu3 %vm551_vm2, %v2842_v34  ;;  %v2744_v53 = vadd.f32 %v2693_v10, %v2496_v41  ;;  %v2209_v10 = vpop.f32.mrf.mxu0  ;;  %v2252_v41 = vadd.f32 %v2207_v4, %v4057_v58 }
 0x445   : > { %v3124_v8 = vpack.c.bf16 %v3088_v25, %v3088_v25  ;;  %v2784_v40 = vadd.f32 %v4088_v12, %v2744_v53 }
 0x446   : > { %v2695_v22 = vpop.f32.mrf.mxu2  ;;  %v2975_v17 = vpop.f32.mrf.mxu3 }
 0x447   : > { %3161 = vst.msk [vmem:[%s4202_s13 + $0x1c] sm:$0xf] %vm3153_vm5, %v3124_v8  ;;  %v2976_v31 = vadd.f32 %v4190_v0, %v2975_v17  ;;  %v2820_v2 = vmax.f32 %v2784_v40, 0.0  ;;  %v2005_v17 = vadd.f32 %v4063_v32, %v4061_v29 }
 0x448   : > { %v2447_v3 = vpop.f32.mrf.mxu1 }
 0x449   : > { %v3053_v7 = vadd.f32 %v2976_v31, %v2857_v45  ;;  %v2497_v46 = vadd.f32 %v2447_v3, %v2249_v18  ;;  %v2861_v31 = vld [vmem:[%s3545_s28 + $0x73] sm:$0xff] }
 0x44b   : > { %v3089_v21 = vmax.f32 %v3053_v7, 0.0  ;;  %v2745_v47 = vadd.f32 %v2695_v22, %v2497_v46  ;;  %v2212_v18 = vpop.f32.mrf.mxu0  ;;  %v2253_v7 = vadd.f32 %v2209_v10, %v2005_v17  ;;  %v4412_v17 = vld [vmem:[#allocation4_spill] sm:$0xff] }
 0x44d   : > { %v3125_v39 = vpack.c.bf16 %v3089_v21, %v3089_v21  ;;  %v2785_v16 = vadd.f32 %v4088_v12, %v2745_v47 }
 0x44e   : > { %v2698_v15 = vpop.f32.mrf.mxu2  ;;  %v2977_v38 = vpop.f32.mrf.mxu3 }
 0x44f   : > { %3162 = vst.msk [vmem:[%s4202_s13 + $0x20] sm:$0xf] %vm3153_vm5, %v3125_v39  ;;  %v2821_v23 = vmax.f32 %v2785_v16, 0.0  ;;  %v2978_v36 = vadd.f32 %v4190_v0, %v2977_v38  ;;  %v2862_v38 = vld [vmem:[%s3545_s28 + $0x7b] sm:$0xff] }
 0x450   : > { %v2450_v1 = vpop.f32.mrf.mxu1 }
 0x451   : > { %v2843_v55 = vpack.c.bf16 %v2821_v23, %v2820_v2  ;;  %v3054_v27 = vadd.f32 %v2978_v36, %v2858_v56  ;;  %v2498_v61 = vadd.f32 %v2450_v1, %v2250_v49 }
 0x453   : > { %v3090_v26 = vmax.f32 %v3054_v27, 0.0  ;;  %3460 = vmatmul.msk.bf16.gmra.mxu3 %vm551_vm2, %v2843_v55  ;;  %v2746_v60 = vadd.f32 %v2698_v15, %v2498_v61  ;;  %v2214_v49 = vpop.f32.mrf.mxu0  ;;  %v2254_v55 = vadd.f32 %v2212_v18, %v4067_v28  ;;  %v2009_v18 = vadd.f32 %v4179_v43, %v4412_v17 }
 0x455   : > { %v3126_v24 = vpack.c.bf16 %v3090_v26, %v3090_v26  ;;  %v2786_v11 = vadd.f32 %v4088_v12, %v2746_v60 }
 0x456   : > { %v2700_v51 = vpop.f32.mrf.mxu2  ;;  %v2980_v54 = vpop.f32.mrf.mxu3 }
 0x457   : > { %3163 = vst.msk [vmem:[%s4202_s13 + $0x24] sm:$0xf] %vm3153_vm5, %v3126_v24  ;;  %v2981_v44 = vadd.f32 %v4190_v0, %v2980_v54  ;;  %v2822_v6 = vmax.f32 %v2786_v11, 0.0  ;;  %v2007_v24 = vadd.f32 %v4073_v50, %v4071_v42  ;;  %v2863_v54 = vld [vmem:[%s3545_s28 + $0x83] sm:$0xff] }
 0x458   : > { %v2452_v14 = vpop.f32.mrf.mxu1 }
 0x459   : > { %v3055_v9 = vadd.f32 %v2981_v44, %v2859_v20  ;;  %v2499_v35 = vadd.f32 %v2452_v14, %v2251_v5  ;;  %v2255_v60 = vadd.f32 %v2214_v49, %v2007_v24  ;;  %v2868_v24 = vld [vmem:[%s3545_s28 + $0xab] sm:$0xff] }
 0x45b   : > { %v3091_v37 = vmax.f32 %v3055_v9, 0.0  ;;  %v2747_v19 = vadd.f32 %v2700_v51, %v2499_v35  ;;  %v2217_v10 = vpop.f32.mrf.mxu0 }
 0x45d   : > { %v3127_v30 = vpack.c.bf16 %v3091_v37, %v3091_v37  ;;  %v2787_v48 = vadd.f32 %v4088_v12, %v2747_v19 }
 0x45e   : > { %v2703_v33 = vpop.f32.mrf.mxu2  ;;  %v2982_v63 = vpop.f32.mrf.mxu3 }
 0x45f   : > { %3164 = vst.msk [vmem:[%s4202_s13 + $0x28] sm:$0xf] %vm3153_vm5, %v3127_v30  ;;  %v2823_v34 = vmax.f32 %v2787_v48, 0.0  ;;  %v2983_v52 = vadd.f32 %v4190_v0, %v2982_v63  ;;  %v2864_v30 = vld [vmem:[%s3545_s28 + $0x8b] sm:$0xff] }
 0x460   : > { %v2455_v25 = vpop.f32.mrf.mxu1 }
 0x461   : > { %v2844_v13 = vpack.c.bf16 %v2823_v34, %v2822_v6  ;;  %v3056_v8 = vadd.f32 %v2983_v52, %v2860_v57  ;;  %v2500_v45 = vadd.f32 %v2455_v25, %v2252_v41  ;;  %v4411_v52 = vld [vmem:[#allocation3_spill] sm:$0xff] }
 0x462   : > { %v2256_v25 = vadd.f32 %v2217_v10, %v4411_v52  ;;  %v2872_v52 = vld [vmem:[%s3545_s28 + $0xcb] sm:$0xff] }
 0x463   : > { %v3092_v22 = vmax.f32 %v3056_v8, 0.0  ;;  %3461 = vmatmul.msk.bf16.gmra.mxu3 %vm551_vm2, %v2844_v13  ;;  %v2748_v58 = vadd.f32 %v2703_v33, %v2500_v45  ;;  %v2219_v45 = vpop.f32.mrf.mxu0 }
 0x465   : > { %v3128_v59 = vpack.c.bf16 %v3092_v22, %v3092_v22  ;;  %v2788_v39 = vadd.f32 %v4088_v12, %v2748_v58 }
 0x466   : > { %v2705_v53 = vpop.f32.mrf.mxu2  ;;  %v2985_v3 = vpop.f32.mrf.mxu3 }
 0x467   : > { %3165 = vst.msk [vmem:[%s4202_s13 + $0x2c] sm:$0xf] %vm3153_vm5, %v3128_v59  ;;  %v2986_v46 = vadd.f32 %v4190_v0, %v2985_v3  ;;  %v2824_v23 = vmax.f32 %v2788_v39, 0.0  ;;  %v2257_v3 = vadd.f32 %v2219_v45, %v2009_v18  ;;  %v2873_v45 = vld [vmem:[%s3545_s28 + $0xd3] sm:$0xff] }
 0x468   : > { %v2457_v40 = vpop.f32.mrf.mxu1 }
 0x469   : > { %v3057_v21 = vadd.f32 %v2986_v46, %v2861_v31  ;;  %v2501_v47 = vadd.f32 %v2457_v40, %v2253_v7 }
 0x46b   : > { %v3093_v16 = vmax.f32 %v3057_v21, 0.0  ;;  %v2749_v29 = vadd.f32 %v2705_v53, %v2501_v47  ;;  %v2865_v53 = vld [vmem:[%s3545_s28 + $0x93] sm:$0xff] }
 0x46d   : > { %v3129_v32 = vpack.c.bf16 %v3093_v16, %v3093_v16  ;;  %v2789_v15 = vadd.f32 %v4088_v12, %v2749_v29 }
 0x46e   : > { %v2708_v56 = vpop.f32.mrf.mxu2  ;;  %v2987_v2 = vpop.f32.mrf.mxu3 }
 0x46f   : > { %3166 = vst.msk [vmem:[%s4202_s13 + $0x30] sm:$0xf] %vm3153_vm5, %v3129_v32  ;;  %v2825_v36 = vmax.f32 %v2789_v15, 0.0  ;;  %v2988_v1 = vadd.f32 %v4190_v0, %v2987_v2  ;;  %v2866_v15 = vld [vmem:[%s3545_s28 + $0x9b] sm:$0xff] }
 0x470   : > { %v2460_v4 = vpop.f32.mrf.mxu1 }
 0x471   : > { %v2845_v27 = vpack.c.bf16 %v2825_v36, %v2824_v23  ;;  %v3058_v26 = vadd.f32 %v2988_v1, %v2862_v38  ;;  %v2502_v62 = vadd.f32 %v2460_v4, %v2254_v55  ;;  %v2867_v55 = vld [vmem:[%s3545_s28 + $0xa3] sm:$0xff] }
 0x473   : > { %v3094_v61 = vmax.f32 %v3058_v26, 0.0  ;;  %3462 = vmatmul.msk.bf16.gmra.mxu3 %vm551_vm2, %v2845_v27  ;;  %v2750_v44 = vadd.f32 %v2708_v56, %v2502_v62 }
 0x475   : > { %v3130_v51 = vpack.c.bf16 %v3094_v61, %v3094_v61  ;;  %v2790_v11 = vadd.f32 %v4088_v12, %v2750_v44  ;;  %v2869_v44 = vld [vmem:[%s3545_s28 + $0xb3] sm:$0xff] }
 0x476   : > { %v2710_v20 = vpop.f32.mrf.mxu2  ;;  %v2990_v5 = vpop.f32.mrf.mxu3 }
 0x477   : > { %3167 = vst.msk [vmem:[%s4202_s13 + $0x34] sm:$0xf] %vm3153_vm5, %v3130_v51  ;;  %v2991_v28 = vadd.f32 %v4190_v0, %v2990_v5  ;;  %v2826_v33 = vmax.f32 %v2790_v11, 0.0  ;;  %v2870_v11 = vld [vmem:[%s3545_s28 + $0xbb] sm:$0xff] }
 0x478   : > { %v2462_v14 = vpop.f32.mrf.mxu1 }
 0x479   : > { %v3059_v9 = vadd.f32 %v2991_v28, %v2863_v54  ;;  %v2503_v35 = vadd.f32 %v2462_v14, %v2255_v60 }
 0x47b   : > { %v3095_v37 = vmax.f32 %v3059_v9, 0.0  ;;  %v2751_v42 = vadd.f32 %v2710_v20, %v2503_v35 }
 0x47d   : > { %v3131_v50 = vpack.c.bf16 %v3095_v37, %v3095_v37  ;;  %v2791_v19 = vadd.f32 %v4088_v12, %v2751_v42 }
 0x47e   : > { %v2992_v48 = vpop.f32.mrf.mxu3  ;;  %v2713_v6 = vpop.f32.mrf.mxu2 }
 0x47f   : > { %3168 = vst.msk [vmem:[%s4202_s13 + $0x38] sm:$0xf] %vm3153_vm5, %v3131_v50  ;;  %v2827_v57 = vmax.f32 %v2791_v19, 0.0  ;;  %v2993_v63 = vadd.f32 %v4190_v0, %v2992_v48  ;;  %v2871_v48 = vld [vmem:[%s3545_s28 + $0xc3] sm:$0xff] }
 0x480   : > { %v2465_v34 = vpop.f32.mrf.mxu1 }
 0x481   : > { %v2846_v41 = vpack.c.bf16 %v2827_v57, %v2826_v33  ;;  %v3060_v13 = vadd.f32 %v2993_v63, %v2864_v30  ;;  %v2504_v22 = vadd.f32 %v2465_v34, %v2256_v25 }
 0x483   : > { %v3096_v8 = vmax.f32 %v3060_v13, 0.0  ;;  %3463 = vmatmul.msk.bf16.gmra.mxu3 %vm551_vm2, %v2846_v41  ;;  %v2752_v7 = vadd.f32 %v2713_v6, %v2504_v22 }
 0x485   : > { %v3132_v59 = vpack.c.bf16 %v3096_v8, %v3096_v8  ;;  %v2792_v39 = vadd.f32 %v4088_v12, %v2752_v7 }
 0x486   : > { %v2995_v31 = vpop.f32.mrf.mxu3  ;;  %v2715_v47 = vpop.f32.mrf.mxu2 }
 0x487   : > { %3169 = vst.msk [vmem:[%s4202_s13 + $0x3c] sm:$0xf] %vm3153_vm5, %v3132_v59  ;;  %v2996_v58 = vadd.f32 %v4190_v0, %v2995_v31  ;;  %v2828_v38 = vmax.f32 %v2792_v39, 0.0 }
 0x488   : > { %v2467_v46 = vpop.f32.mrf.mxu1 }
 0x489   : > { %v3061_v40 = vadd.f32 %v2996_v58, %v2865_v53  ;;  %v2505_v21 = vadd.f32 %v2467_v46, %v2257_v3  ;;  %v2874_v3 = vld [vmem:[%s3545_s28 + $0xdb] sm:$0xff] }
 0x48b   : > { %v3097_v16 = vmax.f32 %v3061_v40, 0.0  ;;  %v2753_v43 = vadd.f32 %v2715_v47, %v2505_v21  ;;  %v2875_v47 = vld [vmem:[%s3545_s28 + $0xe3] sm:$0xff] }
 0x48d   : > { %v3133_v29 = vpack.c.bf16 %v3097_v16, %v3097_v16  ;;  %v2793_v32 = vadd.f32 %v4088_v12, %v2753_v43 }
 0x48e   : > { %v2997_v56 = vpop.f32.mrf.mxu3 }
 0x48f   : > { %3170 = vst.msk [vmem:[%s4202_s13 + $0x40] sm:$0xf] %vm3153_vm5, %v3133_v29  ;;  %v2829_v2 = vmax.f32 %v2793_v32, 0.0  ;;  %v2998_v23 = vadd.f32 %v4190_v0, %v2997_v56 }
 0x491   : > { %v2847_v36 = vpack.c.bf16 %v2829_v2, %v2828_v38  ;;  %v3062_v1 = vadd.f32 %v2998_v23, %v2866_v15  ;;  %v2876_v15 = vld [vmem:[%s3545_s28 + $0xeb] sm:$0xff] }
 0x493   : > { %v3098_v49 = vmax.f32 %v3062_v1, 0.0  ;;  %3464 = vmatmul.msk.bf16.gmra.mxu3 %vm551_vm2, %v2847_v36  ;;  %v2877_v1 = vld [vmem:[%s3545_s28 + $0xf3] sm:$0xff] }
 0x495   : > { %v3134_v4 = vpack.c.bf16 %v3098_v49, %v3098_v49 }
 0x496   : > { %v3000_v12 = vpop.f32.mrf.mxu3 }
 0x497   : > { %3171 = vst.msk [vmem:[%s4202_s13 + $0x44] sm:$0xf] %vm3153_vm5, %v3134_v4  ;;  %v3001_v27 = vadd.f32 %v4190_v0, %v3000_v12 }
 0x499   : > { %v3063_v26 = vadd.f32 %v3001_v27, %v2867_v55 }
 0x49b   : > { %v3099_v61 = vmax.f32 %v3063_v26, 0.0  ;;  %v2878_v26 = vld [vmem:[%s3545_s28 + $0xfb] sm:$0xff] }
 0x49d   : > { %v3135_v62 = vpack.c.bf16 %v3099_v61, %v3099_v61 }
 0x49e   : > { %v3002_v51 = vpop.f32.mrf.mxu3 }
 0x49f   : > { %3172 = vst.msk [vmem:[%s4202_s13 + $0x48] sm:$0xf] %vm3153_vm5, %v3135_v62  ;;  %v3003_v20 = vadd.f32 %v4190_v0, %v3002_v51 }
 0x4a1   : > { %v3064_v54 = vadd.f32 %v3003_v20, %v2868_v24 }
 0x4a3   : > { %v3100_v5 = vmax.f32 %v3064_v54, 0.0  ;;  %v2879_v54 = vld [vmem:[%s3545_s28 + $0x103] sm:$0xff] }
 0x4a5   : > { %v3136_v60 = vpack.c.bf16 %v3100_v5, %v3100_v5 }
 0x4a6   : > { %v3005_v28 = vpop.f32.mrf.mxu3 }
 0x4a7   : > { %3173 = vst.msk [vmem:[%s4202_s13 + $0x4c] sm:$0xf] %vm3153_vm5, %v3136_v60  ;;  %v3006_v14 = vadd.f32 %v4190_v0, %v3005_v28 }
 0x4a9   : > { %v3065_v9 = vadd.f32 %v3006_v14, %v2869_v44 }
 0x4ab   : > { %v3101_v35 = vmax.f32 %v3065_v9, 0.0  ;;  %v2880_v9 = vld [vmem:[%s3545_s28 + $0x10b] sm:$0xff] }
 0x4ad   : > { %v3137_v10 = vpack.c.bf16 %v3101_v35, %v3101_v35 }
 0x4ae   : > { %v3007_v37 = vpop.f32.mrf.mxu3 }
 0x4af   : > { %3174 = vst.msk [vmem:[%s4202_s13 + $0x50] sm:$0xf] %vm3153_vm5, %v3137_v10  ;;  %v3008_v42 = vadd.f32 %v4190_v0, %v3007_v37 }
 0x4b1   : > { %v3066_v50 = vadd.f32 %v3008_v42, %v2870_v11 }
 0x4b3   : > { %v3102_v19 = vmax.f32 %v3066_v50, 0.0  ;;  %v2881_v50 = vld [vmem:[%s3545_s28 + $0x113] sm:$0xff] }
 0x4b5   : > { %v3138_v30 = vpack.c.bf16 %v3102_v19, %v3102_v19 }
 0x4b6   : > { %v3010_v33 = vpop.f32.mrf.mxu3 }
 0x4b7   : > { %3175 = vst.msk [vmem:[%s4202_s13 + $0x54] sm:$0xf] %vm3153_vm5, %v3138_v30  ;;  %v3011_v57 = vadd.f32 %v4190_v0, %v3010_v33 }
 0x4b9   : > { %v3067_v63 = vadd.f32 %v3011_v57, %v2871_v48 }
 0x4bb   : > { %v3103_v6 = vmax.f32 %v3067_v63, 0.0  ;;  %v2882_v63 = vld [vmem:[%s3545_s28 + $0x11b] sm:$0xff] }
 0x4bd   : > { %v3139_v34 = vpack.c.bf16 %v3103_v6, %v3103_v6 }
 0x4be   : > { %v3012_v25 = vpop.f32.mrf.mxu3 }
 0x4bf   : > { %3176 = vst.msk [vmem:[%s4202_s13 + $0x58] sm:$0xf] %vm3153_vm5, %v3139_v34  ;;  %v3013_v41 = vadd.f32 %v4190_v0, %v3012_v25 }
 0x4c1   : > { %v3068_v13 = vadd.f32 %v3013_v41, %v2872_v52 }
 0x4c3   : > { %v3104_v8 = vmax.f32 %v3068_v13, 0.0  ;;  %v2883_v13 = vld [vmem:[%s3545_s28 + $0x123] sm:$0xff] }
 0x4c5   : > { %v3140_v22 = vpack.c.bf16 %v3104_v8, %v3104_v8 }
 0x4c6   : > { %v3015_v17 = vpop.f32.mrf.mxu3 }
 0x4c7   : > { %3177 = vst.msk [vmem:[%s4202_s13 + $0x5c] sm:$0xf] %vm3153_vm5, %v3140_v22  ;;  %v3016_v18 = vadd.f32 %v4190_v0, %v3015_v17 }
 0x4c9   : > { %v3069_v59 = vadd.f32 %v3016_v18, %v2873_v45 }
 0x4cb   : > { %v3105_v53 = vmax.f32 %v3069_v59, 0.0  ;;  %v2884_v59 = vld [vmem:[%s3545_s28 + $0x12b] sm:$0xff] }
 0x4cd   : > { %v3141_v31 = vpack.c.bf16 %v3105_v53, %v3105_v53 }
 0x4ce   : > { %v3017_v7 = vpop.f32.mrf.mxu3 }
 0x4cf   : > { %3178 = vst.msk [vmem:[%s4202_s13 + $0x60] sm:$0xf] %vm3153_vm5, %v3141_v31  ;;  %v3018_v58 = vadd.f32 %v4190_v0, %v3017_v7 }
 0x4d1   : > { %v3070_v46 = vadd.f32 %v3018_v58, %v2874_v3 }
 0x4d3   : > { %v3106_v40 = vmax.f32 %v3070_v46, 0.0 }
 0x4d5   : > { %v3142_v21 = vpack.c.bf16 %v3106_v40, %v3106_v40 }
 0x4d6   : > { %v3020_v39 = vpop.f32.mrf.mxu3 }
 0x4d7   : > { %3179 = vst.msk [vmem:[%s4202_s13 + $0x64] sm:$0xf] %vm3153_vm5, %v3142_v21  ;;  %v3021_v16 = vadd.f32 %v4190_v0, %v3020_v39 }
 0x4d9   : > { %v3071_v43 = vadd.f32 %v3021_v16, %v2875_v47 }
 0x4db   : > { %v3107_v29 = vmax.f32 %v3071_v43, 0.0 }
 0x4dd   : > { %v3143_v32 = vpack.c.bf16 %v3107_v29, %v3107_v29 }
 0x4de   : > { %v3022_v56 = vpop.f32.mrf.mxu3 }
 0x4df   : > { %3180 = vst.msk [vmem:[%s4202_s13 + $0x68] sm:$0xf] %vm3153_vm5, %v3143_v32  ;;  %v3023_v38 = vadd.f32 %v4190_v0, %v3022_v56 }
 0x4e1   : > { %v3072_v2 = vadd.f32 %v3023_v38, %v2876_v15 }
 0x4e3   : > { %v3108_v23 = vmax.f32 %v3072_v2, 0.0 }
 0x4e5   : > { %v3144_v36 = vpack.c.bf16 %v3108_v23, %v3108_v23 }
 0x4e6   : > { %v3025_v49 = vpop.f32.mrf.mxu3 }
 0x4e7   : > { %3181 = vst.msk [vmem:[%s4202_s13 + $0x6c] sm:$0xf] %vm3153_vm5, %v3144_v36  ;;  %v3026_v4 = vadd.f32 %v4190_v0, %v3025_v49 }
 0x4e9   : > { %v3073_v55 = vadd.f32 %v3026_v4, %v2877_v1 }
 0x4eb   : > { %v3109_v12 = vmax.f32 %v3073_v55, 0.0 }
 0x4ed   : > { %v3145_v27 = vpack.c.bf16 %v3109_v12, %v3109_v12 }
 0x4ee   : > { %v3027_v61 = vpop.f32.mrf.mxu3 }
 0x4ef   : > { %3182 = vst.msk [vmem:[%s4202_s13 + $0x70] sm:$0xf] %vm3153_vm5, %v3145_v27  ;;  %v3028_v62 = vadd.f32 %v4190_v0, %v3027_v61 }
 0x4f1   : > { %v3074_v24 = vadd.f32 %v3028_v62, %v2878_v26 }
 0x4f3   : > { %v3110_v51 = vmax.f32 %v3074_v24, 0.0 }
 0x4f5   : > { %v3146_v20 = vpack.c.bf16 %v3110_v51, %v3110_v51 }
 0x4f6   : > { %v3030_v5 = vpop.f32.mrf.mxu3 }
 0x4f7   : > { %3183 = vst.msk [vmem:[%s4202_s13 + $0x74] sm:$0xf] %vm3153_vm5, %v3146_v20  ;;  %v3031_v60 = vadd.f32 %v4190_v0, %v3030_v5 }
 0x4f9   : > { %v3075_v44 = vadd.f32 %v3031_v60, %v2879_v54 }
 0x4fb   : > { %v3111_v28 = vmax.f32 %v3075_v44, 0.0 }
 0x4fd   : > { %v3147_v14 = vpack.c.bf16 %v3111_v28, %v3111_v28 }
 0x4fe   : > { %v3032_v35 = vpop.f32.mrf.mxu3 }
 0x4ff   : > { %3184 = vst.msk [vmem:[%s4202_s13 + $0x78] sm:$0xf] %vm3153_vm5, %v3147_v14  ;;  %v3033_v10 = vadd.f32 %v4190_v0, %v3032_v35 }
 0x501   : > { %v3076_v11 = vadd.f32 %v3033_v10, %v2880_v9 }
 0x503   : > { %v3112_v37 = vmax.f32 %v3076_v11, 0.0 }
 0x505   : > { %v3148_v42 = vpack.c.bf16 %v3112_v37, %v3112_v37 }
 0x506   : > { %v3035_v19 = vpop.f32.mrf.mxu3 }
 0x507   : > { %3185 = vst.msk [vmem:[%s4202_s13 + $0x7c] sm:$0xf] %vm3153_vm5, %v3148_v42  ;;  %v3036_v30 = vadd.f32 %v4190_v0, %v3035_v19 }
 0x509   : > { %v3077_v48 = vadd.f32 %v3036_v30, %v2881_v50 }
 0x50b   : > { %v3113_v33 = vmax.f32 %v3077_v48, 0.0 }
 0x50d   : > { %v3149_v57 = vpack.c.bf16 %v3113_v33, %v3113_v33 }
 0x50e   : > { %v3037_v6 = vpop.f32.mrf.mxu3 }
 0x50f   : > { %3186 = vst.msk [vmem:[%s4202_s13 + $0x80] sm:$0xf] %vm3153_vm5, %v3149_v57  ;;  %v3038_v34 = vadd.f32 %v4190_v0, %v3037_v6 }
 0x511   : > { %v3078_v52 = vadd.f32 %v3038_v34, %v2882_v63 }
 0x513   : > { %v3114_v25 = vmax.f32 %v3078_v52, 0.0 }
 0x515   : > { %v3150_v41 = vpack.c.bf16 %v3114_v25, %v3114_v25 }
 0x516   : > { %v3040_v8 = vpop.f32.mrf.mxu3 }
 0x517   : > { %3187 = vst.msk [vmem:[%s4202_s13 + $0x84] sm:$0xf] %vm3153_vm5, %v3150_v41  ;;  %v3041_v22 = vadd.f32 %v4190_v0, %v3040_v8 }
 0x519   : > { %v3079_v45 = vadd.f32 %v3041_v22, %v2883_v13 }
 0x51b   : > { %v3115_v17 = vmax.f32 %v3079_v45, 0.0 }
 0x51d   : > { %v3151_v18 = vpack.c.bf16 %v3115_v17, %v3115_v17 }
 0x51e   : > { %v3042_v53 = vpop.f32.mrf.mxu3 }
 0x51f   : > { %3188 = vst.msk [vmem:[%s4202_s13 + $0x88] sm:$0xf] %vm3153_vm5, %v3151_v18  ;;  %v3043_v31 = vadd.f32 %v4190_v0, %v3042_v53 }
 0x521   : > { %v3080_v3 = vadd.f32 %v3043_v31, %v2884_v59 }
 0x523   : > { %v3116_v7 = vmax.f32 %v3080_v3, 0.0 }
 0x525   : > { %v3152_v58 = vpack.c.bf16 %v3116_v7, %v3116_v7 }
 0x527   : > { %3189 = vst.msk [vmem:[%s4202_s13 + $0x8c] sm:$0xf] %vm3153_vm5, %v3152_v58 }
 0x528 PF: > { %s16_s21 = sadd.s32 1, %s3490_s21  }
 0x529   : > { %p13_p4 = scmp.ge.s32.totalorder %s16_s21, 4  }
 0x52b   :  { %15 = sbr.rel (!%p13_p4) target bundleno = 1 (0x1), region = 82 }

</bundles_post_ra>
